<compile_context>
chip_gen: v7x
topology: tpu7x:2x2x1
jax: 0.10.0
libtpu: 0.0.40
codegen_flags: <defaults>
</compile_context>

<pallas_src>
import functools
import math

import numpy as np
import jax
import jax.numpy as jnp
from jax.experimental import pallas as pl
from jax.experimental.pallas import tpu as pltpu

# ----------------------------- small-model config ------------------------------
IN_FEATURES = 16      # in_features / node_n
KERNEL_SIZE = 4       # self.kernel_size
D_MODEL     = 32      # GCN hidden_feature
H           = 2       # attention heads
DCT_N       = 4       # self.dct_n
NUM_STAGE   = 2       # GCN residual blocks
D_FF        = 32      # transformer FF dim
N_LAYERS    = 2       # encoder depth N
D_ATT       = 32      # d_att_model
CONV_K      = 11      # inter_conv kernel size (fixed in the module)

INPUT_N  = 40         # must satisfy: INPUT_N - 3*(CONV_K-1) >= KERNEL_SIZE + OUTPUT_N
OUTPUT_N = 6
BATCH    = 2
SEQ_LEN  = INPUT_N + OUTPUT_N
SUBSEQ   = KERNEL_SIZE + OUTPUT_N

LN_EPS   = 1e-6
BN_SCALE = 1.0 / math.sqrt(1.0 + 1e-5)   # eval-mode BatchNorm1d with init running stats


# ----------------------------- helpers -----------------------------------------
def _round_up(x, m):
    return (x + m - 1) // m * m


def get_dct_matrix(n):
    dct_m = np.eye(n)
    for k in np.arange(n):
        for i in np.arange(n):
            w = np.sqrt(2 / n)
            if k == 0:
                w = np.sqrt(1 / n)
            dct_m[k, i] = w * np.cos(np.pi * (i + 1 / 2) * k / n)
    idct_m = np.linalg.inv(dct_m)
    return dct_m, idct_m


def src_reformat(src, input_n, substract_last_pose=False):
    # TODO(synk): original src_reformat helper unavailable; reconstructed from usage
    # (keep the first input_n frames, last_pose = final kept frame).
    src = src[:, :input_n]
    last_pose = src[:, -1:]
    if substract_last_pose:
        src = src - last_pose
    return src, last_pose


class _Packer:
    """Packs many small (r, c) f32 params into one flat slab; row offsets 8-aligned."""

    def __init__(self, width):
        self.width = width
        self.rows = 0
        self.layout = {}
        self.items = []

    def add(self, name, arr):
        arr = np.asarray(arr, np.float32)
        assert arr.ndim == 2 and arr.shape[1] <= self.width, (name, arr.shape)
        off = self.rows
        self.layout[name] = (off, int(arr.shape[0]), int(arr.shape[1]))
        self.items.append((off, arr))
        self.rows += _round_up(arr.shape[0], 8)

    def build(self):
        total = max(_round_up(self.rows, 8), 8)
        slab = np.zeros((total, self.width), np.float32)
        for off, arr in self.items:
            slab[off:off + arr.shape[0], :arr.shape[1]] = arr
        return jnp.asarray(slab), self.layout


def _is_single_tensorcore_chip():
    """True for single-TensorCore generations (v5e / v6e) -> fold batch into one grid step."""
    try:
        kind = jax.devices()[0].device_kind.lower()
    except Exception:
        return False
    return any(tag in kind for tag in ("v5 lite", "v5e", "v5litepod", "v6 lite", "v6e"))


# ----------------------------- fused forward kernel ----------------------------
def _fused_forward_kernel(src_ref, w_ref, c_ref, out_ref, attn_scr, *,
                          nb, wlay, clay, n_layers, n_heads, d_att, input_n,
                          dct_n, num_stage, conv_k, ln_eps, bn_scale):
    f32 = jnp.float32
    S = input_n
    dk = d_att // n_heads
    att_scale = 1.0 / math.sqrt(dk)

    def W(name):                                  # encoder-slab fetch (static slice)
        off, r, c = wlay[name]
        return w_ref[off:off + r, :c]

    def C(name):                                  # const/GCN-slab fetch (static slice)
        off, r, c = clay[name]
        return c_ref[off:off + r, :c]

    def layer_norm(h, g, b):
        # annotated-transformer LayerNorm: unbiased std, eps added to the std
        mean = jnp.mean(h, axis=-1, keepdims=True)
        d = h - mean
        var = jnp.sum(d * d, axis=-1, keepdims=True) * (1.0 / (h.shape[-1] - 1))
        inv = pl.reciprocal(jnp.sqrt(var) + ln_eps, approx=True)
        return g * (d * inv) + b

    # ---------------- init_lin on the whole (nb*S, F) block (batch on sublanes) --------
    x = jnp.dot(src_ref[...], W("init_w"), preferred_element_type=f32) + W("init_b")

    # ---------------- transformer encoder (pre-norm, dropout = identity, no mask) ------
    for l in range(n_layers):
        h = layer_norm(x, W(f"ln1_g{l}"), W(f"ln1_b{l}"))
        qkv = jnp.dot(h, W(f"wqkv{l}"), preferred_element_type=f32) + W(f"bqkv{l}")
        for b in range(nb):
            r0 = b * S
            for hh in range(n_heads):
                q = qkv[r0:r0 + S, hh * dk:(hh + 1) * dk]
                k = qkv[r0:r0 + S, d_att + hh * dk:d_att + (hh + 1) * dk]
                v = qkv[r0:r0 + S, 2 * d_att + hh * dk:2 * d_att + (hh + 1) * dk]
                s = jax.lax.dot_general(q, k, (((1,), (1,)), ((), ())),
                                        preferred_element_type=f32) * att_scale
                s = s - jnp.max(s, axis=-1, keepdims=True)
                p = jnp.exp(s)
                p = p * pl.reciprocal(jnp.sum(p, axis=-1, keepdims=True), approx=True)
                # head outputs land in lane slices of the scratch -> one fused W_o matmul
                attn_scr[r0:r0 + S, hh * dk:(hh + 1) * dk] = jnp.dot(
                    p, v, preferred_element_type=f32)
        x = x + jnp.dot(attn_scr[...], W(f"wo{l}"),
                        preferred_element_type=f32) + W(f"bo{l}")
        h = layer_norm(x, W(f"ln2_g{l}"), W(f"ln2_b{l}"))
        h1 = jnp.maximum(
            jnp.dot(h, W(f"ffw1{l}"), preferred_element_type=f32) + W(f"ffb1{l}"), 0.0)
        x = x + jnp.dot(h1, W(f"ffw2{l}"), preferred_element_type=f32) + W(f"ffb2{l}")
    x = layer_norm(x, W("norm_g"), W("norm_b"))           # (nb*S, D)

    # ---------------- conv stack as banded-shift matmuls (all MXU, no lane shifts) -----
    def conv_layer(z_in, r_name, w_name, leaky):
        r_off, r_rows, l_in = clay[r_name]
        w_off, w_rows, n_out = clay[w_name]
        lout_pad = r_rows // conv_k
        cin = w_rows // conv_k
        acc = jnp.zeros((lout_pad, n_out), f32)
        for k in range(conv_k):
            rk = c_ref[r_off + k * lout_pad:r_off + (k + 1) * lout_pad, :l_in]
            wk = c_ref[w_off + k * cin:w_off + (k + 1) * cin, :n_out]
            g = jnp.dot(rk, z_in, preferred_element_type=f32)          # shifted window
            acc = acc + jnp.dot(g, wk, preferred_element_type=f32)     # channel mix
        if leaky:
            acc = jnp.where(acc >= 0.0, acc, 0.1 * acc)
        return acc

    # ---------------- GCN graph conv in transposed (feature-major) layout --------------
    def gconv_T(zT, w_name, att_name, b_name):
        sT = jnp.dot(C(w_name), zT, preferred_element_type=f32)
        return jnp.dot(sT, C(att_name), preferred_element_type=f32) + C(b_name)

    for b in range(nb):
        r0 = b * S
        xb = x[r0:r0 + S, :]                                # (S, D) encoder output
        srcb = src_ref[r0:r0 + S, :]                        # (S, F) raw source window

        y1 = conv_layer(xb, "R1", "W1taps", True)
        y2 = conv_layer(y1, "R2", "W2taps", True)
        y3 = conv_layer(y2, "R3", "W3taps", False)          # (l3_pad, F), tail rows zero

        # DCT of (conv output + src residual window) and of the index_select'ed source
        dct_att = (jnp.dot(C("dct_conv"), y3, preferred_element_type=f32)
                   + jnp.dot(C("dct_win"), srcb, preferred_element_type=f32))   # (dct_n, F)
        dct_src = jnp.dot(C("dct_idx"), srcb, preferred_element_type=f32)       # (dct_n, F)

        # gc1 weight split -> the [dct_src | dct_att] concat never materializes
        sT = (jnp.dot(C("gc1_wTs"), dct_src, preferred_element_type=f32)
              + jnp.dot(C("gc1_wTa"), dct_att, preferred_element_type=f32))
        yT = jnp.dot(sT, C("gc1_attT"), preferred_element_type=f32) + C("gc1_b")
        yT = jnp.tanh(yT * bn_scale)
        for j in range(num_stage):
            y_res = yT
            yT = jnp.tanh(gconv_T(yT, f"gca_wT{j}", f"gca_attT{j}", f"gca_b{j}") * bn_scale)
            yT = jnp.tanh(gconv_T(yT, f"gcb_wT{j}", f"gcb_attT{j}", f"gcb_b{j}") * bn_scale)
            yT = yT + y_res
        y7T = gconv_T(yT, "gc7_wT", "gc7_attT", "gc7_b")    # (2*dct_n, F)

        lowT = y7T[:dct_n, :] + dct_src                     # GCN input residual (low coeffs)
        out_ref[b] = jnp.dot(C("idct"), lowT, preferred_element_type=f32)   # (subseq, F)


# ----------------------------- parameter packing --------------------------------
def pack_params(params, input_n=INPUT_N, output_n=OUTPUT_N):
    kernel_size, dct_n, K = KERNEL_SIZE, DCT_N, CONV_K
    subseq = kernel_size + output_n
    l1 = input_n - (K - 1)
    l2 = l1 - (K - 1)
    l3 = l2 - (K - 1)
    assert l3 >= subseq, "input_n too small for the 3-layer conv stack"
    l1p, l2p, l3p = _round_up(l1, 8), _round_up(l2, 8), _round_up(l3, 8)

    # --- slab 1: init_lin + transformer encoder (lane-dense, 128 wide) ---
    wp = _Packer(128)
    wp.add("init_w", params["init_w"])
    wp.add("init_b", params["init_b"])
    for l, e in enumerate(params["enc"]):
        for nm in ("ln1_g", "ln1_b", "wqkv", "bqkv", "wo", "bo",
                   "ln2_g", "ln2_b", "ffw1", "ffb1", "ffw2", "ffb2"):
            wp.add(f"{nm}{l}", e[nm])
    wp.add("norm_g", np.ones((1, D_ATT), np.float32))
    wp.add("norm_b", np.zeros((1, D_ATT), np.float32))
    wslab, wlay = wp.build()

    # --- slab 2: conv shift/tap matrices + DCT matrices + GCN (transposed) weights ---
    cp = _Packer(max(input_n, D_MODEL))

    def shift_stack(l_in, l_out, l_out_pad):
        r = np.zeros((K * l_out_pad, l_in), np.float32)
        for k in range(K):
            for j in range(l_out):
                r[k * l_out_pad + j, j + k] = 1.0
        return r

    cp.add("R1", shift_stack(input_n, l1, l1p))
    cp.add("R2", shift_stack(l1p, l2, l2p))
    cp.add("R3", shift_stack(l2p, l3, l3p))

    def taps(wt):                 # torch Conv1d weight (C_out, C_in, K) -> (K*C_in, C_out)
        co, ci, _ = wt.shape
        out = np.zeros((K * ci, co), np.float32)
        for k in range(K):
            out[k * ci:(k + 1) * ci, :] = wt[:, :, k].T
        return out

    cp.add("W1taps", taps(params["conv1_w"]))
    cp.add("W2taps", taps(params["conv2_w"]))
    cp.add("W3taps", taps(params["conv3_w"]))

    dct_m, idct_m = get_dct_matrix(subseq)
    dct_sub = dct_m[:dct_n].astype(np.float32)                      # (dct_n, subseq)
    dct_conv = np.zeros((dct_n, l3p), np.float32)                   # applies to conv output
    dct_conv[:, l3 - subseq:l3] = dct_sub
    dct_win = np.zeros((dct_n, input_n), np.float32)                # src residual window
    dct_win[:, input_n - subseq:] = dct_sub
    # input_gcn = src[:, idx], idx = last kernel_size frames + last frame x output_n,
    # folded into an "effective DCT" applied to the raw (input_n, F) source block.
    dct_idx = np.zeros((dct_n, input_n), np.float32)
    dct_idx[:, input_n - kernel_size:] = dct_sub[:, :kernel_size]
    dct_idx[:, input_n - 1] += dct_sub[:, kernel_size:].sum(axis=1)
    cp.add("dct_conv", dct_conv)
    cp.add("dct_win", dct_win)
    cp.add("dct_idx", dct_idx)
    cp.add("idct", idct_m[:, :dct_n].astype(np.float32))            # (subseq, dct_n)

    g = params["gcn"]
    cp.add("gc1_wTs", g["gc1_w"][:dct_n].T)
    cp.add("gc1_wTa", g["gc1_w"][dct_n:].T)
    cp.add("gc1_attT", g["gc1_att"].T)
    cp.add("gc1_b", g["gc1_b"][:, None])
    for j, st in enumerate(g["stages"]):
        cp.add(f"gca_wT{j}", st["a_w"].T)
        cp.add(f"gca_attT{j}", st["a_att"].T)
        cp.add(f"gca_b{j}", st["a_b"][:, None])
        cp.add(f"gcb_wT{j}", st["b_w"].T)
        cp.add(f"gcb_attT{j}", st["b_att"].T)
        cp.add(f"gcb_b{j}", st["b_b"][:, None])
    cp.add("gc7_wT", g["gc7_w"].T)
    cp.add("gc7_attT", g["gc7_att"].T)
    cp.add("gc7_b", g["gc7_b"][:, None])
    cslab, clay = cp.build()

    return dict(wslab=wslab, wlay=wlay, cslab=cslab, clay=clay,
                input_n=input_n, output_n=output_n)


# ----------------------------- forward (itera = 1) ------------------------------
def forward(packed, src, output_n=OUTPUT_N, input_n=INPUT_N, itera=1, fold_batch=None):
    assert packed["input_n"] == input_n and packed["output_n"] == output_n
    wslab, wlay = packed["wslab"], packed["wlay"]
    cslab, clay = packed["cslab"], packed["clay"]
    subseq = KERNEL_SIZE + output_n

    B, _, n_feat = src.shape
    src, _last_pose = src_reformat(src, input_n, substract_last_pose=False)
    src2d = jnp.asarray(src, jnp.float32).reshape(B * input_n, n_feat)

    if fold_batch is None:
        fold_batch = _is_single_tensorcore_chip()
    nb = B if fold_batch else 1

    kern = functools.partial(
        _fused_forward_kernel,
        nb=nb, wlay=wlay, clay=clay,
        n_layers=N_LAYERS, n_heads=H, d_att=D_ATT, input_n=input_n,
        dct_n=DCT_N, num_stage=NUM_STAGE, conv_k=CONV_K,
        ln_eps=LN_EPS, bn_scale=BN_SCALE)

    out = pl.pallas_call(
        kern,
        out_shape=jax.ShapeDtypeStruct((B, subseq, n_feat), jnp.float32),
        grid=(B // nb,),
        in_specs=[
            pl.BlockSpec((nb * input_n, n_feat), lambda i: (i, 0)),
            pl.BlockSpec(wslab.shape, lambda i: (0, 0)),
            pl.BlockSpec(cslab.shape, lambda i: (0, 0)),
        ],
        out_specs=pl.BlockSpec((nb, subseq, n_feat), lambda i: (i, 0, 0)),
        scratch_shapes=[pltpu.VMEM((nb * input_n, D_ATT), jnp.float32)],
        compiler_params=pltpu.CompilerParams(
            dimension_semantics=("arbitrary",) if fold_batch else ("parallel",)),
    )(src2d, wslab, cslab)

    outputs = [out[:, :, None, :]]                          # unsqueeze(2)
    # TODO(synk): itera > 1 autoregressive refinement loop (uses pos_encoding) not implemented;
    # the default call path is itera=1.
    return jnp.concatenate(outputs, axis=1)


# ----------------------------- deterministic params -----------------------------
def init_params(key):
    keys = iter(jax.random.split(key, 64))

    def w(shape, scale=0.1):
        return np.asarray(jax.random.normal(next(keys), shape, dtype=jnp.float32)) * scale

    def zeros(shape):
        return np.zeros(shape, np.float32)

    def ones(shape):
        return np.ones(shape, np.float32)

    enc = []
    for _ in range(N_LAYERS):
        wq, wk, wv = w((D_ATT, D_ATT)), w((D_ATT, D_ATT)), w((D_ATT, D_ATT))
        wo = w((D_ATT, D_ATT))
        enc.append(dict(
            ln1_g=ones((1, D_ATT)), ln1_b=zeros((1, D_ATT)),
            wqkv=np.concatenate([wq, wk, wv], axis=1), bqkv=zeros((1, 3 * D_ATT)),
            wo=wo, bo=zeros((1, D_ATT)),
            ln2_g=ones((1, D_ATT)), ln2_b=zeros((1, D_ATT)),
            ffw1=w((D_ATT, D_FF)), ffb1=zeros((1, D_FF)),
            ffw2=w((D_FF, D_ATT)), ffb2=zeros((1, D_ATT)),
        ))

    stages = []
    for _ in range(NUM_STAGE):
        stages.append(dict(
            a_att=w((IN_FEATURES, IN_FEATURES)), a_w=w((D_MODEL, D_MODEL)),
            a_b=zeros((D_MODEL,)),
            b_att=w((IN_FEATURES, IN_FEATURES)), b_w=w((D_MODEL, D_MODEL)),
            b_b=zeros((D_MODEL,)),
        ))
    gcn = dict(
        gc1_att=w((IN_FEATURES, IN_FEATURES)), gc1_w=w((2 * DCT_N, D_MODEL)),
        gc1_b=zeros((D_MODEL,)),
        stages=stages,
        gc7_att=w((IN_FEATURES, IN_FEATURES)), gc7_w=w((D_MODEL, 2 * DCT_N)),
        gc7_b=zeros((2 * DCT_N,)),
    )

    return dict(
        init_w=w((IN_FEATURES, D_ATT)), init_b=zeros((1, D_ATT)),
        conv1_w=w((IN_FEATURES, D_ATT, CONV_K)),
        conv2_w=w((IN_FEATURES, IN_FEATURES, CONV_K)),
        conv3_w=w((IN_FEATURES, IN_FEATURES, CONV_K)),
        enc=enc, gcn=gcn,
    )


# ----------------------------- main ---------------------------------------------
if __name__ == "__main__":
    key = jax.random.PRNGKey(0)
    pkey, xkey = jax.random.split(key)
    params = init_params(pkey)
    packed = pack_params(params)
    src = jax.random.normal(xkey, (BATCH, SEQ_LEN, IN_FEATURES), dtype=jnp.float32)

    out = forward(packed, src, output_n=OUTPUT_N, input_n=INPUT_N, itera=1)
    out = jax.block_until_ready(out)

    expected = (BATCH, KERNEL_SIZE + OUTPUT_N, 1, IN_FEATURES)
    assert out.shape == expected, f"got {out.shape}, expected {expected}"
    assert bool(jnp.all(jnp.isfinite(out)))

    # cross-check the other scheduling path (batch-folded vs batch-per-TensorCore grid)
    out_alt = jax.block_until_ready(
        forward(packed, src, fold_batch=not _is_single_tensorcore_chip()))
    assert bool(jnp.allclose(out, out_alt, atol=1e-3, rtol=1e-3))

    print("KERNEL_OK")
</pallas_src>

<mosaic_0001>
module attributes {stable_mosaic.version = 11 : i64} {
  func.func @_fused_forward_kernel(%arg0: i32, %arg1: memref<40x16xf32, #tpu.memory_space<vmem>>, %arg2: memref<424x128xf32, #tpu.memory_space<vmem>>, %arg3: memref<2000x40xf32, #tpu.memory_space<vmem>>, %arg4: memref<1x10x16xf32, #tpu.memory_space<vmem>>, %arg5: memref<40x32xf32, #tpu.memory_space<vmem>>) attributes {dimension_semantics = [#tpu.dimension_semantics<parallel>], iteration_bounds = array<i64: 2>, scalar_prefetch = 0 : i64, scratch_operands = 1 : i64, tpu.core_type = #tpu.core_type<tc>, window_params = [{transform_indices = @transform_0, window_bounds = array<i64: 40, 16>}, {pipeline_mode = #tpu.pipeline_mode<synchronous>, transform_indices = @transform_1, window_bounds = array<i64: 424, 128>}, {pipeline_mode = #tpu.pipeline_mode<synchronous>, transform_indices = @transform_2, window_bounds = array<i64: 2000, 40>}, {transform_indices = @transform_3, window_bounds = array<i64: 1, 10, 16>}]} {
    %c0 = arith.constant 0 : index
    %c0_0 = arith.constant 0 : index
    %0 = vector.load %arg1[%c0, %c0_0] : memref<40x16xf32, #tpu.memory_space<vmem>>, vector<40x16xf32>
    %c0_1 = arith.constant 0 : index
    %c0_2 = arith.constant 0 : index
    %1 = vector.load %arg2[%c0_1, %c0_2] : memref<424x128xf32, #tpu.memory_space<vmem>>, vector<16x32xf32>
    %cst = arith.constant dense<0.000000e+00> : vector<40x32xf32>
    %2 = tpu.matmul %0, %1, %cst {dimension_numbers = #tpu.dot_dimension_numbers<[1], [0], [0], [1], [0, 0, 1, 1], [], []>} : vector<40x16xf32>, vector<16x32xf32>, vector<40x32xf32> -> vector<40x32xf32>
    %c16 = arith.constant 16 : index
    %c0_3 = arith.constant 0 : index
    %3 = vector.load %arg2[%c16, %c0_3] : memref<424x128xf32, #tpu.memory_space<vmem>>, vector<1x32xf32>
    %4 = vector.broadcast %3 : vector<1x32xf32> to vector<40x32xf32>
    %5 = arith.addf %2, %4 : vector<40x32xf32>
    %c24 = arith.constant 24 : index
    %c0_4 = arith.constant 0 : index
    %6 = vector.load %arg2[%c24, %c0_4] : memref<424x128xf32, #tpu.memory_space<vmem>>, vector<1x32xf32>
    %c32 = arith.constant 32 : index
    %c0_5 = arith.constant 0 : index
    %7 = vector.load %arg2[%c32, %c0_5] : memref<424x128xf32, #tpu.memory_space<vmem>>, vector<1x32xf32>
    %cst_6 = arith.constant dense<0.000000e+00> : vector<40xf32>
    %8 = vector.multi_reduction <add>, %5, %cst_6 [1] : vector<40x32xf32> to vector<40xf32>
    %9 = vector.shape_cast %8 : vector<40xf32> to vector<40x1xf32>
    %cst_7 = arith.constant 3.200000e+01 : f32
    %10 = vector.broadcast %cst_7 : f32 to vector<40x1xf32>
    %11 = arith.divf %9, %10 : vector<40x1xf32>
    %12 = vector.broadcast %11 : vector<40x1xf32> to vector<40x32xf32>
    %13 = arith.subf %5, %12 : vector<40x32xf32>
    %14 = arith.mulf %13, %13 : vector<40x32xf32>
    %cst_8 = arith.constant dense<0.000000e+00> : vector<40xf32>
    %15 = vector.multi_reduction <add>, %14, %cst_8 [1] : vector<40x32xf32> to vector<40xf32>
    %16 = vector.shape_cast %15 : vector<40xf32> to vector<40x1xf32>
    %cst_9 = arith.constant 0.0322580636 : f32
    %17 = vector.broadcast %cst_9 : f32 to vector<40x1xf32>
    %18 = arith.mulf %16, %17 : vector<40x1xf32>
    %19 = math.sqrt %18 : vector<40x1xf32>
    %cst_10 = arith.constant 9.99999997E-7 : f32
    %20 = vector.broadcast %cst_10 : f32 to vector<40x1xf32>
    %21 = arith.addf %19, %20 : vector<40x1xf32>
    %22 = tpu.reciprocal %21 {approx = true} : vector<40x1xf32> -> vector<40x1xf32>
    %23 = vector.broadcast %22 : vector<40x1xf32> to vector<40x32xf32>
    %24 = arith.mulf %13, %23 : vector<40x32xf32>
    %25 = vector.broadcast %6 : vector<1x32xf32> to vector<40x32xf32>
    %26 = arith.mulf %25, %24 : vector<40x32xf32>
    %27 = vector.broadcast %7 : vector<1x32xf32> to vector<40x32xf32>
    %28 = arith.addf %26, %27 : vector<40x32xf32>
    %c40 = arith.constant 40 : index
    %c0_11 = arith.constant 0 : index
    %29 = vector.load %arg2[%c40, %c0_11] : memref<424x128xf32, #tpu.memory_space<vmem>>, vector<32x96xf32>
    %cst_12 = arith.constant dense<0.000000e+00> : vector<40x96xf32>
    %30 = tpu.matmul %28, %29, %cst_12 {dimension_numbers = #tpu.dot_dimension_numbers<[1], [0], [0], [1], [0, 0, 1, 1], [], []>} : vector<40x32xf32>, vector<32x96xf32>, vector<40x96xf32> -> vector<40x96xf32>
    %c72 = arith.constant 72 : index
    %c0_13 = arith.constant 0 : index
    %31 = vector.load %arg2[%c72, %c0_13] : memref<424x128xf32, #tpu.memory_space<vmem>>, vector<1x96xf32>
    %32 = vector.broadcast %31 : vector<1x96xf32> to vector<40x96xf32>
    %33 = arith.addf %30, %32 : vector<40x96xf32>
    %34 = vector.extract_strided_slice %33 {offsets = [0, 0], sizes = [40, 16], strides = [1, 1]} : vector<40x96xf32> to vector<40x16xf32>
    %35 = vector.extract_strided_slice %33 {offsets = [0, 32], sizes = [40, 16], strides = [1, 1]} : vector<40x96xf32> to vector<40x16xf32>
    %36 = vector.extract_strided_slice %33 {offsets = [0, 64], sizes = [40, 16], strides = [1, 1]} : vector<40x96xf32> to vector<40x16xf32>
    %cst_14 = arith.constant dense<0.000000e+00> : vector<40x40xf32>
    %37 = tpu.matmul %34, %35, %cst_14 {dimension_numbers = #tpu.dot_dimension_numbers<[1], [1], [0], [0], [0, 0, 1, 0], [], []>} : vector<40x16xf32>, vector<40x16xf32>, vector<40x40xf32> -> vector<40x40xf32>
    %cst_15 = arith.constant 2.500000e-01 : f32
    %38 = vector.broadcast %cst_15 : f32 to vector<40x40xf32>
    %39 = arith.mulf %37, %38 : vector<40x40xf32>
    %cst_16 = arith.constant dense<0xFF800000> : vector<40xf32>
    %40 = vector.multi_reduction <maximumf>, %39, %cst_16 [1] : vector<40x40xf32> to vector<40xf32>
    %41 = vector.shape_cast %40 : vector<40xf32> to vector<40x1xf32>
    %42 = vector.broadcast %41 : vector<40x1xf32> to vector<40x40xf32>
    %43 = arith.subf %39, %42 : vector<40x40xf32>
    %44 = math.exp %43 : vector<40x40xf32>
    %cst_17 = arith.constant dense<0.000000e+00> : vector<40xf32>
    %45 = vector.multi_reduction <add>, %44, %cst_17 [1] : vector<40x40xf32> to vector<40xf32>
    %46 = vector.shape_cast %45 : vector<40xf32> to vector<40x1xf32>
    %47 = tpu.reciprocal %46 {approx = true} : vector<40x1xf32> -> vector<40x1xf32>
    %48 = vector.broadcast %47 : vector<40x1xf32> to vector<40x40xf32>
    %49 = arith.mulf %44, %48 : vector<40x40xf32>
    %cst_18 = arith.constant dense<0.000000e+00> : vector<40x16xf32>
    %50 = tpu.matmul %49, %36, %cst_18 {dimension_numbers = #tpu.dot_dimension_numbers<[1], [0], [0], [1], [0, 0, 1, 1], [], []>} : vector<40x40xf32>, vector<40x16xf32>, vector<40x16xf32> -> vector<40x16xf32>
    %c0_19 = arith.constant 0 : index
    %c0_20 = arith.constant 0 : index
    %51 = vector.load %arg5[%c0_19, %c0_20] : memref<40x32xf32, #tpu.memory_space<vmem>>, vector<40x16xf32>
    tpu.vector_store %arg5[%c0_19, %c0_20], %50 {strides = array<i32>} : memref<40x32xf32, #tpu.memory_space<vmem>>, vector<40x16xf32>,
    %52 = vector.extract_strided_slice %33 {offsets = [0, 16], sizes = [40, 16], strides = [1, 1]} : vector<40x96xf32> to vector<40x16xf32>
    %53 = vector.extract_strided_slice %33 {offsets = [0, 48], sizes = [40, 16], strides = [1, 1]} : vector<40x96xf32> to vector<40x16xf32>
    %54 = vector.extract_strided_slice %33 {offsets = [0, 80], sizes = [40, 16], strides = [1, 1]} : vector<40x96xf32> to vector<40x16xf32>
    %cst_21 = arith.constant dense<0.000000e+00> : vector<40x40xf32>
    %55 = tpu.matmul %52, %53, %cst_21 {dimension_numbers = #tpu.dot_dimension_numbers<[1], [1], [0], [0], [0, 0, 1, 0], [], []>} : vector<40x16xf32>, vector<40x16xf32>, vector<40x40xf32> -> vector<40x40xf32>
    %cst_22 = arith.constant 2.500000e-01 : f32
    %56 = vector.broadcast %cst_22 : f32 to vector<40x40xf32>
    %57 = arith.mulf %55, %56 : vector<40x40xf32>
    %cst_23 = arith.constant dense<0xFF800000> : vector<40xf32>
    %58 = vector.multi_reduction <maximumf>, %57, %cst_23 [1] : vector<40x40xf32> to vector<40xf32>
    %59 = vector.shape_cast %58 : vector<40xf32> to vector<40x1xf32>
    %60 = vector.broadcast %59 : vector<40x1xf32> to vector<40x40xf32>
    %61 = arith.subf %57, %60 : vector<40x40xf32>
    %62 = math.exp %61 : vector<40x40xf32>
    %cst_24 = arith.constant dense<0.000000e+00> : vector<40xf32>
    %63 = vector.multi_reduction <add>, %62, %cst_24 [1] : vector<40x40xf32> to vector<40xf32>
    %64 = vector.shape_cast %63 : vector<40xf32> to vector<40x1xf32>
    %65 = tpu.reciprocal %64 {approx = true} : vector<40x1xf32> -> vector<40x1xf32>
    %66 = vector.broadcast %65 : vector<40x1xf32> to vector<40x40xf32>
    %67 = arith.mulf %62, %66 : vector<40x40xf32>
    %cst_25 = arith.constant dense<0.000000e+00> : vector<40x16xf32>
    %68 = tpu.matmul %67, %54, %cst_25 {dimension_numbers = #tpu.dot_dimension_numbers<[1], [0], [0], [1], [0, 0, 1, 1], [], []>} : vector<40x40xf32>, vector<40x16xf32>, vector<40x16xf32> -> vector<40x16xf32>
    %c0_26 = arith.constant 0 : index
    %c16_27 = arith.constant 16 : index
    %69 = vector.load %arg5[%c0_26, %c16_27] : memref<40x32xf32, #tpu.memory_space<vmem>>, vector<40x16xf32>
    tpu.vector_store %arg5[%c0_26, %c16_27], %68 {strides = array<i32>} : memref<40x32xf32, #tpu.memory_space<vmem>>, vector<40x16xf32>,
    %c0_28 = arith.constant 0 : index
    %c0_29 = arith.constant 0 : index
    %70 = vector.load %arg5[%c0_28, %c0_29] : memref<40x32xf32, #tpu.memory_space<vmem>>, vector<40x32xf32>
    %c80 = arith.constant 80 : index
    %c0_30 = arith.constant 0 : index
    %71 = vector.load %arg2[%c80, %c0_30] : memref<424x128xf32, #tpu.memory_space<vmem>>, vector<32x32xf32>
    %cst_31 = arith.constant dense<0.000000e+00> : vector<40x32xf32>
    %72 = tpu.matmul %70, %71, %cst_31 {dimension_numbers = #tpu.dot_dimension_numbers<[1], [0], [0], [1], [0, 0, 1, 1], [], []>} : vector<40x32xf32>, vector<32x32xf32>, vector<40x32xf32> -> vector<40x32xf32>
    %73 = arith.addf %5, %72 : vector<40x32xf32>
    %c112 = arith.constant 112 : index
    %c0_32 = arith.constant 0 : index
    %74 = vector.load %arg2[%c112, %c0_32] : memref<424x128xf32, #tpu.memory_space<vmem>>, vector<1x32xf32>
    %75 = vector.broadcast %74 : vector<1x32xf32> to vector<40x32xf32>
    %76 = arith.addf %73, %75 : vector<40x32xf32>
    %c120 = arith.constant 120 : index
    %c0_33 = arith.constant 0 : index
    %77 = vector.load %arg2[%c120, %c0_33] : memref<424x128xf32, #tpu.memory_space<vmem>>, vector<1x32xf32>
    %c128 = arith.constant 128 : index
    %c0_34 = arith.constant 0 : index
    %78 = vector.load %arg2[%c128, %c0_34] : memref<424x128xf32, #tpu.memory_space<vmem>>, vector<1x32xf32>
    %cst_35 = arith.constant dense<0.000000e+00> : vector<40xf32>
    %79 = vector.multi_reduction <add>, %76, %cst_35 [1] : vector<40x32xf32> to vector<40xf32>
    %80 = vector.shape_cast %79 : vector<40xf32> to vector<40x1xf32>
    %cst_36 = arith.constant 3.200000e+01 : f32
    %81 = vector.broadcast %cst_36 : f32 to vector<40x1xf32>
    %82 = arith.divf %80, %81 : vector<40x1xf32>
    %83 = vector.broadcast %82 : vector<40x1xf32> to vector<40x32xf32>
    %84 = arith.subf %76, %83 : vector<40x32xf32>
    %85 = arith.mulf %84, %84 : vector<40x32xf32>
    %cst_37 = arith.constant dense<0.000000e+00> : vector<40xf32>
    %86 = vector.multi_reduction <add>, %85, %cst_37 [1] : vector<40x32xf32> to vector<40xf32>
    %87 = vector.shape_cast %86 : vector<40xf32> to vector<40x1xf32>
    %cst_38 = arith.constant 0.0322580636 : f32
    %88 = vector.broadcast %cst_38 : f32 to vector<40x1xf32>
    %89 = arith.mulf %87, %88 : vector<40x1xf32>
    %90 = math.sqrt %89 : vector<40x1xf32>
    %cst_39 = arith.constant 9.99999997E-7 : f32
    %91 = vector.broadcast %cst_39 : f32 to vector<40x1xf32>
    %92 = arith.addf %90, %91 : vector<40x1xf32>
    %93 = tpu.reciprocal %92 {approx = true} : vector<40x1xf32> -> vector<40x1xf32>
    %94 = vector.broadcast %93 : vector<40x1xf32> to vector<40x32xf32>
    %95 = arith.mulf %84, %94 : vector<40x32xf32>
    %96 = vector.broadcast %77 : vector<1x32xf32> to vector<40x32xf32>
    %97 = arith.mulf %96, %95 : vector<40x32xf32>
    %98 = vector.broadcast %78 : vector<1x32xf32> to vector<40x32xf32>
    %99 = arith.addf %97, %98 : vector<40x32xf32>
    %c136 = arith.constant 136 : index
    %c0_40 = arith.constant 0 : index
    %100 = vector.load %arg2[%c136, %c0_40] : memref<424x128xf32, #tpu.memory_space<vmem>>, vector<32x32xf32>
    %cst_41 = arith.constant dense<0.000000e+00> : vector<40x32xf32>
    %101 = tpu.matmul %99, %100, %cst_41 {dimension_numbers = #tpu.dot_dimension_numbers<[1], [0], [0], [1], [0, 0, 1, 1], [], []>} : vector<40x32xf32>, vector<32x32xf32>, vector<40x32xf32> -> vector<40x32xf32>
    %c168 = arith.constant 168 : index
    %c0_42 = arith.constant 0 : index
    %102 = vector.load %arg2[%c168, %c0_42] : memref<424x128xf32, #tpu.memory_space<vmem>>, vector<1x32xf32>
    %103 = vector.broadcast %102 : vector<1x32xf32> to vector<40x32xf32>
    %104 = arith.addf %101, %103 : vector<40x32xf32>
    %cst_43 = arith.constant 0.000000e+00 : f32
    %105 = vector.broadcast %cst_43 : f32 to vector<40x32xf32>
    %106 = arith.maximumf %104, %105 : vector<40x32xf32>
    %c176 = arith.constant 176 : index
    %c0_44 = arith.constant 0 : index
    %107 = vector.load %arg2[%c176, %c0_44] : memref<424x128xf32, #tpu.memory_space<vmem>>, vector<32x32xf32>
    %cst_45 = arith.constant dense<0.000000e+00> : vector<40x32xf32>
    %108 = tpu.matmul %106, %107, %cst_45 {dimension_numbers = #tpu.dot_dimension_numbers<[1], [0], [0], [1], [0, 0, 1, 1], [], []>} : vector<40x32xf32>, vector<32x32xf32>, vector<40x32xf32> -> vector<40x32xf32>
    %109 = arith.addf %76, %108 : vector<40x32xf32>
    %c208 = arith.constant 208 : index
    %c0_46 = arith.constant 0 : index
    %110 = vector.load %arg2[%c208, %c0_46] : memref<424x128xf32, #tpu.memory_space<vmem>>, vector<1x32xf32>
    %111 = vector.broadcast %110 : vector<1x32xf32> to vector<40x32xf32>
    %112 = arith.addf %109, %111 : vector<40x32xf32>
    %c216 = arith.constant 216 : index
    %c0_47 = arith.constant 0 : index
    %113 = vector.load %arg2[%c216, %c0_47] : memref<424x128xf32, #tpu.memory_space<vmem>>, vector<1x32xf32>
    %c224 = arith.constant 224 : index
    %c0_48 = arith.constant 0 : index
    %114 = vector.load %arg2[%c224, %c0_48] : memref<424x128xf32, #tpu.memory_space<vmem>>, vector<1x32xf32>
    %cst_49 = arith.constant dense<0.000000e+00> : vector<40xf32>
    %115 = vector.multi_reduction <add>, %112, %cst_49 [1] : vector<40x32xf32> to vector<40xf32>
    %116 = vector.shape_cast %115 : vector<40xf32> to vector<40x1xf32>
    %cst_50 = arith.constant 3.200000e+01 : f32
    %117 = vector.broadcast %cst_50 : f32 to vector<40x1xf32>
    %118 = arith.divf %116, %117 : vector<40x1xf32>
    %119 = vector.broadcast %118 : vector<40x1xf32> to vector<40x32xf32>
    %120 = arith.subf %112, %119 : vector<40x32xf32>
    %121 = arith.mulf %120, %120 : vector<40x32xf32>
    %cst_51 = arith.constant dense<0.000000e+00> : vector<40xf32>
    %122 = vector.multi_reduction <add>, %121, %cst_51 [1] : vector<40x32xf32> to vector<40xf32>
    %123 = vector.shape_cast %122 : vector<40xf32> to vector<40x1xf32>
    %cst_52 = arith.constant 0.0322580636 : f32
    %124 = vector.broadcast %cst_52 : f32 to vector<40x1xf32>
    %125 = arith.mulf %123, %124 : vector<40x1xf32>
    %126 = math.sqrt %125 : vector<40x1xf32>
    %cst_53 = arith.constant 9.99999997E-7 : f32
    %127 = vector.broadcast %cst_53 : f32 to vector<40x1xf32>
    %128 = arith.addf %126, %127 : vector<40x1xf32>
    %129 = tpu.reciprocal %128 {approx = true} : vector<40x1xf32> -> vector<40x1xf32>
    %130 = vector.broadcast %129 : vector<40x1xf32> to vector<40x32xf32>
    %131 = arith.mulf %120, %130 : vector<40x32xf32>
    %132 = vector.broadcast %113 : vector<1x32xf32> to vector<40x32xf32>
    %133 = arith.mulf %132, %131 : vector<40x32xf32>
    %134 = vector.broadcast %114 : vector<1x32xf32> to vector<40x32xf32>
    %135 = arith.addf %133, %134 : vector<40x32xf32>
    %c232 = arith.constant 232 : index
    %c0_54 = arith.constant 0 : index
    %136 = vector.load %arg2[%c232, %c0_54] : memref<424x128xf32, #tpu.memory_space<vmem>>, vector<32x96xf32>
    %cst_55 = arith.constant dense<0.000000e+00> : vector<40x96xf32>
    %137 = tpu.matmul %135, %136, %cst_55 {dimension_numbers = #tpu.dot_dimension_numbers<[1], [0], [0], [1], [0, 0, 1, 1], [], []>} : vector<40x32xf32>, vector<32x96xf32>, vector<40x96xf32> -> vector<40x96xf32>
    %c264 = arith.constant 264 : index
    %c0_56 = arith.constant 0 : index
    %138 = vector.load %arg2[%c264, %c0_56] : memref<424x128xf32, #tpu.memory_space<vmem>>, vector<1x96xf32>
    %139 = vector.broadcast %138 : vector<1x96xf32> to vector<40x96xf32>
    %140 = arith.addf %137, %139 : vector<40x96xf32>
    %141 = vector.extract_strided_slice %140 {offsets = [0, 0], sizes = [40, 16], strides = [1, 1]} : vector<40x96xf32> to vector<40x16xf32>
    %142 = vector.extract_strided_slice %140 {offsets = [0, 32], sizes = [40, 16], strides = [1, 1]} : vector<40x96xf32> to vector<40x16xf32>
    %143 = vector.extract_strided_slice %140 {offsets = [0, 64], sizes = [40, 16], strides = [1, 1]} : vector<40x96xf32> to vector<40x16xf32>
    %cst_57 = arith.constant dense<0.000000e+00> : vector<40x40xf32>
    %144 = tpu.matmul %141, %142, %cst_57 {dimension_numbers = #tpu.dot_dimension_numbers<[1], [1], [0], [0], [0, 0, 1, 0], [], []>} : vector<40x16xf32>, vector<40x16xf32>, vector<40x40xf32> -> vector<40x40xf32>
    %cst_58 = arith.constant 2.500000e-01 : f32
    %145 = vector.broadcast %cst_58 : f32 to vector<40x40xf32>
    %146 = arith.mulf %144, %145 : vector<40x40xf32>
    %cst_59 = arith.constant dense<0xFF800000> : vector<40xf32>
    %147 = vector.multi_reduction <maximumf>, %146, %cst_59 [1] : vector<40x40xf32> to vector<40xf32>
    %148 = vector.shape_cast %147 : vector<40xf32> to vector<40x1xf32>
    %149 = vector.broadcast %148 : vector<40x1xf32> to vector<40x40xf32>
    %150 = arith.subf %146, %149 : vector<40x40xf32>
    %151 = math.exp %150 : vector<40x40xf32>
    %cst_60 = arith.constant dense<0.000000e+00> : vector<40xf32>
    %152 = vector.multi_reduction <add>, %151, %cst_60 [1] : vector<40x40xf32> to vector<40xf32>
    %153 = vector.shape_cast %152 : vector<40xf32> to vector<40x1xf32>
    %154 = tpu.reciprocal %153 {approx = true} : vector<40x1xf32> -> vector<40x1xf32>
    %155 = vector.broadcast %154 : vector<40x1xf32> to vector<40x40xf32>
    %156 = arith.mulf %151, %155 : vector<40x40xf32>
    %cst_61 = arith.constant dense<0.000000e+00> : vector<40x16xf32>
    %157 = tpu.matmul %156, %143, %cst_61 {dimension_numbers = #tpu.dot_dimension_numbers<[1], [0], [0], [1], [0, 0, 1, 1], [], []>} : vector<40x40xf32>, vector<40x16xf32>, vector<40x16xf32> -> vector<40x16xf32>
    %c0_62 = arith.constant 0 : index
    %c0_63 = arith.constant 0 : index
    %158 = vector.load %arg5[%c0_62, %c0_63] : memref<40x32xf32, #tpu.memory_space<vmem>>, vector<40x16xf32>
    tpu.vector_store %arg5[%c0_62, %c0_63], %157 {strides = array<i32>} : memref<40x32xf32, #tpu.memory_space<vmem>>, vector<40x16xf32>,
    %159 = vector.extract_strided_slice %140 {offsets = [0, 16], sizes = [40, 16], strides = [1, 1]} : vector<40x96xf32> to vector<40x16xf32>
    %160 = vector.extract_strided_slice %140 {offsets = [0, 48], sizes = [40, 16], strides = [1, 1]} : vector<40x96xf32> to vector<40x16xf32>
    %161 = vector.extract_strided_slice %140 {offsets = [0, 80], sizes = [40, 16], strides = [1, 1]} : vector<40x96xf32> to vector<40x16xf32>
    %cst_64 = arith.constant dense<0.000000e+00> : vector<40x40xf32>
    %162 = tpu.matmul %159, %160, %cst_64 {dimension_numbers = #tpu.dot_dimension_numbers<[1], [1], [0], [0], [0, 0, 1, 0], [], []>} : vector<40x16xf32>, vector<40x16xf32>, vector<40x40xf32> -> vector<40x40xf32>
    %cst_65 = arith.constant 2.500000e-01 : f32
    %163 = vector.broadcast %cst_65 : f32 to vector<40x40xf32>
    %164 = arith.mulf %162, %163 : vector<40x40xf32>
    %cst_66 = arith.constant dense<0xFF800000> : vector<40xf32>
    %165 = vector.multi_reduction <maximumf>, %164, %cst_66 [1] : vector<40x40xf32> to vector<40xf32>
    %166 = vector.shape_cast %165 : vector<40xf32> to vector<40x1xf32>
    %167 = vector.broadcast %166 : vector<40x1xf32> to vector<40x40xf32>
    %168 = arith.subf %164, %167 : vector<40x40xf32>
    %169 = math.exp %168 : vector<40x40xf32>
    %cst_67 = arith.constant dense<0.000000e+00> : vector<40xf32>
    %170 = vector.multi_reduction <add>, %169, %cst_67 [1] : vector<40x40xf32> to vector<40xf32>
    %171 = vector.shape_cast %170 : vector<40xf32> to vector<40x1xf32>
    %172 = tpu.reciprocal %171 {approx = true} : vector<40x1xf32> -> vector<40x1xf32>
    %173 = vector.broadcast %172 : vector<40x1xf32> to vector<40x40xf32>
    %174 = arith.mulf %169, %173 : vector<40x40xf32>
    %cst_68 = arith.constant dense<0.000000e+00> : vector<40x16xf32>
    %175 = tpu.matmul %174, %161, %cst_68 {dimension_numbers = #tpu.dot_dimension_numbers<[1], [0], [0], [1], [0, 0, 1, 1], [], []>} : vector<40x40xf32>, vector<40x16xf32>, vector<40x16xf32> -> vector<40x16xf32>
    %c0_69 = arith.constant 0 : index
    %c16_70 = arith.constant 16 : index
    %176 = vector.load %arg5[%c0_69, %c16_70] : memref<40x32xf32, #tpu.memory_space<vmem>>, vector<40x16xf32>
    tpu.vector_store %arg5[%c0_69, %c16_70], %175 {strides = array<i32>} : memref<40x32xf32, #tpu.memory_space<vmem>>, vector<40x16xf32>,
    %c0_71 = arith.constant 0 : index
    %c0_72 = arith.constant 0 : index
    %177 = vector.load %arg5[%c0_71, %c0_72] : memref<40x32xf32, #tpu.memory_space<vmem>>, vector<40x32xf32>
    %c272 = arith.constant 272 : index
    %c0_73 = arith.constant 0 : index
    %178 = vector.load %arg2[%c272, %c0_73] : memref<424x128xf32, #tpu.memory_space<vmem>>, vector<32x32xf32>
    %cst_74 = arith.constant dense<0.000000e+00> : vector<40x32xf32>
    %179 = tpu.matmul %177, %178, %cst_74 {dimension_numbers = #tpu.dot_dimension_numbers<[1], [0], [0], [1], [0, 0, 1, 1], [], []>} : vector<40x32xf32>, vector<32x32xf32>, vector<40x32xf32> -> vector<40x32xf32>
    %180 = arith.addf %112, %179 : vector<40x32xf32>
    %c304 = arith.constant 304 : index
    %c0_75 = arith.constant 0 : index
    %181 = vector.load %arg2[%c304, %c0_75] : memref<424x128xf32, #tpu.memory_space<vmem>>, vector<1x32xf32>
    %182 = vector.broadcast %181 : vector<1x32xf32> to vector<40x32xf32>
    %183 = arith.addf %180, %182 : vector<40x32xf32>
    %c312 = arith.constant 312 : index
    %c0_76 = arith.constant 0 : index
    %184 = vector.load %arg2[%c312, %c0_76] : memref<424x128xf32, #tpu.memory_space<vmem>>, vector<1x32xf32>
    %c320 = arith.constant 320 : index
    %c0_77 = arith.constant 0 : index
    %185 = vector.load %arg2[%c320, %c0_77] : memref<424x128xf32, #tpu.memory_space<vmem>>, vector<1x32xf32>
    %cst_78 = arith.constant dense<0.000000e+00> : vector<40xf32>
    %186 = vector.multi_reduction <add>, %183, %cst_78 [1] : vector<40x32xf32> to vector<40xf32>
    %187 = vector.shape_cast %186 : vector<40xf32> to vector<40x1xf32>
    %cst_79 = arith.constant 3.200000e+01 : f32
    %188 = vector.broadcast %cst_79 : f32 to vector<40x1xf32>
    %189 = arith.divf %187, %188 : vector<40x1xf32>
    %190 = vector.broadcast %189 : vector<40x1xf32> to vector<40x32xf32>
    %191 = arith.subf %183, %190 : vector<40x32xf32>
    %192 = arith.mulf %191, %191 : vector<40x32xf32>
    %cst_80 = arith.constant dense<0.000000e+00> : vector<40xf32>
    %193 = vector.multi_reduction <add>, %192, %cst_80 [1] : vector<40x32xf32> to vector<40xf32>
    %194 = vector.shape_cast %193 : vector<40xf32> to vector<40x1xf32>
    %cst_81 = arith.constant 0.0322580636 : f32
    %195 = vector.broadcast %cst_81 : f32 to vector<40x1xf32>
    %196 = arith.mulf %194, %195 : vector<40x1xf32>
    %197 = math.sqrt %196 : vector<40x1xf32>
    %cst_82 = arith.constant 9.99999997E-7 : f32
    %198 = vector.broadcast %cst_82 : f32 to vector<40x1xf32>
    %199 = arith.addf %197, %198 : vector<40x1xf32>
    %200 = tpu.reciprocal %199 {approx = true} : vector<40x1xf32> -> vector<40x1xf32>
    %201 = vector.broadcast %200 : vector<40x1xf32> to vector<40x32xf32>
    %202 = arith.mulf %191, %201 : vector<40x32xf32>
    %203 = vector.broadcast %184 : vector<1x32xf32> to vector<40x32xf32>
    %204 = arith.mulf %203, %202 : vector<40x32xf32>
    %205 = vector.broadcast %185 : vector<1x32xf32> to vector<40x32xf32>
    %206 = arith.addf %204, %205 : vector<40x32xf32>
    %c328 = arith.constant 328 : index
    %c0_83 = arith.constant 0 : index
    %207 = vector.load %arg2[%c328, %c0_83] : memref<424x128xf32, #tpu.memory_space<vmem>>, vector<32x32xf32>
    %cst_84 = arith.constant dense<0.000000e+00> : vector<40x32xf32>
    %208 = tpu.matmul %206, %207, %cst_84 {dimension_numbers = #tpu.dot_dimension_numbers<[1], [0], [0], [1], [0, 0, 1, 1], [], []>} : vector<40x32xf32>, vector<32x32xf32>, vector<40x32xf32> -> vector<40x32xf32>
    %c360 = arith.constant 360 : index
    %c0_85 = arith.constant 0 : index
    %209 = vector.load %arg2[%c360, %c0_85] : memref<424x128xf32, #tpu.memory_space<vmem>>, vector<1x32xf32>
    %210 = vector.broadcast %209 : vector<1x32xf32> to vector<40x32xf32>
    %211 = arith.addf %208, %210 : vector<40x32xf32>
    %cst_86 = arith.constant 0.000000e+00 : f32
    %212 = vector.broadcast %cst_86 : f32 to vector<40x32xf32>
    %213 = arith.maximumf %211, %212 : vector<40x32xf32>
    %c368 = arith.constant 368 : index
    %c0_87 = arith.constant 0 : index
    %214 = vector.load %arg2[%c368, %c0_87] : memref<424x128xf32, #tpu.memory_space<vmem>>, vector<32x32xf32>
    %cst_88 = arith.constant dense<0.000000e+00> : vector<40x32xf32>
    %215 = tpu.matmul %213, %214, %cst_88 {dimension_numbers = #tpu.dot_dimension_numbers<[1], [0], [0], [1], [0, 0, 1, 1], [], []>} : vector<40x32xf32>, vector<32x32xf32>, vector<40x32xf32> -> vector<40x32xf32>
    %216 = arith.addf %183, %215 : vector<40x32xf32>
    %c400 = arith.constant 400 : index
    %c0_89 = arith.constant 0 : index
    %217 = vector.load %arg2[%c400, %c0_89] : memref<424x128xf32, #tpu.memory_space<vmem>>, vector<1x32xf32>
    %218 = vector.broadcast %217 : vector<1x32xf32> to vector<40x32xf32>
    %219 = arith.addf %216, %218 : vector<40x32xf32>
    %c408 = arith.constant 408 : index
    %c0_90 = arith.constant 0 : index
    %220 = vector.load %arg2[%c408, %c0_90] : memref<424x128xf32, #tpu.memory_space<vmem>>, vector<1x32xf32>
    %c416 = arith.constant 416 : index
    %c0_91 = arith.constant 0 : index
    %221 = vector.load %arg2[%c416, %c0_91] : memref<424x128xf32, #tpu.memory_space<vmem>>, vector<1x32xf32>
    %cst_92 = arith.constant dense<0.000000e+00> : vector<40xf32>
    %222 = vector.multi_reduction <add>, %219, %cst_92 [1] : vector<40x32xf32> to vector<40xf32>
    %223 = vector.shape_cast %222 : vector<40xf32> to vector<40x1xf32>
    %cst_93 = arith.constant 3.200000e+01 : f32
    %224 = vector.broadcast %cst_93 : f32 to vector<40x1xf32>
    %225 = arith.divf %223, %224 : vector<40x1xf32>
    %226 = vector.broadcast %225 : vector<40x1xf32> to vector<40x32xf32>
    %227 = arith.subf %219, %226 : vector<40x32xf32>
    %228 = arith.mulf %227, %227 : vector<40x32xf32>
    %cst_94 = arith.constant dense<0.000000e+00> : vector<40xf32>
    %229 = vector.multi_reduction <add>, %228, %cst_94 [1] : vector<40x32xf32> to vector<40xf32>
    %230 = vector.shape_cast %229 : vector<40xf32> to vector<40x1xf32>
    %cst_95 = arith.constant 0.0322580636 : f32
    %231 = vector.broadcast %cst_95 : f32 to vector<40x1xf32>
    %232 = arith.mulf %230, %231 : vector<40x1xf32>
    %233 = math.sqrt %232 : vector<40x1xf32>
    %cst_96 = arith.constant 9.99999997E-7 : f32
    %234 = vector.broadcast %cst_96 : f32 to vector<40x1xf32>
    %235 = arith.addf %233, %234 : vector<40x1xf32>
    %236 = tpu.reciprocal %235 {approx = true} : vector<40x1xf32> -> vector<40x1xf32>
    %237 = vector.broadcast %236 : vector<40x1xf32> to vector<40x32xf32>
    %238 = arith.mulf %227, %237 : vector<40x32xf32>
    %239 = vector.broadcast %220 : vector<1x32xf32> to vector<40x32xf32>
    %240 = arith.mulf %239, %238 : vector<40x32xf32>
    %241 = vector.broadcast %221 : vector<1x32xf32> to vector<40x32xf32>
    %242 = arith.addf %240, %241 : vector<40x32xf32>
    %c0_97 = arith.constant 0 : index
    %c0_98 = arith.constant 0 : index
    %243 = vector.load %arg1[%c0_97, %c0_98] : memref<40x16xf32, #tpu.memory_space<vmem>>, vector<40x16xf32>
    %cst_99 = arith.constant 0.000000e+00 : f32
    %244 = vector.broadcast %cst_99 : f32 to vector<32x16xf32>
    %c0_100 = arith.constant 0 : index
    %c0_101 = arith.constant 0 : index
    %245 = vector.load %arg3[%c0_100, %c0_101] : memref<2000x40xf32, #tpu.memory_space<vmem>>, vector<32x40xf32>
    %c792 = arith.constant 792 : index
    %c0_102 = arith.constant 0 : index
    %246 = vector.load %arg3[%c792, %c0_102] : memref<2000x40xf32, #tpu.memory_space<vmem>>, vector<32x16xf32>
    %cst_103 = arith.constant dense<0.000000e+00> : vector<32x32xf32>
    %247 = tpu.matmul %245, %242, %cst_103 {dimension_numbers = #tpu.dot_dimension_numbers<[1], [0], [0], [1], [0, 0, 1, 1], [], []>} : vector<32x40xf32>, vector<40x32xf32>, vector<32x32xf32> -> vector<32x32xf32>
    %cst_104 = arith.constant dense<0.000000e+00> : vector<32x16xf32>
    %248 = tpu.matmul %247, %246, %cst_104 {dimension_numbers = #tpu.dot_dimension_numbers<[1], [0], [0], [1], [0, 0, 1, 1], [], []>} : vector<32x32xf32>, vector<32x16xf32>, vector<32x16xf32> -> vector<32x16xf32>
    %249 = arith.addf %244, %248 : vector<32x16xf32>
    %c32_105 = arith.constant 32 : index
    %c0_106 = arith.constant 0 : index
    %250 = vector.load %arg3[%c32_105, %c0_106] : memref<2000x40xf32, #tpu.memory_space<vmem>>, vector<32x40xf32>
    %c824 = arith.constant 824 : index
    %c0_107 = arith.constant 0 : index
    %251 = vector.load %arg3[%c824, %c0_107] : memref<2000x40xf32, #tpu.memory_space<vmem>>, vector<32x16xf32>
    %cst_108 = arith.constant dense<0.000000e+00> : vector<32x32xf32>
    %252 = tpu.matmul %250, %242, %cst_108 {dimension_numbers = #tpu.dot_dimension_numbers<[1], [0], [0], [1], [0, 0, 1, 1], [], []>} : vector<32x40xf32>, vector<40x32xf32>, vector<32x32xf32> -> vector<32x32xf32>
    %cst_109 = arith.constant dense<0.000000e+00> : vector<32x16xf32>
    %253 = tpu.matmul %252, %251, %cst_109 {dimension_numbers = #tpu.dot_dimension_numbers<[1], [0], [0], [1], [0, 0, 1, 1], [], []>} : vector<32x32xf32>, vector<32x16xf32>, vector<32x16xf32> -> vector<32x16xf32>
    %254 = arith.addf %249, %253 : vector<32x16xf32>
    %c64 = arith.constant 64 : index
    %c0_110 = arith.constant 0 : index
    %255 = vector.load %arg3[%c64, %c0_110] : memref<2000x40xf32, #tpu.memory_space<vmem>>, vector<32x40xf32>
    %c856 = arith.constant 856 : index
    %c0_111 = arith.constant 0 : index
    %256 = vector.load %arg3[%c856, %c0_111] : memref<2000x40xf32, #tpu.memory_space<vmem>>, vector<32x16xf32>
    %cst_112 = arith.constant dense<0.000000e+00> : vector<32x32xf32>
    %257 = tpu.matmul %255, %242, %cst_112 {dimension_numbers = #tpu.dot_dimension_numbers<[1], [0], [0], [1], [0, 0, 1, 1], [], []>} : vector<32x40xf32>, vector<40x32xf32>, vector<32x32xf32> -> vector<32x32xf32>
    %cst_113 = arith.constant dense<0.000000e+00> : vector<32x16xf32>
    %258 = tpu.matmul %257, %256, %cst_113 {dimension_numbers = #tpu.dot_dimension_numbers<[1], [0], [0], [1], [0, 0, 1, 1], [], []>} : vector<32x32xf32>, vector<32x16xf32>, vector<32x16xf32> -> vector<32x16xf32>
    %259 = arith.addf %254, %258 : vector<32x16xf32>
    %c96 = arith.constant 96 : index
    %c0_114 = arith.constant 0 : index
    %260 = vector.load %arg3[%c96, %c0_114] : memref<2000x40xf32, #tpu.memory_space<vmem>>, vector<32x40xf32>
    %c888 = arith.constant 888 : index
    %c0_115 = arith.constant 0 : index
    %261 = vector.load %arg3[%c888, %c0_115] : memref<2000x40xf32, #tpu.memory_space<vmem>>, vector<32x16xf32>
    %cst_116 = arith.constant dense<0.000000e+00> : vector<32x32xf32>
    %262 = tpu.matmul %260, %242, %cst_116 {dimension_numbers = #tpu.dot_dimension_numbers<[1], [0], [0], [1], [0, 0, 1, 1], [], []>} : vector<32x40xf32>, vector<40x32xf32>, vector<32x32xf32> -> vector<32x32xf32>
    %cst_117 = arith.constant dense<0.000000e+00> : vector<32x16xf32>
    %263 = tpu.matmul %262, %261, %cst_117 {dimension_numbers = #tpu.dot_dimension_numbers<[1], [0], [0], [1], [0, 0, 1, 1], [], []>} : vector<32x32xf32>, vector<32x16xf32>, vector<32x16xf32> -> vector<32x16xf32>
    %264 = arith.addf %259, %263 : vector<32x16xf32>
    %c128_118 = arith.constant 128 : index
    %c0_119 = arith.constant 0 : index
    %265 = vector.load %arg3[%c128_118, %c0_119] : memref<2000x40xf32, #tpu.memory_space<vmem>>, vector<32x40xf32>
    %c920 = arith.constant 920 : index
    %c0_120 = arith.constant 0 : index
    %266 = vector.load %arg3[%c920, %c0_120] : memref<2000x40xf32, #tpu.memory_space<vmem>>, vector<32x16xf32>
    %cst_121 = arith.constant dense<0.000000e+00> : vector<32x32xf32>
    %267 = tpu.matmul %265, %242, %cst_121 {dimension_numbers = #tpu.dot_dimension_numbers<[1], [0], [0], [1], [0, 0, 1, 1], [], []>} : vector<32x40xf32>, vector<40x32xf32>, vector<32x32xf32> -> vector<32x32xf32>
    %cst_122 = arith.constant dense<0.000000e+00> : vector<32x16xf32>
    %268 = tpu.matmul %267, %266, %cst_122 {dimension_numbers = #tpu.dot_dimension_numbers<[1], [0], [0], [1], [0, 0, 1, 1], [], []>} : vector<32x32xf32>, vector<32x16xf32>, vector<32x16xf32> -> vector<32x16xf32>
    %269 = arith.addf %264, %268 : vector<32x16xf32>
    %c160 = arith.constant 160 : index
    %c0_123 = arith.constant 0 : index
    %270 = vector.load %arg3[%c160, %c0_123] : memref<2000x40xf32, #tpu.memory_space<vmem>>, vector<32x40xf32>
    %c952 = arith.constant 952 : index
    %c0_124 = arith.constant 0 : index
    %271 = vector.load %arg3[%c952, %c0_124] : memref<2000x40xf32, #tpu.memory_space<vmem>>, vector<32x16xf32>
    %cst_125 = arith.constant dense<0.000000e+00> : vector<32x32xf32>
    %272 = tpu.matmul %270, %242, %cst_125 {dimension_numbers = #tpu.dot_dimension_numbers<[1], [0], [0], [1], [0, 0, 1, 1], [], []>} : vector<32x40xf32>, vector<40x32xf32>, vector<32x32xf32> -> vector<32x32xf32>
    %cst_126 = arith.constant dense<0.000000e+00> : vector<32x16xf32>
    %273 = tpu.matmul %272, %271, %cst_126 {dimension_numbers = #tpu.dot_dimension_numbers<[1], [0], [0], [1], [0, 0, 1, 1], [], []>} : vector<32x32xf32>, vector<32x16xf32>, vector<32x16xf32> -> vector<32x16xf32>
    %274 = arith.addf %269, %273 : vector<32x16xf32>
    %c192 = arith.constant 192 : index
    %c0_127 = arith.constant 0 : index
    %275 = vector.load %arg3[%c192, %c0_127] : memref<2000x40xf32, #tpu.memory_space<vmem>>, vector<32x40xf32>
    %c984 = arith.constant 984 : index
    %c0_128 = arith.constant 0 : index
    %276 = vector.load %arg3[%c984, %c0_128] : memref<2000x40xf32, #tpu.memory_space<vmem>>, vector<32x16xf32>
    %cst_129 = arith.constant dense<0.000000e+00> : vector<32x32xf32>
    %277 = tpu.matmul %275, %242, %cst_129 {dimension_numbers = #tpu.dot_dimension_numbers<[1], [0], [0], [1], [0, 0, 1, 1], [], []>} : vector<32x40xf32>, vector<40x32xf32>, vector<32x32xf32> -> vector<32x32xf32>
    %cst_130 = arith.constant dense<0.000000e+00> : vector<32x16xf32>
    %278 = tpu.matmul %277, %276, %cst_130 {dimension_numbers = #tpu.dot_dimension_numbers<[1], [0], [0], [1], [0, 0, 1, 1], [], []>} : vector<32x32xf32>, vector<32x16xf32>, vector<32x16xf32> -> vector<32x16xf32>
    %279 = arith.addf %274, %278 : vector<32x16xf32>
    %c224_131 = arith.constant 224 : index
    %c0_132 = arith.constant 0 : index
    %280 = vector.load %arg3[%c224_131, %c0_132] : memref<2000x40xf32, #tpu.memory_space<vmem>>, vector<32x40xf32>
    %c1016 = arith.constant 1016 : index
    %c0_133 = arith.constant 0 : index
    %281 = vector.load %arg3[%c1016, %c0_133] : memref<2000x40xf32, #tpu.memory_space<vmem>>, vector<32x16xf32>
    %cst_134 = arith.constant dense<0.000000e+00> : vector<32x32xf32>
    %282 = tpu.matmul %280, %242, %cst_134 {dimension_numbers = #tpu.dot_dimension_numbers<[1], [0], [0], [1], [0, 0, 1, 1], [], []>} : vector<32x40xf32>, vector<40x32xf32>, vector<32x32xf32> -> vector<32x32xf32>
    %cst_135 = arith.constant dense<0.000000e+00> : vector<32x16xf32>
    %283 = tpu.matmul %282, %281, %cst_135 {dimension_numbers = #tpu.dot_dimension_numbers<[1], [0], [0], [1], [0, 0, 1, 1], [], []>} : vector<32x32xf32>, vector<32x16xf32>, vector<32x16xf32> -> vector<32x16xf32>
    %284 = arith.addf %279, %283 : vector<32x16xf32>
    %c256 = arith.constant 256 : index
    %c0_136 = arith.constant 0 : index
    %285 = vector.load %arg3[%c256, %c0_136] : memref<2000x40xf32, #tpu.memory_space<vmem>>, vector<32x40xf32>
    %c1048 = arith.constant 1048 : index
    %c0_137 = arith.constant 0 : index
    %286 = vector.load %arg3[%c1048, %c0_137] : memref<2000x40xf32, #tpu.memory_space<vmem>>, vector<32x16xf32>
    %cst_138 = arith.constant dense<0.000000e+00> : vector<32x32xf32>
    %287 = tpu.matmul %285, %242, %cst_138 {dimension_numbers = #tpu.dot_dimension_numbers<[1], [0], [0], [1], [0, 0, 1, 1], [], []>} : vector<32x40xf32>, vector<40x32xf32>, vector<32x32xf32> -> vector<32x32xf32>
    %cst_139 = arith.constant dense<0.000000e+00> : vector<32x16xf32>
    %288 = tpu.matmul %287, %286, %cst_139 {dimension_numbers = #tpu.dot_dimension_numbers<[1], [0], [0], [1], [0, 0, 1, 1], [], []>} : vector<32x32xf32>, vector<32x16xf32>, vector<32x16xf32> -> vector<32x16xf32>
    %289 = arith.addf %284, %288 : vector<32x16xf32>
    %c288 = arith.constant 288 : index
    %c0_140 = arith.constant 0 : index
    %290 = vector.load %arg3[%c288, %c0_140] : memref<2000x40xf32, #tpu.memory_space<vmem>>, vector<32x40xf32>
    %c1080 = arith.constant 1080 : index
    %c0_141 = arith.constant 0 : index
    %291 = vector.load %arg3[%c1080, %c0_141] : memref<2000x40xf32, #tpu.memory_space<vmem>>, vector<32x16xf32>
    %cst_142 = arith.constant dense<0.000000e+00> : vector<32x32xf32>
    %292 = tpu.matmul %290, %242, %cst_142 {dimension_numbers = #tpu.dot_dimension_numbers<[1], [0], [0], [1], [0, 0, 1, 1], [], []>} : vector<32x40xf32>, vector<40x32xf32>, vector<32x32xf32> -> vector<32x32xf32>
    %cst_143 = arith.constant dense<0.000000e+00> : vector<32x16xf32>
    %293 = tpu.matmul %292, %291, %cst_143 {dimension_numbers = #tpu.dot_dimension_numbers<[1], [0], [0], [1], [0, 0, 1, 1], [], []>} : vector<32x32xf32>, vector<32x16xf32>, vector<32x16xf32> -> vector<32x16xf32>
    %294 = arith.addf %289, %293 : vector<32x16xf32>
    %c320_144 = arith.constant 320 : index
    %c0_145 = arith.constant 0 : index
    %295 = vector.load %arg3[%c320_144, %c0_145] : memref<2000x40xf32, #tpu.memory_space<vmem>>, vector<32x40xf32>
    %c1112 = arith.constant 1112 : index
    %c0_146 = arith.constant 0 : index
    %296 = vector.load %arg3[%c1112, %c0_146] : memref<2000x40xf32, #tpu.memory_space<vmem>>, vector<32x16xf32>
    %cst_147 = arith.constant dense<0.000000e+00> : vector<32x32xf32>
    %297 = tpu.matmul %295, %242, %cst_147 {dimension_numbers = #tpu.dot_dimension_numbers<[1], [0], [0], [1], [0, 0, 1, 1], [], []>} : vector<32x40xf32>, vector<40x32xf32>, vector<32x32xf32> -> vector<32x32xf32>
    %cst_148 = arith.constant dense<0.000000e+00> : vector<32x16xf32>
    %298 = tpu.matmul %297, %296, %cst_148 {dimension_numbers = #tpu.dot_dimension_numbers<[1], [0], [0], [1], [0, 0, 1, 1], [], []>} : vector<32x32xf32>, vector<32x16xf32>, vector<32x16xf32> -> vector<32x16xf32>
    %299 = arith.addf %294, %298 : vector<32x16xf32>
    %cst_149 = arith.constant 0.000000e+00 : f32
    %300 = vector.broadcast %cst_149 : f32 to vector<32x16xf32>
    %301 = arith.cmpf oge, %299, %300 : vector<32x16xf32>
    %cst_150 = arith.constant 1.000000e-01 : f32
    %302 = vector.broadcast %cst_150 : f32 to vector<32x16xf32>
    %303 = arith.mulf %302, %299 : vector<32x16xf32>
    %304 = arith.select %301, %299, %303 : vector<32x16xi1>, vector<32x16xf32>
    %cst_151 = arith.constant 0.000000e+00 : f32
    %305 = vector.broadcast %cst_151 : f32 to vector<24x16xf32>
    %c352 = arith.constant 352 : index
    %c0_152 = arith.constant 0 : index
    %306 = vector.load %arg3[%c352, %c0_152] : memref<2000x40xf32, #tpu.memory_space<vmem>>, vector<24x32xf32>
    %c1144 = arith.constant 1144 : index
    %c0_153 = arith.constant 0 : index
    %307 = vector.load %arg3[%c1144, %c0_153] : memref<2000x40xf32, #tpu.memory_space<vmem>>, vector<16x16xf32>
    %cst_154 = arith.constant dense<0.000000e+00> : vector<24x16xf32>
    %308 = tpu.matmul %306, %304, %cst_154 {dimension_numbers = #tpu.dot_dimension_numbers<[1], [0], [0], [1], [0, 0, 1, 1], [], []>} : vector<24x32xf32>, vector<32x16xf32>, vector<24x16xf32> -> vector<24x16xf32>
    %cst_155 = arith.constant dense<0.000000e+00> : vector<24x16xf32>
    %309 = tpu.matmul %308, %307, %cst_155 {dimension_numbers = #tpu.dot_dimension_numbers<[1], [0], [0], [1], [0, 0, 1, 1], [], []>} : vector<24x16xf32>, vector<16x16xf32>, vector<24x16xf32> -> vector<24x16xf32>
    %310 = arith.addf %305, %309 : vector<24x16xf32>
    %c376 = arith.constant 376 : index
    %c0_156 = arith.constant 0 : index
    %311 = vector.load %arg3[%c376, %c0_156] : memref<2000x40xf32, #tpu.memory_space<vmem>>, vector<24x32xf32>
    %c1160 = arith.constant 1160 : index
    %c0_157 = arith.constant 0 : index
    %312 = vector.load %arg3[%c1160, %c0_157] : memref<2000x40xf32, #tpu.memory_space<vmem>>, vector<16x16xf32>
    %cst_158 = arith.constant dense<0.000000e+00> : vector<24x16xf32>
    %313 = tpu.matmul %311, %304, %cst_158 {dimension_numbers = #tpu.dot_dimension_numbers<[1], [0], [0], [1], [0, 0, 1, 1], [], []>} : vector<24x32xf32>, vector<32x16xf32>, vector<24x16xf32> -> vector<24x16xf32>
    %cst_159 = arith.constant dense<0.000000e+00> : vector<24x16xf32>
    %314 = tpu.matmul %313, %312, %cst_159 {dimension_numbers = #tpu.dot_dimension_numbers<[1], [0], [0], [1], [0, 0, 1, 1], [], []>} : vector<24x16xf32>, vector<16x16xf32>, vector<24x16xf32> -> vector<24x16xf32>
    %315 = arith.addf %310, %314 : vector<24x16xf32>
    %c400_160 = arith.constant 400 : index
    %c0_161 = arith.constant 0 : index
    %316 = vector.load %arg3[%c400_160, %c0_161] : memref<2000x40xf32, #tpu.memory_space<vmem>>, vector<24x32xf32>
    %c1176 = arith.constant 1176 : index
    %c0_162 = arith.constant 0 : index
    %317 = vector.load %arg3[%c1176, %c0_162] : memref<2000x40xf32, #tpu.memory_space<vmem>>, vector<16x16xf32>
    %cst_163 = arith.constant dense<0.000000e+00> : vector<24x16xf32>
    %318 = tpu.matmul %316, %304, %cst_163 {dimension_numbers = #tpu.dot_dimension_numbers<[1], [0], [0], [1], [0, 0, 1, 1], [], []>} : vector<24x32xf32>, vector<32x16xf32>, vector<24x16xf32> -> vector<24x16xf32>
    %cst_164 = arith.constant dense<0.000000e+00> : vector<24x16xf32>
    %319 = tpu.matmul %318, %317, %cst_164 {dimension_numbers = #tpu.dot_dimension_numbers<[1], [0], [0], [1], [0, 0, 1, 1], [], []>} : vector<24x16xf32>, vector<16x16xf32>, vector<24x16xf32> -> vector<24x16xf32>
    %320 = arith.addf %315, %319 : vector<24x16xf32>
    %c424 = arith.constant 424 : index
    %c0_165 = arith.constant 0 : index
    %321 = vector.load %arg3[%c424, %c0_165] : memref<2000x40xf32, #tpu.memory_space<vmem>>, vector<24x32xf32>
    %c1192 = arith.constant 1192 : index
    %c0_166 = arith.constant 0 : index
    %322 = vector.load %arg3[%c1192, %c0_166] : memref<2000x40xf32, #tpu.memory_space<vmem>>, vector<16x16xf32>
    %cst_167 = arith.constant dense<0.000000e+00> : vector<24x16xf32>
    %323 = tpu.matmul %321, %304, %cst_167 {dimension_numbers = #tpu.dot_dimension_numbers<[1], [0], [0], [1], [0, 0, 1, 1], [], []>} : vector<24x32xf32>, vector<32x16xf32>, vector<24x16xf32> -> vector<24x16xf32>
    %cst_168 = arith.constant dense<0.000000e+00> : vector<24x16xf32>
    %324 = tpu.matmul %323, %322, %cst_168 {dimension_numbers = #tpu.dot_dimension_numbers<[1], [0], [0], [1], [0, 0, 1, 1], [], []>} : vector<24x16xf32>, vector<16x16xf32>, vector<24x16xf32> -> vector<24x16xf32>
    %325 = arith.addf %320, %324 : vector<24x16xf32>
    %c448 = arith.constant 448 : index
    %c0_169 = arith.constant 0 : index
    %326 = vector.load %arg3[%c448, %c0_169] : memref<2000x40xf32, #tpu.memory_space<vmem>>, vector<24x32xf32>
    %c1208 = arith.constant 1208 : index
    %c0_170 = arith.constant 0 : index
    %327 = vector.load %arg3[%c1208, %c0_170] : memref<2000x40xf32, #tpu.memory_space<vmem>>, vector<16x16xf32>
    %cst_171 = arith.constant dense<0.000000e+00> : vector<24x16xf32>
    %328 = tpu.matmul %326, %304, %cst_171 {dimension_numbers = #tpu.dot_dimension_numbers<[1], [0], [0], [1], [0, 0, 1, 1], [], []>} : vector<24x32xf32>, vector<32x16xf32>, vector<24x16xf32> -> vector<24x16xf32>
    %cst_172 = arith.constant dense<0.000000e+00> : vector<24x16xf32>
    %329 = tpu.matmul %328, %327, %cst_172 {dimension_numbers = #tpu.dot_dimension_numbers<[1], [0], [0], [1], [0, 0, 1, 1], [], []>} : vector<24x16xf32>, vector<16x16xf32>, vector<24x16xf32> -> vector<24x16xf32>
    %330 = arith.addf %325, %329 : vector<24x16xf32>
    %c472 = arith.constant 472 : index
    %c0_173 = arith.constant 0 : index
    %331 = vector.load %arg3[%c472, %c0_173] : memref<2000x40xf32, #tpu.memory_space<vmem>>, vector<24x32xf32>
    %c1224 = arith.constant 1224 : index
    %c0_174 = arith.constant 0 : index
    %332 = vector.load %arg3[%c1224, %c0_174] : memref<2000x40xf32, #tpu.memory_space<vmem>>, vector<16x16xf32>
    %cst_175 = arith.constant dense<0.000000e+00> : vector<24x16xf32>
    %333 = tpu.matmul %331, %304, %cst_175 {dimension_numbers = #tpu.dot_dimension_numbers<[1], [0], [0], [1], [0, 0, 1, 1], [], []>} : vector<24x32xf32>, vector<32x16xf32>, vector<24x16xf32> -> vector<24x16xf32>
    %cst_176 = arith.constant dense<0.000000e+00> : vector<24x16xf32>
    %334 = tpu.matmul %333, %332, %cst_176 {dimension_numbers = #tpu.dot_dimension_numbers<[1], [0], [0], [1], [0, 0, 1, 1], [], []>} : vector<24x16xf32>, vector<16x16xf32>, vector<24x16xf32> -> vector<24x16xf32>
    %335 = arith.addf %330, %334 : vector<24x16xf32>
    %c496 = arith.constant 496 : index
    %c0_177 = arith.constant 0 : index
    %336 = vector.load %arg3[%c496, %c0_177] : memref<2000x40xf32, #tpu.memory_space<vmem>>, vector<24x32xf32>
    %c1240 = arith.constant 1240 : index
    %c0_178 = arith.constant 0 : index
    %337 = vector.load %arg3[%c1240, %c0_178] : memref<2000x40xf32, #tpu.memory_space<vmem>>, vector<16x16xf32>
    %cst_179 = arith.constant dense<0.000000e+00> : vector<24x16xf32>
    %338 = tpu.matmul %336, %304, %cst_179 {dimension_numbers = #tpu.dot_dimension_numbers<[1], [0], [0], [1], [0, 0, 1, 1], [], []>} : vector<24x32xf32>, vector<32x16xf32>, vector<24x16xf32> -> vector<24x16xf32>
    %cst_180 = arith.constant dense<0.000000e+00> : vector<24x16xf32>
    %339 = tpu.matmul %338, %337, %cst_180 {dimension_numbers = #tpu.dot_dimension_numbers<[1], [0], [0], [1], [0, 0, 1, 1], [], []>} : vector<24x16xf32>, vector<16x16xf32>, vector<24x16xf32> -> vector<24x16xf32>
    %340 = arith.addf %335, %339 : vector<24x16xf32>
    %c520 = arith.constant 520 : index
    %c0_181 = arith.constant 0 : index
    %341 = vector.load %arg3[%c520, %c0_181] : memref<2000x40xf32, #tpu.memory_space<vmem>>, vector<24x32xf32>
    %c1256 = arith.constant 1256 : index
    %c0_182 = arith.constant 0 : index
    %342 = vector.load %arg3[%c1256, %c0_182] : memref<2000x40xf32, #tpu.memory_space<vmem>>, vector<16x16xf32>
    %cst_183 = arith.constant dense<0.000000e+00> : vector<24x16xf32>
    %343 = tpu.matmul %341, %304, %cst_183 {dimension_numbers = #tpu.dot_dimension_numbers<[1], [0], [0], [1], [0, 0, 1, 1], [], []>} : vector<24x32xf32>, vector<32x16xf32>, vector<24x16xf32> -> vector<24x16xf32>
    %cst_184 = arith.constant dense<0.000000e+00> : vector<24x16xf32>
    %344 = tpu.matmul %343, %342, %cst_184 {dimension_numbers = #tpu.dot_dimension_numbers<[1], [0], [0], [1], [0, 0, 1, 1], [], []>} : vector<24x16xf32>, vector<16x16xf32>, vector<24x16xf32> -> vector<24x16xf32>
    %345 = arith.addf %340, %344 : vector<24x16xf32>
    %c544 = arith.constant 544 : index
    %c0_185 = arith.constant 0 : index
    %346 = vector.load %arg3[%c544, %c0_185] : memref<2000x40xf32, #tpu.memory_space<vmem>>, vector<24x32xf32>
    %c1272 = arith.constant 1272 : index
    %c0_186 = arith.constant 0 : index
    %347 = vector.load %arg3[%c1272, %c0_186] : memref<2000x40xf32, #tpu.memory_space<vmem>>, vector<16x16xf32>
    %cst_187 = arith.constant dense<0.000000e+00> : vector<24x16xf32>
    %348 = tpu.matmul %346, %304, %cst_187 {dimension_numbers = #tpu.dot_dimension_numbers<[1], [0], [0], [1], [0, 0, 1, 1], [], []>} : vector<24x32xf32>, vector<32x16xf32>, vector<24x16xf32> -> vector<24x16xf32>
    %cst_188 = arith.constant dense<0.000000e+00> : vector<24x16xf32>
    %349 = tpu.matmul %348, %347, %cst_188 {dimension_numbers = #tpu.dot_dimension_numbers<[1], [0], [0], [1], [0, 0, 1, 1], [], []>} : vector<24x16xf32>, vector<16x16xf32>, vector<24x16xf32> -> vector<24x16xf32>
    %350 = arith.addf %345, %349 : vector<24x16xf32>
    %c568 = arith.constant 568 : index
    %c0_189 = arith.constant 0 : index
    %351 = vector.load %arg3[%c568, %c0_189] : memref<2000x40xf32, #tpu.memory_space<vmem>>, vector<24x32xf32>
    %c1288 = arith.constant 1288 : index
    %c0_190 = arith.constant 0 : index
    %352 = vector.load %arg3[%c1288, %c0_190] : memref<2000x40xf32, #tpu.memory_space<vmem>>, vector<16x16xf32>
    %cst_191 = arith.constant dense<0.000000e+00> : vector<24x16xf32>
    %353 = tpu.matmul %351, %304, %cst_191 {dimension_numbers = #tpu.dot_dimension_numbers<[1], [0], [0], [1], [0, 0, 1, 1], [], []>} : vector<24x32xf32>, vector<32x16xf32>, vector<24x16xf32> -> vector<24x16xf32>
    %cst_192 = arith.constant dense<0.000000e+00> : vector<24x16xf32>
    %354 = tpu.matmul %353, %352, %cst_192 {dimension_numbers = #tpu.dot_dimension_numbers<[1], [0], [0], [1], [0, 0, 1, 1], [], []>} : vector<24x16xf32>, vector<16x16xf32>, vector<24x16xf32> -> vector<24x16xf32>
    %355 = arith.addf %350, %354 : vector<24x16xf32>
    %c592 = arith.constant 592 : index
    %c0_193 = arith.constant 0 : index
    %356 = vector.load %arg3[%c592, %c0_193] : memref<2000x40xf32, #tpu.memory_space<vmem>>, vector<24x32xf32>
    %c1304 = arith.constant 1304 : index
    %c0_194 = arith.constant 0 : index
    %357 = vector.load %arg3[%c1304, %c0_194] : memref<2000x40xf32, #tpu.memory_space<vmem>>, vector<16x16xf32>
    %cst_195 = arith.constant dense<0.000000e+00> : vector<24x16xf32>
    %358 = tpu.matmul %356, %304, %cst_195 {dimension_numbers = #tpu.dot_dimension_numbers<[1], [0], [0], [1], [0, 0, 1, 1], [], []>} : vector<24x32xf32>, vector<32x16xf32>, vector<24x16xf32> -> vector<24x16xf32>
    %cst_196 = arith.constant dense<0.000000e+00> : vector<24x16xf32>
    %359 = tpu.matmul %358, %357, %cst_196 {dimension_numbers = #tpu.dot_dimension_numbers<[1], [0], [0], [1], [0, 0, 1, 1], [], []>} : vector<24x16xf32>, vector<16x16xf32>, vector<24x16xf32> -> vector<24x16xf32>
    %360 = arith.addf %355, %359 : vector<24x16xf32>
    %cst_197 = arith.constant 0.000000e+00 : f32
    %361 = vector.broadcast %cst_197 : f32 to vector<24x16xf32>
    %362 = arith.cmpf oge, %360, %361 : vector<24x16xf32>
    %cst_198 = arith.constant 1.000000e-01 : f32
    %363 = vector.broadcast %cst_198 : f32 to vector<24x16xf32>
    %364 = arith.mulf %363, %360 : vector<24x16xf32>
    %365 = arith.select %362, %360, %364 : vector<24x16xi1>, vector<24x16xf32>
    %cst_199 = arith.constant 0.000000e+00 : f32
    %366 = vector.broadcast %cst_199 : f32 to vector<16x16xf32>
    %c616 = arith.constant 616 : index
    %c0_200 = arith.constant 0 : index
    %367 = vector.load %arg3[%c616, %c0_200] : memref<2000x40xf32, #tpu.memory_space<vmem>>, vector<16x24xf32>
    %c1320 = arith.constant 1320 : index
    %c0_201 = arith.constant 0 : index
    %368 = vector.load %arg3[%c1320, %c0_201] : memref<2000x40xf32, #tpu.memory_space<vmem>>, vector<16x16xf32>
    %cst_202 = arith.constant dense<0.000000e+00> : vector<16x16xf32>
    %369 = tpu.matmul %367, %365, %cst_202 {dimension_numbers = #tpu.dot_dimension_numbers<[1], [0], [0], [1], [0, 0, 1, 1], [], []>} : vector<16x24xf32>, vector<24x16xf32>, vector<16x16xf32> -> vector<16x16xf32>
    %cst_203 = arith.constant dense<0.000000e+00> : vector<16x16xf32>
    %370 = tpu.matmul %369, %368, %cst_203 {dimension_numbers = #tpu.dot_dimension_numbers<[1], [0], [0], [1], [0, 0, 1, 1], [], []>} : vector<16x16xf32>, vector<16x16xf32>, vector<16x16xf32> -> vector<16x16xf32>
    %371 = arith.addf %366, %370 : vector<16x16xf32>
    %c632 = arith.constant 632 : index
    %c0_204 = arith.constant 0 : index
    %372 = vector.load %arg3[%c632, %c0_204] : memref<2000x40xf32, #tpu.memory_space<vmem>>, vector<16x24xf32>
    %c1336 = arith.constant 1336 : index
    %c0_205 = arith.constant 0 : index
    %373 = vector.load %arg3[%c1336, %c0_205] : memref<2000x40xf32, #tpu.memory_space<vmem>>, vector<16x16xf32>
    %cst_206 = arith.constant dense<0.000000e+00> : vector<16x16xf32>
    %374 = tpu.matmul %372, %365, %cst_206 {dimension_numbers = #tpu.dot_dimension_numbers<[1], [0], [0], [1], [0, 0, 1, 1], [], []>} : vector<16x24xf32>, vector<24x16xf32>, vector<16x16xf32> -> vector<16x16xf32>
    %cst_207 = arith.constant dense<0.000000e+00> : vector<16x16xf32>
    %375 = tpu.matmul %374, %373, %cst_207 {dimension_numbers = #tpu.dot_dimension_numbers<[1], [0], [0], [1], [0, 0, 1, 1], [], []>} : vector<16x16xf32>, vector<16x16xf32>, vector<16x16xf32> -> vector<16x16xf32>
    %376 = arith.addf %371, %375 : vector<16x16xf32>
    %c648 = arith.constant 648 : index
    %c0_208 = arith.constant 0 : index
    %377 = vector.load %arg3[%c648, %c0_208] : memref<2000x40xf32, #tpu.memory_space<vmem>>, vector<16x24xf32>
    %c1352 = arith.constant 1352 : index
    %c0_209 = arith.constant 0 : index
    %378 = vector.load %arg3[%c1352, %c0_209] : memref<2000x40xf32, #tpu.memory_space<vmem>>, vector<16x16xf32>
    %cst_210 = arith.constant dense<0.000000e+00> : vector<16x16xf32>
    %379 = tpu.matmul %377, %365, %cst_210 {dimension_numbers = #tpu.dot_dimension_numbers<[1], [0], [0], [1], [0, 0, 1, 1], [], []>} : vector<16x24xf32>, vector<24x16xf32>, vector<16x16xf32> -> vector<16x16xf32>
    %cst_211 = arith.constant dense<0.000000e+00> : vector<16x16xf32>
    %380 = tpu.matmul %379, %378, %cst_211 {dimension_numbers = #tpu.dot_dimension_numbers<[1], [0], [0], [1], [0, 0, 1, 1], [], []>} : vector<16x16xf32>, vector<16x16xf32>, vector<16x16xf32> -> vector<16x16xf32>
    %381 = arith.addf %376, %380 : vector<16x16xf32>
    %c664 = arith.constant 664 : index
    %c0_212 = arith.constant 0 : index
    %382 = vector.load %arg3[%c664, %c0_212] : memref<2000x40xf32, #tpu.memory_space<vmem>>, vector<16x24xf32>
    %c1368 = arith.constant 1368 : index
    %c0_213 = arith.constant 0 : index
    %383 = vector.load %arg3[%c1368, %c0_213] : memref<2000x40xf32, #tpu.memory_space<vmem>>, vector<16x16xf32>
    %cst_214 = arith.constant dense<0.000000e+00> : vector<16x16xf32>
    %384 = tpu.matmul %382, %365, %cst_214 {dimension_numbers = #tpu.dot_dimension_numbers<[1], [0], [0], [1], [0, 0, 1, 1], [], []>} : vector<16x24xf32>, vector<24x16xf32>, vector<16x16xf32> -> vector<16x16xf32>
    %cst_215 = arith.constant dense<0.000000e+00> : vector<16x16xf32>
    %385 = tpu.matmul %384, %383, %cst_215 {dimension_numbers = #tpu.dot_dimension_numbers<[1], [0], [0], [1], [0, 0, 1, 1], [], []>} : vector<16x16xf32>, vector<16x16xf32>, vector<16x16xf32> -> vector<16x16xf32>
    %386 = arith.addf %381, %385 : vector<16x16xf32>
    %c680 = arith.constant 680 : index
    %c0_216 = arith.constant 0 : index
    %387 = vector.load %arg3[%c680, %c0_216] : memref<2000x40xf32, #tpu.memory_space<vmem>>, vector<16x24xf32>
    %c1384 = arith.constant 1384 : index
    %c0_217 = arith.constant 0 : index
    %388 = vector.load %arg3[%c1384, %c0_217] : memref<2000x40xf32, #tpu.memory_space<vmem>>, vector<16x16xf32>
    %cst_218 = arith.constant dense<0.000000e+00> : vector<16x16xf32>
    %389 = tpu.matmul %387, %365, %cst_218 {dimension_numbers = #tpu.dot_dimension_numbers<[1], [0], [0], [1], [0, 0, 1, 1], [], []>} : vector<16x24xf32>, vector<24x16xf32>, vector<16x16xf32> -> vector<16x16xf32>
    %cst_219 = arith.constant dense<0.000000e+00> : vector<16x16xf32>
    %390 = tpu.matmul %389, %388, %cst_219 {dimension_numbers = #tpu.dot_dimension_numbers<[1], [0], [0], [1], [0, 0, 1, 1], [], []>} : vector<16x16xf32>, vector<16x16xf32>, vector<16x16xf32> -> vector<16x16xf32>
    %391 = arith.addf %386, %390 : vector<16x16xf32>
    %c696 = arith.constant 696 : index
    %c0_220 = arith.constant 0 : index
    %392 = vector.load %arg3[%c696, %c0_220] : memref<2000x40xf32, #tpu.memory_space<vmem>>, vector<16x24xf32>
    %c1400 = arith.constant 1400 : index
    %c0_221 = arith.constant 0 : index
    %393 = vector.load %arg3[%c1400, %c0_221] : memref<2000x40xf32, #tpu.memory_space<vmem>>, vector<16x16xf32>
    %cst_222 = arith.constant dense<0.000000e+00> : vector<16x16xf32>
    %394 = tpu.matmul %392, %365, %cst_222 {dimension_numbers = #tpu.dot_dimension_numbers<[1], [0], [0], [1], [0, 0, 1, 1], [], []>} : vector<16x24xf32>, vector<24x16xf32>, vector<16x16xf32> -> vector<16x16xf32>
    %cst_223 = arith.constant dense<0.000000e+00> : vector<16x16xf32>
    %395 = tpu.matmul %394, %393, %cst_223 {dimension_numbers = #tpu.dot_dimension_numbers<[1], [0], [0], [1], [0, 0, 1, 1], [], []>} : vector<16x16xf32>, vector<16x16xf32>, vector<16x16xf32> -> vector<16x16xf32>
    %396 = arith.addf %391, %395 : vector<16x16xf32>
    %c712 = arith.constant 712 : index
    %c0_224 = arith.constant 0 : index
    %397 = vector.load %arg3[%c712, %c0_224] : memref<2000x40xf32, #tpu.memory_space<vmem>>, vector<16x24xf32>
    %c1416 = arith.constant 1416 : index
    %c0_225 = arith.constant 0 : index
    %398 = vector.load %arg3[%c1416, %c0_225] : memref<2000x40xf32, #tpu.memory_space<vmem>>, vector<16x16xf32>
    %cst_226 = arith.constant dense<0.000000e+00> : vector<16x16xf32>
    %399 = tpu.matmul %397, %365, %cst_226 {dimension_numbers = #tpu.dot_dimension_numbers<[1], [0], [0], [1], [0, 0, 1, 1], [], []>} : vector<16x24xf32>, vector<24x16xf32>, vector<16x16xf32> -> vector<16x16xf32>
    %cst_227 = arith.constant dense<0.000000e+00> : vector<16x16xf32>
    %400 = tpu.matmul %399, %398, %cst_227 {dimension_numbers = #tpu.dot_dimension_numbers<[1], [0], [0], [1], [0, 0, 1, 1], [], []>} : vector<16x16xf32>, vector<16x16xf32>, vector<16x16xf32> -> vector<16x16xf32>
    %401 = arith.addf %396, %400 : vector<16x16xf32>
    %c728 = arith.constant 728 : index
    %c0_228 = arith.constant 0 : index
    %402 = vector.load %arg3[%c728, %c0_228] : memref<2000x40xf32, #tpu.memory_space<vmem>>, vector<16x24xf32>
    %c1432 = arith.constant 1432 : index
    %c0_229 = arith.constant 0 : index
    %403 = vector.load %arg3[%c1432, %c0_229] : memref<2000x40xf32, #tpu.memory_space<vmem>>, vector<16x16xf32>
    %cst_230 = arith.constant dense<0.000000e+00> : vector<16x16xf32>
    %404 = tpu.matmul %402, %365, %cst_230 {dimension_numbers = #tpu.dot_dimension_numbers<[1], [0], [0], [1], [0, 0, 1, 1], [], []>} : vector<16x24xf32>, vector<24x16xf32>, vector<16x16xf32> -> vector<16x16xf32>
    %cst_231 = arith.constant dense<0.000000e+00> : vector<16x16xf32>
    %405 = tpu.matmul %404, %403, %cst_231 {dimension_numbers = #tpu.dot_dimension_numbers<[1], [0], [0], [1], [0, 0, 1, 1], [], []>} : vector<16x16xf32>, vector<16x16xf32>, vector<16x16xf32> -> vector<16x16xf32>
    %406 = arith.addf %401, %405 : vector<16x16xf32>
    %c744 = arith.constant 744 : index
    %c0_232 = arith.constant 0 : index
    %407 = vector.load %arg3[%c744, %c0_232] : memref<2000x40xf32, #tpu.memory_space<vmem>>, vector<16x24xf32>
    %c1448 = arith.constant 1448 : index
    %c0_233 = arith.constant 0 : index
    %408 = vector.load %arg3[%c1448, %c0_233] : memref<2000x40xf32, #tpu.memory_space<vmem>>, vector<16x16xf32>
    %cst_234 = arith.constant dense<0.000000e+00> : vector<16x16xf32>
    %409 = tpu.matmul %407, %365, %cst_234 {dimension_numbers = #tpu.dot_dimension_numbers<[1], [0], [0], [1], [0, 0, 1, 1], [], []>} : vector<16x24xf32>, vector<24x16xf32>, vector<16x16xf32> -> vector<16x16xf32>
    %cst_235 = arith.constant dense<0.000000e+00> : vector<16x16xf32>
    %410 = tpu.matmul %409, %408, %cst_235 {dimension_numbers = #tpu.dot_dimension_numbers<[1], [0], [0], [1], [0, 0, 1, 1], [], []>} : vector<16x16xf32>, vector<16x16xf32>, vector<16x16xf32> -> vector<16x16xf32>
    %411 = arith.addf %406, %410 : vector<16x16xf32>
    %c760 = arith.constant 760 : index
    %c0_236 = arith.constant 0 : index
    %412 = vector.load %arg3[%c760, %c0_236] : memref<2000x40xf32, #tpu.memory_space<vmem>>, vector<16x24xf32>
    %c1464 = arith.constant 1464 : index
    %c0_237 = arith.constant 0 : index
    %413 = vector.load %arg3[%c1464, %c0_237] : memref<2000x40xf32, #tpu.memory_space<vmem>>, vector<16x16xf32>
    %cst_238 = arith.constant dense<0.000000e+00> : vector<16x16xf32>
    %414 = tpu.matmul %412, %365, %cst_238 {dimension_numbers = #tpu.dot_dimension_numbers<[1], [0], [0], [1], [0, 0, 1, 1], [], []>} : vector<16x24xf32>, vector<24x16xf32>, vector<16x16xf32> -> vector<16x16xf32>
    %cst_239 = arith.constant dense<0.000000e+00> : vector<16x16xf32>
    %415 = tpu.matmul %414, %413, %cst_239 {dimension_numbers = #tpu.dot_dimension_numbers<[1], [0], [0], [1], [0, 0, 1, 1], [], []>} : vector<16x16xf32>, vector<16x16xf32>, vector<16x16xf32> -> vector<16x16xf32>
    %416 = arith.addf %411, %415 : vector<16x16xf32>
    %c776 = arith.constant 776 : index
    %c0_240 = arith.constant 0 : index
    %417 = vector.load %arg3[%c776, %c0_240] : memref<2000x40xf32, #tpu.memory_space<vmem>>, vector<16x24xf32>
    %c1480 = arith.constant 1480 : index
    %c0_241 = arith.constant 0 : index
    %418 = vector.load %arg3[%c1480, %c0_241] : memref<2000x40xf32, #tpu.memory_space<vmem>>, vector<16x16xf32>
    %cst_242 = arith.constant dense<0.000000e+00> : vector<16x16xf32>
    %419 = tpu.matmul %417, %365, %cst_242 {dimension_numbers = #tpu.dot_dimension_numbers<[1], [0], [0], [1], [0, 0, 1, 1], [], []>} : vector<16x24xf32>, vector<24x16xf32>, vector<16x16xf32> -> vector<16x16xf32>
    %cst_243 = arith.constant dense<0.000000e+00> : vector<16x16xf32>
    %420 = tpu.matmul %419, %418, %cst_243 {dimension_numbers = #tpu.dot_dimension_numbers<[1], [0], [0], [1], [0, 0, 1, 1], [], []>} : vector<16x16xf32>, vector<16x16xf32>, vector<16x16xf32> -> vector<16x16xf32>
    %421 = arith.addf %416, %420 : vector<16x16xf32>
    %c1496 = arith.constant 1496 : index
    %c0_244 = arith.constant 0 : index
    %422 = vector.load %arg3[%c1496, %c0_244] : memref<2000x40xf32, #tpu.memory_space<vmem>>, vector<4x16xf32>
    %cst_245 = arith.constant dense<0.000000e+00> : vector<4x16xf32>
    %423 = tpu.matmul %422, %421, %cst_245 {dimension_numbers = #tpu.dot_dimension_numbers<[1], [0], [0], [1], [0, 0, 1, 1], [], []>} : vector<4x16xf32>, vector<16x16xf32>, vector<4x16xf32> -> vector<4x16xf32>
    %c1504 = arith.constant 1504 : index
    %c0_246 = arith.constant 0 : index
    %424 = vector.load %arg3[%c1504, %c0_246] : memref<2000x40xf32, #tpu.memory_space<vmem>>, vector<4x40xf32>
    %cst_247 = arith.constant dense<0.000000e+00> : vector<4x16xf32>
    %425 = tpu.matmul %424, %243, %cst_247 {dimension_numbers = #tpu.dot_dimension_numbers<[1], [0], [0], [1], [0, 0, 1, 1], [], []>} : vector<4x40xf32>, vector<40x16xf32>, vector<4x16xf32> -> vector<4x16xf32>
    %426 = arith.addf %423, %425 : vector<4x16xf32>
    %c1512 = arith.constant 1512 : index
    %c0_248 = arith.constant 0 : index
    %427 = vector.load %arg3[%c1512, %c0_248] : memref<2000x40xf32, #tpu.memory_space<vmem>>, vector<4x40xf32>
    %cst_249 = arith.constant dense<0.000000e+00> : vector<4x16xf32>
    %428 = tpu.matmul %427, %243, %cst_249 {dimension_numbers = #tpu.dot_dimension_numbers<[1], [0], [0], [1], [0, 0, 1, 1], [], []>} : vector<4x40xf32>, vector<40x16xf32>, vector<4x16xf32> -> vector<4x16xf32>
    %c1536 = arith.constant 1536 : index
    %c0_250 = arith.constant 0 : index
    %429 = vector.load %arg3[%c1536, %c0_250] : memref<2000x40xf32, #tpu.memory_space<vmem>>, vector<32x4xf32>
    %cst_251 = arith.constant dense<0.000000e+00> : vector<32x16xf32>
    %430 = tpu.matmul %429, %428, %cst_251 {dimension_numbers = #tpu.dot_dimension_numbers<[1], [0], [0], [1], [0, 0, 1, 1], [], []>} : vector<32x4xf32>, vector<4x16xf32>, vector<32x16xf32> -> vector<32x16xf32>
    %c1568 = arith.constant 1568 : index
    %c0_252 = arith.constant 0 : index
    %431 = vector.load %arg3[%c1568, %c0_252] : memref<2000x40xf32, #tpu.memory_space<vmem>>, vector<32x4xf32>
    %cst_253 = arith.constant dense<0.000000e+00> : vector<32x16xf32>
    %432 = tpu.matmul %431, %426, %cst_253 {dimension_numbers = #tpu.dot_dimension_numbers<[1], [0], [0], [1], [0, 0, 1, 1], [], []>} : vector<32x4xf32>, vector<4x16xf32>, vector<32x16xf32> -> vector<32x16xf32>
    %433 = arith.addf %430, %432 : vector<32x16xf32>
    %c1600 = arith.constant 1600 : index
    %c0_254 = arith.constant 0 : index
    %434 = vector.load %arg3[%c1600, %c0_254] : memref<2000x40xf32, #tpu.memory_space<vmem>>, vector<16x16xf32>
    %cst_255 = arith.constant dense<0.000000e+00> : vector<32x16xf32>
    %435 = tpu.matmul %433, %434, %cst_255 {dimension_numbers = #tpu.dot_dimension_numbers<[1], [0], [0], [1], [0, 0, 1, 1], [], []>} : vector<32x16xf32>, vector<16x16xf32>, vector<32x16xf32> -> vector<32x16xf32>
    %c1616 = arith.constant 1616 : index
    %c0_256 = arith.constant 0 : index
    %436 = vector.load %arg3[%c1616, %c0_256] : memref<2000x40xf32, #tpu.memory_space<vmem>>, vector<32x1xf32>
    %437 = vector.broadcast %436 : vector<32x1xf32> to vector<32x16xf32>
    %438 = arith.addf %435, %437 : vector<32x16xf32>
    %cst_257 = arith.constant 0.999994993 : f32
    %439 = vector.broadcast %cst_257 : f32 to vector<32x16xf32>
    %440 = arith.mulf %438, %439 : vector<32x16xf32>
    %441 = math.tanh %440 : vector<32x16xf32>
    %c1648 = arith.constant 1648 : index
    %c0_258 = arith.constant 0 : index
    %442 = vector.load %arg3[%c1648, %c0_258] : memref<2000x40xf32, #tpu.memory_space<vmem>>, vector<32x32xf32>
    %cst_259 = arith.constant dense<0.000000e+00> : vector<32x16xf32>
    %443 = tpu.matmul %442, %441, %cst_259 {dimension_numbers = #tpu.dot_dimension_numbers<[1], [0], [0], [1], [0, 0, 1, 1], [], []>} : vector<32x32xf32>, vector<32x16xf32>, vector<32x16xf32> -> vector<32x16xf32>
    %c1680 = arith.constant 1680 : index
    %c0_260 = arith.constant 0 : index
    %444 = vector.load %arg3[%c1680, %c0_260] : memref<2000x40xf32, #tpu.memory_space<vmem>>, vector<16x16xf32>
    %cst_261 = arith.constant dense<0.000000e+00> : vector<32x16xf32>
    %445 = tpu.matmul %443, %444, %cst_261 {dimension_numbers = #tpu.dot_dimension_numbers<[1], [0], [0], [1], [0, 0, 1, 1], [], []>} : vector<32x16xf32>, vector<16x16xf32>, vector<32x16xf32> -> vector<32x16xf32>
    %c1696 = arith.constant 1696 : index
    %c0_262 = arith.constant 0 : index
    %446 = vector.load %arg3[%c1696, %c0_262] : memref<2000x40xf32, #tpu.memory_space<vmem>>, vector<32x1xf32>
    %447 = vector.broadcast %446 : vector<32x1xf32> to vector<32x16xf32>
    %448 = arith.addf %445, %447 : vector<32x16xf32>
    %cst_263 = arith.constant 0.999994993 : f32
    %449 = vector.broadcast %cst_263 : f32 to vector<32x16xf32>
    %450 = arith.mulf %448, %449 : vector<32x16xf32>
    %451 = math.tanh %450 : vector<32x16xf32>
    %c1728 = arith.constant 1728 : index
    %c0_264 = arith.constant 0 : index
    %452 = vector.load %arg3[%c1728, %c0_264] : memref<2000x40xf32, #tpu.memory_space<vmem>>, vector<32x32xf32>
    %cst_265 = arith.constant dense<0.000000e+00> : vector<32x16xf32>
    %453 = tpu.matmul %452, %451, %cst_265 {dimension_numbers = #tpu.dot_dimension_numbers<[1], [0], [0], [1], [0, 0, 1, 1], [], []>} : vector<32x32xf32>, vector<32x16xf32>, vector<32x16xf32> -> vector<32x16xf32>
    %c1760 = arith.constant 1760 : index
    %c0_266 = arith.constant 0 : index
    %454 = vector.load %arg3[%c1760, %c0_266] : memref<2000x40xf32, #tpu.memory_space<vmem>>, vector<16x16xf32>
    %cst_267 = arith.constant dense<0.000000e+00> : vector<32x16xf32>
    %455 = tpu.matmul %453, %454, %cst_267 {dimension_numbers = #tpu.dot_dimension_numbers<[1], [0], [0], [1], [0, 0, 1, 1], [], []>} : vector<32x16xf32>, vector<16x16xf32>, vector<32x16xf32> -> vector<32x16xf32>
    %c1776 = arith.constant 1776 : index
    %c0_268 = arith.constant 0 : index
    %456 = vector.load %arg3[%c1776, %c0_268] : memref<2000x40xf32, #tpu.memory_space<vmem>>, vector<32x1xf32>
    %457 = vector.broadcast %456 : vector<32x1xf32> to vector<32x16xf32>
    %458 = arith.addf %455, %457 : vector<32x16xf32>
    %cst_269 = arith.constant 0.999994993 : f32
    %459 = vector.broadcast %cst_269 : f32 to vector<32x16xf32>
    %460 = arith.mulf %458, %459 : vector<32x16xf32>
    %461 = math.tanh %460 : vector<32x16xf32>
    %462 = arith.addf %461, %441 : vector<32x16xf32>
    %c1808 = arith.constant 1808 : index
    %c0_270 = arith.constant 0 : index
    %463 = vector.load %arg3[%c1808, %c0_270] : memref<2000x40xf32, #tpu.memory_space<vmem>>, vector<32x32xf32>
    %cst_271 = arith.constant dense<0.000000e+00> : vector<32x16xf32>
    %464 = tpu.matmul %463, %462, %cst_271 {dimension_numbers = #tpu.dot_dimension_numbers<[1], [0], [0], [1], [0, 0, 1, 1], [], []>} : vector<32x32xf32>, vector<32x16xf32>, vector<32x16xf32> -> vector<32x16xf32>
    %c1840 = arith.constant 1840 : index
    %c0_272 = arith.constant 0 : index
    %465 = vector.load %arg3[%c1840, %c0_272] : memref<2000x40xf32, #tpu.memory_space<vmem>>, vector<16x16xf32>
    %cst_273 = arith.constant dense<0.000000e+00> : vector<32x16xf32>
    %466 = tpu.matmul %464, %465, %cst_273 {dimension_numbers = #tpu.dot_dimension_numbers<[1], [0], [0], [1], [0, 0, 1, 1], [], []>} : vector<32x16xf32>, vector<16x16xf32>, vector<32x16xf32> -> vector<32x16xf32>
    %c1856 = arith.constant 1856 : index
    %c0_274 = arith.constant 0 : index
    %467 = vector.load %arg3[%c1856, %c0_274] : memref<2000x40xf32, #tpu.memory_space<vmem>>, vector<32x1xf32>
    %468 = vector.broadcast %467 : vector<32x1xf32> to vector<32x16xf32>
    %469 = arith.addf %466, %468 : vector<32x16xf32>
    %cst_275 = arith.constant 0.999994993 : f32
    %470 = vector.broadcast %cst_275 : f32 to vector<32x16xf32>
    %471 = arith.mulf %469, %470 : vector<32x16xf32>
    %472 = math.tanh %471 : vector<32x16xf32>
    %c1888 = arith.constant 1888 : index
    %c0_276 = arith.constant 0 : index
    %473 = vector.load %arg3[%c1888, %c0_276] : memref<2000x40xf32, #tpu.memory_space<vmem>>, vector<32x32xf32>
    %cst_277 = arith.constant dense<0.000000e+00> : vector<32x16xf32>
    %474 = tpu.matmul %473, %472, %cst_277 {dimension_numbers = #tpu.dot_dimension_numbers<[1], [0], [0], [1], [0, 0, 1, 1], [], []>} : vector<32x32xf32>, vector<32x16xf32>, vector<32x16xf32> -> vector<32x16xf32>
    %c1920 = arith.constant 1920 : index
    %c0_278 = arith.constant 0 : index
    %475 = vector.load %arg3[%c1920, %c0_278] : memref<2000x40xf32, #tpu.memory_space<vmem>>, vector<16x16xf32>
    %cst_279 = arith.constant dense<0.000000e+00> : vector<32x16xf32>
    %476 = tpu.matmul %474, %475, %cst_279 {dimension_numbers = #tpu.dot_dimension_numbers<[1], [0], [0], [1], [0, 0, 1, 1], [], []>} : vector<32x16xf32>, vector<16x16xf32>, vector<32x16xf32> -> vector<32x16xf32>
    %c1936 = arith.constant 1936 : index
    %c0_280 = arith.constant 0 : index
    %477 = vector.load %arg3[%c1936, %c0_280] : memref<2000x40xf32, #tpu.memory_space<vmem>>, vector<32x1xf32>
    %478 = vector.broadcast %477 : vector<32x1xf32> to vector<32x16xf32>
    %479 = arith.addf %476, %478 : vector<32x16xf32>
    %cst_281 = arith.constant 0.999994993 : f32
    %480 = vector.broadcast %cst_281 : f32 to vector<32x16xf32>
    %481 = arith.mulf %479, %480 : vector<32x16xf32>
    %482 = math.tanh %481 : vector<32x16xf32>
    %483 = arith.addf %482, %462 : vector<32x16xf32>
    %c1968 = arith.constant 1968 : index
    %c0_282 = arith.constant 0 : index
    %484 = vector.load %arg3[%c1968, %c0_282] : memref<2000x40xf32, #tpu.memory_space<vmem>>, vector<8x32xf32>
    %cst_283 = arith.constant dense<0.000000e+00> : vector<8x16xf32>
    %485 = tpu.matmul %484, %483, %cst_283 {dimension_numbers = #tpu.dot_dimension_numbers<[1], [0], [0], [1], [0, 0, 1, 1], [], []>} : vector<8x32xf32>, vector<32x16xf32>, vector<8x16xf32> -> vector<8x16xf32>
    %c1976 = arith.constant 1976 : index
    %c0_284 = arith.constant 0 : index
    %486 = vector.load %arg3[%c1976, %c0_284] : memref<2000x40xf32, #tpu.memory_space<vmem>>, vector<16x16xf32>
    %cst_285 = arith.constant dense<0.000000e+00> : vector<8x16xf32>
    %487 = tpu.matmul %485, %486, %cst_285 {dimension_numbers = #tpu.dot_dimension_numbers<[1], [0], [0], [1], [0, 0, 1, 1], [], []>} : vector<8x16xf32>, vector<16x16xf32>, vector<8x16xf32> -> vector<8x16xf32>
    %c1992 = arith.constant 1992 : index
    %c0_286 = arith.constant 0 : index
    %488 = vector.load %arg3[%c1992, %c0_286] : memref<2000x40xf32, #tpu.memory_space<vmem>>, vector<8x1xf32>
    %489 = vector.broadcast %488 : vector<8x1xf32> to vector<8x16xf32>
    %490 = arith.addf %487, %489 : vector<8x16xf32>
    %491 = vector.extract_strided_slice %490 {offsets = [0, 0], sizes = [4, 16], strides = [1, 1]} : vector<8x16xf32> to vector<4x16xf32>
    %492 = arith.addf %491, %428 : vector<4x16xf32>
    %c1520 = arith.constant 1520 : index
    %c0_287 = arith.constant 0 : index
    %493 = vector.load %arg3[%c1520, %c0_287] : memref<2000x40xf32, #tpu.memory_space<vmem>>, vector<10x4xf32>
    %cst_288 = arith.constant dense<0.000000e+00> : vector<10x16xf32>
    %494 = tpu.matmul %493, %492, %cst_288 {dimension_numbers = #tpu.dot_dimension_numbers<[1], [0], [0], [1], [0, 0, 1, 1], [], []>} : vector<10x4xf32>, vector<4x16xf32>, vector<10x16xf32> -> vector<10x16xf32>
    %c0_289 = arith.constant 0 : index
    %c0_290 = arith.constant 0 : index
    %c0_291 = arith.constant 0 : index
    %495 = vector.load %arg4[%c0_289, %c0_290, %c0_291] : memref<1x10x16xf32, #tpu.memory_space<vmem>>, vector<1x10x16xf32>
    %496 = vector.shape_cast %495 : vector<1x10x16xf32> to vector<10x16xf32>
    %497 = vector.shape_cast %494 : vector<10x16xf32> to vector<1x10x16xf32>
    tpu.vector_store %arg4[%c0_289, %c0_290, %c0_291], %497 {strides = array<i32>} : memref<1x10x16xf32, #tpu.memory_space<vmem>>, vector<1x10x16xf32>,
    return
  }
  func.func @transform_0(%arg0: i32) -> (i32, i32) {
    %c0_i32 = arith.constant 0 : i32
    %c0_i32_0 = arith.constant 0 : i32
    return %arg0, %c0_i32 : i32, i32
  }
  func.func @transform_1(%arg0: i32) -> (i32, i32) {
    %c0_i32 = arith.constant 0 : i32
    %c0_i32_0 = arith.constant 0 : i32
    %c0_i32_1 = arith.constant 0 : i32
    return %c0_i32, %c0_i32_0 : i32, i32
  }
  func.func @transform_2(%arg0: i32) -> (i32, i32) {
    %c0_i32 = arith.constant 0 : i32
    %c0_i32_0 = arith.constant 0 : i32
    %c0_i32_1 = arith.constant 0 : i32
    return %c0_i32, %c0_i32_0 : i32, i32
  }
  func.func @transform_3(%arg0: i32) -> (i32, i32, i32) {
    %c0_i32 = arith.constant 0 : i32
    %c0_i32_0 = arith.constant 0 : i32
    %c0_i32_1 = arith.constant 0 : i32
    return %arg0, %c0_i32, %c0_i32_0 : i32, i32, i32
  }
}

</mosaic_0001>

<bundles_post_ra>
// kernel: tpu_custom_call.1
= control target key start
LH: loop header
LB: loop body
LE: loop exit
PB: predicated region body
PF: predicated region fallthrough
CT: control target
= control target key end

     0   :  { %s14634_s12 = smov 0   ;;  %s17042_s0 = inlined_call_operand.vmem [shape: f32[80,16], index: 0, kind: input, shape index: {}]   ;;  %s17043_s1 = inlined_call_operand.vmem [shape: f32[424,128], index: 1, kind: input, shape index: {}]   ;;  %s17044_s2 = inlined_call_operand.vmem [shape: f32[2000,40], index: 2, kind: input, shape index: {}]   ;;  %s17045_s3 = inlined_call_operand.vmem [shape: f32[2,10,16], index: 3, kind: output, shape index: {}]  }
   0x1 LB: > { %s14640_s13 = sadd.s32 4294967295, %s14602_s12   ;;  %p11129_p0 = scmp.ge.s32.totalorder %s14602_s12, 1  ;;  %s14602_s12 = sphi %s14634_s12, %s13_s12  }
   0x2   : > { %p138_p1 = scmp.lt.s32.totalorder %s14602_s12, 3 }
   0x4   : > { %p139_p2 = pnand %p11129_p0, %p138_p1 }
   0x5   : > { %v178_v0 = vld [vmem:[%s17043_s1] sm:$0xff] (!%p139_p2)  ;;  %v179_v1 = vld [vmem:[%s17043_s1 + $0x8] sm:$0xff] (!%p139_p2)  ;;  %s162_s18 = smul.u32 (!%p139_p2), 5, %s14640_s13  ;;  %v14604_v2 = vmov (!%p139_p2), 0.0|0.0   ;;  %vm14605_vm0 = vmmov (!%p139_p2), 0   ;;  %v14606_v4 = vmov (!%p139_p2), 0.0  }
   0x6   : > { %142 = sbr.rel (%p139_p2) target bundleno = 10951 (0x2ac7), region = 32  ;;  %13604 = vmatprep.subr.bf16.mxu0 (!%p139_p2), %v14604_v2  ;;  %v13605_v3 = vpack.c.bf16 (!%p139_p2), %v179_v1, %v178_v0  ;;  %12191 = vmatprep.mubr.msk.f32.mxu0 (!%p139_p2), %vm14605_vm0, %v14606_v4  ;;  %vm185_vm1 = vcmask (!%p139_p2), 130048   ;;  %v11133_v10 = vld [vmem:[%s17043_s1 + $0x10] ss:$0 sm:$0xff] (!%p139_p2)  ;;  %vm293_vm2 = vcmask (!%p139_p2), 261120   ;;  %v413_v56 = vld [vmem:[%s17043_s1 + $0x28] sm:$0xff] (!%p139_p2) }
   0x7   : > { %p163_p3 = scmp.lt.s32.totalorder (!%p139_p2), %s162_s18, 9  ;;  %13607 = vmatprep.subr.bf16.mxu1 (!%p139_p2), %v14604_v2  ;;  %12214 = vmatprep.mubr.msk.f32.mxu1 (!%p139_p2), %vm14605_vm0, %v14606_v4  ;;  %v414_v57 = vld [vmem:[%s17043_s1 + $0x30] sm:$0xff] (!%p139_p2)  ;;  %v415_v59 = vld [vmem:[%s17043_s1 + $0x38] sm:$0xff] (!%p139_p2)  ;;  %v416_v60 = vld [vmem:[%s17043_s1 + $0x40] sm:$0xff] (!%p139_p2)  ;;  %s14607_s14 = smov (!%p139_p2), 96   ;;  %vm657_vm14 = vcmask (!%p139_p2), 326656  }
   0x8   : > { %13606 = vmatpush3.bf16.msra.mxu0 (!%p139_p2), %v13605_v3  ;;  %v13608_v58 = vpack.c.bf16 (!%p139_p2), %v414_v57, %v413_v56  ;;  %v13611_v61 = vpack.c.bf16 (!%p139_p2), %v416_v60, %v415_v59  ;;  %s14608_s15 = smov (!%p139_p2), 80   ;;  %s14609_s16 = smov (!%p139_p2), 112   ;;  %vm14805_vm13 = vmpackc.low (!%p139_p2), %vm185_vm1, %vm185_vm1  ;;  %vm1168_vm15 = vcmask (!%p139_p2), 261248  }
   0x9   : > { %13613 = vmatprep.subr.bf16.mxu0 (!%p139_p2), %v14604_v2  ;;  %s14610_s17 = smov (!%p139_p2), 64   ;;  %s14612_s28 = smov (!%p139_p2), 16  }
   0xa   : > { %13609 = vmatpush3.bf16.msra.mxu1 (!%p139_p2), %v13608_v58  ;;  %p168_p4 = scmp.lt.s32.totalorder (!%p139_p2), %s14640_s13, 1 }
   0xb   : > { %13610 = vmatprep.subr.bf16.mxu1 (!%p139_p2), %v14604_v2 }
   0xd   : > { %s17049_s18 = smov (!%p163_p3, %s162_s18), 9  ;;  %s17051_s13 = smov (!%p168_p4, %s14640_s13), 1 }
   0xe   : > { %s11130_s19 = sshll.u32 %s17049_s18, 3  ;;  %13612 = vmatpush3.bf16.msra.mxu1 %v13611_v61  ;;  %s14611_s18 = smov 48  }
   0xf   : > { %s14661_s22 = scalar_lea.vmem %s17042_s0, %s11130_s19  ;;  %13621 = vmatprep.subr.bf16.mxu1 %v14604_v2 }
  0x10   : > { %v173_v5 = vld [vmem:[%s14661_s22] sm:$0xff]  ;;  %v174_v6 = vld [vmem:[%s14661_s22 + $0x8] sm:$0xff]  ;;  %v175_v7 = vld [vmem:[%s14661_s22 + $0x10] sm:$0xff] }
  0x11   : > { %12192 = vmatmul.mubr.msk.f32.vlgmr.msra.gmra.mrb[0].mxu0 %vm185_vm1, %v173_v5  ;;  %v176_v8 = vld [vmem:[%s14661_s22 + $0x18] sm:$0xff]  ;;  %v177_v9 = vld [vmem:[%s14661_s22 + $0x20] sm:$0xff] }
  0x12   : > { %12194 = vmatprep.mubr.msk.f32.mxu0 %vm14605_vm0, %v14606_v4 }
  0x15   : > { %12195 = vmatmul.mubr.msk.f32.gmra.mrb[2].mxu0 %vm185_vm1, %v174_v6 }
  0x16   : > { %12197 = vmatprep.mubr.msk.f32.mxu0 %vm14605_vm0, %v14606_v4 }
  0x19   : > { %12198 = vmatmul.mubr.msk.f32.gmra.mrb[4].mxu0 %vm185_vm1, %v175_v7 }
  0x1a   : > { %12200 = vmatprep.mubr.msk.f32.mxu0 %vm14605_vm0, %v14606_v4 }
  0x1d   : > { %12201 = vmatmul.mubr.msk.f32.gmra.mrb[6].mxu0 %vm185_vm1, %v176_v8 }
  0x1e   : > { %12203 = vmatprep.mubr.msk.f32.mxu0 %vm14605_vm0, %v14606_v4 }
  0x21   : > { %12204 = vmatmul.mubr.msk.f32.gmra.mrb[8].mxu0 %vm185_vm1, %v177_v9 }
  0x22   : > { %12239 = vmatprep.mubr.msk.f32.mxu0 %vm14605_vm0, %v14606_v4 }
  0xe4   : > { %v267_v11 = vpop.f32.mrb[0].mxu0 }
  0xe5   : > { %v14686_v12 = vadd.f32 %v11133_v10, %v267_v11  ;;  %v12193_v13 = vpop.f32.mrb[1].mxu0 }
  0xe7   : > { %v294_v14 = vsel %vm293_vm2, %v14686_v12, 0.0 }
  0xe8   : > { %295 = vadd.xlane.f32.xlu0 %v294_v14  ;;  %v272_v15 = vpop.f32.mrb[2].mxu0 }
  0xe9   : > { %v14690_v16 = vadd.f32 %v11133_v10, %v272_v15  ;;  %v12196_v17 = vpop.f32.mrb[3].mxu0 }
  0xeb   : > { %v297_v18 = vsel %vm293_vm2, %v14690_v16, 0.0 }
  0xec   : > { %298 = vadd.xlane.f32.xlu0 %v297_v18  ;;  %v277_v19 = vpop.f32.mrb[4].mxu0 }
  0xed   : > { %v14694_v20 = vadd.f32 %v11133_v10, %v277_v19  ;;  %v12199_v21 = vpop.f32.mrb[5].mxu0 }
  0xef   : > { %v300_v22 = vsel %vm293_vm2, %v14694_v20, 0.0 }
  0xf0   : > { %301 = vadd.xlane.f32.xlu1 %v300_v22  ;;  %v282_v23 = vpop.f32.mrb[6].mxu0 }
  0xf1   : > { %v14698_v24 = vadd.f32 %v11133_v10, %v282_v23  ;;  %v12202_v25 = vpop.f32.mrb[7].mxu0 }
  0xf3   : > { %v303_v26 = vsel %vm293_vm2, %v14698_v24, 0.0 }
  0xf4   : > { %304 = vadd.xlane.f32.xlu1 %v303_v26  ;;  %v287_v27 = vpop.f32.mrb[8].mxu0 }
  0xf5   : > { %v14702_v28 = vadd.f32 %v11133_v10, %v287_v27  ;;  %v12205_v29 = vpop.f32.mrb[9].mxu0 }
  0xf7   : > { %v306_v30 = vsel %vm293_vm2, %v14702_v28, 0.0 }
  0xf8   : > { %307 = vadd.xlane.f32.xlu0 %v306_v30 }
 0x175   : > { %v296_v31 = vpop.xlane.xlu0 %295 }
 0x176   : > { %v310_v32 = vmul.f32 0.03125, %v296_v31 }
 0x178   : > { %v14707_v33 = vsub.f32 %v14686_v12, %v310_v32 }
 0x179   : > { %v299_v34 = vpop.xlane.xlu0 %298 }
 0x17a   : > { %v311_v35 = vmul.f32 0.03125, %v299_v34  ;;  %v320_v36 = vmul.f32 %v14707_v33, %v14707_v33 }
 0x17c   : > { %v14712_v37 = vsub.f32 %v14690_v16, %v311_v35  ;;  %v325_v38 = vsel %vm293_vm2, %v320_v36, 0.0 }
 0x17d   : > { %v302_v39 = vpop.xlane.xlu1 %301  ;;  %326 = vadd.xlane.f32.xlu1 %v325_v38 }
 0x17e   : > { %v312_v40 = vmul.f32 0.03125, %v302_v39  ;;  %v321_v41 = vmul.f32 %v14712_v37, %v14712_v37 }
 0x180   : > { %v14718_v42 = vsub.f32 %v14694_v20, %v312_v40  ;;  %v328_v43 = vsel %vm293_vm2, %v321_v41, 0.0 }
 0x181   : > { %v305_v44 = vpop.xlane.xlu1 %304  ;;  %329 = vadd.xlane.f32.xlu0 %v328_v43 }
 0x182   : > { %v313_v45 = vmul.f32 0.03125, %v305_v44  ;;  %v322_v46 = vmul.f32 %v14718_v42, %v14718_v42 }
 0x184   : > { %v14724_v47 = vsub.f32 %v14698_v24, %v313_v45  ;;  %v331_v48 = vsel %vm293_vm2, %v322_v46, 0.0  ;;  %v11139_v45 = vld [vmem:[%s17043_s1 + $0x18] ss:$0 sm:$0xff] }
 0x185   : > { %332 = vadd.xlane.f32.xlu1 %v331_v48  ;;  %v308_v49 = vpop.xlane.xlu0 %307 }
 0x186   : > { %v314_v50 = vmul.f32 0.03125, %v308_v49  ;;  %v323_v51 = vmul.f32 %v14724_v47, %v14724_v47 }
 0x188   : > { %v14730_v52 = vsub.f32 %v14702_v28, %v314_v50  ;;  %v334_v53 = vsel %vm293_vm2, %v323_v51, 0.0  ;;  %v11140_v50 = vld [vmem:[%s17043_s1 + $0x20] ss:$0 sm:$0xff] }
 0x189   : > { %335 = vadd.xlane.f32.xlu0 %v334_v53 }
 0x18a   : > { %v324_v54 = vmul.f32 %v14730_v52, %v14730_v52 }
 0x18c   : > { %v337_v55 = vsel %vm293_vm2, %v324_v54, 0.0 }
 0x18d   : > { %338 = vadd.xlane.f32.xlu1 %v337_v55 }
 0x20a   : > { %v327_v62 = vpop.xlane.xlu1 %326 }
 0x20b   : > { %v340_v63 = vmul.f32 0.032258064, %v327_v62 }
 0x20d   : > { %14376 = vrsqrt.f32 %v340_v63  ;;  %vm347_vm3 = vcmp.eq.f32.partialorder %v340_v63, inf  ;;  %v350_v10 = vand.u32 2147483648, %v340_v63  ;;  %vm349_vm4 = vcmp.eq.f32.partialorder %v340_v63, 0.0 }
 0x20e   : > { %v330_v0 = vpop.xlane.xlu0 %329 }
 0x20f   : > { %v341_v1 = vmul.f32 0.032258064, %v330_v0 }
 0x211   : > { %14378 = vrsqrt.f32 %v341_v1  ;;  %vm354_vm5 = vcmp.eq.f32.partialorder %v341_v1, inf  ;;  %v357_v21 = vand.u32 2147483648, %v341_v1  ;;  %vm356_vm6 = vcmp.eq.f32.partialorder %v341_v1, 0.0 }
 0x212   : > { %v333_v3 = vpop.xlane.xlu1 %332 }
 0x213   : > { %v342_v5 = vmul.f32 0.032258064, %v333_v3 }
 0x215   : > { %14380 = vrsqrt.f32 %v342_v5  ;;  %vm361_vm7 = vcmp.eq.f32.partialorder %v342_v5, inf  ;;  %v364_v29 = vand.u32 2147483648, %v342_v5  ;;  %vm363_vm8 = vcmp.eq.f32.partialorder %v342_v5, 0.0 }
 0x216   : > { %v336_v6 = vpop.xlane.xlu0 %335 }
 0x217   : > { %v14377_v7 = vpop.eup %14376  ;;  %v343_v8 = vmul.f32 0.032258064, %v336_v6 }
 0x218   : > { %v346_v9 = vmul.f32 %v14377_v7, %v340_v63 }
 0x219   : > { %14382 = vrsqrt.f32 %v343_v8  ;;  %vm368_vm9 = vcmp.eq.f32.partialorder %v343_v8, inf  ;;  %v371_v36 = vand.u32 2147483648, %v343_v8  ;;  %vm370_vm10 = vcmp.eq.f32.partialorder %v343_v8, 0.0 }
 0x21a   : > { %v348_v11 = vsel %vm347_vm3, %v340_v63, %v346_v9  ;;  %v339_v13 = vpop.xlane.xlu1 %338 }
 0x21b   : > { %v14379_v14 = vpop.eup %14378  ;;  %v351_v15 = vsel %vm349_vm4, %v350_v10, %v348_v11  ;;  %v344_v17 = vmul.f32 0.032258064, %v339_v13 }
 0x21c   : > { %v380_v18 = vadd.f32 1e-06, %v351_v15  ;;  %v353_v19 = vmul.f32 %v14379_v14, %v341_v1 }
 0x21d   : > { %14384 = vrsqrt.f32 %v344_v17  ;;  %vm375_vm11 = vcmp.eq.f32.partialorder %v344_v17, inf  ;;  %v378_v46 = vand.u32 2147483648, %v344_v17  ;;  %vm377_vm12 = vcmp.eq.f32.partialorder %v344_v17, 0.0 }
 0x21e   : > { %v355_v22 = vsel %vm354_vm5, %v341_v1, %v353_v19  ;;  %14386 = vrcp.f32 %v380_v18 }
 0x21f   : > { %v14381_v23 = vpop.eup %14380  ;;  %v358_v25 = vsel %vm356_vm6, %v357_v21, %v355_v22 }
 0x220   : > { %v381_v26 = vadd.f32 1e-06, %v358_v25  ;;  %v360_v27 = vmul.f32 %v14381_v23, %v342_v5 }
 0x222   : > { %v362_v30 = vsel %vm361_vm7, %v342_v5, %v360_v27  ;;  %14388 = vrcp.f32 %v381_v26 }
 0x223   : > { %v14383_v31 = vpop.eup %14382  ;;  %v365_v32 = vsel %vm363_vm8, %v364_v29, %v362_v30 }
 0x224   : > { %v382_v34 = vadd.f32 1e-06, %v365_v32  ;;  %v367_v35 = vmul.f32 %v14383_v31, %v343_v8 }
 0x226   : > { %v369_v38 = vsel %vm368_vm9, %v343_v8, %v367_v35  ;;  %14390 = vrcp.f32 %v382_v34  ;;  %v11141_v8 = vld [vmem:[%s17043_s1 + $0x48] ss:$0 sm:$0xff] }
 0x227   : > { %v14385_v39 = vpop.eup %14384  ;;  %v372_v40 = vsel %vm370_vm10, %v371_v36, %v369_v38 }
 0x228   : > { %v14387_v41 = vpop.eup %14386  ;;  %v383_v43 = vadd.f32 1e-06, %v372_v40  ;;  %v374_v44 = vmul.f32 %v14385_v39, %v344_v17 }
 0x229   : > { %v390_v48 = vmul.f32 %v14387_v41, %v14707_v33 }
 0x22a   : > { %v376_v49 = vsel %vm375_vm11, %v344_v17, %v374_v44  ;;  %14392 = vrcp.f32 %v383_v43 }
 0x22b   : > { %v379_v51 = vsel %vm377_vm12, %v378_v46, %v376_v49  ;;  %v399_v53 = vmul.f32 %v11139_v45, %v390_v48 }
 0x22c   : > { %v14389_v54 = vpop.eup %14388  ;;  %v384_v55 = vadd.f32 1e-06, %v379_v51 }
 0x22d   : > { %v408_v56 = vadd.f32 %v11140_v50, %v399_v53  ;;  %v391_v57 = vmul.f32 %v14389_v54, %v14712_v37 }
 0x22e   : > { %14394 = vrcp.f32 %v384_v55 }
 0x22f   : > { %12215 = vmatmul.mubr.msk.f32.vlgmr.msra.gmra.mrb[0].mxu1 %vm293_vm2, %v408_v56  ;;  %v400_v58 = vmul.f32 %v11139_v45, %v391_v57 }
 0x230   : > { %v14391_v59 = vpop.eup %14390  ;;  %12217 = vmatprep.mubr.msk.f32.mxu1 %vm14605_vm0, %v14606_v4 }
 0x231   : > { %v409_v33 = vadd.f32 %v11140_v50, %v400_v58  ;;  %v392_v60 = vmul.f32 %v14391_v59, %v14718_v42 }
 0x233   : > { %12218 = vmatmul.mubr.msk.f32.gmra.mrb[2].mxu1 %vm293_vm2, %v409_v33  ;;  %v401_v61 = vmul.f32 %v11139_v45, %v392_v60 }
 0x234   : > { %v14393_v62 = vpop.eup %14392  ;;  %12220 = vmatprep.mubr.msk.f32.mxu1 %vm14605_vm0, %v14606_v4 }
 0x235   : > { %v410_v63 = vadd.f32 %v11140_v50, %v401_v61  ;;  %v393_v37 = vmul.f32 %v14393_v62, %v14724_v47 }
 0x237   : > { %12221 = vmatmul.mubr.msk.f32.gmra.mrb[4].mxu1 %vm293_vm2, %v410_v63  ;;  %v402_v0 = vmul.f32 %v11139_v45, %v393_v37 }
 0x238   : > { %v14395_v1 = vpop.eup %14394  ;;  %12223 = vmatprep.mubr.msk.f32.mxu1 %vm14605_vm0, %v14606_v4 }
 0x239   : > { %v411_v3 = vadd.f32 %v11140_v50, %v402_v0  ;;  %v394_v42 = vmul.f32 %v14395_v1, %v14730_v52 }
 0x23b   : > { %12224 = vmatmul.mubr.msk.f32.gmra.mrb[6].mxu1 %vm293_vm2, %v411_v3  ;;  %v403_v5 = vmul.f32 %v11139_v45, %v394_v42 }
 0x23c   : > { %12226 = vmatprep.mubr.msk.f32.mxu1 %vm14605_vm0, %v14606_v4 }
 0x23d   : > { %v412_v6 = vadd.f32 %v11140_v50, %v403_v5 }
 0x23f   : > { %12227 = vmatmul.mubr.msk.f32.gmra.mrb[8].mxu1 %vm293_vm2, %v412_v6 }
 0x240   : > { %12264 = vmatprep.mubr.msk.f32.mxu1 %vm14605_vm0, %v14606_v4 }
 0x302   : > { %v503_v47 = vpop.f32.mrb[0].mxu1 }
 0x303   : > { %v12216_v7 = vpop.f32.mrb[1].mxu1  ;;  %v504_v52 = vadd.f32 %v11141_v8, %v503_v47 }
 0x306   : > { %v508_v9 = vpop.f32.mrb[2].mxu1 }
 0x307   : > { %v509_v10 = vadd.f32 %v11141_v8, %v508_v9  ;;  %v12219_v11 = vpop.f32.mrb[3].mxu1 }
 0x309   : > { %v14779_v13 = vpack.i.bf16 %v509_v10, %v504_v52 }
 0x30a   : > { %v513_v14 = vpop.f32.mrb[4].mxu1 }
 0x30b   : > { %14295 = vrot.lane.b32.xlu0 %v14779_v13, %s14607_s14  ;;  %v12222_v15 = vpop.f32.mrb[5].mxu1  ;;  %v514_v18 = vadd.f32 %v11141_v8, %v513_v14 }
 0x30e   : > { %v518_v17 = vpop.f32.mrb[6].mxu1 }
 0x30f   : > { %v519_v19 = vadd.f32 %v11141_v8, %v518_v17  ;;  %v12225_v21 = vpop.f32.mrb[7].mxu1 }
 0x311   : > { %v14783_v22 = vpack.i.bf16 %v519_v19, %v514_v18 }
 0x312   : > { %v523_v23 = vpop.f32.mrb[8].mxu1 }
 0x313   : > { %14310 = vrot.lane.b32.xlu0 %v14783_v22, %s14608_s15  ;;  %14300 = vrot.lane.b32.xlu1 %v14783_v22, %s14607_s14  ;;  %v12228_v25 = vpop.f32.mrb[9].mxu1  ;;  %v14789_v26 = vadd.f32 %v11141_v8, %v523_v23 }
 0x317   : > { %838 = vrot.lane.b32.xlu0 %v504_v52, %s14609_s16  ;;  %540 = vrot.lane.b32.xlu1 %v14789_v26, %s14607_s14 }
 0x31b   : > { %842 = vrot.lane.b32.xlu0 %v514_v18, %s14609_s16  ;;  %14305 = vrot.lane.b32.xlu1 %v14779_v13, %s14608_s15 }
 0x31f   : > { %846 = vrot.lane.b32.xlu0 %v14789_v26, %s14609_s16  ;;  %856 = vrot.lane.b32.xlu1 %v14789_v26, %s14608_s15 }
 0x323   : > { %840 = vrot.lane.b32.xlu1 %v509_v10, %s14609_s16 }
 0x327   : > { %844 = vrot.lane.b32.xlu1 %v519_v19, %s14609_s16 }
 0x37d   : > { %v14296_v27 = vpop.permute.xlu0 %14295 }
 0x37e   : > { %v14298_v29 = vunpack.i.h.bf16 %v14296_v27  ;;  %v14297_v30 = vunpack.i.l.bf16 %v14296_v27 }
 0x380   : > { %v13614_v32 = vpack.c.bf16 %v14298_v29, %v14297_v30 }
 0x382   : > { %13616 = vmatpush3.bf16.xpose.msk.msra.mxu0 %vm14805_vm13, %v13614_v32 }
 0x383   : > { %13617 = vmatprep.subr.bf16.mxu0 %v14604_v2 }
 0x385   : > { %v14301_v34 = vpop.permute.xlu1 %14300  ;;  %v14311_v45 = vpop.permute.xlu0 %14310 }
 0x386   : > { %v14303_v35 = vunpack.i.h.bf16 %v14301_v34  ;;  %v14302_v36 = vunpack.i.l.bf16 %v14301_v34  ;;  %v14313_v46 = vunpack.i.h.bf16 %v14311_v45  ;;  %v14312_v48 = vunpack.i.l.bf16 %v14311_v45 }
 0x388   : > { %v13618_v38 = vpack.c.bf16 %v14303_v35, %v14302_v36  ;;  %v13632_v49 = vpack.c.bf16 %v14313_v46, %v14312_v48 }
 0x389   : > { %v541_v39 = vpop.permute.xlu1 %540  ;;  %v839_v51 = vpop.permute.xlu0 %838 }
 0x38a   : > { %13620 = vmatpush3.bf16.xpose.msk.msra.mxu0 %vm14805_vm13, %v13618_v38 }
 0x38b   : > { %12237 = vmatprep.subr.mxu0 %v14606_v4 }
 0x38d   : > { %v14306_v40 = vpop.permute.xlu1 %14305  ;;  %v843_v54 = vpop.permute.xlu0 %842 }
 0x38e   : > { %v14308_v41 = vunpack.i.h.bf16 %v14306_v40  ;;  %v14307_v43 = vunpack.i.l.bf16 %v14306_v40 }
 0x390   : > { %v13628_v44 = vpack.c.bf16 %v14308_v41, %v14307_v43 }
 0x391   : > { %v857_v50 = vpop.permute.xlu1 %856  ;;  %v847_v56 = vpop.permute.xlu0 %846 }
 0x392   : > { %12238 = vmatpush3.xpose.msk.msra.mxu0 %vm185_vm1, %v541_v39 }
 0x393   : > { %13627 = vmatprep.subr.bf16.mxu0 %v14604_v2 }
 0x395   : > { %12240 = vmatmul.mubr.msk.f32.vlgmr.msra.gmra.mrb[10].mxu0 %vm185_vm1, %v504_v52  ;;  %v841_v53 = vpop.permute.xlu1 %840 }
 0x396   : > { %13630 = vmatpush3.bf16.xpose.msk.msra.mxu0 %vm14805_vm13, %v13628_v44  ;;  %12242 = vmatprep.mubr.msk.f32.mxu0 %vm14605_vm0, %v14606_v4 }
 0x397   : > { %13631 = vmatprep.subr.bf16.mxu0 %v14604_v2 }
 0x399   : > { %12243 = vmatmul.mubr.msk.f32.gmra.mrb[12].mxu0 %vm185_vm1, %v509_v10  ;;  %v845_v55 = vpop.permute.xlu1 %844 }
 0x39a   : > { %12245 = vmatprep.mubr.msk.f32.mxu0 %vm14605_vm0, %v14606_v4 }
 0x39d   : > { %12246 = vmatmul.mubr.msk.f32.gmra.mrb[14].mxu0 %vm185_vm1, %v514_v18 }
 0x39e   : > { %13634 = vmatpush3.bf16.xpose.msk.msra.mxu0 %vm14805_vm13, %v13632_v49  ;;  %12248 = vmatprep.mubr.msk.f32.mxu0 %vm14605_vm0, %v14606_v4 }
 0x39f   : > { %12287 = vmatprep.subr.mxu0 %v14606_v4 }
 0x3a1   : > { %12249 = vmatmul.mubr.msk.f32.gmra.mrb[16].mxu0 %vm185_vm1, %v519_v19 }
 0x3a2   : > { %12251 = vmatprep.mubr.msk.f32.mxu0 %vm14605_vm0, %v14606_v4 }
 0x3a5   : > { %12252 = vmatmul.mubr.msk.f32.gmra.mrb[18].mxu0 %vm185_vm1, %v14789_v26 }
 0x3a6   : > { %12288 = vmatpush3.xpose.msk.msra.mxu0 %vm185_vm1, %v857_v50  ;;  %12289 = vmatprep.mubr.msk.f32.mxu0 %vm14605_vm0, %v14606_v4 }
 0x3a7   : > { %13641 = vmatprep.subr.bf16.mxu0 %v14604_v2 }
 0x3a9   : > { %12290 = vmatmul.mubr.msk.f32.vlgmr.msra.gmra.mrb[20].mxu0 %vm185_vm1, %v839_v51 }
 0x3aa   : > { %12292 = vmatprep.mubr.msk.f32.mxu0 %vm14605_vm0, %v14606_v4 }
 0x3ad   : > { %12293 = vmatmul.mubr.msk.f32.gmra.mrb[22].mxu0 %vm185_vm1, %v841_v53 }
 0x3ae   : > { %12295 = vmatprep.mubr.msk.f32.mxu0 %vm14605_vm0, %v14606_v4 }
 0x3b1   : > { %12296 = vmatmul.mubr.msk.f32.gmra.mrb[24].mxu0 %vm185_vm1, %v843_v54 }
 0x3b2   : > { %12298 = vmatprep.mubr.msk.f32.mxu0 %vm14605_vm0, %v14606_v4 }
 0x3b5   : > { %12299 = vmatmul.mubr.msk.f32.gmra.mrb[26].mxu0 %vm185_vm1, %v845_v55 }
 0x3b6   : > { %12301 = vmatprep.mubr.msk.f32.mxu0 %vm14605_vm0, %v14606_v4 }
 0x3b9   : > { %12302 = vmatmul.mubr.msk.f32.gmra.mrb[28].mxu0 %vm185_vm1, %v847_v56 }
 0x3ba   : > { %12337 = vmatprep.mubr.msk.f32.mxu0 %vm14605_vm0, %v14606_v4 }
 0x468   : > { %v628_v57 = vpop.f32.mrb[10].mxu0 }
 0x469   : > { %v652_v58 = vmul.f32 0.25, %v628_v57  ;;  %v12241_v59 = vpop.f32.mrb[11].mxu0 }
 0x46b   : > { %v658_v33 = vsel %vm657_vm14, %v652_v58, -inf }
 0x46c   : > { %659 = vmax.xlane.f32.xlu1 %v658_v33  ;;  %v633_v60 = vpop.f32.mrb[12].mxu0 }
 0x46d   : > { %v653_v61 = vmul.f32 0.25, %v633_v60  ;;  %v12244_v62 = vpop.f32.mrb[13].mxu0 }
 0x46f   : > { %v661_v63 = vsel %vm657_vm14, %v653_v61, -inf }
 0x470   : > { %662 = vmax.xlane.f32.xlu0 %v661_v63  ;;  %v638_v37 = vpop.f32.mrb[14].mxu0 }
 0x471   : > { %v654_v0 = vmul.f32 0.25, %v638_v37  ;;  %v12247_v1 = vpop.f32.mrb[15].mxu0 }
 0x473   : > { %v664_v3 = vsel %vm657_vm14, %v654_v0, -inf }
 0x474   : > { %665 = vmax.xlane.f32.xlu0 %v664_v3  ;;  %v643_v42 = vpop.f32.mrb[16].mxu0 }
 0x475   : > { %v655_v5 = vmul.f32 0.25, %v643_v42  ;;  %v12250_v6 = vpop.f32.mrb[17].mxu0 }
 0x477   : > { %v667_v47 = vsel %vm657_vm14, %v655_v5, -inf }
 0x478   : > { %668 = vmax.xlane.f32.xlu0 %v667_v47  ;;  %v648_v7 = vpop.f32.mrb[18].mxu0 }
 0x479   : > { %v656_v8 = vmul.f32 0.25, %v648_v7  ;;  %v12253_v9 = vpop.f32.mrb[19].mxu0 }
 0x47b   : > { %v670_v52 = vsel %vm657_vm14, %v656_v8, -inf }
 0x47c   : > { %671 = vmax.xlane.f32.xlu1 %v670_v52  ;;  %v944_v10 = vpop.f32.mrb[20].mxu0 }
 0x47d   : > { %v968_v11 = vmul.f32 0.25, %v944_v10  ;;  %v12291_v14 = vpop.f32.mrb[21].mxu0 }
 0x47f   : > { %v973_v15 = vsel %vm657_vm14, %v968_v11, -inf }
 0x480   : > { %974 = vmax.xlane.f32.xlu0 %v973_v15  ;;  %v949_v17 = vpop.f32.mrb[22].mxu0 }
 0x481   : > { %v969_v18 = vmul.f32 0.25, %v949_v17  ;;  %v12294_v19 = vpop.f32.mrb[23].mxu0 }
 0x483   : > { %v976_v21 = vsel %vm657_vm14, %v969_v18, -inf }
 0x484   : > { %977 = vmax.xlane.f32.xlu1 %v976_v21  ;;  %v954_v23 = vpop.f32.mrb[24].mxu0 }
 0x485   : > { %v970_v25 = vmul.f32 0.25, %v954_v23  ;;  %v12297_v27 = vpop.f32.mrb[25].mxu0 }
 0x487   : > { %v979_v29 = vsel %vm657_vm14, %v970_v25, -inf }
 0x488   : > { %980 = vmax.xlane.f32.xlu0 %v979_v29  ;;  %v959_v30 = vpop.f32.mrb[26].mxu0 }
 0x489   : > { %v14864_v32 = vmul.f32 0.25, %v959_v30  ;;  %v12300_v34 = vpop.f32.mrb[27].mxu0 }
 0x48b   : > { %v982_v35 = vsel %vm657_vm14, %v14864_v32, -inf }
 0x48c   : > { %983 = vmax.xlane.f32.xlu1 %v982_v35  ;;  %v964_v36 = vpop.f32.mrb[28].mxu0 }
 0x48d   : > { %v12303_v38 = vpop.f32.mrb[29].mxu0  ;;  %v14872_v39 = vmul.f32 0.25, %v964_v36 }
 0x48f   : > { %v985_v40 = vsel %vm657_vm14, %v14872_v39, -inf }
 0x49d   : > { %14320 = vrot.lane.b32.xlu1 %v14783_v22, %s14610_s17 }
 0x49e   : > { %14315 = vrot.lane.b32.xlu0 %v14779_v13, %s14610_s17 }
 0x4bd   : > { %986 = vmax.xlane.f32.xlu0 %v985_v40 }
 0x4d3   : > { %721 = vrot.lane.b32.xlu0 %v14789_v26, %s14610_s17 }
 0x4f9   : > { %v660_v41 = vpop.xlane.xlu1 %659 }
 0x4fa   : > { %v673_v43 = vsub.f32 %v652_v58, %v660_v41 }
 0x4fc   : > { %v678_v44 = vmul.f32 1.442695, %v673_v43 }
 0x4fd   : > { %v663_v45 = vpop.xlane.xlu0 %662 }
 0x4fe   : > { %14396 = vpow2.f32 %v678_v44  ;;  %v674_v46 = vsub.f32 %v653_v61, %v663_v45 }
 0x500   : > { %v680_v48 = vmul.f32 1.442695, %v674_v46 }
 0x501   : > { %v666_v49 = vpop.xlane.xlu0 %665 }
 0x502   : > { %14398 = vpow2.f32 %v680_v48  ;;  %v675_v50 = vsub.f32 %v654_v0, %v666_v49 }
 0x504   : > { %v682_v51 = vmul.f32 1.442695, %v675_v50 }
 0x505   : > { %v669_v53 = vpop.xlane.xlu0 %668 }
 0x506   : > { %14400 = vpow2.f32 %v682_v51  ;;  %v676_v54 = vsub.f32 %v655_v5, %v669_v53 }
 0x508   : > { %v14878_v55 = vpop.eup %14396  ;;  %v684_v56 = vmul.f32 1.442695, %v676_v54 }
 0x509   : > { %v672_v57 = vpop.xlane.xlu1 %671  ;;  %v688_v59 = vsel %vm657_vm14, %v14878_v55, 0.0 }
 0x50a   : > { %14402 = vpow2.f32 %v684_v56  ;;  %v677_v58 = vsub.f32 %v656_v8, %v672_v57  ;;  %689 = vadd.xlane.f32.xlu1 %v688_v59 }
 0x50c   : > { %v14882_v33 = vpop.eup %14398  ;;  %v686_v60 = vmul.f32 1.442695, %v677_v58 }
 0x50d   : > { %v975_v61 = vpop.xlane.xlu0 %974  ;;  %v691_v62 = vsel %vm657_vm14, %v14882_v33, 0.0 }
 0x50e   : > { %14404 = vpow2.f32 %v686_v60  ;;  %v988_v63 = vsub.f32 %v968_v11, %v975_v61  ;;  %692 = vadd.xlane.f32.xlu0 %v691_v62 }
 0x510   : > { %v14886_v37 = vpop.eup %14400  ;;  %v993_v0 = vmul.f32 1.442695, %v988_v63 }
 0x511   : > { %v978_v1 = vpop.xlane.xlu1 %977  ;;  %v694_v3 = vsel %vm657_vm14, %v14886_v37, 0.0 }
 0x512   : > { %14406 = vpow2.f32 %v993_v0  ;;  %v989_v42 = vsub.f32 %v969_v18, %v978_v1  ;;  %695 = vadd.xlane.f32.xlu1 %v694_v3 }
 0x514   : > { %v14890_v5 = vpop.eup %14402  ;;  %v995_v6 = vmul.f32 1.442695, %v989_v42 }
 0x515   : > { %v981_v47 = vpop.xlane.xlu0 %980  ;;  %v697_v7 = vsel %vm657_vm14, %v14890_v5, 0.0 }
 0x516   : > { %14408 = vpow2.f32 %v995_v6  ;;  %v990_v8 = vsub.f32 %v970_v25, %v981_v47  ;;  %698 = vadd.xlane.f32.xlu0 %v697_v7 }
 0x518   : > { %v14894_v9 = vpop.eup %14404  ;;  %v997_v52 = vmul.f32 1.442695, %v990_v8 }
 0x519   : > { %v14316_v10 = vpop.permute.xlu0 %14315  ;;  %v984_v11 = vpop.xlane.xlu1 %983  ;;  %v700_v14 = vsel %vm657_vm14, %v14894_v9, 0.0 }
 0x51a   : > { %14410 = vpow2.f32 %v997_v52  ;;  %v14318_v15 = vunpack.i.h.bf16 %v14316_v10  ;;  %v14317_v17 = vunpack.i.l.bf16 %v14316_v10  ;;  %v991_v18 = vsub.f32 %v14864_v32, %v984_v11  ;;  %701 = vadd.xlane.f32.xlu1 %v700_v14 }
 0x51c   : > { %v14899_v19 = vpop.eup %14406  ;;  %v13622_v21 = vpack.c.bf16 %v14318_v15, %v14317_v17  ;;  %v999_v23 = vmul.f32 1.442695, %v991_v18 }
 0x51d   : > { %v14321_v25 = vpop.permute.xlu1 %14320  ;;  %v1003_v27 = vsel %vm657_vm14, %v14899_v19, 0.0 }
 0x51e   : > { %14412 = vpow2.f32 %v999_v23  ;;  %v14323_v29 = vunpack.i.h.bf16 %v14321_v25  ;;  %v14322_v30 = vunpack.i.l.bf16 %v14321_v25  ;;  %13623 = vmatpush3.bf16.msra.mxu1 %v13622_v21  ;;  %1004 = vadd.xlane.f32.xlu1 %v1003_v27 }
 0x51f   : > { %13624 = vmatprep.subr.bf16.mxu1 %v14604_v2 }
 0x520   : > { %v14904_v34 = vpop.eup %14408  ;;  %v13625_v35 = vpack.c.bf16 %v14323_v29, %v14322_v30 }
 0x521   : > { %v1006_v32 = vsel %vm657_vm14, %v14904_v34, 0.0 }
 0x522   : > { %13626 = vmatpush3.bf16.msra.mxu1 %v13625_v35  ;;  %1007 = vadd.xlane.f32.xlu0 %v1006_v32 }
 0x523   : > { %12262 = vmatprep.subr.mxu1 %v14606_v4 }
 0x524   : > { %v14909_v36 = vpop.eup %14410 }
 0x525   : > { %v1009_v38 = vsel %vm657_vm14, %v14909_v36, 0.0 }
 0x526   : > { %1010 = vadd.xlane.f32.xlu1 %v1009_v38 }
 0x528   : > { %v14913_v40 = vpop.eup %14412 }
 0x529   : > { %v1012_v41 = vsel %vm657_vm14, %v14913_v40, 0.0 }
 0x52a   : > { %1013 = vadd.xlane.f32.xlu1 %v1012_v41  ;;  %v1179_v41 = vld [vmem:[%s17043_s1 + $0x50] sm:$0xff] }
 0x538   : > { %14330 = vrot.lane.b32.xlu0 %v14783_v22, %s14611_s18 }
 0x53b   : > { %14325 = vrot.lane.b32.xlu1 %v14779_v13, %s14611_s18 }
 0x53c   : > { %1036 = vrot.lane.b32.xlu0 %v14789_v26, %s14611_s18 }
 0x54a   : > { %v987_v43 = vpop.xlane.xlu0 %986 }
 0x54b   : > { %v992_v44 = vsub.f32 %v14872_v39, %v987_v43  ;;  %v1180_v43 = vld [vmem:[%s17043_s1 + $0x58] sm:$0xff] }
 0x54d   : > { %v1001_v45 = vmul.f32 1.442695, %v992_v44  ;;  %v13642_v44 = vpack.c.bf16 %v1180_v43, %v1179_v41 }
 0x54e   : > { %v722_v46 = vpop.permute.xlu0 %721 }
 0x54f   : > { %12263 = vmatpush3.msra.mxu1 %v722_v46  ;;  %14414 = vpow2.f32 %v1001_v45  ;;  %13643 = vmatpush3.bf16.msra.mxu0 %v13642_v44  ;;  %v1181_v45 = vld [vmem:[%s17043_s1 + $0x60] sm:$0xff]  ;;  %v1182_v46 = vld [vmem:[%s17043_s1 + $0x68] sm:$0xff] }
 0x550   : > { %13635 = vmatprep.subr.bf16.mxu1 %v14604_v2  ;;  %13644 = vmatprep.subr.bf16.mxu0 %v14604_v2 }
 0x559   : > { %v14925_v48 = vpop.eup %14414 }
 0x55a   : > { %v1015_v22 = vsel %vm657_vm14, %v14925_v48, 0.0 }
 0x55f   : > { %1016 = vadd.xlane.f32.xlu1 %v1015_v22 }
 0x597   : > { %v690_v49 = vpop.xlane.xlu1 %689 }
 0x598   : > { %14416 = vrcp.f32 %v690_v49 }
 0x59b   : > { %v693_v13 = vpop.xlane.xlu0 %692 }
 0x59c   : > { %14418 = vrcp.f32 %v693_v13 }
 0x59f   : > { %v696_v26 = vpop.xlane.xlu1 %695 }
 0x5a0   : > { %14420 = vrcp.f32 %v696_v26 }
 0x5a2   : > { %v14417_v50 = vpop.eup %14416 }
 0x5a3   : > { %v708_v39 = vmul.f32 %v14417_v50, %v14878_v55  ;;  %v699_v51 = vpop.xlane.xlu0 %698 }
 0x5a4   : > { %14422 = vrcp.f32 %v699_v51 }
 0x5a5   : > { %12265 = vmatmul.mubr.msk.f32.vlgmr.msra.gmra.mrb[10].mxu1 %vm657_vm14, %v708_v39 }
 0x5a6   : > { %v14419_v53 = vpop.eup %14418  ;;  %12267 = vmatprep.mubr.msk.f32.mxu1 %vm14605_vm0, %v14606_v4 }
 0x5a7   : > { %v702_v54 = vpop.xlane.xlu1 %701  ;;  %v709_v56 = vmul.f32 %v14419_v53, %v14882_v33 }
 0x5a8   : > { %14424 = vrcp.f32 %v702_v54 }
 0x5a9   : > { %12268 = vmatmul.mubr.msk.f32.gmra.mrb[12].mxu1 %vm657_vm14, %v709_v56 }
 0x5aa   : > { %v14421_v57 = vpop.eup %14420  ;;  %12270 = vmatprep.mubr.msk.f32.mxu1 %vm14605_vm0, %v14606_v4 }
 0x5ab   : > { %v710_v55 = vmul.f32 %v14421_v57, %v14886_v37  ;;  %v1005_v58 = vpop.xlane.xlu1 %1004 }
 0x5ac   : > { %14426 = vrcp.f32 %v1005_v58 }
 0x5ad   : > { %12271 = vmatmul.mubr.msk.f32.gmra.mrb[14].mxu1 %vm657_vm14, %v710_v55 }
 0x5ae   : > { %v14423_v59 = vpop.eup %14422  ;;  %12273 = vmatprep.mubr.msk.f32.mxu1 %vm14605_vm0, %v14606_v4 }
 0x5af   : > { %v711_v60 = vmul.f32 %v14423_v59, %v14890_v5  ;;  %v1008_v63 = vpop.xlane.xlu0 %1007 }
 0x5b0   : > { %14428 = vrcp.f32 %v1008_v63 }
 0x5b1   : > { %12274 = vmatmul.mubr.msk.f32.gmra.mrb[16].mxu1 %vm657_vm14, %v711_v60 }
 0x5b2   : > { %v14425_v33 = vpop.eup %14424  ;;  %12276 = vmatprep.mubr.msk.f32.mxu1 %vm14605_vm0, %v14606_v4 }
 0x5b3   : > { %v1011_v61 = vpop.xlane.xlu1 %1010  ;;  %v712_v62 = vmul.f32 %v14425_v33, %v14894_v9  ;;  %v14331_v0 = vpop.permute.xlu0 %14330 }
 0x5b4   : > { %v14333_v5 = vunpack.i.h.bf16 %v14331_v0  ;;  %v14332_v6 = vunpack.i.l.bf16 %v14331_v0  ;;  %14430 = vrcp.f32 %v1011_v61 }
 0x5b5   : > { %12277 = vmatmul.mubr.msk.f32.gmra.mrb[18].mxu1 %vm657_vm14, %v712_v62 }
 0x5b6   : > { %12314 = vmatprep.mubr.msk.f32.mxu1 %vm14605_vm0, %v14606_v4  ;;  %v13639_v7 = vpack.c.bf16 %v14333_v5, %v14332_v6  ;;  %v14427_v8 = vpop.eup %14426 }
 0x5b7   : > { %v1014_v37 = vpop.xlane.xlu1 %1013  ;;  %v1023_v9 = vmul.f32 %v14427_v8, %v14899_v19  ;;  %v1037_v52 = vpop.permute.xlu0 %1036 }
 0x5b8   : > { %14432 = vrcp.f32 %v1014_v37 }
 0x5ba   : > { %v14429_v10 = vpop.eup %14428 }
 0x5bb   : > { %v14326_v1 = vpop.permute.xlu1 %14325  ;;  %v1024_v11 = vmul.f32 %v14429_v10, %v14904_v34 }
 0x5bc   : > { %v14328_v3 = vunpack.i.h.bf16 %v14326_v1  ;;  %v14327_v42 = vunpack.i.l.bf16 %v14326_v1  ;;  %v11182_v1 = vld [vmem:[%s17043_s1 + $0x70] ss:$0 sm:$0xff] }
 0x5be   : > { %v13636_v47 = vpack.c.bf16 %v14328_v3, %v14327_v42  ;;  %v14431_v14 = vpop.eup %14430 }
 0x5bf   : > { %v1025_v15 = vmul.f32 %v14431_v14, %v14909_v36 }
 0x5c0   : > { %13637 = vmatpush3.bf16.msra.mxu1 %v13636_v47 }
 0x5c1   : > { %13638 = vmatprep.subr.bf16.mxu1 %v14604_v2 }
 0x5c2   : > { %v14433_v17 = vpop.eup %14432 }
 0x5c3   : > { %v1026_v18 = vmul.f32 %v14433_v17, %v14913_v40 }
 0x5c4   : > { %13640 = vmatpush3.bf16.msra.mxu1 %v13639_v7 }
 0x5c5   : > { %12312 = vmatprep.subr.mxu1 %v14606_v4 }
 0x5c8   : > { %12313 = vmatpush3.msra.mxu1 %v1037_v52 }
 0x5c9   : > { %12315 = vmatmul.mubr.msk.f32.vlgmr.msra.gmra.mrb[20].mxu1 %vm657_vm14, %v1023_v9  ;;  %13647 = vmatprep.subr.bf16.mxu1 %v14604_v2 }
 0x5ca   : > { %12317 = vmatprep.mubr.msk.f32.mxu1 %vm14605_vm0, %v14606_v4 }
 0x5cd   : > { %12318 = vmatmul.mubr.msk.f32.gmra.mrb[22].mxu1 %vm657_vm14, %v1024_v11 }
 0x5ce   : > { %12320 = vmatprep.mubr.msk.f32.mxu1 %vm14605_vm0, %v14606_v4 }
 0x5d1   : > { %12321 = vmatmul.mubr.msk.f32.gmra.mrb[24].mxu1 %vm657_vm14, %v1025_v15 }
 0x5d2   : > { %12323 = vmatprep.mubr.msk.f32.mxu1 %vm14605_vm0, %v14606_v4 }
 0x5d5   : > { %12324 = vmatmul.mubr.msk.f32.gmra.mrb[26].mxu1 %vm657_vm14, %v1026_v18 }
 0x5d6   : > { %12326 = vmatprep.mubr.msk.f32.mxu1 %vm14605_vm0, %v14606_v4 }
 0x5ec   : > { %v1017_v19 = vpop.xlane.xlu1 %1016 }
 0x5ed   : > { %14434 = vrcp.f32 %v1017_v19 }
 0x5f7   : > { %v14435_v21 = vpop.eup %14434 }
 0x5f8   : > { %v1027_v23 = vmul.f32 %v14435_v21, %v14925_v48  ;;  %v13645_v48 = vpack.c.bf16 %v1182_v46, %v1181_v45 }
 0x5fa   : > { %12327 = vmatmul.mubr.msk.f32.gmra.mrb[28].mxu1 %vm657_vm14, %v1027_v23  ;;  %13646 = vmatpush3.bf16.msra.mxu0 %v13645_v48 }
 0x5fb   : > { %12360 = vmatprep.mubr.msk.f32.mxu1 %vm14605_vm0, %v14606_v4  ;;  %13653 = vmatprep.subr.bf16.mxu0 %v14604_v2 }
 0x678   : > { %v809_v25 = vpop.f32.mrb[10].mxu1 }
 0x679   : > { %833 = vst.msk [vmem:[#allocation2] sm:$0xff] %vm185_vm1, %v809_v25  ;;  %v12266_v27 = vpop.f32.mrb[11].mxu1 }
 0x67c   : > { %v814_v29 = vpop.f32.mrb[12].mxu1 }
 0x67d   : > { %834 = vst.msk [vmem:[#allocation2 + $0x8] sm:$0xff] %vm185_vm1, %v814_v29  ;;  %v12269_v30 = vpop.f32.mrb[13].mxu1 }
 0x680   : > { %v819_v34 = vpop.f32.mrb[14].mxu1 }
 0x681   : > { %835 = vst.msk [vmem:[#allocation2 + $0x10] sm:$0xff] %vm185_vm1, %v819_v34  ;;  %v12272_v35 = vpop.f32.mrb[15].mxu1 }
 0x684   : > { %v824_v32 = vpop.f32.mrb[16].mxu1 }
 0x685   : > { %836 = vst.msk [vmem:[#allocation2 + $0x18] sm:$0xff] %vm185_vm1, %v824_v32  ;;  %v12275_v36 = vpop.f32.mrb[17].mxu1 }
 0x688   : > { %v829_v38 = vpop.f32.mrb[18].mxu1 }
 0x689   : > { %837 = vst.msk [vmem:[#allocation2 + $0x20] sm:$0xff] %vm185_vm1, %v829_v38  ;;  %v12278_v40 = vpop.f32.mrb[19].mxu1 }
 0x69c   : > { %v1124_v22 = vpop.f32.mrb[20].mxu1 }
 0x69d   : > { %1153 = vrot.lane.b32.xlu0 %v1124_v22, %s14612_s28  ;;  %v12316_v49 = vpop.f32.mrb[21].mxu1 }
 0x6a0   : > { %v1129_v13 = vpop.f32.mrb[22].mxu1 }
 0x6a1   : > { %1155 = vrot.lane.b32.xlu0 %v1129_v13, %s14612_s28  ;;  %v12319_v26 = vpop.f32.mrb[23].mxu1 }
 0x6a4   : > { %v1134_v50 = vpop.f32.mrb[24].mxu1 }
 0x6a5   : > { %1157 = vrot.lane.b32.xlu0 %v1134_v50, %s14612_s28  ;;  %v12322_v39 = vpop.f32.mrb[25].mxu1 }
 0x6a6   : > { %v1423_v39 = vld [vmem:[%s17043_s1 + $0x88] sm:$0xff] }
 0x6a8   : > { %v1139_v51 = vpop.f32.mrb[26].mxu1 }
 0x6a9   : > { %1159 = vrot.lane.b32.xlu0 %v1139_v51, %s14612_s28  ;;  %v12325_v53 = vpop.f32.mrb[27].mxu1  ;;  %v1424_v51 = vld [vmem:[%s17043_s1 + $0x90] sm:$0xff] }
 0x6cd   : > { %v1144_v54 = vpop.f32.mrb[28].mxu1 }
 0x6ce   : > { %1161 = vrot.lane.b32.xlu0 %v1144_v54, %s14612_s28  ;;  %v12328_v56 = vpop.f32.mrb[29].mxu1  ;;  %v13648_v54 = vpack.c.bf16 %v1424_v51, %v1423_v39 }
 0x6d0   : > { %13649 = vmatpush3.bf16.msra.mxu1 %v13648_v54 }
 0x6d1   : > { %13650 = vmatprep.subr.bf16.mxu1 %v14604_v2 }
 0x70f   : > { %v1154_v57 = vpop.permute.xlu0 %1153 }
 0x710   : > { %1169 = vst.msk [vmem:[#allocation2] sm:$0xff] %vm1168_vm15, %v1154_v57 }
 0x713   : > { %v1156_v55 = vpop.permute.xlu0 %1155 }
 0x714   : > { %1170 = vst.msk [vmem:[#allocation2 + $0x8] sm:$0xff] %vm1168_vm15, %v1156_v55  ;;  %v1425_v55 = vld [vmem:[%s17043_s1 + $0x98] sm:$0xff] }
 0x717   : > { %v1158_v59 = vpop.permute.xlu0 %1157  ;;  %v1174_v58 = vld [vmem:[#allocation2] sm:$0xff] }
 0x718   : > { %1171 = vst.msk [vmem:[#allocation2 + $0x10] sm:$0xff] %vm1168_vm15, %v1158_v59  ;;  %12338 = vmatmul.mubr.msk.f32.vlgmr.msra.gmra.mrb[30].mxu0 %vm293_vm2, %v1174_v58  ;;  %v1426_v59 = vld [vmem:[%s17043_s1 + $0xa0] sm:$0xff] }
 0x719   : > { %12340 = vmatprep.mubr.msk.f32.mxu0 %vm14605_vm0, %v14606_v4  ;;  %v13651_v58 = vpack.c.bf16 %v1426_v59, %v1425_v55 }
 0x71b   : > { %v1160_v60 = vpop.permute.xlu0 %1159  ;;  %v1175_v33 = vld [vmem:[#allocation2 + $0x8] sm:$0xff]  ;;  %13652 = vmatpush3.bf16.msra.mxu1 %v13651_v58 }
 0x71c   : > { %1172 = vst.msk [vmem:[#allocation2 + $0x18] sm:$0xff] %vm1168_vm15, %v1160_v60  ;;  %12341 = vmatmul.mubr.msk.f32.gmra.mrb[32].mxu0 %vm293_vm2, %v1175_v33  ;;  %13659 = vmatprep.subr.bf16.mxu1 %v14604_v2 }
 0x71d   : > { %12343 = vmatprep.mubr.msk.f32.mxu0 %vm14605_vm0, %v14606_v4 }
 0x71f   : > { %v1176_v61 = vld [vmem:[#allocation2 + $0x10] sm:$0xff] }
 0x720   : > { %12344 = vmatmul.mubr.msk.f32.gmra.mrb[34].mxu0 %vm293_vm2, %v1176_v61  ;;  %v1542_v61 = vld [vmem:[%s17043_s1 + $0xb0] sm:$0xff] }
 0x721   : > { %12346 = vmatprep.mubr.msk.f32.mxu0 %vm14605_vm0, %v14606_v4 }
 0x723   : > { %v1177_v62 = vld [vmem:[#allocation2 + $0x18] sm:$0xff] }
 0x724   : > { %12347 = vmatmul.mubr.msk.f32.gmra.mrb[36].mxu0 %vm293_vm2, %v1177_v62  ;;  %v1543_v62 = vld [vmem:[%s17043_s1 + $0xb8] sm:$0xff] }
 0x725   : > { %12349 = vmatprep.mubr.msk.f32.mxu0 %vm14605_vm0, %v14606_v4 }
 0x740   : > { %v1162_v63 = vpop.permute.xlu0 %1161 }
 0x741   : > { %1173 = vst.msk [vmem:[#allocation2 + $0x20] sm:$0xff] %vm1168_vm15, %v1162_v63  ;;  %v13654_v63 = vpack.c.bf16 %v1543_v62, %v1542_v61 }
 0x743   : > { %13655 = vmatpush3.bf16.msra.mxu0 %v13654_v63 }
 0x744   : > { %13656 = vmatprep.subr.bf16.mxu0 %v14604_v2 }
 0x748   : > { %v1178_v37 = vld [vmem:[#allocation2 + $0x20] sm:$0xff] }
 0x749   : > { %12350 = vmatmul.mubr.msk.f32.gmra.mrb[38].mxu0 %vm293_vm2, %v1178_v37 }
 0x74a   : > { %12383 = vmatprep.mubr.msk.f32.mxu0 %vm14605_vm0, %v14606_v4 }
 0x7eb   : > { %v1264_v0 = vpop.f32.mrb[30].mxu0 }
 0x7ec   : > { %v1288_v3 = vadd.f32 %v1264_v0, %v14686_v12  ;;  %v12339_v42 = vpop.f32.mrb[31].mxu0 }
 0x7ee   : > { %v15020_v5 = vadd.f32 %v11182_v1, %v1288_v3 }
 0x7ef   : > { %v1269_v6 = vpop.f32.mrb[32].mxu0 }
 0x7f0   : > { %v1289_v47 = vadd.f32 %v1269_v6, %v14690_v16  ;;  %v12342_v7 = vpop.f32.mrb[33].mxu0  ;;  %v1305_v8 = vsel %vm293_vm2, %v15020_v5, 0.0 }
 0x7f1   : > { %1306 = vadd.xlane.f32.xlu0 %v1305_v8 }
 0x7f2   : > { %v15025_v9 = vadd.f32 %v11182_v1, %v1289_v47 }
 0x7f3   : > { %v1274_v52 = vpop.f32.mrb[34].mxu0 }
 0x7f4   : > { %v1290_v10 = vadd.f32 %v1274_v52, %v14694_v20  ;;  %v12345_v11 = vpop.f32.mrb[35].mxu0  ;;  %v1308_v12 = vsel %vm293_vm2, %v15025_v9, 0.0 }
 0x7f5   : > { %1309 = vadd.xlane.f32.xlu1 %v1308_v12 }
 0x7f6   : > { %v15030_v14 = vadd.f32 %v11182_v1, %v1290_v10 }
 0x7f7   : > { %v1279_v15 = vpop.f32.mrb[36].mxu0 }
 0x7f8   : > { %v1291_v16 = vadd.f32 %v1279_v15, %v14698_v24  ;;  %v12348_v17 = vpop.f32.mrb[37].mxu0  ;;  %v1311_v18 = vsel %vm293_vm2, %v15030_v14, 0.0 }
 0x7f9   : > { %1312 = vadd.xlane.f32.xlu1 %v1311_v18 }
 0x7fa   : > { %v15035_v19 = vadd.f32 %v11182_v1, %v1291_v16 }
 0x7fc   : > { %v1314_v20 = vsel %vm293_vm2, %v15035_v19, 0.0 }
 0x7fd   : > { %1315 = vadd.xlane.f32.xlu1 %v1314_v20 }
 0x81c   : > { %v1284_v21 = vpop.f32.mrb[38].mxu0 }
 0x81d   : > { %v1292_v23 = vadd.f32 %v1284_v21, %v14702_v28  ;;  %v12351_v25 = vpop.f32.mrb[39].mxu0 }
 0x81f   : > { %v15040_v27 = vadd.f32 %v11182_v1, %v1292_v23 }
 0x821   : > { %v1317_v24 = vsel %vm293_vm2, %v15040_v27, 0.0 }
 0x822   : > { %1318 = vadd.xlane.f32.xlu1 %v1317_v24 }
 0x87e   : > { %v1307_v29 = vpop.xlane.xlu0 %1306 }
 0x87f   : > { %v1320_v30 = vmul.f32 0.03125, %v1307_v29 }
 0x881   : > { %v15045_v34 = vsub.f32 %v15020_v5, %v1320_v30 }
 0x882   : > { %v1310_v35 = vpop.xlane.xlu1 %1309 }
 0x883   : > { %v1321_v32 = vmul.f32 0.03125, %v1310_v35  ;;  %v1330_v36 = vmul.f32 %v15045_v34, %v15045_v34 }
 0x885   : > { %v15050_v38 = vsub.f32 %v15025_v9, %v1321_v32  ;;  %v1335_v28 = vsel %vm293_vm2, %v1330_v36, 0.0 }
 0x886   : > { %v1313_v40 = vpop.xlane.xlu1 %1312  ;;  %1336 = vadd.xlane.f32.xlu1 %v1335_v28 }
 0x887   : > { %v1322_v41 = vmul.f32 0.03125, %v1313_v40  ;;  %v1331_v43 = vmul.f32 %v15050_v38, %v15050_v38 }
 0x889   : > { %v15056_v44 = vsub.f32 %v15030_v14, %v1322_v41  ;;  %v1338_v45 = vsel %vm293_vm2, %v1331_v43, 0.0 }
 0x88a   : > { %1339 = vadd.xlane.f32.xlu0 %v1338_v45  ;;  %v1316_v46 = vpop.xlane.xlu1 %1315 }
 0x88b   : > { %v1323_v48 = vmul.f32 0.03125, %v1316_v46  ;;  %v1332_v22 = vmul.f32 %v15056_v44, %v15056_v44 }
 0x88d   : > { %v15062_v49 = vsub.f32 %v15035_v19, %v1323_v48  ;;  %v1341_v13 = vsel %vm293_vm2, %v1332_v22, 0.0  ;;  %v11183_v48 = vld [vmem:[%s17043_s1 + $0x78] ss:$0 sm:$0xff] }
 0x88e   : > { %1342 = vadd.xlane.f32.xlu1 %v1341_v13  ;;  %v11184_v13 = vld [vmem:[%s17043_s1 + $0x80] ss:$0 sm:$0xff] }
 0x88f   : > { %v1333_v26 = vmul.f32 %v15062_v49, %v15062_v49 }
 0x891   : > { %v1344_v50 = vsel %vm293_vm2, %v1333_v26, 0.0 }
 0x892   : > { %1345 = vadd.xlane.f32.xlu0 %v1344_v50 }
 0x8af   : > { %v1319_v53 = vpop.xlane.xlu1 %1318 }
 0x8b0   : > { %v1324_v56 = vmul.f32 0.03125, %v1319_v53 }
 0x8b2   : > { %v15075_v57 = vsub.f32 %v15040_v27, %v1324_v56 }
 0x8b4   : > { %v1334_v60 = vmul.f32 %v15075_v57, %v15075_v57 }
 0x8b6   : > { %v1347_v33 = vsel %vm293_vm2, %v1334_v60, 0.0 }
 0x8b7   : > { %1348 = vadd.xlane.f32.xlu1 %v1347_v33 }
 0x913   : > { %v1337_v37 = vpop.xlane.xlu1 %1336 }
 0x914   : > { %v1350_v0 = vmul.f32 0.032258064, %v1337_v37 }
 0x916   : > { %14436 = vrsqrt.f32 %v1350_v0  ;;  %vm1357_vm3 = vcmp.eq.f32.partialorder %v1350_v0, inf  ;;  %v1360_v10 = vand.u32 2147483648, %v1350_v0  ;;  %vm1359_vm4 = vcmp.eq.f32.partialorder %v1350_v0, 0.0 }
 0x917   : > { %v1340_v1 = vpop.xlane.xlu0 %1339 }
 0x918   : > { %v1351_v3 = vmul.f32 0.032258064, %v1340_v1 }
 0x91a   : > { %14438 = vrsqrt.f32 %v1351_v3  ;;  %vm1364_vm5 = vcmp.eq.f32.partialorder %v1351_v3, inf  ;;  %v1367_v18 = vand.u32 2147483648, %v1351_v3  ;;  %vm1366_vm6 = vcmp.eq.f32.partialorder %v1351_v3, 0.0 }
 0x91b   : > { %v1343_v42 = vpop.xlane.xlu1 %1342 }
 0x91c   : > { %v1352_v6 = vmul.f32 0.032258064, %v1343_v42 }
 0x91e   : > { %14440 = vrsqrt.f32 %v1352_v6  ;;  %vm1371_vm7 = vcmp.eq.f32.partialorder %v1352_v6, inf  ;;  %v1374_v29 = vand.u32 2147483648, %v1352_v6  ;;  %vm1373_vm8 = vcmp.eq.f32.partialorder %v1352_v6, 0.0 }
 0x91f   : > { %v1346_v47 = vpop.xlane.xlu0 %1345 }
 0x920   : > { %v14437_v7 = vpop.eup %14436  ;;  %v1353_v8 = vmul.f32 0.032258064, %v1346_v47 }
 0x921   : > { %v1356_v52 = vmul.f32 %v14437_v7, %v1350_v0  ;;  %v1544_v7 = vld [vmem:[%s17043_s1 + $0xc0] sm:$0xff] }
 0x922   : > { %14442 = vrsqrt.f32 %v1353_v8  ;;  %vm1378_vm9 = vcmp.eq.f32.partialorder %v1353_v8, inf  ;;  %v1381_v40 = vand.u32 2147483648, %v1353_v8  ;;  %vm1380_vm10 = vcmp.eq.f32.partialorder %v1353_v8, 0.0 }
 0x923   : > { %v1358_v11 = vsel %vm1357_vm3, %v1350_v0, %v1356_v52 }
 0x924   : > { %v14439_v12 = vpop.eup %14438  ;;  %v1361_v15 = vsel %vm1359_vm4, %v1360_v10, %v1358_v11 }
 0x925   : > { %v1390_v16 = vadd.f32 1e-06, %v1361_v15  ;;  %v1363_v17 = vmul.f32 %v14439_v12, %v1351_v3 }
 0x927   : > { %14444 = vrcp.f32 %v1390_v16  ;;  %v1365_v20 = vsel %vm1364_vm5, %v1351_v3, %v1363_v17 }
 0x928   : > { %v14441_v21 = vpop.eup %14440  ;;  %v1368_v23 = vsel %vm1366_vm6, %v1367_v18, %v1365_v20 }
 0x929   : > { %v1391_v25 = vadd.f32 1e-06, %v1368_v23  ;;  %v1370_v24 = vmul.f32 %v14441_v21, %v1352_v6 }
 0x92b   : > { %14446 = vrcp.f32 %v1391_v25  ;;  %v1372_v30 = vsel %vm1371_vm7, %v1352_v6, %v1370_v24 }
 0x92c   : > { %v14443_v35 = vpop.eup %14442  ;;  %v1375_v32 = vsel %vm1373_vm8, %v1374_v29, %v1372_v30 }
 0x92d   : > { %v1392_v36 = vadd.f32 1e-06, %v1375_v32  ;;  %v1377_v28 = vmul.f32 %v14443_v35, %v1353_v8 }
 0x92f   : > { %v1379_v41 = vsel %vm1378_vm9, %v1353_v8, %v1377_v28  ;;  %14448 = vrcp.f32 %v1392_v36  ;;  %v1545_v8 = vld [vmem:[%s17043_s1 + $0xc8] sm:$0xff] }
 0x930   : > { %v1382_v43 = vsel %vm1380_vm10, %v1381_v40, %v1379_v41  ;;  %v13657_v52 = vpack.c.bf16 %v1545_v8, %v1544_v7 }
 0x931   : > { %v14445_v45 = vpop.eup %14444  ;;  %v1393_v46 = vadd.f32 1e-06, %v1382_v43 }
 0x932   : > { %v1400_v22 = vmul.f32 %v14445_v45, %v15045_v34  ;;  %13658 = vmatpush3.bf16.msra.mxu0 %v13657_v52  ;;  %v11196_v45 = vld [vmem:[%s17043_s1 + $0xd0] ss:$0 sm:$0xff] }
 0x933   : > { %14450 = vrcp.f32 %v1393_v46  ;;  %13665 = vmatprep.subr.bf16.mxu0 %v14604_v2 }
 0x934   : > { %v1409_v26 = vmul.f32 %v11183_v48, %v1400_v22 }
 0x935   : > { %v14447_v50 = vpop.eup %14446 }
 0x936   : > { %v1418_v39 = vadd.f32 %v11184_v13, %v1409_v26  ;;  %v1401_v51 = vmul.f32 %v14447_v50, %v15050_v38 }
 0x938   : > { %12361 = vmatmul.mubr.msk.f32.vlgmr.msra.gmra.mrb[30].mxu1 %vm293_vm2, %v1418_v39  ;;  %v1410_v53 = vmul.f32 %v11183_v48, %v1401_v51 }
 0x939   : > { %v14449_v54 = vpop.eup %14448  ;;  %12363 = vmatprep.mubr.msk.f32.mxu1 %vm14605_vm0, %v14606_v4 }
 0x93a   : > { %v1419_v56 = vadd.f32 %v11184_v13, %v1410_v53  ;;  %v1402_v34 = vmul.f32 %v14449_v54, %v15056_v44 }
 0x93c   : > { %12364 = vmatmul.mubr.msk.f32.gmra.mrb[32].mxu1 %vm293_vm2, %v1419_v56  ;;  %v1411_v55 = vmul.f32 %v11183_v48, %v1402_v34 }
 0x93d   : > { %v14451_v59 = vpop.eup %14450  ;;  %12366 = vmatprep.mubr.msk.f32.mxu1 %vm14605_vm0, %v14606_v4 }
 0x93e   : > { %v1420_v58 = vadd.f32 %v11184_v13, %v1411_v55  ;;  %v1403_v38 = vmul.f32 %v14451_v59, %v15062_v49 }
 0x940   : > { %12367 = vmatmul.mubr.msk.f32.gmra.mrb[34].mxu1 %vm293_vm2, %v1420_v58  ;;  %v1412_v60 = vmul.f32 %v11183_v48, %v1403_v38 }
 0x941   : > { %12369 = vmatprep.mubr.msk.f32.mxu1 %vm14605_vm0, %v14606_v4 }
 0x942   : > { %v1421_v33 = vadd.f32 %v11184_v13, %v1412_v60 }
 0x944   : > { %12370 = vmatmul.mubr.msk.f32.gmra.mrb[36].mxu1 %vm293_vm2, %v1421_v33  ;;  %v1349_v44 = vpop.xlane.xlu1 %1348 }
 0x945   : > { %v1354_v61 = vmul.f32 0.032258064, %v1349_v44  ;;  %12372 = vmatprep.mubr.msk.f32.mxu1 %vm14605_vm0, %v14606_v4 }
 0x947   : > { %14452 = vrsqrt.f32 %v1354_v61  ;;  %vm1385_vm11 = vcmp.eq.f32.partialorder %v1354_v61, inf  ;;  %v1388_v37 = vand.u32 2147483648, %v1354_v61  ;;  %vm1387_vm12 = vcmp.eq.f32.partialorder %v1354_v61, 0.0 }
 0x951   : > { %v14453_v62 = vpop.eup %14452 }
 0x952   : > { %v1384_v63 = vmul.f32 %v14453_v62, %v1354_v61 }
 0x954   : > { %v1386_v49 = vsel %vm1385_vm11, %v1354_v61, %v1384_v63 }
 0x955   : > { %v1389_v0 = vsel %vm1387_vm12, %v1388_v37, %v1386_v49 }
 0x956   : > { %v1394_v1 = vadd.f32 1e-06, %v1389_v0 }
 0x958   : > { %14454 = vrcp.f32 %v1394_v1 }
 0x962   : > { %v14455_v3 = vpop.eup %14454 }
 0x963   : > { %v1404_v42 = vmul.f32 %v14455_v3, %v15075_v57  ;;  %v11185_v57 = vld [vmem:[%s17043_s1 + $0xa8] ss:$0 sm:$0xff] }
 0x965   : > { %v1413_v6 = vmul.f32 %v11183_v48, %v1404_v42 }
 0x967   : > { %v1422_v47 = vadd.f32 %v11184_v13, %v1413_v6 }
 0x969   : > { %12373 = vmatmul.mubr.msk.f32.gmra.mrb[38].mxu1 %vm293_vm2, %v1422_v47 }
 0x96a   : > { %12406 = vmatprep.mubr.msk.f32.mxu1 %vm14605_vm0, %v14606_v4 }
 0xa0b   : > { %v1513_v10 = vpop.f32.mrb[30].mxu1 }
 0xa0c   : > { %v1514_v11 = vadd.f32 %v11185_v57, %v1513_v10  ;;  %v12362_v12 = vpop.f32.mrb[31].mxu1 }
 0xa0e   : > { %v1537_v15 = vmax.f32 %v1514_v11, 0.0 }
 0xa0f   : > { %v1518_v16 = vpop.f32.mrb[32].mxu1 }
 0xa10   : > { %v1519_v17 = vadd.f32 %v11185_v57, %v1518_v16  ;;  %v12365_v18 = vpop.f32.mrb[33].mxu1  ;;  %12384 = vmatmul.mubr.msk.f32.vlgmr.msra.gmra.mrb[40].mxu0 %vm293_vm2, %v1537_v15 }
 0xa11   : > { %12386 = vmatprep.mubr.msk.f32.mxu0 %vm14605_vm0, %v14606_v4  ;;  %v1787_v18 = vld [vmem:[%s17043_s1 + $0xf0] sm:$0xff] }
 0xa12   : > { %v1538_v20 = vmax.f32 %v1519_v17, 0.0  ;;  %v1786_v17 = vld [vmem:[%s17043_s1 + $0xe8] sm:$0xff] }
 0xa13   : > { %v1523_v21 = vpop.f32.mrb[34].mxu1 }
 0xa14   : > { %v1524_v23 = vadd.f32 %v11185_v57, %v1523_v21  ;;  %v12368_v25 = vpop.f32.mrb[35].mxu1  ;;  %12387 = vmatmul.mubr.msk.f32.gmra.mrb[42].mxu0 %vm293_vm2, %v1538_v20  ;;  %v13660_v21 = vpack.c.bf16 %v1787_v18, %v1786_v17 }
 0xa15   : > { %12389 = vmatprep.mubr.msk.f32.mxu0 %vm14605_vm0, %v14606_v4 }
 0xa16   : > { %v1539_v24 = vmax.f32 %v1524_v23, 0.0  ;;  %13661 = vmatpush3.bf16.msra.mxu1 %v13660_v21 }
 0xa17   : > { %v1528_v29 = vpop.f32.mrb[36].mxu1  ;;  %13662 = vmatprep.subr.bf16.mxu1 %v14604_v2 }
 0xa18   : > { %v1529_v30 = vadd.f32 %v11185_v57, %v1528_v29  ;;  %v12371_v35 = vpop.f32.mrb[37].mxu1  ;;  %12390 = vmatmul.mubr.msk.f32.gmra.mrb[44].mxu0 %vm293_vm2, %v1539_v24  ;;  %v1788_v24 = vld [vmem:[%s17043_s1 + $0xf8] sm:$0xff]  ;;  %v1789_v29 = vld [vmem:[%s17043_s1 + $0x100] sm:$0xff] }
 0xa19   : > { %12392 = vmatprep.mubr.msk.f32.mxu0 %vm14605_vm0, %v14606_v4 }
 0xa1a   : > { %v1540_v32 = vmax.f32 %v1529_v30, 0.0  ;;  %v13663_v30 = vpack.c.bf16 %v1789_v29, %v1788_v24 }
 0xa1c   : > { %12393 = vmatmul.mubr.msk.f32.gmra.mrb[46].mxu0 %vm293_vm2, %v1540_v32  ;;  %13664 = vmatpush3.bf16.msra.mxu1 %v13663_v30 }
 0xa1d   : > { %12395 = vmatprep.mubr.msk.f32.mxu0 %vm14605_vm0, %v14606_v4  ;;  %13673 = vmatprep.subr.bf16.mxu1 %v14604_v2 }
 0xa3c   : > { %v1533_v36 = vpop.f32.mrb[38].mxu1 }
 0xa3d   : > { %v1534_v28 = vadd.f32 %v11185_v57, %v1533_v36  ;;  %v12374_v40 = vpop.f32.mrb[39].mxu1 }
 0xa3f   : > { %v1541_v41 = vmax.f32 %v1534_v28, 0.0 }
 0xa41   : > { %12396 = vmatmul.mubr.msk.f32.gmra.mrb[48].mxu0 %vm293_vm2, %v1541_v41 }
 0xa42   : > { %12431 = vmatprep.mubr.msk.f32.mxu0 %vm14605_vm0, %v14606_v4 }
 0xae3   : > { %v1627_v43 = vpop.f32.mrb[40].mxu0 }
 0xae4   : > { %v1651_v46 = vadd.f32 %v1627_v43, %v15020_v5  ;;  %v12385_v48 = vpop.f32.mrb[41].mxu0 }
 0xae6   : > { %v15150_v22 = vadd.f32 %v11196_v45, %v1651_v46 }
 0xae7   : > { %v1632_v13 = vpop.f32.mrb[42].mxu0 }
 0xae8   : > { %v1652_v26 = vadd.f32 %v1632_v13, %v15025_v9  ;;  %v12388_v50 = vpop.f32.mrb[43].mxu0  ;;  %v1668_v39 = vsel %vm293_vm2, %v15150_v22, 0.0 }
 0xae9   : > { %1669 = vadd.xlane.f32.xlu0 %v1668_v39 }
 0xaea   : > { %v15155_v51 = vadd.f32 %v11196_v45, %v1652_v26 }
 0xaeb   : > { %v1637_v53 = vpop.f32.mrb[44].mxu0 }
 0xaec   : > { %v1653_v54 = vadd.f32 %v1637_v53, %v15030_v14  ;;  %v12391_v56 = vpop.f32.mrb[45].mxu0  ;;  %v1671_v5 = vsel %vm293_vm2, %v15155_v51, 0.0 }
 0xaed   : > { %1672 = vadd.xlane.f32.xlu1 %v1671_v5 }
 0xaee   : > { %v15160_v34 = vadd.f32 %v11196_v45, %v1653_v54 }
 0xaef   : > { %v1642_v55 = vpop.f32.mrb[46].mxu0 }
 0xaf0   : > { %v1654_v9 = vadd.f32 %v1642_v55, %v15035_v19  ;;  %v12394_v59 = vpop.f32.mrb[47].mxu0  ;;  %v1674_v58 = vsel %vm293_vm2, %v15160_v34, 0.0 }
 0xaf1   : > { %1675 = vadd.xlane.f32.xlu0 %v1674_v58 }
 0xaf2   : > { %v15165_v38 = vadd.f32 %v11196_v45, %v1654_v9 }
 0xaf4   : > { %v1677_v14 = vsel %vm293_vm2, %v15165_v38, 0.0 }
 0xaf5   : > { %1678 = vadd.xlane.f32.xlu1 %v1677_v14 }
 0xb14   : > { %v1647_v60 = vpop.f32.mrb[48].mxu0 }
 0xb15   : > { %v1655_v33 = vadd.f32 %v1647_v60, %v15040_v27  ;;  %v12397_v44 = vpop.f32.mrb[49].mxu0 }
 0xb17   : > { %v15170_v61 = vadd.f32 %v11196_v45, %v1655_v33 }
 0xb19   : > { %v1680_v19 = vsel %vm293_vm2, %v15170_v61, 0.0 }
 0xb1a   : > { %1681 = vadd.xlane.f32.xlu0 %v1680_v19 }
 0xb76   : > { %v1670_v62 = vpop.xlane.xlu0 %1669 }
 0xb77   : > { %v1683_v63 = vmul.f32 0.03125, %v1670_v62 }
 0xb79   : > { %v15175_v37 = vsub.f32 %v15150_v22, %v1683_v63 }
 0xb7a   : > { %v1673_v49 = vpop.xlane.xlu1 %1672 }
 0xb7b   : > { %v1684_v0 = vmul.f32 0.03125, %v1673_v49  ;;  %v1693_v1 = vmul.f32 %v15175_v37, %v15175_v37 }
 0xb7d   : > { %v15180_v3 = vsub.f32 %v15155_v51, %v1684_v0  ;;  %v1698_v27 = vsel %vm293_vm2, %v1693_v1, 0.0 }
 0xb7e   : > { %v1676_v42 = vpop.xlane.xlu0 %1675  ;;  %1699 = vadd.xlane.f32.xlu1 %v1698_v27 }
 0xb7f   : > { %v1685_v6 = vmul.f32 0.03125, %v1676_v42  ;;  %v1694_v47 = vmul.f32 %v15180_v3, %v15180_v3 }
 0xb81   : > { %v15186_v7 = vsub.f32 %v15160_v34, %v1685_v6  ;;  %v1701_v8 = vsel %vm293_vm2, %v1694_v47, 0.0  ;;  %v11197_v47 = vld [vmem:[%s17043_s1 + $0xd8] ss:$0 sm:$0xff] }
 0xb82   : > { %v1679_v52 = vpop.xlane.xlu1 %1678  ;;  %1702 = vadd.xlane.f32.xlu0 %v1701_v8 }
 0xb83   : > { %v1686_v57 = vmul.f32 0.03125, %v1679_v52  ;;  %v1695_v10 = vmul.f32 %v15186_v7, %v15186_v7  ;;  %v11198_v52 = vld [vmem:[%s17043_s1 + $0xe0] ss:$0 sm:$0xff] }
 0xb85   : > { %v15192_v11 = vsub.f32 %v15165_v38, %v1686_v57  ;;  %v1704_v12 = vsel %vm293_vm2, %v1695_v10, 0.0 }
 0xb86   : > { %1705 = vadd.xlane.f32.xlu1 %v1704_v12 }
 0xb87   : > { %v1696_v15 = vmul.f32 %v15192_v11, %v15192_v11 }
 0xb89   : > { %v1707_v16 = vsel %vm293_vm2, %v1696_v15, 0.0 }
 0xb8a   : > { %1708 = vadd.xlane.f32.xlu0 %v1707_v16 }
 0xba7   : > { %v1682_v20 = vpop.xlane.xlu0 %1681 }
 0xba8   : > { %v1687_v23 = vmul.f32 0.03125, %v1682_v20 }
 0xbaa   : > { %v15205_v25 = vsub.f32 %v15170_v61, %v1687_v23 }
 0xbac   : > { %v1697_v35 = vmul.f32 %v15205_v25, %v15205_v25 }
 0xbae   : > { %v1710_v32 = vsel %vm293_vm2, %v1697_v35, 0.0 }
 0xbaf   : > { %1711 = vadd.xlane.f32.xlu1 %v1710_v32 }
 0xc0b   : > { %v1700_v36 = vpop.xlane.xlu1 %1699 }
 0xc0c   : > { %v1713_v28 = vmul.f32 0.032258064, %v1700_v36 }
 0xc0e   : > { %14456 = vrsqrt.f32 %v1713_v28  ;;  %vm1720_vm3 = vcmp.eq.f32.partialorder %v1713_v28, inf  ;;  %v1723_v50 = vand.u32 2147483648, %v1713_v28  ;;  %vm1722_vm4 = vcmp.eq.f32.partialorder %v1713_v28, 0.0 }
 0xc0f   : > { %v1703_v40 = vpop.xlane.xlu0 %1702 }
 0xc10   : > { %v1714_v41 = vmul.f32 0.032258064, %v1703_v40 }
 0xc12   : > { %14458 = vrsqrt.f32 %v1714_v41  ;;  %vm1727_vm5 = vcmp.eq.f32.partialorder %v1714_v41, inf  ;;  %v1730_v55 = vand.u32 2147483648, %v1714_v41  ;;  %vm1729_vm6 = vcmp.eq.f32.partialorder %v1714_v41, 0.0 }
 0xc13   : > { %v1706_v43 = vpop.xlane.xlu1 %1705 }
 0xc14   : > { %v1715_v45 = vmul.f32 0.032258064, %v1706_v43 }
 0xc16   : > { %14460 = vrsqrt.f32 %v1715_v45  ;;  %vm1734_vm7 = vcmp.eq.f32.partialorder %v1715_v45, inf  ;;  %v1737_v33 = vand.u32 2147483648, %v1715_v45  ;;  %vm1736_vm8 = vcmp.eq.f32.partialorder %v1715_v45, 0.0 }
 0xc17   : > { %v1709_v46 = vpop.xlane.xlu0 %1708 }
 0xc18   : > { %v14457_v48 = vpop.eup %14456  ;;  %v1716_v13 = vmul.f32 0.032258064, %v1709_v46 }
 0xc19   : > { %v1719_v26 = vmul.f32 %v14457_v48, %v1713_v28 }
 0xc1a   : > { %14462 = vrsqrt.f32 %v1716_v13  ;;  %vm1741_vm9 = vcmp.eq.f32.partialorder %v1716_v13, inf  ;;  %v1744_v0 = vand.u32 2147483648, %v1716_v13  ;;  %vm1743_vm10 = vcmp.eq.f32.partialorder %v1716_v13, 0.0 }
 0xc1b   : > { %v1721_v39 = vsel %vm1720_vm3, %v1713_v28, %v1719_v26  ;;  %v11199_v26 = vld [vmem:[%s17043_s1 + $0x108] ss:$0 sm:$0xff] }
 0xc1c   : > { %v14459_v53 = vpop.eup %14458  ;;  %v1724_v54 = vsel %vm1722_vm4, %v1723_v50, %v1721_v39 }
 0xc1d   : > { %v1753_v56 = vadd.f32 1e-06, %v1724_v54  ;;  %v1726_v5 = vmul.f32 %v14459_v53, %v1714_v41 }
 0xc1f   : > { %14464 = vrcp.f32 %v1753_v56  ;;  %v1728_v9 = vsel %vm1727_vm5, %v1714_v41, %v1726_v5 }
 0xc20   : > { %v14461_v59 = vpop.eup %14460  ;;  %v1731_v58 = vsel %vm1729_vm6, %v1730_v55, %v1728_v9 }
 0xc21   : > { %v1754_v14 = vadd.f32 1e-06, %v1731_v58  ;;  %v1733_v60 = vmul.f32 %v14461_v59, %v1715_v45 }
 0xc23   : > { %14466 = vrcp.f32 %v1754_v14  ;;  %v1735_v44 = vsel %vm1734_vm7, %v1715_v45, %v1733_v60 }
 0xc24   : > { %v14463_v19 = vpop.eup %14462  ;;  %v1738_v62 = vsel %vm1736_vm8, %v1737_v33, %v1735_v44 }
 0xc25   : > { %v1755_v63 = vadd.f32 1e-06, %v1738_v62  ;;  %v1740_v49 = vmul.f32 %v14463_v19, %v1716_v13 }
 0xc27   : > { %14468 = vrcp.f32 %v1755_v63  ;;  %v1742_v1 = vsel %vm1741_vm9, %v1716_v13, %v1740_v49 }
 0xc28   : > { %v1745_v27 = vsel %vm1743_vm10, %v1744_v0, %v1742_v1 }
 0xc29   : > { %v14465_v42 = vpop.eup %14464  ;;  %v1756_v6 = vadd.f32 1e-06, %v1745_v27 }
 0xc2a   : > { %v1763_v8 = vmul.f32 %v14465_v42, %v15175_v37 }
 0xc2b   : > { %14470 = vrcp.f32 %v1756_v6 }
 0xc2c   : > { %v1772_v57 = vmul.f32 %v11197_v47, %v1763_v8 }
 0xc2d   : > { %v14467_v10 = vpop.eup %14466 }
 0xc2e   : > { %v1781_v12 = vadd.f32 %v11198_v52, %v1772_v57  ;;  %v1764_v15 = vmul.f32 %v14467_v10, %v15180_v3 }
 0xc30   : > { %12407 = vmatmul.mubr.msk.f32.vlgmr.msra.gmra.mrb[40].mxu1 %vm293_vm2, %v1781_v12  ;;  %v1773_v16 = vmul.f32 %v11197_v47, %v1764_v15 }
 0xc31   : > { %v14469_v17 = vpop.eup %14468  ;;  %12409 = vmatprep.mubr.msk.f32.mxu1 %vm14605_vm0, %v14606_v4 }
 0xc32   : > { %v1782_v18 = vadd.f32 %v11198_v52, %v1773_v16  ;;  %v1765_v37 = vmul.f32 %v14469_v17, %v15186_v7 }
 0xc34   : > { %12410 = vmatmul.mubr.msk.f32.gmra.mrb[42].mxu1 %vm293_vm2, %v1782_v18  ;;  %v1774_v20 = vmul.f32 %v11197_v47, %v1765_v37 }
 0xc35   : > { %v14471_v21 = vpop.eup %14470  ;;  %12412 = vmatprep.mubr.msk.f32.mxu1 %vm14605_vm0, %v14606_v4 }
 0xc36   : > { %v1783_v23 = vadd.f32 %v11198_v52, %v1774_v20  ;;  %v1766_v3 = vmul.f32 %v14471_v21, %v15192_v11 }
 0xc38   : > { %12413 = vmatmul.mubr.msk.f32.gmra.mrb[44].mxu1 %vm293_vm2, %v1783_v23  ;;  %v1775_v24 = vmul.f32 %v11197_v47, %v1766_v3 }
 0xc39   : > { %12415 = vmatprep.mubr.msk.f32.mxu1 %vm14605_vm0, %v14606_v4 }
 0xc3a   : > { %v1784_v29 = vadd.f32 %v11198_v52, %v1775_v24 }
 0xc3c   : > { %v1712_v30 = vpop.xlane.xlu1 %1711  ;;  %12416 = vmatmul.mubr.msk.f32.gmra.mrb[46].mxu1 %vm293_vm2, %v1784_v29 }
 0xc3d   : > { %v1717_v7 = vmul.f32 0.032258064, %v1712_v30  ;;  %12418 = vmatprep.mubr.msk.f32.mxu1 %vm14605_vm0, %v14606_v4 }
 0xc3f   : > { %14472 = vrsqrt.f32 %v1717_v7  ;;  %vm1748_vm11 = vcmp.eq.f32.partialorder %v1717_v7, inf  ;;  %v1751_v36 = vand.u32 2147483648, %v1717_v7  ;;  %vm1750_vm12 = vcmp.eq.f32.partialorder %v1717_v7, 0.0 }
 0xc49   : > { %v14473_v35 = vpop.eup %14472 }
 0xc4a   : > { %v1747_v32 = vmul.f32 %v14473_v35, %v1717_v7 }
 0xc4c   : > { %v1749_v11 = vsel %vm1748_vm11, %v1717_v7, %v1747_v32 }
 0xc4d   : > { %v1752_v28 = vsel %vm1750_vm12, %v1751_v36, %v1749_v11 }
 0xc4e   : > { %v1757_v40 = vadd.f32 1e-06, %v1752_v28 }
 0xc50   : > { %14474 = vrcp.f32 %v1757_v40 }
 0xc5a   : > { %v14475_v41 = vpop.eup %14474 }
 0xc5b   : > { %v1767_v43 = vmul.f32 %v14475_v41, %v15205_v25 }
 0xc5d   : > { %v1776_v45 = vmul.f32 %v11197_v47, %v1767_v43 }
 0xc5f   : > { %v1785_v46 = vadd.f32 %v11198_v52, %v1776_v45 }
 0xc61   : > { %12419 = vmatmul.mubr.msk.f32.gmra.mrb[48].mxu1 %vm293_vm2, %v1785_v46 }
 0xc62   : > { %12456 = vmatprep.mubr.msk.f32.mxu1 %vm14605_vm0, %v14606_v4 }
 0xd03   : > { %v1876_v48 = vpop.f32.mrb[40].mxu1 }
 0xd04   : > { %v12408_v13 = vpop.f32.mrb[41].mxu1  ;;  %v1877_v39 = vadd.f32 %v11199_v26, %v1876_v48 }
 0xd07   : > { %v1881_v50 = vpop.f32.mrb[42].mxu1 }
 0xd08   : > { %v1882_v53 = vadd.f32 %v11199_v26, %v1881_v50  ;;  %v12411_v54 = vpop.f32.mrb[43].mxu1 }
 0xd0a   : > { %v15247_v56 = vpack.i.bf16 %v1882_v53, %v1877_v39 }
 0xd0b   : > { %v1886_v25 = vpop.f32.mrb[44].mxu1 }
 0xd0c   : > { %14335 = vrot.lane.b32.xlu0 %v15247_v56, %s14607_s14  ;;  %v12414_v5 = vpop.f32.mrb[45].mxu1  ;;  %v1887_v9 = vadd.f32 %v11199_v26, %v1886_v25 }
 0xd0f   : > { %v1891_v55 = vpop.f32.mrb[46].mxu1 }
 0xd10   : > { %v1892_v59 = vadd.f32 %v11199_v26, %v1891_v55  ;;  %v12417_v58 = vpop.f32.mrb[47].mxu1 }
 0xd12   : > { %v15251_v14 = vpack.i.bf16 %v1892_v59, %v1887_v9 }
 0xd14   : > { %14350 = vrot.lane.b32.xlu0 %v15251_v14, %s14608_s15  ;;  %14340 = vrot.lane.b32.xlu1 %v15251_v14, %s14607_s14 }
 0xd18   : > { %2210 = vrot.lane.b32.xlu0 %v1877_v39, %s14609_s16 }
 0xd1c   : > { %2214 = vrot.lane.b32.xlu0 %v1887_v9, %s14609_s16 }
 0xd34   : > { %v1896_v60 = vpop.f32.mrb[48].mxu1 }
 0xd35   : > { %v15259_v33 = vadd.f32 %v11199_v26, %v1896_v60  ;;  %v12420_v44 = vpop.f32.mrb[49].mxu1 }
 0xd37   : > { %2218 = vrot.lane.b32.xlu0 %v15259_v33, %s14609_s16  ;;  %1913 = vrot.lane.b32.xlu1 %v15259_v33, %s14607_s14 }
 0xd3b   : > { %14345 = vrot.lane.b32.xlu1 %v15247_v56, %s14608_s15 }
 0xd3f   : > { %2228 = vrot.lane.b32.xlu1 %v15259_v33, %s14608_s15 }
 0xd43   : > { %2212 = vrot.lane.b32.xlu1 %v1882_v53, %s14609_s16 }
 0xd47   : > { %2216 = vrot.lane.b32.xlu1 %v1892_v59, %s14609_s16 }
 0xd7e   : > { %v14336_v19 = vpop.permute.xlu0 %14335 }
 0xd7f   : > { %v14338_v62 = vunpack.i.h.bf16 %v14336_v19  ;;  %v14337_v63 = vunpack.i.l.bf16 %v14336_v19 }
 0xd81   : > { %v13666_v49 = vpack.c.bf16 %v14338_v62, %v14337_v63 }
 0xd83   : > { %13668 = vmatpush3.bf16.xpose.msk.msra.mxu0 %vm14805_vm13, %v13666_v49 }
 0xd84   : > { %13669 = vmatprep.subr.bf16.mxu0 %v14604_v2 }
 0xd86   : > { %v14341_v0 = vpop.permute.xlu1 %14340  ;;  %v14351_v10 = vpop.permute.xlu0 %14350 }
 0xd87   : > { %v14343_v1 = vunpack.i.h.bf16 %v14341_v0  ;;  %v14342_v27 = vunpack.i.l.bf16 %v14341_v0  ;;  %v14353_v12 = vunpack.i.h.bf16 %v14351_v10  ;;  %v14352_v15 = vunpack.i.l.bf16 %v14351_v10 }
 0xd89   : > { %v13670_v42 = vpack.c.bf16 %v14343_v1, %v14342_v27  ;;  %v13684_v16 = vpack.c.bf16 %v14353_v12, %v14352_v15 }
 0xd8a   : > { %v2211_v18 = vpop.permute.xlu0 %2210 }
 0xd8b   : > { %13672 = vmatpush3.bf16.xpose.msk.msra.mxu0 %vm14805_vm13, %v13670_v42 }
 0xd8c   : > { %12429 = vmatprep.subr.mxu0 %v14606_v4 }
 0xd8e   : > { %v2215_v37 = vpop.permute.xlu0 %2214 }
 0xda9   : > { %v1914_v6 = vpop.permute.xlu1 %1913  ;;  %v2219_v21 = vpop.permute.xlu0 %2218 }
 0xdaa   : > { %12430 = vmatpush3.xpose.msk.msra.mxu0 %vm185_vm1, %v1914_v6 }
 0xdab   : > { %13679 = vmatprep.subr.bf16.mxu0 %v14604_v2 }
 0xdad   : > { %v14346_v47 = vpop.permute.xlu1 %14345  ;;  %12432 = vmatmul.mubr.msk.f32.vlgmr.msra.gmra.mrb[50].mxu0 %vm185_vm1, %v1877_v39 }
 0xdae   : > { %v14348_v8 = vunpack.i.h.bf16 %v14346_v47  ;;  %v14347_v52 = vunpack.i.l.bf16 %v14346_v47  ;;  %12434 = vmatprep.mubr.msk.f32.mxu0 %vm14605_vm0, %v14606_v4 }
 0xdb0   : > { %v13680_v57 = vpack.c.bf16 %v14348_v8, %v14347_v52 }
 0xdb1   : > { %12435 = vmatmul.mubr.msk.f32.gmra.mrb[52].mxu0 %vm185_vm1, %v1882_v53  ;;  %v2229_v17 = vpop.permute.xlu1 %2228 }
 0xdb2   : > { %13682 = vmatpush3.bf16.xpose.msk.msra.mxu0 %vm14805_vm13, %v13680_v57  ;;  %12437 = vmatprep.mubr.msk.f32.mxu0 %vm14605_vm0, %v14606_v4 }
 0xdb3   : > { %13683 = vmatprep.subr.bf16.mxu0 %v14604_v2 }
 0xdb5   : > { %12438 = vmatmul.mubr.msk.f32.gmra.mrb[54].mxu0 %vm185_vm1, %v1887_v9  ;;  %v2213_v31 = vpop.permute.xlu1 %2212 }
 0xdb6   : > { %12440 = vmatprep.mubr.msk.f32.mxu0 %vm14605_vm0, %v14606_v4 }
 0xdb9   : > { %12441 = vmatmul.mubr.msk.f32.gmra.mrb[56].mxu0 %vm185_vm1, %v1892_v59  ;;  %v2217_v20 = vpop.permute.xlu1 %2216 }
 0xdba   : > { %13686 = vmatpush3.bf16.xpose.msk.msra.mxu0 %vm14805_vm13, %v13684_v16  ;;  %12443 = vmatprep.mubr.msk.f32.mxu0 %vm14605_vm0, %v14606_v4 }
 0xdbb   : > { %12479 = vmatprep.subr.mxu0 %v14606_v4 }
 0xdbd   : > { %12444 = vmatmul.mubr.msk.f32.gmra.mrb[58].mxu0 %vm185_vm1, %v15259_v33 }
 0xdbe   : > { %12481 = vmatprep.mubr.msk.f32.mxu0 %vm14605_vm0, %v14606_v4 }
 0xdc2   : > { %12480 = vmatpush3.xpose.msk.msra.mxu0 %vm185_vm1, %v2229_v17 }
 0xdc3   : > { %13693 = vmatprep.subr.bf16.mxu0 %v14604_v2 }
 0xdc5   : > { %12482 = vmatmul.mubr.msk.f32.vlgmr.msra.gmra.mrb[60].mxu0 %vm185_vm1, %v2211_v18 }
 0xdc6   : > { %12484 = vmatprep.mubr.msk.f32.mxu0 %vm14605_vm0, %v14606_v4 }
 0xdc9   : > { %12485 = vmatmul.mubr.msk.f32.gmra.mrb[62].mxu0 %vm185_vm1, %v2213_v31 }
 0xdca   : > { %12487 = vmatprep.mubr.msk.f32.mxu0 %vm14605_vm0, %v14606_v4 }
 0xdcd   : > { %12488 = vmatmul.mubr.msk.f32.gmra.mrb[64].mxu0 %vm185_vm1, %v2215_v37 }
 0xdce   : > { %12490 = vmatprep.mubr.msk.f32.mxu0 %vm14605_vm0, %v14606_v4 }
 0xdd1   : > { %12491 = vmatmul.mubr.msk.f32.gmra.mrb[66].mxu0 %vm185_vm1, %v2217_v20 }
 0xdd2   : > { %12493 = vmatprep.mubr.msk.f32.mxu0 %vm14605_vm0, %v14606_v4 }
 0xdd5   : > { %12494 = vmatmul.mubr.msk.f32.gmra.mrb[68].mxu0 %vm185_vm1, %v2219_v21 }
 0xdd6   : > { %12529 = vmatprep.mubr.msk.f32.mxu0 %vm14605_vm0, %v14606_v4 }
 0xe80   : > { %v2001_v23 = vpop.f32.mrb[50].mxu0 }
 0xe81   : > { %v2025_v3 = vmul.f32 0.25, %v2001_v23  ;;  %v12433_v24 = vpop.f32.mrb[51].mxu0 }
 0xe83   : > { %v2030_v29 = vsel %vm657_vm14, %v2025_v3, -inf }
 0xe84   : > { %2031 = vmax.xlane.f32.xlu1 %v2030_v29  ;;  %v2006_v30 = vpop.f32.mrb[52].mxu0 }
 0xe85   : > { %v2026_v7 = vmul.f32 0.25, %v2006_v30  ;;  %v12436_v35 = vpop.f32.mrb[53].mxu0 }
 0xe87   : > { %v2033_v32 = vsel %vm657_vm14, %v2026_v7, -inf }
 0xe88   : > { %2034 = vmax.xlane.f32.xlu0 %v2033_v32  ;;  %v2011_v36 = vpop.f32.mrb[54].mxu0 }
 0xe89   : > { %v2027_v11 = vmul.f32 0.25, %v2011_v36  ;;  %v12439_v28 = vpop.f32.mrb[55].mxu0 }
 0xe8b   : > { %v2036_v40 = vsel %vm657_vm14, %v2027_v11, -inf }
 0xe8c   : > { %2037 = vmax.xlane.f32.xlu0 %v2036_v40  ;;  %v2016_v41 = vpop.f32.mrb[56].mxu0 }
 0xe8d   : > { %v2028_v43 = vmul.f32 0.25, %v2016_v41  ;;  %v12442_v45 = vpop.f32.mrb[57].mxu0 }
 0xe8f   : > { %v2039_v46 = vsel %vm657_vm14, %v2028_v43, -inf }
 0xe90   : > { %2040 = vmax.xlane.f32.xlu0 %v2039_v46  ;;  %v2021_v48 = vpop.f32.mrb[58].mxu0 }
 0xe91   : > { %v2029_v13 = vmul.f32 0.25, %v2021_v48  ;;  %v12445_v26 = vpop.f32.mrb[59].mxu0 }
 0xe93   : > { %v2042_v50 = vsel %vm657_vm14, %v2029_v13, -inf }
 0xe94   : > { %2043 = vmax.xlane.f32.xlu1 %v2042_v50 }
 0xe98   : > { %v2316_v39 = vpop.f32.mrb[60].mxu0 }
 0xe99   : > { %v2340_v53 = vmul.f32 0.25, %v2316_v39  ;;  %v12483_v54 = vpop.f32.mrb[61].mxu0 }
 0xe9b   : > { %v2345_v25 = vsel %vm657_vm14, %v2340_v53, -inf }
 0xe9c   : > { %2346 = vmax.xlane.f32.xlu0 %v2345_v25  ;;  %v2321_v5 = vpop.f32.mrb[62].mxu0 }
 0xe9d   : > { %v2341_v55 = vmul.f32 0.25, %v2321_v5  ;;  %v12486_v9 = vpop.f32.mrb[63].mxu0 }
 0xe9f   : > { %v2348_v59 = vsel %vm657_vm14, %v2341_v55, -inf }
 0xea0   : > { %2349 = vmax.xlane.f32.xlu1 %v2348_v59  ;;  %v2326_v58 = vpop.f32.mrb[64].mxu0 }
 0xea1   : > { %v15325_v60 = vmul.f32 0.25, %v2326_v58  ;;  %v12489_v44 = vpop.f32.mrb[65].mxu0 }
 0xea3   : > { %v2351_v19 = vsel %vm657_vm14, %v15325_v60, -inf }
 0xea4   : > { %2352 = vmax.xlane.f32.xlu0 %v2351_v19  ;;  %v2331_v62 = vpop.f32.mrb[66].mxu0 }
 0xea5   : > { %v15329_v63 = vmul.f32 0.25, %v2331_v62  ;;  %v12492_v49 = vpop.f32.mrb[67].mxu0 }
 0xea7   : > { %v2354_v0 = vsel %vm657_vm14, %v15329_v63, -inf }
 0xea8   : > { %2355 = vmax.xlane.f32.xlu1 %v2354_v0  ;;  %v2336_v1 = vpop.f32.mrb[68].mxu0 }
 0xea9   : > { %v15333_v27 = vmul.f32 0.25, %v2336_v1  ;;  %v12495_v42 = vpop.f32.mrb[69].mxu0 }
 0xeab   : > { %v2357_v6 = vsel %vm657_vm14, %v15333_v27, -inf }
 0xeac   : > { %2358 = vmax.xlane.f32.xlu0 %v2357_v6 }
 0xeb9   : > { %14360 = vrot.lane.b32.xlu1 %v15251_v14, %s14610_s17 }
 0xec2   : > { %14355 = vrot.lane.b32.xlu0 %v15247_v56, %s14610_s17 }
 0xf11   : > { %v2032_v47 = vpop.xlane.xlu1 %2031 }
 0xf12   : > { %v2045_v8 = vsub.f32 %v2025_v3, %v2032_v47 }
 0xf14   : > { %v2050_v52 = vmul.f32 1.442695, %v2045_v8 }
 0xf15   : > { %v2035_v57 = vpop.xlane.xlu0 %2034 }
 0xf16   : > { %14476 = vpow2.f32 %v2050_v52  ;;  %v2046_v10 = vsub.f32 %v2026_v7, %v2035_v57 }
 0xf18   : > { %v2052_v12 = vmul.f32 1.442695, %v2046_v10 }
 0xf19   : > { %v2038_v15 = vpop.xlane.xlu0 %2037 }
 0xf1a   : > { %14478 = vpow2.f32 %v2052_v12  ;;  %v2047_v16 = vsub.f32 %v2027_v11, %v2038_v15 }
 0xf1c   : > { %v2054_v17 = vmul.f32 1.442695, %v2047_v16 }
 0xf1d   : > { %v2041_v18 = vpop.xlane.xlu0 %2040 }
 0xf1e   : > { %14480 = vpow2.f32 %v2054_v17  ;;  %v2048_v31 = vsub.f32 %v2028_v43, %v2041_v18 }
 0xf20   : > { %v15341_v37 = vpop.eup %14476  ;;  %v2056_v20 = vmul.f32 1.442695, %v2048_v31 }
 0xf21   : > { %v2044_v21 = vpop.xlane.xlu1 %2043  ;;  %v2060_v23 = vsel %vm657_vm14, %v15341_v37, 0.0 }
 0xf22   : > { %14482 = vpow2.f32 %v2056_v20  ;;  %v2049_v3 = vsub.f32 %v2029_v13, %v2044_v21  ;;  %2061 = vadd.xlane.f32.xlu1 %v2060_v23 }
 0xf24   : > { %v15345_v24 = vpop.eup %14478  ;;  %v2058_v29 = vmul.f32 1.442695, %v2049_v3 }
 0xf25   : > { %v2063_v30 = vsel %vm657_vm14, %v15345_v24, 0.0 }
 0xf26   : > { %14484 = vpow2.f32 %v2058_v29  ;;  %2064 = vadd.xlane.f32.xlu0 %v2063_v30 }
 0xf28   : > { %v15349_v7 = vpop.eup %14480 }
 0xf29   : > { %v2347_v35 = vpop.xlane.xlu0 %2346  ;;  %v2066_v32 = vsel %vm657_vm14, %v15349_v7, 0.0 }
 0xf2a   : > { %v2360_v36 = vsub.f32 %v2340_v53, %v2347_v35  ;;  %2067 = vadd.xlane.f32.xlu1 %v2066_v32 }
 0xf2c   : > { %v15353_v11 = vpop.eup %14482  ;;  %v2365_v28 = vmul.f32 1.442695, %v2360_v36 }
 0xf2d   : > { %v2350_v40 = vpop.xlane.xlu1 %2349  ;;  %v2069_v41 = vsel %vm657_vm14, %v15353_v11, 0.0 }
 0xf2e   : > { %14486 = vpow2.f32 %v2365_v28  ;;  %v2361_v43 = vsub.f32 %v2341_v55, %v2350_v40  ;;  %2070 = vadd.xlane.f32.xlu0 %v2069_v41 }
 0xf30   : > { %v15357_v45 = vpop.eup %14484  ;;  %v2367_v46 = vmul.f32 1.442695, %v2361_v43 }
 0xf31   : > { %v2072_v48 = vsel %vm657_vm14, %v15357_v45, 0.0  ;;  %v2353_v13 = vpop.xlane.xlu0 %2352 }
 0xf32   : > { %14488 = vpow2.f32 %v2367_v46  ;;  %2073 = vadd.xlane.f32.xlu1 %v2072_v48  ;;  %v2362_v49 = vsub.f32 %v15325_v60, %v2353_v13 }
 0xf34   : > { %v2369_v1 = vmul.f32 1.442695, %v2362_v49 }
 0xf35   : > { %v2356_v26 = vpop.xlane.xlu1 %2355 }
 0xf36   : > { %v2363_v0 = vsub.f32 %v15329_v63, %v2356_v26  ;;  %14490 = vpow2.f32 %v2369_v1 }
 0xf38   : > { %v15361_v50 = vpop.eup %14486  ;;  %v2371_v6 = vmul.f32 1.442695, %v2363_v0 }
 0xf39   : > { %v2359_v39 = vpop.xlane.xlu0 %2358  ;;  %v2375_v53 = vsel %vm657_vm14, %v15361_v50, 0.0  ;;  %v14361_v25 = vpop.permute.xlu1 %14360 }
 0xf3a   : > { %2376 = vadd.xlane.f32.xlu1 %v2375_v53  ;;  %v14363_v58 = vunpack.i.h.bf16 %v14361_v25  ;;  %v14362_v44 = vunpack.i.l.bf16 %v14361_v25  ;;  %v2364_v42 = vsub.f32 %v15333_v27, %v2359_v39  ;;  %14492 = vpow2.f32 %v2371_v6 }
 0xf3c   : > { %v15365_v54 = vpop.eup %14488  ;;  %v13677_v62 = vpack.c.bf16 %v14363_v58, %v14362_v44  ;;  %v2373_v47 = vmul.f32 1.442695, %v2364_v42  ;;  %v2551_v58 = vld [vmem:[%s17043_s1 + $0x118] sm:$0xff] }
 0xf3d   : > { %v14356_v5 = vpop.permute.xlu0 %14355  ;;  %v2378_v55 = vsel %vm657_vm14, %v15365_v54, 0.0 }
 0xf3e   : > { %v14358_v9 = vunpack.i.h.bf16 %v14356_v5  ;;  %v14357_v59 = vunpack.i.l.bf16 %v14356_v5  ;;  %2379 = vadd.xlane.f32.xlu0 %v2378_v55  ;;  %14494 = vpow2.f32 %v2373_v47 }
 0xf40   : > { %v13674_v19 = vpack.c.bf16 %v14358_v9, %v14357_v59  ;;  %v15378_v8 = vpop.eup %14490  ;;  %v2550_v59 = vld [vmem:[%s17043_s1 + $0x110] sm:$0xff] }
 0xf41   : > { %v13694_v44 = vpack.c.bf16 %v2551_v58, %v2550_v59 }
 0xf42   : > { %13675 = vmatpush3.bf16.msra.mxu1 %v13674_v19 }
 0xf43   : > { %13676 = vmatprep.subr.bf16.mxu1 %v14604_v2  ;;  %13695 = vmatpush3.bf16.msra.mxu0 %v13694_v44 }
 0xf44   : > { %v15380_v52 = vpop.eup %14492  ;;  %13696 = vmatprep.subr.bf16.mxu0 %v14604_v2 }
 0xf45   : > { %v2384_v60 = vsel %vm657_vm14, %v15380_v52, 0.0 }
 0xf46   : > { %13678 = vmatpush3.bf16.msra.mxu1 %v13677_v62 }
 0xf47   : > { %12454 = vmatprep.subr.mxu1 %v14606_v4 }
 0xf48   : > { %v15384_v57 = vpop.eup %14494 }
 0xf49   : > { %v2387_v63 = vsel %vm657_vm14, %v15384_v57, 0.0 }
 0xf4b   : > { %14365 = vrot.lane.b32.xlu1 %v15247_v56, %s14611_s18  ;;  %v2381_v56 = vsel %vm657_vm14, %v15378_v8, 0.0 }
 0xf54   : > { %2093 = vrot.lane.b32.xlu0 %v15259_v33, %s14610_s17 }
 0xf6f   : > { %2382 = vadd.xlane.f32.xlu1 %v2381_v56  ;;  %v2552_v56 = vld [vmem:[%s17043_s1 + $0x120] sm:$0xff] }
 0xf73   : > { %2385 = vadd.xlane.f32.xlu1 %v2384_v60  ;;  %2388 = vadd.xlane.f32.xlu0 %v2387_v63 }
 0xf84   : > { %14370 = vrot.lane.b32.xlu1 %v15251_v14, %s14611_s18 }
 0xf88   : > { %2408 = vrot.lane.b32.xlu1 %v15259_v33, %s14611_s18  ;;  %s11511_s18 = sshll.u32 %s17051_s13, 4 }
 0xf89   : > { %s172_s8 = scalar_lea.vmem %s17045_s3, %s11511_s18 }
 0xfaf   : > { %v2062_v27 = vpop.xlane.xlu1 %2061 }
 0xfb0   : > { %14496 = vrcp.f32 %v2062_v27 }
 0xfb3   : > { %v2065_v12 = vpop.xlane.xlu0 %2064 }
 0xfb4   : > { %14498 = vrcp.f32 %v2065_v12 }
 0xfb7   : > { %v2068_v10 = vpop.xlane.xlu1 %2067 }
 0xfb8   : > { %14500 = vrcp.f32 %v2068_v10 }
 0xfba   : > { %v14497_v20 = vpop.eup %14496 }
 0xfbb   : > { %v2071_v16 = vpop.xlane.xlu0 %2070  ;;  %v2080_v14 = vmul.f32 %v14497_v20, %v15341_v37 }
 0xfbc   : > { %14502 = vrcp.f32 %v2071_v16 }
 0xfbe   : > { %v14499_v29 = vpop.eup %14498 }
 0xfbf   : > { %v2074_v15 = vpop.xlane.xlu1 %2073  ;;  %v2081_v30 = vmul.f32 %v14499_v29, %v15345_v24 }
 0xfc0   : > { %14504 = vrcp.f32 %v2074_v15 }
 0xfc2   : > { %v14501_v35 = vpop.eup %14500 }
 0xfc3   : > { %v2082_v37 = vmul.f32 %v14501_v35, %v15349_v7 }
 0xfc6   : > { %v14503_v32 = vpop.eup %14502 }
 0xfc7   : > { %v2377_v17 = vpop.xlane.xlu1 %2376  ;;  %v2083_v36 = vmul.f32 %v14503_v32, %v15353_v11 }
 0xfc8   : > { %14506 = vrcp.f32 %v2377_v17 }
 0xfca   : > { %v14505_v28 = vpop.eup %14504 }
 0xfcb   : > { %v14366_v18 = vpop.permute.xlu1 %14365  ;;  %v2380_v31 = vpop.xlane.xlu0 %2379  ;;  %v2084_v24 = vmul.f32 %v14505_v28, %v15357_v45  ;;  %v11240_v28 = vld [vmem:[%s17043_s1 + $0x130] ss:$0 sm:$0xff] }
 0xfcc   : > { %v14368_v21 = vunpack.i.h.bf16 %v14366_v18  ;;  %v14367_v23 = vunpack.i.l.bf16 %v14366_v18  ;;  %14508 = vrcp.f32 %v2380_v31 }
 0xfce   : > { %v13688_v33 = vpack.c.bf16 %v14368_v21, %v14367_v23 }
 0xfcf   : > { %v2094_v3 = vpop.permute.xlu0 %2093 }
 0xfd0   : > { %12455 = vmatpush3.msra.mxu1 %v2094_v3 }
 0xfd1   : > { %12457 = vmatmul.mubr.msk.f32.vlgmr.msra.gmra.mrb[50].mxu1 %vm657_vm14, %v2080_v14  ;;  %13687 = vmatprep.subr.bf16.mxu1 %v14604_v2 }
 0xfd2   : > { %13689 = vmatpush3.bf16.msra.mxu1 %v13688_v33  ;;  %12459 = vmatprep.mubr.msk.f32.mxu1 %vm14605_vm0, %v14606_v4  ;;  %v14507_v48 = vpop.eup %14506 }
 0xfd3   : > { %13690 = vmatprep.subr.bf16.mxu1 %v14604_v2  ;;  %v2395_v45 = vmul.f32 %v14507_v48, %v15361_v50 }
 0xfd5   : > { %12460 = vmatmul.mubr.msk.f32.gmra.mrb[52].mxu1 %vm657_vm14, %v2081_v30 }
 0xfd6   : > { %12462 = vmatprep.mubr.msk.f32.mxu1 %vm14605_vm0, %v14606_v4  ;;  %v14509_v39 = vpop.eup %14508 }
 0xfd7   : > { %v2396_v53 = vmul.f32 %v14509_v39, %v15365_v54 }
 0xfd9   : > { %12463 = vmatmul.mubr.msk.f32.gmra.mrb[54].mxu1 %vm657_vm14, %v2082_v37 }
 0xfda   : > { %12465 = vmatprep.mubr.msk.f32.mxu1 %vm14605_vm0, %v14606_v4 }
 0xfdd   : > { %12466 = vmatmul.mubr.msk.f32.gmra.mrb[56].mxu1 %vm657_vm14, %v2083_v36 }
 0xfde   : > { %12468 = vmatprep.mubr.msk.f32.mxu1 %vm14605_vm0, %v14606_v4 }
 0xfe1   : > { %12469 = vmatmul.mubr.msk.f32.gmra.mrb[58].mxu1 %vm657_vm14, %v2084_v24 }
 0xfe2   : > { %12506 = vmatprep.mubr.msk.f32.mxu1 %vm14605_vm0, %v14606_v4 }
 0xffc   : > { %v2383_v7 = vpop.xlane.xlu1 %2382 }
 0xffd   : > { %14510 = vrcp.f32 %v2383_v7 }
0x1000   : > { %v2386_v40 = vpop.xlane.xlu1 %2385  ;;  %v2389_v13 = vpop.xlane.xlu0 %2388 }
0x1001   : > { %14512 = vrcp.f32 %v2386_v40 }
0x1002   : > { %14514 = vrcp.f32 %v2389_v13 }
0x1004   : > { %v14371_v41 = vpop.permute.xlu1 %14370 }
0x1005   : > { %v14373_v43 = vunpack.i.h.bf16 %v14371_v41  ;;  %v14372_v11 = vunpack.i.l.bf16 %v14371_v41 }
0x1007   : > { %v13691_v46 = vpack.c.bf16 %v14373_v43, %v14372_v11  ;;  %v14511_v25 = vpop.eup %14510 }
0x1008   : > { %v2409_v26 = vpop.permute.xlu1 %2408  ;;  %v2397_v50 = vmul.f32 %v14511_v25, %v15378_v8 }
0x1009   : > { %13692 = vmatpush3.bf16.msra.mxu1 %v13691_v46 }
0x100a   : > { %12504 = vmatprep.subr.mxu1 %v14606_v4 }
0x100b   : > { %v14513_v5 = vpop.eup %14512 }
0x100c   : > { %v2398_v55 = vmul.f32 %v14513_v5, %v15380_v52  ;;  %v14515_v9 = vpop.eup %14514 }
0x100d   : > { %12505 = vmatpush3.msra.mxu1 %v2409_v26  ;;  %v2399_v54 = vmul.f32 %v14515_v9, %v15384_v57  ;;  %v2553_v57 = vld [vmem:[%s17043_s1 + $0x128] sm:$0xff] }
0x100e   : > { %12507 = vmatmul.mubr.msk.f32.vlgmr.msra.gmra.mrb[60].mxu1 %vm657_vm14, %v2395_v45  ;;  %13699 = vmatprep.subr.bf16.mxu1 %v14604_v2  ;;  %v13697_v60 = vpack.c.bf16 %v2553_v57, %v2552_v56 }
0x100f   : > { %12509 = vmatprep.mubr.msk.f32.mxu1 %vm14605_vm0, %v14606_v4 }
0x1010   : > { %13698 = vmatpush3.bf16.msra.mxu0 %v13697_v60 }
0x1011   : > { %13705 = vmatprep.subr.bf16.mxu0 %v14604_v2 }
0x1012   : > { %12510 = vmatmul.mubr.msk.f32.gmra.mrb[62].mxu1 %vm657_vm14, %v2396_v53 }
0x1013   : > { %12512 = vmatprep.mubr.msk.f32.mxu1 %vm14605_vm0, %v14606_v4 }
0x1016   : > { %12513 = vmatmul.mubr.msk.f32.gmra.mrb[64].mxu1 %vm657_vm14, %v2397_v50 }
0x1017   : > { %12515 = vmatprep.mubr.msk.f32.mxu1 %vm14605_vm0, %v14606_v4 }
0x101a   : > { %12516 = vmatmul.mubr.msk.f32.gmra.mrb[66].mxu1 %vm657_vm14, %v2398_v55 }
0x101b   : > { %12518 = vmatprep.mubr.msk.f32.mxu1 %vm14605_vm0, %v14606_v4 }
0x101e   : > { %12519 = vmatmul.mubr.msk.f32.gmra.mrb[68].mxu1 %vm657_vm14, %v2399_v54 }
0x101f   : > { %12552 = vmatprep.mubr.msk.f32.mxu1 %vm14605_vm0, %v14606_v4 }
0x10a4   : > { %v2181_v19 = vpop.f32.mrb[50].mxu1 }
0x10a5   : > { %2205 = vst.msk [vmem:[#allocation2] sm:$0xff] %vm185_vm1, %v2181_v19  ;;  %v12458_v62 = vpop.f32.mrb[51].mxu1 }
0x10a8   : > { %v2186_v49 = vpop.f32.mrb[52].mxu1 }
0x10a9   : > { %2206 = vst.msk [vmem:[#allocation2 + $0x8] sm:$0xff] %vm185_vm1, %v2186_v49  ;;  %v12461_v0 = vpop.f32.mrb[53].mxu1 }
0x10ac   : > { %v2191_v1 = vpop.f32.mrb[54].mxu1 }
0x10ad   : > { %2207 = vst.msk [vmem:[#allocation2 + $0x10] sm:$0xff] %vm185_vm1, %v2191_v1  ;;  %v12464_v42 = vpop.f32.mrb[55].mxu1 }
0x10b0   : > { %v2196_v6 = vpop.f32.mrb[56].mxu1 }
0x10b1   : > { %2208 = vst.msk [vmem:[#allocation2 + $0x18] sm:$0xff] %vm185_vm1, %v2196_v6  ;;  %v12467_v47 = vpop.f32.mrb[57].mxu1 }
0x10b4   : > { %v2201_v8 = vpop.f32.mrb[58].mxu1 }
0x10b5   : > { %2209 = vst.msk [vmem:[#allocation2 + $0x20] sm:$0xff] %vm185_vm1, %v2201_v8  ;;  %v12470_v52 = vpop.f32.mrb[59].mxu1 }
0x10e1   : > { %v2496_v63 = vpop.f32.mrb[60].mxu1 }
0x10e2   : > { %2525 = vrot.lane.b32.xlu1 %v2496_v63, %s14612_s28  ;;  %v12508_v27 = vpop.f32.mrb[61].mxu1 }
0x10e5   : > { %v2501_v10 = vpop.f32.mrb[62].mxu1 }
0x10e6   : > { %2527 = vrot.lane.b32.xlu1 %v2501_v10, %s14612_s28  ;;  %v12511_v12 = vpop.f32.mrb[63].mxu1 }
0x10e9   : > { %v2506_v15 = vpop.f32.mrb[64].mxu1 }
0x10ea   : > { %2529 = vrot.lane.b32.xlu1 %v2506_v15, %s14612_s28  ;;  %v12514_v16 = vpop.f32.mrb[65].mxu1 }
0x10ed   : > { %v2511_v17 = vpop.f32.mrb[66].mxu1 }
0x10ee   : > { %2531 = vrot.lane.b32.xlu1 %v2511_v17, %s14612_s28  ;;  %v12517_v18 = vpop.f32.mrb[67].mxu1 }
0x10f1   : > { %v2516_v31 = vpop.f32.mrb[68].mxu1 }
0x10f2   : > { %2533 = vrot.lane.b32.xlu1 %v2516_v31, %s14612_s28  ;;  %v12520_v20 = vpop.f32.mrb[69].mxu1 }
0x10f3   : > { %v2794_v20 = vld [vmem:[%s17043_s1 + $0x148] sm:$0xff] }
0x1154   : > { %v2526_v21 = vpop.permute.xlu1 %2525 }
0x1155   : > { %2540 = vst.msk [vmem:[#allocation2] sm:$0xff] %vm1168_vm15, %v2526_v21  ;;  %v2795_v21 = vld [vmem:[%s17043_s1 + $0x150] sm:$0xff] }
0x1158   : > { %v2528_v23 = vpop.permute.xlu1 %2527 }
0x1159   : > { %2541 = vst.msk [vmem:[#allocation2 + $0x8] sm:$0xff] %vm1168_vm15, %v2528_v23  ;;  %v13700_v23 = vpack.c.bf16 %v2795_v21, %v2794_v20 }
0x115b   : > { %13701 = vmatpush3.bf16.msra.mxu1 %v13700_v23 }
0x115c   : > { %v2530_v14 = vpop.permute.xlu1 %2529  ;;  %v2545_v3 = vld [vmem:[#allocation2] sm:$0xff]  ;;  %13702 = vmatprep.subr.bf16.mxu1 %v14604_v2 }
0x115d   : > { %2542 = vst.msk [vmem:[#allocation2 + $0x10] sm:$0xff] %vm1168_vm15, %v2530_v14  ;;  %12530 = vmatmul.mubr.msk.f32.vlgmr.msra.gmra.mrb[70].mxu0 %vm293_vm2, %v2545_v3  ;;  %v2796_v14 = vld [vmem:[%s17043_s1 + $0x158] sm:$0xff]  ;;  %v2797_v3 = vld [vmem:[%s17043_s1 + $0x160] sm:$0xff] }
0x115e   : > { %12532 = vmatprep.mubr.msk.f32.mxu0 %vm14605_vm0, %v14606_v4 }
0x1160   : > { %v2532_v29 = vpop.permute.xlu1 %2531  ;;  %v2546_v33 = vld [vmem:[#allocation2 + $0x8] sm:$0xff] }
0x1161   : > { %2543 = vst.msk [vmem:[#allocation2 + $0x18] sm:$0xff] %vm1168_vm15, %v2532_v29  ;;  %12533 = vmatmul.mubr.msk.f32.gmra.mrb[72].mxu0 %vm293_vm2, %v2546_v33  ;;  %v13703_v29 = vpack.c.bf16 %v2797_v3, %v2796_v14  ;;  %v2913_v33 = vld [vmem:[%s17043_s1 + $0x170] sm:$0xff] }
0x1162   : > { %12535 = vmatprep.mubr.msk.f32.mxu0 %vm14605_vm0, %v14606_v4 }
0x1163   : > { %13704 = vmatpush3.bf16.msra.mxu1 %v13703_v29 }
0x1164   : > { %v2534_v30 = vpop.permute.xlu1 %2533  ;;  %v2547_v35 = vld [vmem:[#allocation2 + $0x10] sm:$0xff] }
0x1165   : > { %2544 = vst.msk [vmem:[#allocation2 + $0x20] sm:$0xff] %vm1168_vm15, %v2534_v30  ;;  %12536 = vmatmul.mubr.msk.f32.gmra.mrb[74].mxu0 %vm293_vm2, %v2547_v35  ;;  %v2914_v30 = vld [vmem:[%s17043_s1 + $0x178] sm:$0xff] }
0x1166   : > { %12538 = vmatprep.mubr.msk.f32.mxu0 %vm14605_vm0, %v14606_v4  ;;  %v13706_v35 = vpack.c.bf16 %v2914_v30, %v2913_v33 }
0x1168   : > { %v2548_v37 = vld [vmem:[#allocation2 + $0x18] sm:$0xff]  ;;  %13707 = vmatpush3.bf16.msra.mxu0 %v13706_v35 }
0x1169   : > { %12539 = vmatmul.mubr.msk.f32.gmra.mrb[76].mxu0 %vm293_vm2, %v2548_v37  ;;  %13708 = vmatprep.subr.bf16.mxu0 %v14604_v2 }
0x116a   : > { %12541 = vmatprep.mubr.msk.f32.mxu0 %vm14605_vm0, %v14606_v4 }
0x116c   : > { %v2549_v32 = vld [vmem:[#allocation2 + $0x20] sm:$0xff] }
0x116d   : > { %12542 = vmatmul.mubr.msk.f32.gmra.mrb[78].mxu0 %vm293_vm2, %v2549_v32 }
0x116e   : > { %12575 = vmatprep.mubr.msk.f32.mxu0 %vm14605_vm0, %v14606_v4 }
0x1230   : > { %v2635_v36 = vpop.f32.mrb[70].mxu0 }
0x1231   : > { %v2659_v24 = vadd.f32 %v2635_v36, %v15150_v22  ;;  %v12531_v7 = vpop.f32.mrb[71].mxu0 }
0x1233   : > { %v15486_v40 = vadd.f32 %v11240_v28, %v2659_v24 }
0x1234   : > { %v2640_v41 = vpop.f32.mrb[72].mxu0 }
0x1235   : > { %v2660_v43 = vadd.f32 %v2640_v41, %v15155_v51  ;;  %v12534_v11 = vpop.f32.mrb[73].mxu0  ;;  %v2676_v46 = vsel %vm293_vm2, %v15486_v40, 0.0 }
0x1236   : > { %2677 = vadd.xlane.f32.xlu0 %v2676_v46 }
0x1237   : > { %v15491_v48 = vadd.f32 %v11240_v28, %v2660_v43 }
0x1238   : > { %v2645_v45 = vpop.f32.mrb[74].mxu0 }
0x1239   : > { %v2661_v13 = vadd.f32 %v2645_v45, %v15160_v34  ;;  %v12537_v26 = vpop.f32.mrb[75].mxu0  ;;  %v2679_v22 = vsel %vm293_vm2, %v15491_v48, 0.0 }
0x123a   : > { %2680 = vadd.xlane.f32.xlu1 %v2679_v22 }
0x123b   : > { %v15496_v39 = vadd.f32 %v11240_v28, %v2661_v13 }
0x123c   : > { %v2650_v53 = vpop.f32.mrb[76].mxu0 }
0x123d   : > { %v2662_v51 = vadd.f32 %v2650_v53, %v15165_v38  ;;  %v12540_v25 = vpop.f32.mrb[77].mxu0  ;;  %v2682_v50 = vsel %vm293_vm2, %v15496_v39, 0.0 }
0x123e   : > { %2683 = vadd.xlane.f32.xlu0 %v2682_v50 }
0x123f   : > { %v15501_v5 = vadd.f32 %v11240_v28, %v2662_v51 }
0x1240   : > { %v2655_v55 = vpop.f32.mrb[78].mxu0 }
0x1241   : > { %v2663_v34 = vadd.f32 %v2655_v55, %v15170_v61  ;;  %v12543_v9 = vpop.f32.mrb[79].mxu0  ;;  %v2685_v54 = vsel %vm293_vm2, %v15501_v5, 0.0 }
0x1242   : > { %2686 = vadd.xlane.f32.xlu0 %v2685_v54 }
0x1243   : > { %v15506_v59 = vadd.f32 %v11240_v28, %v2663_v34 }
0x1245   : > { %v2688_v38 = vsel %vm293_vm2, %v15506_v59, 0.0 }
0x1246   : > { %2689 = vadd.xlane.f32.xlu0 %v2688_v38 }
0x12c3   : > { %v2678_v58 = vpop.xlane.xlu0 %2677 }
0x12c4   : > { %v2691_v44 = vmul.f32 0.03125, %v2678_v58 }
0x12c6   : > { %v15511_v19 = vsub.f32 %v15486_v40, %v2691_v44 }
0x12c7   : > { %v2681_v62 = vpop.xlane.xlu1 %2680 }
0x12c8   : > { %v2692_v49 = vmul.f32 0.03125, %v2681_v62  ;;  %v2701_v61 = vmul.f32 %v15511_v19, %v15511_v19 }
0x12ca   : > { %v15516_v0 = vsub.f32 %v15491_v48, %v2692_v49  ;;  %v2706_v1 = vsel %vm293_vm2, %v2701_v61, 0.0 }
0x12cb   : > { %v2684_v42 = vpop.xlane.xlu0 %2683  ;;  %2707 = vadd.xlane.f32.xlu0 %v2706_v1 }
0x12cc   : > { %v2693_v6 = vmul.f32 0.03125, %v2684_v42  ;;  %v2702_v47 = vmul.f32 %v15516_v0, %v15516_v0 }
0x12ce   : > { %v15522_v8 = vsub.f32 %v15496_v39, %v2693_v6  ;;  %v2709_v52 = vsel %vm293_vm2, %v2702_v47, 0.0 }
0x12cf   : > { %v2687_v56 = vpop.xlane.xlu0 %2686  ;;  %2710 = vadd.xlane.f32.xlu0 %v2709_v52 }
0x12d0   : > { %v2694_v57 = vmul.f32 0.03125, %v2687_v56  ;;  %v2703_v60 = vmul.f32 %v15522_v8, %v15522_v8 }
0x12d2   : > { %v15528_v63 = vsub.f32 %v15501_v5, %v2694_v57  ;;  %v2712_v27 = vsel %vm293_vm2, %v2703_v60, 0.0 }
0x12d3   : > { %2713 = vadd.xlane.f32.xlu0 %v2712_v27  ;;  %v2690_v10 = vpop.xlane.xlu0 %2689 }
0x12d4   : > { %v2695_v12 = vmul.f32 0.03125, %v2690_v10  ;;  %v2704_v15 = vmul.f32 %v15528_v63, %v15528_v63  ;;  %v11241_v10 = vld [vmem:[%s17043_s1 + $0x138] ss:$0 sm:$0xff] }
0x12d6   : > { %v15534_v16 = vsub.f32 %v15506_v59, %v2695_v12  ;;  %v2715_v17 = vsel %vm293_vm2, %v2704_v15, 0.0 }
0x12d7   : > { %2716 = vadd.xlane.f32.xlu0 %v2715_v17 }
0x12d8   : > { %v2705_v18 = vmul.f32 %v15534_v16, %v15534_v16 }
0x12da   : > { %v2718_v31 = vsel %vm293_vm2, %v2705_v18, 0.0  ;;  %v11242_v18 = vld [vmem:[%s17043_s1 + $0x140] ss:$0 sm:$0xff] }
0x12db   : > { %2719 = vadd.xlane.f32.xlu0 %v2718_v31 }
0x1358   : > { %v2708_v37 = vpop.xlane.xlu0 %2707 }
0x1359   : > { %v2721_v32 = vmul.f32 0.032258064, %v2708_v37 }
0x135b   : > { %14516 = vrsqrt.f32 %v2721_v32  ;;  %vm2728_vm13 = vcmp.eq.f32.partialorder %v2721_v32, inf  ;;  %v2731_v45 = vand.u32 2147483648, %v2721_v32  ;;  %vm2730_vm15 = vcmp.eq.f32.partialorder %v2721_v32, 0.0 }
0x135c   : > { %v2711_v36 = vpop.xlane.xlu0 %2710 }
0x135d   : > { %v2722_v28 = vmul.f32 0.032258064, %v2711_v36 }
0x135f   : > { %14518 = vrsqrt.f32 %v2722_v28  ;;  %vm2735_vm3 = vcmp.eq.f32.partialorder %v2722_v28, inf  ;;  %v2738_v55 = vand.u32 2147483648, %v2722_v28  ;;  %vm2737_vm4 = vcmp.eq.f32.partialorder %v2722_v28, 0.0 }
0x1360   : > { %v2714_v24 = vpop.xlane.xlu0 %2713 }
0x1361   : > { %v2723_v7 = vmul.f32 0.032258064, %v2714_v24 }
0x1363   : > { %14520 = vrsqrt.f32 %v2723_v7  ;;  %vm2742_vm5 = vcmp.eq.f32.partialorder %v2723_v7, inf  ;;  %v2745_v44 = vand.u32 2147483648, %v2723_v7  ;;  %vm2744_vm6 = vcmp.eq.f32.partialorder %v2723_v7, 0.0 }
0x1364   : > { %v2717_v41 = vpop.xlane.xlu0 %2716 }
0x1365   : > { %v14517_v43 = vpop.eup %14516  ;;  %v2724_v11 = vmul.f32 0.032258064, %v2717_v41 }
0x1366   : > { %v2727_v46 = vmul.f32 %v14517_v43, %v2721_v32  ;;  %v2916_v43 = vld [vmem:[%s17043_s1 + $0x188] sm:$0xff] }
0x1367   : > { %14522 = vrsqrt.f32 %v2724_v11  ;;  %vm2749_vm7 = vcmp.eq.f32.partialorder %v2724_v11, inf  ;;  %v2752_v6 = vand.u32 2147483648, %v2724_v11  ;;  %vm2751_vm8 = vcmp.eq.f32.partialorder %v2724_v11, 0.0 }
0x1368   : > { %v2729_v13 = vsel %vm2728_vm13, %v2721_v32, %v2727_v46  ;;  %v2720_v26 = vpop.xlane.xlu0 %2719 }
0x1369   : > { %v14519_v22 = vpop.eup %14518  ;;  %v2732_v53 = vsel %vm2730_vm15, %v2731_v45, %v2729_v13  ;;  %v2725_v51 = vmul.f32 0.032258064, %v2720_v26 }
0x136a   : > { %v2761_v25 = vadd.f32 1e-06, %v2732_v53  ;;  %v2734_v50 = vmul.f32 %v14519_v22, %v2722_v28 }
0x136b   : > { %14524 = vrsqrt.f32 %v2725_v51  ;;  %vm2756_vm9 = vcmp.eq.f32.partialorder %v2725_v51, inf  ;;  %v2759_v12 = vand.u32 2147483648, %v2725_v51  ;;  %vm2758_vm10 = vcmp.eq.f32.partialorder %v2725_v51, 0.0 }
0x136c   : > { %14526 = vrcp.f32 %v2761_v25  ;;  %v2736_v34 = vsel %vm2735_vm3, %v2722_v28, %v2734_v50 }
0x136d   : > { %v14521_v9 = vpop.eup %14520  ;;  %v2739_v54 = vsel %vm2737_vm4, %v2738_v55, %v2736_v34 }
0x136e   : > { %v2762_v38 = vadd.f32 1e-06, %v2739_v54  ;;  %v2741_v58 = vmul.f32 %v14521_v9, %v2723_v7 }
0x1370   : > { %14528 = vrcp.f32 %v2762_v38  ;;  %v2743_v62 = vsel %vm2742_vm5, %v2723_v7, %v2741_v58 }
0x1371   : > { %v14523_v49 = vpop.eup %14522  ;;  %v2746_v61 = vsel %vm2744_vm6, %v2745_v44, %v2743_v62 }
0x1372   : > { %v2763_v1 = vadd.f32 1e-06, %v2746_v61  ;;  %v2748_v42 = vmul.f32 %v14523_v49, %v2724_v11 }
0x1374   : > { %14530 = vrcp.f32 %v2763_v1  ;;  %v2750_v47 = vsel %vm2749_vm7, %v2724_v11, %v2748_v42 }
0x1375   : > { %v14525_v52 = vpop.eup %14524  ;;  %v2753_v56 = vsel %vm2751_vm8, %v2752_v6, %v2750_v47  ;;  %v11254_v6 = vld [vmem:[%s17043_s1 + $0x190] ss:$0 sm:$0xff] }
0x1376   : > { %v14527_v57 = vpop.eup %14526  ;;  %v2764_v60 = vadd.f32 1e-06, %v2753_v56  ;;  %v2755_v27 = vmul.f32 %v14525_v52, %v2725_v51 }
0x1377   : > { %v2771_v15 = vmul.f32 %v14527_v57, %v15511_v19 }
0x1378   : > { %14532 = vrcp.f32 %v2764_v60  ;;  %v2757_v17 = vsel %vm2756_vm9, %v2725_v51, %v2755_v27 }
0x1379   : > { %v2760_v31 = vsel %vm2758_vm10, %v2759_v12, %v2757_v17  ;;  %v2780_v20 = vmul.f32 %v11241_v10, %v2771_v15 }
0x137a   : > { %v14529_v21 = vpop.eup %14528  ;;  %v2765_v23 = vadd.f32 1e-06, %v2760_v31 }
0x137b   : > { %v2789_v14 = vadd.f32 %v11242_v18, %v2780_v20  ;;  %v2772_v3 = vmul.f32 %v14529_v21, %v15516_v0 }
0x137c   : > { %14534 = vrcp.f32 %v2765_v23 }
0x137d   : > { %12553 = vmatmul.mubr.msk.f32.vlgmr.msra.gmra.mrb[70].mxu1 %vm293_vm2, %v2789_v14  ;;  %v2781_v29 = vmul.f32 %v11241_v10, %v2772_v3 }
0x137e   : > { %v14531_v33 = vpop.eup %14530  ;;  %12555 = vmatprep.mubr.msk.f32.mxu1 %vm14605_vm0, %v14606_v4 }
0x137f   : > { %v2790_v19 = vadd.f32 %v11242_v18, %v2781_v29  ;;  %v2773_v30 = vmul.f32 %v14531_v33, %v15522_v8 }
0x1381   : > { %12556 = vmatmul.mubr.msk.f32.gmra.mrb[72].mxu1 %vm293_vm2, %v2790_v19  ;;  %v2782_v35 = vmul.f32 %v11241_v10, %v2773_v30 }
0x1382   : > { %v14533_v37 = vpop.eup %14532  ;;  %12558 = vmatprep.mubr.msk.f32.mxu1 %vm14605_vm0, %v14606_v4 }
0x1383   : > { %v2791_v32 = vadd.f32 %v11242_v18, %v2782_v35  ;;  %v2774_v0 = vmul.f32 %v14533_v37, %v15528_v63  ;;  %v2915_v63 = vld [vmem:[%s17043_s1 + $0x180] sm:$0xff] }
0x1384   : > { %v13709_v11 = vpack.c.bf16 %v2916_v43, %v2915_v63 }
0x1385   : > { %12559 = vmatmul.mubr.msk.f32.gmra.mrb[74].mxu1 %vm293_vm2, %v2791_v32  ;;  %v2783_v36 = vmul.f32 %v11241_v10, %v2774_v0 }
0x1386   : > { %v14535_v28 = vpop.eup %14534  ;;  %12561 = vmatprep.mubr.msk.f32.mxu1 %vm14605_vm0, %v14606_v4  ;;  %13710 = vmatpush3.bf16.msra.mxu0 %v13709_v11 }
0x1387   : > { %v2792_v24 = vadd.f32 %v11242_v18, %v2783_v36  ;;  %v2775_v8 = vmul.f32 %v14535_v28, %v15534_v16  ;;  %v11243_v16 = vld [vmem:[%s17043_s1 + $0x168] ss:$0 sm:$0xff] }
0x1389   : > { %12562 = vmatmul.mubr.msk.f32.gmra.mrb[76].mxu1 %vm293_vm2, %v2792_v24  ;;  %v2784_v7 = vmul.f32 %v11241_v10, %v2775_v8 }
0x138a   : > { %12564 = vmatprep.mubr.msk.f32.mxu1 %vm14605_vm0, %v14606_v4 }
0x138b   : > { %v2793_v41 = vadd.f32 %v11242_v18, %v2784_v7 }
0x138d   : > { %12565 = vmatmul.mubr.msk.f32.gmra.mrb[78].mxu1 %vm293_vm2, %v2793_v41 }
0x1450   : > { %v2884_v46 = vpop.f32.mrb[70].mxu1 }
0x1451   : > { %v2885_v45 = vadd.f32 %v11243_v16, %v2884_v46  ;;  %v12554_v13 = vpop.f32.mrb[71].mxu1 }
0x1453   : > { %v2908_v26 = vmax.f32 %v2885_v45, 0.0 }
0x1454   : > { %v2889_v22 = vpop.f32.mrb[72].mxu1 }
0x1455   : > { %v2890_v53 = vadd.f32 %v11243_v16, %v2889_v22  ;;  %v12557_v51 = vpop.f32.mrb[73].mxu1  ;;  %12576 = vmatmul.mubr.msk.f32.vlgmr.msra.gmra.mrb[80].mxu0 %vm293_vm2, %v2908_v26 }
0x1456   : > { %12578 = vmatprep.mubr.msk.f32.mxu0 %vm14605_vm0, %v14606_v4 }
0x1457   : > { %v2909_v25 = vmax.f32 %v2890_v53, 0.0 }
0x1458   : > { %v2894_v50 = vpop.f32.mrb[74].mxu1 }
0x1459   : > { %v2895_v55 = vadd.f32 %v11243_v16, %v2894_v50  ;;  %v12560_v34 = vpop.f32.mrb[75].mxu1  ;;  %12579 = vmatmul.mubr.msk.f32.gmra.mrb[82].mxu0 %vm293_vm2, %v2909_v25 }
0x145a   : > { %12581 = vmatprep.mubr.msk.f32.mxu0 %vm14605_vm0, %v14606_v4 }
0x145b   : > { %v2910_v9 = vmax.f32 %v2895_v55, 0.0  ;;  %v3162_v55 = vld [vmem:[%s17044_s2] sm:$0xff] }
0x145c   : > { %v2899_v54 = vpop.f32.mrb[76].mxu1  ;;  %12600 = vmatprep.mubr.msk.f32.mxu1 %vm657_vm14, %v3162_v55 }
0x145d   : > { %v2900_v38 = vadd.f32 %v11243_v16, %v2899_v54  ;;  %v12563_v58 = vpop.f32.mrb[77].mxu1  ;;  %12582 = vmatmul.mubr.msk.f32.gmra.mrb[84].mxu0 %vm293_vm2, %v2910_v9 }
0x145e   : > { %12584 = vmatprep.mubr.msk.f32.mxu0 %vm14605_vm0, %v14606_v4 }
0x145f   : > { %v2911_v44 = vmax.f32 %v2900_v38, 0.0 }
0x1460   : > { %v2904_v62 = vpop.f32.mrb[78].mxu1 }
0x1461   : > { %v2905_v49 = vadd.f32 %v11243_v16, %v2904_v62  ;;  %v12566_v61 = vpop.f32.mrb[79].mxu1  ;;  %12585 = vmatmul.mubr.msk.f32.gmra.mrb[86].mxu0 %vm293_vm2, %v2911_v44 }
0x1462   : > { %12587 = vmatprep.mubr.msk.f32.mxu0 %vm14605_vm0, %v14606_v4 }
0x1463   : > { %v2912_v1 = vmax.f32 %v2905_v49, 0.0 }
0x1465   : > { %12588 = vmatmul.mubr.msk.f32.gmra.mrb[88].mxu0 %vm293_vm2, %v2912_v1 }
0x1528   : > { %v2998_v42 = vpop.f32.mrb[80].mxu0 }
0x1529   : > { %v3022_v47 = vadd.f32 %v2998_v42, %v15486_v40  ;;  %v12577_v52 = vpop.f32.mrb[81].mxu0 }
0x152b   : > { %v3032_v56 = vadd.f32 %v11254_v6, %v3022_v47 }
0x152c   : > { %v3003_v57 = vpop.f32.mrb[82].mxu0 }
0x152d   : > { %v3023_v60 = vadd.f32 %v3003_v57, %v15491_v48  ;;  %v12580_v27 = vpop.f32.mrb[83].mxu0  ;;  %v3039_v10 = vsel %vm293_vm2, %v3032_v56, 0.0 }
0x152e   : > { %3040 = vadd.xlane.f32.xlu0 %v3039_v10 }
0x152f   : > { %v3033_v12 = vadd.f32 %v11254_v6, %v3023_v60 }
0x1530   : > { %v3008_v15 = vpop.f32.mrb[84].mxu0 }
0x1531   : > { %v3024_v17 = vadd.f32 %v3008_v15, %v15496_v39  ;;  %v12583_v18 = vpop.f32.mrb[85].mxu0  ;;  %v3042_v31 = vsel %vm293_vm2, %v3033_v12, 0.0 }
0x1532   : > { %3043 = vadd.xlane.f32.xlu1 %v3042_v31 }
0x1533   : > { %v3034_v20 = vadd.f32 %v11254_v6, %v3024_v17 }
0x1534   : > { %v3013_v21 = vpop.f32.mrb[86].mxu0 }
0x1535   : > { %v3025_v40 = vadd.f32 %v3013_v21, %v15501_v5  ;;  %v12586_v23 = vpop.f32.mrb[87].mxu0  ;;  %v3045_v14 = vsel %vm293_vm2, %v3034_v20, 0.0 }
0x1536   : > { %3046 = vadd.xlane.f32.xlu0 %v3045_v14 }
0x1537   : > { %v3035_v48 = vadd.f32 %v11254_v6, %v3025_v40 }
0x1538   : > { %v3018_v3 = vpop.f32.mrb[88].mxu0 }
0x1539   : > { %v3026_v29 = vadd.f32 %v3018_v3, %v15506_v59  ;;  %v12589_v33 = vpop.f32.mrb[89].mxu0  ;;  %v3048_v19 = vsel %vm293_vm2, %v3035_v48, 0.0 }
0x153a   : > { %3049 = vadd.xlane.f32.xlu1 %v3048_v19 }
0x153b   : > { %v3036_v39 = vadd.f32 %v11254_v6, %v3026_v29 }
0x153d   : > { %v3051_v30 = vsel %vm293_vm2, %v3036_v39, 0.0 }
0x153e   : > { %3052 = vadd.xlane.f32.xlu0 %v3051_v30 }
0x15bb   : > { %v3041_v35 = vpop.xlane.xlu0 %3040 }
0x15bc   : > { %v3054_v37 = vmul.f32 0.03125, %v3041_v35 }
0x15be   : > { %v15619_v32 = vsub.f32 %v3032_v56, %v3054_v37 }
0x15bf   : > { %v3044_v5 = vpop.xlane.xlu1 %3043 }
0x15c0   : > { %v3055_v0 = vmul.f32 0.03125, %v3044_v5  ;;  %v3064_v36 = vmul.f32 %v15619_v32, %v15619_v32 }
0x15c2   : > { %v15623_v28 = vsub.f32 %v3033_v12, %v3055_v0  ;;  %v3069_v59 = vsel %vm293_vm2, %v3064_v36, 0.0  ;;  %v11255_v0 = vld [vmem:[%s17043_s1 + $0x198] ss:$0 sm:$0xff] }
0x15c3   : > { %v3047_v24 = vpop.xlane.xlu0 %3046  ;;  %3070 = vadd.xlane.f32.xlu1 %v3069_v59 }
0x15c4   : > { %v3056_v8 = vmul.f32 0.03125, %v3047_v24  ;;  %v3065_v7 = vmul.f32 %v15623_v28, %v15623_v28 }
0x15c6   : > { %v15628_v41 = vsub.f32 %v3034_v20, %v3056_v8  ;;  %v3072_v63 = vsel %vm293_vm2, %v3065_v7, 0.0 }
0x15c7   : > { %v3050_v43 = vpop.xlane.xlu1 %3049  ;;  %3073 = vadd.xlane.f32.xlu0 %v3072_v63 }
0x15c8   : > { %v3057_v11 = vmul.f32 0.03125, %v3050_v43  ;;  %v3066_v16 = vmul.f32 %v15628_v41, %v15628_v41  ;;  %v11256_v43 = vld [vmem:[%s17043_s1 + $0x1a0] ss:$0 sm:$0xff] }
0x15ca   : > { %v15633_v46 = vsub.f32 %v3035_v48, %v3057_v11  ;;  %v3075_v45 = vsel %vm293_vm2, %v3066_v16, 0.0 }
0x15cb   : > { %3076 = vadd.xlane.f32.xlu1 %v3075_v45  ;;  %v3053_v13 = vpop.xlane.xlu0 %3052 }
0x15cc   : > { %v3058_v26 = vmul.f32 0.03125, %v3053_v13  ;;  %v3067_v22 = vmul.f32 %v15633_v46, %v15633_v46 }
0x15ce   : > { %v15638_v53 = vsub.f32 %v3036_v39, %v3058_v26  ;;  %v3078_v51 = vsel %vm293_vm2, %v3067_v22, 0.0 }
0x15cf   : > { %3079 = vadd.xlane.f32.xlu0 %v3078_v51 }
0x15d0   : > { %v3068_v25 = vmul.f32 %v15638_v53, %v15638_v53 }
0x15d2   : > { %v3081_v50 = vsel %vm293_vm2, %v3068_v25, 0.0 }
0x15d3   : > { %3082 = vadd.xlane.f32.xlu1 %v3081_v50 }
0x1650   : > { %v3071_v34 = vpop.xlane.xlu1 %3070 }
0x1651   : > { %v3084_v9 = vmul.f32 0.032258064, %v3071_v34 }
0x1653   : > { %14536 = vrsqrt.f32 %v3084_v9  ;;  %vm3091_vm11 = vcmp.eq.f32.partialorder %v3084_v9, inf  ;;  %v3094_v42 = vand.u32 2147483648, %v3084_v9  ;;  %vm3093_vm12 = vcmp.eq.f32.partialorder %v3084_v9, 0.0 }
0x1654   : > { %v3074_v54 = vpop.xlane.xlu0 %3073 }
0x1655   : > { %v3085_v38 = vmul.f32 0.032258064, %v3074_v54 }
0x1657   : > { %14538 = vrsqrt.f32 %v3085_v38  ;;  %vm3098_vm13 = vcmp.eq.f32.partialorder %v3085_v38, inf  ;;  %v3101_v10 = vand.u32 2147483648, %v3085_v38  ;;  %vm3100_vm15 = vcmp.eq.f32.partialorder %v3085_v38, 0.0 }
0x1658   : > { %v3077_v58 = vpop.xlane.xlu1 %3076 }
0x1659   : > { %v3086_v44 = vmul.f32 0.032258064, %v3077_v58  ;;  %v3164_v58 = vld [vmem:[%s17044_s2 + $0x10] sm:$0xff] }
0x165b   : > { %14540 = vrsqrt.f32 %v3086_v44  ;;  %vm3105_vm3 = vcmp.eq.f32.partialorder %v3086_v44, inf  ;;  %v3108_v20 = vand.u32 2147483648, %v3086_v44  ;;  %vm3107_vm4 = vcmp.eq.f32.partialorder %v3086_v44, 0.0 }
0x165c   : > { %v3080_v62 = vpop.xlane.xlu0 %3079 }
0x165d   : > { %v14537_v49 = vpop.eup %14536  ;;  %v3087_v61 = vmul.f32 0.032258064, %v3080_v62  ;;  %v3268_v62 = vld [vmem:[%s17044_s2 + $0x28] sm:$0xff] }
0x165e   : > { %v3090_v1 = vmul.f32 %v14537_v49, %v3084_v9  ;;  %v3269_v49 = vld [vmem:[%s17044_s2 + $0x30] sm:$0xff] }
0x165f   : > { %14542 = vrsqrt.f32 %v3087_v61  ;;  %vm3112_vm5 = vcmp.eq.f32.partialorder %v3087_v61, inf  ;;  %v3115_v3 = vand.u32 2147483648, %v3087_v61  ;;  %vm3114_vm6 = vcmp.eq.f32.partialorder %v3087_v61, 0.0 }
0x1660   : > { %v3092_v6 = vsel %vm3091_vm11, %v3084_v9, %v3090_v1  ;;  %v3083_v47 = vpop.xlane.xlu1 %3082  ;;  %v3566_v1 = vld [vmem:[%s17044_s2 + $0x40] sm:$0xff] }
0x1661   : > { %v14539_v52 = vpop.eup %14538  ;;  %v3095_v56 = vsel %vm3093_vm12, %v3094_v42, %v3092_v6  ;;  %v3088_v57 = vmul.f32 0.032258064, %v3083_v47  ;;  %v3567_v42 = vld [vmem:[%s17044_s2 + $0x48] sm:$0xff]  ;;  %v3568_v6 = vld [vmem:[%s17044_s2 + $0x50] sm:$0xff]  ;;  %v3569_v47 = vld [vmem:[%s17044_s2 + $0x58] sm:$0xff] }
0x1662   : > { %v3124_v60 = vadd.f32 1e-06, %v3095_v56  ;;  %v3097_v27 = vmul.f32 %v14539_v52, %v3085_v38  ;;  %v3772_v52 = vld [vmem:[%s17044_s2 + $0x60] sm:$0xff]  ;;  %v3773_v56 = vld [vmem:[%s17044_s2 + $0x68] sm:$0xff] }
0x1663   : > { %14544 = vrsqrt.f32 %v3088_v57  ;;  %vm3119_vm7 = vcmp.eq.f32.partialorder %v3088_v57, inf  ;;  %v3122_v5 = vand.u32 2147483648, %v3088_v57  ;;  %vm3121_vm8 = vcmp.eq.f32.partialorder %v3088_v57, 0.0 }
0x1664   : > { %14546 = vrcp.f32 %v3124_v60  ;;  %v3099_v12 = vsel %vm3098_vm13, %v3085_v38, %v3097_v27  ;;  %v3775_v60 = vld [vmem:[%s17044_s2 + $0x78] sm:$0xff]  ;;  %v3978_v27 = vld [vmem:[%s17044_s2 + $0x80] sm:$0xff]  ;;  %vm7485_vm13 = vcmask 195584  }
0x1665   : > { %v14541_v15 = vpop.eup %14540  ;;  %v3102_v17 = vsel %vm3100_vm15, %v3101_v10, %v3099_v12  ;;  %v3979_v10 = vld [vmem:[%s17044_s2 + $0x88] sm:$0xff]  ;;  %v3980_v12 = vld [vmem:[%s17044_s2 + $0x90] sm:$0xff] }
0x1666   : > { %v3125_v18 = vadd.f32 1e-06, %v3102_v17  ;;  %v3104_v31 = vmul.f32 %v14541_v15, %v3086_v44  ;;  %v3981_v15 = vld [vmem:[%s17044_s2 + $0x98] sm:$0xff]  ;;  %v4184_v17 = vld [vmem:[%s17044_s2 + $0xa0] sm:$0xff] }
0x1668   : > { %14548 = vrcp.f32 %v3125_v18  ;;  %v3106_v21 = vsel %vm3105_vm3, %v3086_v44, %v3104_v31  ;;  %v3267_v44 = vld [vmem:[%s17044_s2 + $0x20] sm:$0xff]  ;;  %v4185_v18 = vld [vmem:[%s17044_s2 + $0xa8] sm:$0xff]  ;;  %v4186_v31 = vld [vmem:[%s17044_s2 + $0xb0] sm:$0xff] }
0x1669   : > { %v14543_v40 = vpop.eup %14542  ;;  %v3109_v23 = vsel %vm3107_vm4, %v3108_v20, %v3106_v21  ;;  %v4187_v20 = vld [vmem:[%s17044_s2 + $0xb8] sm:$0xff]  ;;  %v4390_v21 = vld [vmem:[%s17044_s2 + $0xc0] sm:$0xff] }
0x166a   : > { %v3126_v14 = vadd.f32 1e-06, %v3109_v23  ;;  %v3111_v48 = vmul.f32 %v14543_v40, %v3087_v61  ;;  %v4391_v40 = vld [vmem:[%s17044_s2 + $0xc8] sm:$0xff]  ;;  %v4392_v23 = vld [vmem:[%s17044_s2 + $0xd0] sm:$0xff] }
0x166c   : > { %14550 = vrcp.f32 %v3126_v14  ;;  %v3113_v29 = vsel %vm3112_vm5, %v3087_v61, %v3111_v48  ;;  %v3270_v61 = vld [vmem:[%s17044_s2 + $0x38] sm:$0xff]  ;;  %v4596_v48 = vld [vmem:[%s17044_s2 + $0xe0] sm:$0xff]  ;;  %vm9556_vm5 = vcmask 31744  }
0x166d   : > { %v14545_v33 = vpop.eup %14544  ;;  %v3116_v19 = vsel %vm3114_vm6, %v3115_v3, %v3113_v29  ;;  %v4393_v14 = vld [vmem:[%s17044_s2 + $0xd8] sm:$0xff]  ;;  %v4597_v3 = vld [vmem:[%s17044_s2 + $0xe8] sm:$0xff]  ;;  %v4598_v29 = vld [vmem:[%s17044_s2 + $0xf0] sm:$0xff] }
0x166e   : > { %v14547_v39 = vpop.eup %14546  ;;  %v3127_v30 = vadd.f32 1e-06, %v3116_v19  ;;  %v3118_v35 = vmul.f32 %v14545_v33, %v3088_v57  ;;  %v4599_v33 = vld [vmem:[%s17044_s2 + $0xf8] sm:$0xff]  ;;  %v4802_v19 = vld [vmem:[%s17044_s2 + $0x100] sm:$0xff] }
0x166f   : > { %v3134_v37 = vmul.f32 %v14547_v39, %v15619_v32  ;;  %v4803_v39 = vld [vmem:[%s17044_s2 + $0x108] sm:$0xff] }
0x1670   : > { %14552 = vrcp.f32 %v3127_v30  ;;  %v3120_v36 = vsel %vm3119_vm7, %v3088_v57, %v3118_v35  ;;  %v3774_v57 = vld [vmem:[%s17044_s2 + $0x70] sm:$0xff]  ;;  %v4805_v35 = vld [vmem:[%s17044_s2 + $0x118] sm:$0xff] }
0x1671   : > { %v3123_v59 = vsel %vm3121_vm8, %v3122_v5, %v3120_v36  ;;  %v3143_v7 = vmul.f32 %v11255_v0, %v3134_v37  ;;  %v4804_v30 = vld [vmem:[%s17044_s2 + $0x110] sm:$0xff]  ;;  %v3271_v37 = vld [vmem:[%s17044_s2 + $0x338] sm:$0xff]  ;;  %v3272_v5 = vld [vmem:[%s17044_s2 + $0x340] sm:$0xff] }
0x1672   : > { %v14549_v24 = vpop.eup %14548  ;;  %v3128_v8 = vadd.f32 1e-06, %v3123_v59  ;;  %v3273_v36 = vld [vmem:[%s17044_s2 + $0x348] sm:$0xff]  ;;  %v3274_v59 = vld [vmem:[%s17044_s2 + $0x350] sm:$0xff] }
0x1673   : > { %v3135_v63 = vmul.f32 %v14549_v24, %v15623_v28  ;;  %v3152_v16 = vadd.f32 %v11256_v43, %v3143_v7  ;;  %v13731_v24 = vpack.c.bf16 %v3274_v59, %v3273_v36  ;;  %v3167_v7 = vld [vmem:[%s17044_s2 + $0x320] sm:$0xff]  ;;  %v4396_v59 = vld [vmem:[%s17044_s2 + $0x3e8] sm:$0xff] }
0x1674   : > { %14554 = vrcp.f32 %v3128_v8  ;;  %v3166_v8 = vld [vmem:[%s17044_s2 + $0x318] sm:$0xff] }
0x1675   : > { %v3144_v32 = vmul.f32 %v11255_v0, %v3135_v63  ;;  %v13735_v63 = vpack.c.bf16 %v3167_v7, %v3166_v8 }
0x1676   : > { %v14551_v11 = vpop.eup %14550 }
0x1677   : > { %v3153_v45 = vadd.f32 %v11256_v43, %v3144_v32  ;;  %v3136_v13 = vmul.f32 %v14551_v11, %v15628_v41  ;;  %v5215_v32 = vld [vmem:[%s17044_s2 + $0x148] sm:$0xff]  ;;  %v5216_v11 = vld [vmem:[%s17044_s2 + $0x150] sm:$0xff] }
0x1679   : > { %v15657_v26 = vpack.c.bf16 %v3153_v45, %v3152_v16  ;;  %v3145_v51 = vmul.f32 %v11255_v0, %v3136_v13  ;;  %v5217_v16 = vld [vmem:[%s17044_s2 + $0x158] sm:$0xff] }
0x167a   : > { %v14553_v22 = vpop.eup %14552 }
0x167b   : > { %v3137_v25 = vmul.f32 %v14553_v22, %v15633_v46  ;;  %13712 = vmatprep.subr.bf16.mxu1 %v15657_v26  ;;  %v3154_v55 = vadd.f32 %v11256_v43, %v3145_v51  ;;  %v3163_v46 = vld [vmem:[%s17044_s2 + $0x8] sm:$0xff] }
0x167c   : > { %13714 = vmatpush3.bf16.msra.mxu1 %v15657_v26 }
0x167d   : > { %v3146_v28 = vmul.f32 %v11255_v0, %v3137_v25  ;;  %v3168_v25 = vld [vmem:[%s17044_s2 + $0x328] sm:$0xff] }
0x167e   : > { %v14555_v50 = vpop.eup %14554 }
0x167f   : > { %v3155_v34 = vadd.f32 %v11256_v43, %v3146_v28  ;;  %v3138_v9 = vmul.f32 %v14555_v50, %v15638_v53  ;;  %v3165_v53 = vld [vmem:[%s17044_s2 + $0x18] sm:$0xff]  ;;  %v3169_v28 = vld [vmem:[%s17044_s2 + $0x330] sm:$0xff] }
0x1681   : > { %v15663_v54 = vpack.c.bf16 %v3155_v34, %v3154_v55  ;;  %v3147_v38 = vmul.f32 %v11255_v0, %v3138_v9  ;;  %v13727_v0 = vpack.c.bf16 %v3272_v5, %v3271_v37  ;;  %v13739_v34 = vpack.c.bf16 %v3169_v28, %v3168_v25  ;;  %v3570_v9 = vld [vmem:[%s17044_s2 + $0x358] sm:$0xff]  ;;  %v4395_v5 = vld [vmem:[%s17044_s2 + $0x3e0] sm:$0xff] }
0x1682   : > { %v4394_v37 = vld [vmem:[%s17044_s2 + $0x3d8] sm:$0xff] }
0x1683   : > { %v15665_v41 = vadd.f32 %v11256_v43, %v3147_v38  ;;  %13716 = vmatprep.subr.bf16.mxu1 %v15663_v54  ;;  %13728 = vmatprep.subr.bf16.mxu0 %v13727_v0  ;;  %v5214_v43 = vld [vmem:[%s17044_s2 + $0x140] sm:$0xff]  ;;  %v13815_v36 = vpack.c.bf16 %v4395_v5, %v4394_v37 }
0x1684   : > { %13718 = vmatpush3.bf16.msra.mxu1 %v15663_v54  ;;  %13730 = vmatpush3.bf16.msra.mxu0 %v13727_v0  ;;  %v3571_v38 = vld [vmem:[%s17044_s2 + $0x360] sm:$0xff] }
0x1685   : > { %12598 = vmatprep.subr.mxu1 %v15665_v41  ;;  %13732 = vmatprep.subr.bf16.mxu0 %v13731_v24 }
0x1688   : > { %12599 = vmatpush3.msra.mxu1 %v15665_v41  ;;  %13734 = vmatpush3.bf16.msra.mxu0 %v13731_v24  ;;  %v4397_v24 = vld [vmem:[%s17044_s2 + $0x3f0] sm:$0xff] }
0x1689   : > { %13720 = vmatprep.subr.bf16.mxu1 %v15657_v26  ;;  %12601 = vmatmul.mubr.msk.f32.vlgmr.msra.gmra.mrb[80].mxu1 %vm657_vm14, %v3163_v46 }
0x168a   : > { %13722 = vmatpush3.bf16.msra.mxu1 %v15657_v26  ;;  %12603 = vmatprep.mubr.msk.f32.mxu1 %vm657_vm14, %v3164_v58 }
0x168b   : > { %13724 = vmatprep.subr.bf16.mxu1 %v15663_v54  ;;  %13736 = vmatprep.subr.bf16.mxu0 %v13735_v63 }
0x168d   : > { %12604 = vmatmul.mubr.msk.f32.gmra.mrb[82].mxu1 %vm657_vm14, %v3165_v53  ;;  %v13751_v53 = vpack.c.bf16 %v3571_v38, %v3570_v9 }
0x168e   : > { %13726 = vmatpush3.bf16.msra.mxu1 %v15663_v54  ;;  %12616 = vmatprep.mubr.msk.f32.mxu1 %vm657_vm14, %v3267_v44  ;;  %v3572_v44 = vld [vmem:[%s17044_s2 + $0x368] sm:$0xff] }
0x168f   : > { %12614 = vmatprep.subr.mxu1 %v15665_v41 }
0x1692   : > { %12615 = vmatpush3.msra.mxu1 %v15665_v41 }
0x1693   : > { %12617 = vmatmul.mubr.msk.f32.vlgmr.msra.gmra.mrb[84].mxu1 %vm657_vm14, %v3268_v62  ;;  %13744 = vmatprep.subr.bf16.mxu1 %v15657_v26  ;;  %v3573_v62 = vld [vmem:[%s17044_s2 + $0x370] sm:$0xff] }
0x1694   : > { %13746 = vmatpush3.bf16.msra.mxu1 %v15657_v26  ;;  %12619 = vmatprep.mubr.msk.f32.mxu1 %vm657_vm14, %v3269_v49  ;;  %v13755_v49 = vpack.c.bf16 %v3573_v62, %v3572_v44 }
0x1695   : > { %13748 = vmatprep.subr.bf16.mxu1 %v15663_v54 }
0x1697   : > { %12620 = vmatmul.mubr.msk.f32.gmra.mrb[86].mxu1 %vm657_vm14, %v3270_v61 }
0x1698   : > { %13750 = vmatpush3.bf16.msra.mxu1 %v15663_v54  ;;  %12660 = vmatprep.mubr.msk.f32.mxu1 %vm657_vm14, %v3566_v1  ;;  %v3776_v1 = vld [vmem:[%s17044_s2 + $0x378] sm:$0xff] }
0x1699   : > { %12658 = vmatprep.subr.mxu1 %v15665_v41 }
0x169c   : > { %12659 = vmatpush3.msra.mxu1 %v15665_v41 }
0x169d   : > { %13760 = vmatprep.subr.bf16.mxu1 %v15657_v26  ;;  %12661 = vmatmul.mubr.msk.f32.vlgmr.msra.gmra.mrb[88].mxu1 %vm657_vm14, %v3567_v42  ;;  %v3777_v42 = vld [vmem:[%s17044_s2 + $0x380] sm:$0xff] }
0x169e   : > { %13762 = vmatpush3.bf16.msra.mxu1 %v15657_v26  ;;  %12663 = vmatprep.mubr.msk.f32.mxu1 %vm657_vm14, %v3568_v6 }
0x169f   : > { %13764 = vmatprep.subr.bf16.mxu1 %v15663_v54 }
0x16a1   : > { %12664 = vmatmul.mubr.msk.f32.gmra.mrb[90].mxu1 %vm657_vm14, %v3569_v47  ;;  %v13767_v47 = vpack.c.bf16 %v3777_v42, %v3776_v1 }
0x16a2   : > { %13766 = vmatpush3.bf16.msra.mxu1 %v15663_v54  ;;  %12690 = vmatprep.mubr.msk.f32.mxu1 %vm657_vm14, %v3772_v52 }
0x16a3   : > { %12688 = vmatprep.subr.mxu1 %v15665_v41 }
0x16a6   : > { %12689 = vmatpush3.msra.mxu1 %v15665_v41 }
0x16a7   : > { %13776 = vmatprep.subr.bf16.mxu1 %v15657_v26  ;;  %12691 = vmatmul.mubr.msk.f32.vlgmr.msra.gmra.mrb[92].mxu1 %vm657_vm14, %v3773_v56  ;;  %v3778_v56 = vld [vmem:[%s17044_s2 + $0x388] sm:$0xff] }
0x16a8   : > { %13778 = vmatpush3.bf16.msra.mxu1 %v15657_v26  ;;  %12693 = vmatprep.mubr.msk.f32.mxu1 %vm657_vm14, %v3774_v57  ;;  %v3779_v57 = vld [vmem:[%s17044_s2 + $0x390] sm:$0xff] }
0x16a9   : > { %13780 = vmatprep.subr.bf16.mxu1 %v15663_v54 }
0x16ab   : > { %12694 = vmatmul.mubr.msk.f32.gmra.mrb[94].mxu1 %vm657_vm14, %v3775_v60 }
0x16ac   : > { %13782 = vmatpush3.bf16.msra.mxu1 %v15663_v54  ;;  %12720 = vmatprep.mubr.msk.f32.mxu1 %vm657_vm14, %v3978_v27  ;;  %v13771_v27 = vpack.c.bf16 %v3779_v57, %v3778_v56  ;;  %v5012_v56 = vld [vmem:[%s17044_s2 + $0x438] sm:$0xff]  ;;  %v5013_v57 = vld [vmem:[%s17044_s2 + $0x440] sm:$0xff] }
0x16ad   : > { %12718 = vmatprep.subr.mxu1 %v15665_v41 }
0x16b0   : > { %12719 = vmatpush3.msra.mxu1 %v15665_v41 }
0x16b1   : > { %13792 = vmatprep.subr.bf16.mxu1 %v15657_v26  ;;  %12721 = vmatmul.mubr.msk.f32.vlgmr.msra.gmra.mrb[96].mxu1 %vm657_vm14, %v3979_v10  ;;  %v3982_v10 = vld [vmem:[%s17044_s2 + $0x398] sm:$0xff] }
0x16b2   : > { %13794 = vmatpush3.bf16.msra.mxu1 %v15657_v26  ;;  %12723 = vmatprep.mubr.msk.f32.mxu1 %vm657_vm14, %v3980_v12  ;;  %v3983_v12 = vld [vmem:[%s17044_s2 + $0x3a0] sm:$0xff] }
0x16b3   : > { %13796 = vmatprep.subr.bf16.mxu1 %v15663_v54 }
0x16b5   : > { %12724 = vmatmul.mubr.msk.f32.gmra.mrb[98].mxu1 %vm657_vm14, %v3981_v15 }
0x16b6   : > { %13798 = vmatpush3.bf16.msra.mxu1 %v15663_v54  ;;  %12750 = vmatprep.mubr.msk.f32.mxu1 %vm657_vm14, %v4184_v17 }
0x16b7   : > { %12748 = vmatprep.subr.mxu1 %v15665_v41 }
0x16ba   : > { %12749 = vmatpush3.msra.mxu1 %v15665_v41 }
0x16bb   : > { %12751 = vmatmul.mubr.msk.f32.vlgmr.msra.gmra.mrb[100].mxu1 %vm657_vm14, %v4185_v18  ;;  %13808 = vmatprep.subr.bf16.mxu1 %v15657_v26  ;;  %v13783_v18 = vpack.c.bf16 %v3983_v12, %v3982_v10  ;;  %v5009_v10 = vld [vmem:[%s17044_s2 + $0x128] sm:$0xff] }
0x16bc   : > { %13810 = vmatpush3.bf16.msra.mxu1 %v15657_v26  ;;  %12753 = vmatprep.mubr.msk.f32.mxu1 %vm657_vm14, %v4186_v31  ;;  %v3984_v31 = vld [vmem:[%s17044_s2 + $0x3a8] sm:$0xff] }
0x16bd   : > { %13812 = vmatprep.subr.bf16.mxu1 %v15663_v54 }
0x16bf   : > { %12754 = vmatmul.mubr.msk.f32.gmra.mrb[102].mxu1 %vm657_vm14, %v4187_v20  ;;  %v3985_v20 = vld [vmem:[%s17044_s2 + $0x3b0] sm:$0xff] }
0x16c0   : > { %13814 = vmatpush3.bf16.msra.mxu1 %v15663_v54  ;;  %12780 = vmatprep.mubr.msk.f32.mxu1 %vm657_vm14, %v4390_v21 }
0x16c1   : > { %12778 = vmatprep.subr.mxu1 %v15665_v41 }
0x16c4   : > { %12779 = vmatpush3.msra.mxu1 %v15665_v41 }
0x16c5   : > { %12781 = vmatmul.mubr.msk.f32.vlgmr.msra.gmra.mrb[104].mxu1 %vm657_vm14, %v4391_v40  ;;  %13824 = vmatprep.subr.bf16.mxu1 %v15657_v26 }
0x16c6   : > { %13826 = vmatpush3.bf16.msra.mxu1 %v15657_v26  ;;  %12783 = vmatprep.mubr.msk.f32.mxu1 %vm657_vm14, %v4392_v23  ;;  %v13787_v23 = vpack.c.bf16 %v3985_v20, %v3984_v31 }
0x16c7   : > { %13828 = vmatprep.subr.bf16.mxu1 %v15663_v54 }
0x16c9   : > { %12784 = vmatmul.mubr.msk.f32.gmra.mrb[106].mxu1 %vm657_vm14, %v4393_v14  ;;  %v4188_v14 = vld [vmem:[%s17044_s2 + $0x3b8] sm:$0xff] }
0x16ca   : > { %13830 = vmatpush3.bf16.msra.mxu1 %v15663_v54  ;;  %12810 = vmatprep.mubr.msk.f32.mxu1 %vm657_vm14, %v4596_v48  ;;  %v4189_v48 = vld [vmem:[%s17044_s2 + $0x3c0] sm:$0xff] }
0x16cb   : > { %12808 = vmatprep.subr.mxu1 %v15665_v41 }
0x16ce   : > { %12809 = vmatpush3.msra.mxu1 %v15665_v41 }
0x16cf   : > { %12811 = vmatmul.mubr.msk.f32.vlgmr.msra.gmra.mrb[108].mxu1 %vm657_vm14, %v4597_v3  ;;  %13840 = vmatprep.subr.bf16.mxu1 %v15657_v26  ;;  %v13799_v3 = vpack.c.bf16 %v4189_v48, %v4188_v14  ;;  %v5221_v14 = vld [vmem:[%s17044_s2 + $0x470] sm:$0xff] }
0x16d0   : > { %13842 = vmatpush3.bf16.msra.mxu1 %v15657_v26  ;;  %12813 = vmatprep.mubr.msk.f32.mxu1 %vm657_vm14, %v4598_v29 }
0x16d1   : > { %13844 = vmatprep.subr.bf16.mxu1 %v15663_v54 }
0x16d3   : > { %12814 = vmatmul.mubr.msk.f32.gmra.mrb[110].mxu1 %vm657_vm14, %v4599_v33  ;;  %v4190_v33 = vld [vmem:[%s17044_s2 + $0x3c8] sm:$0xff] }
0x16d4   : > { %13846 = vmatpush3.bf16.msra.mxu1 %v15663_v54  ;;  %12840 = vmatprep.mubr.msk.f32.mxu1 %vm657_vm14, %v4802_v19  ;;  %v4191_v19 = vld [vmem:[%s17044_s2 + $0x3d0] sm:$0xff] }
0x16d5   : > { %12838 = vmatprep.subr.mxu1 %v15665_v41 }
0x16d8   : > { %12839 = vmatpush3.msra.mxu1 %v15665_v41 }
0x16d9   : > { %12841 = vmatmul.mubr.msk.f32.vlgmr.msra.gmra.mrb[112].mxu1 %vm657_vm14, %v4803_v39  ;;  %13872 = vmatprep.subr.bf16.mxu1 %v15657_v26 }
0x16da   : > { %13874 = vmatpush3.bf16.msra.mxu1 %v15657_v26  ;;  %12843 = vmatprep.mubr.msk.f32.mxu1 %vm657_vm14, %v4804_v30  ;;  %v13803_v30 = vpack.c.bf16 %v4191_v19, %v4190_v33 }
0x16db   : > { %13876 = vmatprep.subr.bf16.mxu1 %v15663_v54 }
0x16dd   : > { %12844 = vmatmul.mubr.msk.f32.gmra.mrb[114].mxu1 %vm657_vm14, %v4805_v35 }
0x16de   : > { %13878 = vmatpush3.bf16.msra.mxu1 %v15663_v54  ;;  %12900 = vmatprep.mubr.msk.f32.mxu1 %vm657_vm14, %v5214_v43  ;;  %v4600_v43 = vld [vmem:[%s17044_s2 + $0x3f8] sm:$0xff] }
0x16df   : > { %12898 = vmatprep.subr.mxu1 %v15665_v41 }
0x16e2   : > { %12899 = vmatpush3.msra.mxu1 %v15665_v41 }
0x16e3   : > { %13887 = vmatprep.subr.bf16.mxu1 %v14604_v2  ;;  %12901 = vmatmul.mubr.msk.f32.vlgmr.msra.gmra.mrb[116].mxu1 %vm657_vm14, %v5215_v32  ;;  %v4601_v32 = vld [vmem:[%s17044_s2 + $0x400] sm:$0xff] }
0x16e4   : > { %12903 = vmatprep.mubr.msk.f32.mxu1 %vm657_vm14, %v5216_v11 }
0x16e7   : > { %12904 = vmatmul.mubr.msk.f32.gmra.mrb[118].mxu1 %vm657_vm14, %v5217_v16 }
0x16e8   : > { %12928 = vmatprep.mubr.msk.f32.mxu1 %vm14605_vm0, %v14606_v4 }
0x175c   : > { %v12602_v45 = vpop.f32.mrb[80].mxu1 }
0x175d   : > { %v3248_v13 = vpop.f32.mrb[81].mxu1 }
0x1760   : > { %v12605_v22 = vpop.f32.mrb[82].mxu1 }
0x1761   : > { %v3258_v51 = vpop.f32.mrb[83].mxu1 }
0x1766   : > { %v12618_v50 = vpop.f32.mrb[84].mxu1 }
0x1767   : > { %v3353_v55 = vpop.f32.mrb[85].mxu1 }
0x1768   : > { %12630 = vmatprep.mubr.msk.f32.mxu0 %vm293_vm2, %v3353_v55  ;;  %v4807_v55 = vld [vmem:[%s17044_s2 + $0x420] sm:$0xff] }
0x1769   : > { %12631 = vmatmul.mubr.msk.f32.vlgmr.msra.gmra.mrb[90].mxu0 %vm293_vm2, %v12618_v50  ;;  %v4806_v50 = vld [vmem:[%s17044_s2 + $0x418] sm:$0xff] }
0x176a   : > { %v12621_v46 = vpop.f32.mrb[86].mxu1  ;;  %13738 = vmatpush3.bf16.msra.mxu0 %v13735_v63  ;;  %v13819_v63 = vpack.c.bf16 %v4397_v24, %v4396_v59  ;;  %v13847_v38 = vpack.c.bf16 %v4807_v55, %v4806_v50  ;;  %v5800_v50 = vld [vmem:[%s17044_s2 + $0x1a0] sm:$0xff]  ;;  %v5984_v55 = vld [vmem:[%s17044_s2 + $0x1a8] sm:$0xff] }
0x176b   : > { %v3363_v58 = vpop.f32.mrb[87].mxu1  ;;  %13740 = vmatprep.subr.bf16.mxu0 %v13739_v34 }
0x176c   : > { %12633 = vmatprep.mubr.msk.f32.mxu0 %vm293_vm2, %v3363_v58  ;;  %v4809_v58 = vld [vmem:[%s17044_s2 + $0x430] sm:$0xff] }
0x176d   : > { %12634 = vmatmul.mubr.msk.f32.gmra.mrb[92].mxu0 %vm293_vm2, %v12621_v46  ;;  %v4808_v46 = vld [vmem:[%s17044_s2 + $0x428] sm:$0xff] }
0x176e   : > { %13742 = vmatpush3.bf16.msra.mxu0 %v13739_v34  ;;  %12644 = vmatprep.mubr.msk.f32.mxu0 %vm293_vm2, %v3248_v13  ;;  %v4602_v13 = vld [vmem:[%s17044_s2 + $0x408] sm:$0xff]  ;;  %v13851_v62 = vpack.c.bf16 %v4809_v58, %v4808_v46  ;;  %v6172_v58 = vld [vmem:[%s17044_s2 + $0x1d0] sm:$0xff] }
0x176f   : > { %13752 = vmatprep.subr.bf16.mxu0 %v13751_v53  ;;  %v6171_v46 = vld [vmem:[%s17044_s2 + $0x1c8] sm:$0xff] }
0x1770   : > { %v12662_v61 = vpop.f32.mrb[88].mxu1 }
0x1771   : > { %12645 = vmatmul.mubr.msk.f32.vlgmr.msra.gmra.mrb[90].mxu0 %vm293_vm2, %v12602_v45  ;;  %v3652_v6 = vpop.f32.mrb[89].mxu1  ;;  %v13831_v45 = vpack.c.bf16 %v4601_v32, %v4600_v43 }
0x1772   : > { %12647 = vmatprep.mubr.msk.f32.mxu0 %vm293_vm2, %v3258_v51  ;;  %13754 = vmatpush3.bf16.msra.mxu0 %v13751_v53 }
0x1773   : > { %13756 = vmatprep.subr.bf16.mxu0 %v13755_v49 }
0x1774   : > { %v12665_v52 = vpop.f32.mrb[90].mxu1 }
0x1775   : > { %12648 = vmatmul.mubr.msk.f32.gmra.mrb[92].mxu0 %vm293_vm2, %v12605_v22  ;;  %v3662_v60 = vpop.f32.mrb[91].mxu1  ;;  %v4603_v22 = vld [vmem:[%s17044_s2 + $0x410] sm:$0xff] }
0x1776   : > { %13758 = vmatpush3.bf16.msra.mxu0 %v13755_v49  ;;  %12674 = vmatprep.mubr.msk.f32.mxu0 %vm293_vm2, %v3652_v6  ;;  %v13835_v28 = vpack.c.bf16 %v4603_v22, %v4602_v13  ;;  %v5526_v13 = vld [vmem:[%s17044_s2 + $0x178] sm:$0xff]  ;;  %v5527_v22 = vld [vmem:[%s17044_s2 + $0x180] sm:$0xff] }
0x1777   : > { %13768 = vmatprep.subr.bf16.mxu0 %v13767_v47 }
0x1779   : > { %12675 = vmatmul.mubr.msk.f32.vlgmr.msra.gmra.mrb[90].mxu0 %vm293_vm2, %v12662_v61 }
0x177a   : > { %12677 = vmatprep.mubr.msk.f32.mxu0 %vm293_vm2, %v3662_v60  ;;  %13770 = vmatpush3.bf16.msra.mxu0 %v13767_v47  ;;  %v12692_v15 = vpop.f32.mrb[92].mxu1  ;;  %v5015_v60 = vld [vmem:[%s17044_s2 + $0x450] sm:$0xff] }
0x177b   : > { %v3858_v17 = vpop.f32.mrb[93].mxu1  ;;  %13772 = vmatprep.subr.bf16.mxu0 %v13771_v27 }
0x177d   : > { %12678 = vmatmul.mubr.msk.f32.gmra.mrb[92].mxu0 %vm293_vm2, %v12665_v52  ;;  %v5008_v52 = vld [vmem:[%s17044_s2 + $0x120] sm:$0xff] }
0x177e   : > { %13774 = vmatpush3.bf16.msra.mxu0 %v13771_v27  ;;  %12704 = vmatprep.mubr.msk.f32.mxu0 %vm293_vm2, %v3858_v17  ;;  %v12695_v21 = vpop.f32.mrb[94].mxu1  ;;  %v13863_v27 = vpack.c.bf16 %v5013_v57, %v5012_v56  ;;  %v5218_v17 = vld [vmem:[%s17044_s2 + $0x458] sm:$0xff]  ;;  %v5530_v56 = vld [vmem:[%s17044_s2 + $0x490] sm:$0xff] }
0x177f   : > { %13784 = vmatprep.subr.bf16.mxu0 %v13783_v18  ;;  %v3868_v40 = vpop.f32.mrb[95].mxu1 }
0x1781   : > { %12705 = vmatmul.mubr.msk.f32.vlgmr.msra.gmra.mrb[90].mxu0 %vm293_vm2, %v12692_v15  ;;  %v5011_v15 = vld [vmem:[%s17044_s2 + $0x138] sm:$0xff] }
0x1782   : > { %13786 = vmatpush3.bf16.msra.mxu0 %v13783_v18  ;;  %12707 = vmatprep.mubr.msk.f32.mxu0 %vm293_vm2, %v3868_v40 }
0x1783   : > { %13788 = vmatprep.subr.bf16.mxu0 %v13787_v23 }
0x1784   : > { %v12722_v29 = vpop.f32.mrb[96].mxu1 }
0x1785   : > { %12708 = vmatmul.mubr.msk.f32.gmra.mrb[92].mxu0 %vm293_vm2, %v12695_v21  ;;  %v4064_v39 = vpop.f32.mrb[97].mxu1 }
0x1786   : > { %13790 = vmatpush3.bf16.msra.mxu0 %v13787_v23  ;;  %12734 = vmatprep.mubr.msk.f32.mxu0 %vm293_vm2, %v4064_v39  ;;  %v5220_v23 = vld [vmem:[%s17044_s2 + $0x468] sm:$0xff] }
0x1787   : > { %13800 = vmatprep.subr.bf16.mxu0 %v13799_v3 }
0x1788   : > { %v12725_v35 = vpop.f32.mrb[98].mxu1 }
0x1789   : > { %12735 = vmatmul.mubr.msk.f32.vlgmr.msra.gmra.mrb[90].mxu0 %vm293_vm2, %v12722_v29  ;;  %v4074_v0 = vpop.f32.mrb[99].mxu1  ;;  %v13883_v29 = vpack.c.bf16 %v5221_v14, %v5220_v23  ;;  %v5436_v23 = vld [vmem:[%s17044_s2 + $0x480] sm:$0xff] }
0x178a   : > { %13802 = vmatpush3.bf16.msra.mxu0 %v13799_v3  ;;  %12737 = vmatprep.mubr.msk.f32.mxu0 %vm293_vm2, %v4074_v0 }
0x178b   : > { %13804 = vmatprep.subr.bf16.mxu0 %v13803_v30 }
0x178d   : > { %12738 = vmatmul.mubr.msk.f32.gmra.mrb[92].mxu0 %vm293_vm2, %v12725_v35 }
0x178e   : > { %v12752_v8 = vpop.f32.mrb[100].mxu1  ;;  %13806 = vmatpush3.bf16.msra.mxu0 %v13803_v30 }
0x178f   : > { %v4270_v7 = vpop.f32.mrb[101].mxu1  ;;  %13816 = vmatprep.subr.bf16.mxu0 %v13815_v36 }
0x1790   : > { %12764 = vmatprep.mubr.msk.f32.mxu0 %vm293_vm2, %v4270_v7 }
0x1791   : > { %12765 = vmatmul.mubr.msk.f32.vlgmr.msra.gmra.mrb[90].mxu0 %vm293_vm2, %v12752_v8 }
0x1792   : > { %v12755_v11 = vpop.f32.mrb[102].mxu1  ;;  %13818 = vmatpush3.bf16.msra.mxu0 %v13815_v36 }
0x1793   : > { %v4280_v16 = vpop.f32.mrb[103].mxu1  ;;  %13820 = vmatprep.subr.bf16.mxu0 %v13819_v63 }
0x1794   : > { %12767 = vmatprep.mubr.msk.f32.mxu0 %vm293_vm2, %v4280_v16  ;;  %v5433_v16 = vld [vmem:[%s17044_s2 + $0x168] sm:$0xff] }
0x1795   : > { %12768 = vmatmul.mubr.msk.f32.gmra.mrb[92].mxu0 %vm293_vm2, %v12755_v11  ;;  %v5432_v11 = vld [vmem:[%s17044_s2 + $0x160] sm:$0xff] }
0x1796   : > { %13822 = vmatpush3.bf16.msra.mxu0 %v13819_v63 }
0x1797   : > { %13832 = vmatprep.subr.bf16.mxu0 %v13831_v45 }
0x1798   : > { %v12782_v51 = vpop.f32.mrb[104].mxu1 }
0x1799   : > { %v4476_v25 = vpop.f32.mrb[105].mxu1 }
0x179a   : > { %12794 = vmatprep.mubr.msk.f32.mxu0 %vm293_vm2, %v4476_v25  ;;  %v5798_v25 = vld [vmem:[%s17044_s2 + $0x190] sm:$0xff] }
0x179b   : > { %12795 = vmatmul.mubr.msk.f32.vlgmr.msra.gmra.mrb[90].mxu0 %vm293_vm2, %v12782_v51  ;;  %v5528_v51 = vld [vmem:[%s17044_s2 + $0x188] sm:$0xff] }
0x179c   : > { %13834 = vmatpush3.bf16.msra.mxu0 %v13831_v45  ;;  %v12785_v34 = vpop.f32.mrb[106].mxu1  ;;  %v5434_v45 = vld [vmem:[%s17044_s2 + $0x170] sm:$0xff] }
0x179d   : > { %v4486_v9 = vpop.f32.mrb[107].mxu1  ;;  %13836 = vmatprep.subr.bf16.mxu0 %v13835_v28 }
0x179e   : > { %12797 = vmatprep.mubr.msk.f32.mxu0 %vm293_vm2, %v4486_v9  ;;  %v5986_v9 = vld [vmem:[%s17044_s2 + $0x1b8] sm:$0xff] }
0x179f   : > { %12798 = vmatmul.mubr.msk.f32.gmra.mrb[92].mxu0 %vm293_vm2, %v12785_v34  ;;  %v5985_v34 = vld [vmem:[%s17044_s2 + $0x1b0] sm:$0xff] }
0x17a0   : > { %13838 = vmatpush3.bf16.msra.mxu0 %v13835_v28  ;;  %v5799_v28 = vld [vmem:[%s17044_s2 + $0x198] sm:$0xff] }
0x17a1   : > { %13848 = vmatprep.subr.bf16.mxu0 %v13847_v38 }
0x17a2   : > { %v12812_v53 = vpop.f32.mrb[108].mxu1 }
0x17a3   : > { %v4682_v44 = vpop.f32.mrb[109].mxu1 }
0x17a4   : > { %12824 = vmatprep.mubr.msk.f32.mxu0 %vm293_vm2, %v4682_v44  ;;  %v6357_v44 = vld [vmem:[%s17044_s2 + $0x1e0] sm:$0xff] }
0x17a5   : > { %12825 = vmatmul.mubr.msk.f32.vlgmr.msra.gmra.mrb[90].mxu0 %vm293_vm2, %v12812_v53  ;;  %v6356_v53 = vld [vmem:[%s17044_s2 + $0x1d8] sm:$0xff] }
0x17a6   : > { %13850 = vmatpush3.bf16.msra.mxu0 %v13847_v38  ;;  %v12815_v49 = vpop.f32.mrb[110].mxu1  ;;  %v6170_v38 = vld [vmem:[%s17044_s2 + $0x1c0] sm:$0xff] }
0x17a7   : > { %v4692_v61 = vpop.f32.mrb[111].mxu1  ;;  %13852 = vmatprep.subr.bf16.mxu0 %v13851_v62 }
0x17a8   : > { %12827 = vmatprep.mubr.msk.f32.mxu0 %vm293_vm2, %v4692_v61  ;;  %v6543_v61 = vld [vmem:[%s17044_s2 + $0x1f8] sm:$0xff] }
0x17a9   : > { %12828 = vmatmul.mubr.msk.f32.gmra.mrb[92].mxu0 %vm293_vm2, %v12815_v49  ;;  %v6542_v49 = vld [vmem:[%s17044_s2 + $0x1f0] sm:$0xff] }
0x17aa   : > { %13854 = vmatpush3.bf16.msra.mxu0 %v13851_v62  ;;  %v6358_v62 = vld [vmem:[%s17044_s2 + $0x1e8] sm:$0xff] }
0x17ab   : > { %13856 = vmatprep.subr.bf16.mxu0 %v15657_v26 }
0x17ac   : > { %v12842_v1 = vpop.f32.mrb[112].mxu1 }
0x17ad   : > { %v4888_v42 = vpop.f32.mrb[113].mxu1 }
0x17ae   : > { %12854 = vmatprep.mubr.msk.f32.mxu0 %vm293_vm2, %v4888_v42  ;;  %v6728_v42 = vld [vmem:[%s17044_s2 + $0x208] sm:$0xff] }
0x17af   : > { %12855 = vmatmul.mubr.msk.f32.vlgmr.msra.gmra.mrb[90].mxu0 %vm293_vm2, %v12842_v1  ;;  %v6544_v1 = vld [vmem:[%s17044_s2 + $0x200] sm:$0xff] }
0x17b0   : > { %13858 = vmatpush3.bf16.msra.mxu0 %v15657_v26  ;;  %v12845_v6 = vpop.f32.mrb[114].mxu1  ;;  %v5014_v26 = vld [vmem:[%s17044_s2 + $0x448] sm:$0xff] }
0x17b1   : > { %13860 = vmatprep.subr.bf16.mxu0 %v15663_v54  ;;  %v4898_v47 = vpop.f32.mrb[115].mxu1  ;;  %v13867_v12 = vpack.c.bf16 %v5015_v60, %v5014_v26  ;;  %v6914_v26 = vld [vmem:[%s17044_s2 + $0x220] sm:$0xff]  ;;  %v6915_v60 = vld [vmem:[%s17044_s2 + $0x228] sm:$0xff] }
0x17b2   : > { %12857 = vmatprep.mubr.msk.f32.mxu0 %vm293_vm2, %v4898_v47  ;;  %v6730_v47 = vld [vmem:[%s17044_s2 + $0x218] sm:$0xff] }
0x17b3   : > { %12858 = vmatmul.mubr.msk.f32.gmra.mrb[92].mxu0 %vm293_vm2, %v12845_v6  ;;  %v6729_v6 = vld [vmem:[%s17044_s2 + $0x210] sm:$0xff] }
0x17b4   : > { %13862 = vmatpush3.bf16.msra.mxu0 %v15663_v54  ;;  %12870 = vmatprep.mubr.msk.f32.mxu0 %vm657_vm14, %v5008_v52  ;;  %v5010_v54 = vld [vmem:[%s17044_s2 + $0x130] sm:$0xff]  ;;  %v5529_v52 = vld [vmem:[%s17044_s2 + $0x488] sm:$0xff] }
0x17b5   : > { %12868 = vmatprep.subr.mxu0 %v15665_v41  ;;  %v13900_v57 = vpack.c.bf16 %v5530_v56, %v5529_v52  ;;  %v6546_v52 = vld [vmem:[%s17044_s2 + $0x4e0] sm:$0xff] }
0x17b6   : > { %v12902_v31 = vpop.f32.mrb[116].mxu1 }
0x17b7   : > { %v5300_v20 = vpop.f32.mrb[117].mxu1 }
0x17b8   : > { %12869 = vmatpush3.msra.mxu0 %v15665_v41  ;;  %v5219_v41 = vld [vmem:[%s17044_s2 + $0x460] sm:$0xff] }
0x17b9   : > { %12871 = vmatmul.mubr.msk.f32.vlgmr.msra.gmra.mrb[94].mxu0 %vm657_vm14, %v5009_v10  ;;  %13864 = vmatprep.subr.bf16.mxu0 %v13863_v27  ;;  %v13879_v18 = vpack.c.bf16 %v5219_v41, %v5218_v17  ;;  %v7100_v10 = vld [vmem:[%s17044_s2 + $0x238] sm:$0xff]  ;;  %v7288_v41 = vld [vmem:[%s17044_s2 + $0x260] sm:$0xff] }
0x17ba   : > { %12873 = vmatprep.mubr.msk.f32.mxu0 %vm657_vm14, %v5010_v54  ;;  %13866 = vmatpush3.bf16.msra.mxu0 %v13863_v27  ;;  %v12905_v21 = vpop.f32.mrb[118].mxu1  ;;  %v6916_v27 = vld [vmem:[%s17044_s2 + $0x230] sm:$0xff]  ;;  %v7101_v54 = vld [vmem:[%s17044_s2 + $0x240] sm:$0xff]  ;;  %v7287_v17 = vld [vmem:[%s17044_s2 + $0x258] sm:$0xff] }
0x17bb   : > { %13868 = vmatprep.subr.bf16.mxu0 %v13867_v12  ;;  %v5310_v40 = vpop.f32.mrb[119].mxu1 }
0x17bd   : > { %12874 = vmatmul.mubr.msk.f32.gmra.mrb[96].mxu0 %vm657_vm14, %v5011_v15  ;;  %v7286_v15 = vld [vmem:[%s17044_s2 + $0x250] sm:$0xff] }
0x17be   : > { %13870 = vmatpush3.bf16.msra.mxu0 %v13867_v12  ;;  %v7102_v12 = vld [vmem:[%s17044_s2 + $0x248] sm:$0xff] }
0x17bf   : > { %13880 = vmatprep.subr.bf16.mxu0 %v13879_v18 }
0x188c   : > { %v12872_v48 = vpop.f32.mrb[94].mxu0 }
0x188d   : > { %v5094_v3 = vpop.f32.mrb[95].mxu0 }
0x188e   : > { %12884 = vmatprep.mubr.msk.f32.mxu0 %vm293_vm2, %v5094_v3 }
0x188f   : > { %12885 = vmatmul.mubr.msk.f32.vlgmr.msra.gmra.mrb[90].mxu0 %vm293_vm2, %v12872_v48 }
0x1890   : > { %v12875_v33 = vpop.f32.mrb[96].mxu0  ;;  %13882 = vmatpush3.bf16.msra.mxu0 %v13879_v18 }
0x1891   : > { %v5104_v19 = vpop.f32.mrb[97].mxu0  ;;  %13884 = vmatprep.subr.bf16.mxu0 %v13883_v29 }
0x1892   : > { %12887 = vmatprep.mubr.msk.f32.mxu0 %vm293_vm2, %v5104_v19 }
0x1893   : > { %12888 = vmatmul.mubr.msk.f32.gmra.mrb[92].mxu0 %vm293_vm2, %v12875_v33 }
0x1894   : > { %13886 = vmatpush3.bf16.msra.mxu0 %v13883_v29  ;;  %12914 = vmatprep.mubr.msk.f32.mxu0 %vm293_vm2, %v5300_v20 }
0x1895   : > { %13899 = vmatprep.subr.bf16.mxu0 %v14604_v2 }
0x1897   : > { %12915 = vmatmul.mubr.msk.f32.vlgmr.msra.gmra.mrb[90].mxu0 %vm293_vm2, %v12902_v31 }
0x1898   : > { %12917 = vmatprep.mubr.msk.f32.mxu0 %vm293_vm2, %v5310_v40  ;;  %13901 = vmatpush3.bf16.msra.mxu0 %v13900_v57  ;;  %v5435_v40 = vld [vmem:[%s17044_s2 + $0x478] sm:$0xff] }
0x1899   : > { %13902 = vmatprep.subr.bf16.mxu0 %v14604_v2  ;;  %v13903_v3 = vpack.c.bf16 %v5436_v23, %v5435_v40  ;;  %v6917_v23 = vld [vmem:[%s17044_s2 + $0x4f8] sm:$0xff] }
0x189b   : > { %12918 = vmatmul.mubr.msk.f32.gmra.mrb[92].mxu0 %vm293_vm2, %v12905_v21 }
0x189c   : > { %12958 = vmatprep.mubr.msk.f32.mxu0 %vm14605_vm0, %v14606_v4 }
0x196a   : > { %v12916_v39 = vpop.f32.mrb[90].mxu0 }
0x196b   : > { %vm5421_vm9 = vcmp.ge.f32.partialorder %v12916_v39, 0.0  ;;  %v5425_v30 = vmul.f32 0.1, %v12916_v39  ;;  %v5397_v35 = vpop.f32.mrb[91].mxu0 }
0x196c   : > { %vm5420_vm10 = vcmp.ge.f32.partialorder %v5397_v35, 0.0  ;;  %v5424_v37 = vmul.f32 0.1, %v5397_v35 }
0x196d   : > { %v5429_v5 = vsel %vm5421_vm9, %v12916_v39, %v5425_v30  ;;  %v5801_v30 = vld [vmem:[%s17044_s2 + $0x498] sm:$0xff] }
0x196e   : > { %v5428_v0 = vsel %vm5420_vm10, %v5397_v35, %v5424_v37  ;;  %v12919_v36 = vpop.f32.mrb[92].mxu0  ;;  %v5802_v35 = vld [vmem:[%s17044_s2 + $0x4a0] sm:$0xff] }
0x196f   : > { %v16085_v59 = vpack.c.bf16 %v5429_v5, %v5428_v0  ;;  %vm5423_vm11 = vcmp.ge.f32.partialorder %v12919_v36, 0.0  ;;  %v5427_v24 = vmul.f32 0.1, %v12919_v36  ;;  %v5407_v8 = vpop.f32.mrb[93].mxu0  ;;  %v13912_v0 = vpack.c.bf16 %v5802_v35, %v5801_v30  ;;  %v7103_v35 = vld [vmem:[%s17044_s2 + $0x508] sm:$0xff] }
0x1970   : > { %vm5422_vm12 = vcmp.ge.f32.partialorder %v5407_v8, 0.0  ;;  %v5426_v7 = vmul.f32 0.1, %v5407_v8 }
0x1971   : > { %v5431_v63 = vsel %vm5423_vm11, %v12919_v36, %v5427_v24  ;;  %13889 = vmatpush3.bf16.msra.mxu1 %v16085_v59 }
0x1972   : > { %v5430_v43 = vsel %vm5422_vm12, %v5407_v8, %v5426_v7  ;;  %13890 = vmatprep.subr.bf16.mxu1 %v14604_v2  ;;  %v5987_v7 = vld [vmem:[%s17044_s2 + $0x4a8] sm:$0xff] }
0x1973   : > { %v16089_v32 = vpack.c.bf16 %v5431_v63, %v5430_v43  ;;  %v5988_v63 = vld [vmem:[%s17044_s2 + $0x4b0] sm:$0xff] }
0x1975   : > { %13892 = vmatpush3.bf16.msra.mxu1 %v16089_v32 }
0x1976   : > { %13893 = vmatprep.subr.bf16.mxu1 %v14604_v2 }
0x1978   : > { %12929 = vmatmul.mubr.msk.f32.vlgmr.msra.gmra.mrb[120].mxu1 %vm293_vm2, %v5432_v11  ;;  %v13921_v11 = vpack.c.bf16 %v5988_v63, %v5987_v7  ;;  %v7289_v63 = vld [vmem:[%s17044_s2 + $0x518] sm:$0xff] }
0x1979   : > { %13895 = vmatpush3.bf16.msra.mxu1 %v16085_v59  ;;  %12931 = vmatprep.mubr.msk.f32.mxu1 %vm14605_vm0, %v14606_v4 }
0x197a   : > { %13896 = vmatprep.subr.bf16.mxu1 %v14604_v2 }
0x197c   : > { %12932 = vmatmul.mubr.msk.f32.gmra.mrb[122].mxu1 %vm293_vm2, %v5433_v16 }
0x197d   : > { %13898 = vmatpush3.bf16.msra.mxu1 %v16089_v32  ;;  %12934 = vmatprep.mubr.msk.f32.mxu1 %vm14605_vm0, %v14606_v4 }
0x197e   : > { %13905 = vmatprep.subr.bf16.mxu1 %v14604_v2 }
0x1980   : > { %12935 = vmatmul.mubr.msk.f32.gmra.mrb[124].mxu1 %vm293_vm2, %v5434_v45 }
0x1981   : > { %12945 = vmatprep.mubr.msk.f32.mxu1 %vm14605_vm0, %v14606_v4 }
0x1984   : > { %12946 = vmatmul.mubr.msk.f32.vlgmr.msra.gmra.mrb[126].mxu1 %vm293_vm2, %v5526_v13 }
0x1985   : > { %13907 = vmatpush3.bf16.msra.mxu1 %v16085_v59  ;;  %12948 = vmatprep.mubr.msk.f32.mxu1 %vm14605_vm0, %v14606_v4 }
0x1986   : > { %13908 = vmatprep.subr.bf16.mxu1 %v14604_v2 }
0x1988   : > { %12949 = vmatmul.mubr.msk.f32.gmra.mrb[128].mxu1 %vm293_vm2, %v5527_v22 }
0x1989   : > { %13910 = vmatpush3.bf16.msra.mxu1 %v16089_v32  ;;  %12951 = vmatprep.mubr.msk.f32.mxu1 %vm14605_vm0, %v14606_v4 }
0x198a   : > { %13914 = vmatprep.subr.bf16.mxu1 %v14604_v2 }
0x198c   : > { %12952 = vmatmul.mubr.msk.f32.gmra.mrb[130].mxu1 %vm293_vm2, %v5528_v51  ;;  %v6173_v51 = vld [vmem:[%s17044_s2 + $0x4b8] sm:$0xff] }
0x198d   : > { %12988 = vmatprep.mubr.msk.f32.mxu1 %vm14605_vm0, %v14606_v4 }
0x1990   : > { %12989 = vmatmul.mubr.msk.f32.vlgmr.msra.gmra.mrb[132].mxu1 %vm293_vm2, %v5798_v25  ;;  %v6174_v25 = vld [vmem:[%s17044_s2 + $0x4c0] sm:$0xff] }
0x1991   : > { %13916 = vmatpush3.bf16.msra.mxu1 %v16085_v59  ;;  %12991 = vmatprep.mubr.msk.f32.mxu1 %vm14605_vm0, %v14606_v4 }
0x1992   : > { %13917 = vmatprep.subr.bf16.mxu1 %v14604_v2 }
0x1994   : > { %12992 = vmatmul.mubr.msk.f32.gmra.mrb[134].mxu1 %vm293_vm2, %v5799_v28 }
0x1995   : > { %13919 = vmatpush3.bf16.msra.mxu1 %v16089_v32  ;;  %12994 = vmatprep.mubr.msk.f32.mxu1 %vm14605_vm0, %v14606_v4 }
0x1996   : > { %13923 = vmatprep.subr.bf16.mxu1 %v14604_v2 }
0x1998   : > { %12995 = vmatmul.mubr.msk.f32.gmra.mrb[136].mxu1 %vm293_vm2, %v5800_v50 }
0x1999   : > { %13018 = vmatprep.mubr.msk.f32.mxu1 %vm14605_vm0, %v14606_v4 }
0x199c   : > { %13019 = vmatmul.mubr.msk.f32.vlgmr.msra.gmra.mrb[138].mxu1 %vm293_vm2, %v5984_v55  ;;  %v13930_v55 = vpack.c.bf16 %v6174_v25, %v6173_v51 }
0x199d   : > { %13925 = vmatpush3.bf16.msra.mxu1 %v16085_v59  ;;  %13021 = vmatprep.mubr.msk.f32.mxu1 %vm14605_vm0, %v14606_v4 }
0x199e   : > { %13926 = vmatprep.subr.bf16.mxu1 %v14604_v2 }
0x19a0   : > { %13022 = vmatmul.mubr.msk.f32.gmra.mrb[140].mxu1 %vm293_vm2, %v5985_v34 }
0x19a1   : > { %13928 = vmatpush3.bf16.msra.mxu1 %v16089_v32  ;;  %13024 = vmatprep.mubr.msk.f32.mxu1 %vm14605_vm0, %v14606_v4 }
0x19a2   : > { %13932 = vmatprep.subr.bf16.mxu1 %v14604_v2 }
0x19a4   : > { %13025 = vmatmul.mubr.msk.f32.gmra.mrb[142].mxu1 %vm293_vm2, %v5986_v9 }
0x19a5   : > { %13048 = vmatprep.mubr.msk.f32.mxu1 %vm14605_vm0, %v14606_v4 }
0x19a8   : > { %13049 = vmatmul.mubr.msk.f32.vlgmr.msra.gmra.mrb[144].mxu1 %vm293_vm2, %v6170_v38 }
0x19a9   : > { %13934 = vmatpush3.bf16.msra.mxu1 %v16085_v59  ;;  %13051 = vmatprep.mubr.msk.f32.mxu1 %vm14605_vm0, %v14606_v4 }
0x19aa   : > { %13935 = vmatprep.subr.bf16.mxu1 %v14604_v2 }
0x19ac   : > { %13052 = vmatmul.mubr.msk.f32.gmra.mrb[146].mxu1 %vm293_vm2, %v6171_v46 }
0x19ad   : > { %13937 = vmatpush3.bf16.msra.mxu1 %v16089_v32  ;;  %13054 = vmatprep.mubr.msk.f32.mxu1 %vm14605_vm0, %v14606_v4 }
0x19ae   : > { %13941 = vmatprep.subr.bf16.mxu1 %v14604_v2 }
0x19b0   : > { %13055 = vmatmul.mubr.msk.f32.gmra.mrb[148].mxu1 %vm293_vm2, %v6172_v58  ;;  %v6359_v58 = vld [vmem:[%s17044_s2 + $0x4c8] sm:$0xff] }
0x19b1   : > { %13078 = vmatprep.mubr.msk.f32.mxu1 %vm14605_vm0, %v14606_v4 }
0x19b4   : > { %13079 = vmatmul.mubr.msk.f32.vlgmr.msra.gmra.mrb[150].mxu1 %vm293_vm2, %v6356_v53  ;;  %v6360_v53 = vld [vmem:[%s17044_s2 + $0x4d0] sm:$0xff] }
0x19b5   : > { %13943 = vmatpush3.bf16.msra.mxu1 %v16085_v59  ;;  %13081 = vmatprep.mubr.msk.f32.mxu1 %vm14605_vm0, %v14606_v4 }
0x19b6   : > { %13944 = vmatprep.subr.bf16.mxu1 %v14604_v2 }
0x19b8   : > { %13082 = vmatmul.mubr.msk.f32.gmra.mrb[152].mxu1 %vm293_vm2, %v6357_v44 }
0x19b9   : > { %13946 = vmatpush3.bf16.msra.mxu1 %v16089_v32  ;;  %13084 = vmatprep.mubr.msk.f32.mxu1 %vm14605_vm0, %v14606_v4 }
0x19ba   : > { %13950 = vmatprep.subr.bf16.mxu1 %v14604_v2 }
0x19bc   : > { %13085 = vmatmul.mubr.msk.f32.gmra.mrb[154].mxu1 %vm293_vm2, %v6358_v62 }
0x19bd   : > { %13108 = vmatprep.mubr.msk.f32.mxu1 %vm14605_vm0, %v14606_v4 }
0x19c0   : > { %13109 = vmatmul.mubr.msk.f32.vlgmr.msra.gmra.mrb[156].mxu1 %vm293_vm2, %v6542_v49  ;;  %v13939_v49 = vpack.c.bf16 %v6360_v53, %v6359_v58 }
0x19c1   : > { %13952 = vmatpush3.bf16.msra.mxu1 %v16085_v59  ;;  %13111 = vmatprep.mubr.msk.f32.mxu1 %vm14605_vm0, %v14606_v4 }
0x19c2   : > { %13953 = vmatprep.subr.bf16.mxu1 %v14604_v2 }
0x19c4   : > { %13112 = vmatmul.mubr.msk.f32.gmra.mrb[158].mxu1 %vm293_vm2, %v6543_v61 }
0x19c5   : > { %13955 = vmatpush3.bf16.msra.mxu1 %v16089_v32  ;;  %13114 = vmatprep.mubr.msk.f32.mxu1 %vm14605_vm0, %v14606_v4 }
0x19c6   : > { %13959 = vmatprep.subr.bf16.mxu1 %v14604_v2 }
0x19c8   : > { %13115 = vmatmul.mubr.msk.f32.gmra.mrb[160].mxu1 %vm293_vm2, %v6544_v1 }
0x19c9   : > { %13138 = vmatprep.mubr.msk.f32.mxu1 %vm14605_vm0, %v14606_v4 }
0x19cc   : > { %13139 = vmatmul.mubr.msk.f32.vlgmr.msra.gmra.mrb[162].mxu1 %vm293_vm2, %v6728_v42 }
0x19cd   : > { %13961 = vmatpush3.bf16.msra.mxu1 %v16085_v59  ;;  %13141 = vmatprep.mubr.msk.f32.mxu1 %vm14605_vm0, %v14606_v4 }
0x19ce   : > { %13962 = vmatprep.subr.bf16.mxu1 %v14604_v2 }
0x19d0   : > { %13142 = vmatmul.mubr.msk.f32.gmra.mrb[164].mxu1 %vm293_vm2, %v6729_v6 }
0x19d1   : > { %13964 = vmatpush3.bf16.msra.mxu1 %v16089_v32  ;;  %13144 = vmatprep.mubr.msk.f32.mxu1 %vm14605_vm0, %v14606_v4 }
0x19d2   : > { %13968 = vmatprep.subr.bf16.mxu1 %v14604_v2 }
0x19d4   : > { %13145 = vmatmul.mubr.msk.f32.gmra.mrb[166].mxu1 %vm293_vm2, %v6730_v47  ;;  %v6545_v47 = vld [vmem:[%s17044_s2 + $0x4d8] sm:$0xff] }
0x19d5   : > { %13168 = vmatprep.mubr.msk.f32.mxu1 %vm14605_vm0, %v14606_v4 }
0x19d8   : > { %13169 = vmatmul.mubr.msk.f32.vlgmr.msra.gmra.mrb[168].mxu1 %vm293_vm2, %v6914_v26  ;;  %v13948_v26 = vpack.c.bf16 %v6546_v52, %v6545_v47  ;;  %v7482_v47 = vld [vmem:[%s17044_s2 + $0x270] sm:$0xff] }
0x19d9   : > { %13970 = vmatpush3.bf16.msra.mxu1 %v16085_v59  ;;  %13171 = vmatprep.mubr.msk.f32.mxu1 %vm14605_vm0, %v14606_v4  ;;  %v7815_v52 = vld [vmem:[%s17044_s2 + $0x290] sm:$0xff] }
0x19da   : > { %13971 = vmatprep.subr.bf16.mxu1 %v14604_v2 }
0x19dc   : > { %13172 = vmatmul.mubr.msk.f32.gmra.mrb[170].mxu1 %vm293_vm2, %v6915_v60 }
0x19dd   : > { %13973 = vmatpush3.bf16.msra.mxu1 %v16089_v32  ;;  %13174 = vmatprep.mubr.msk.f32.mxu1 %vm14605_vm0, %v14606_v4 }
0x19de   : > { %13977 = vmatprep.subr.bf16.mxu1 %v14604_v2 }
0x19e0   : > { %13175 = vmatmul.mubr.msk.f32.gmra.mrb[172].mxu1 %vm293_vm2, %v6916_v27 }
0x19e1   : > { %13198 = vmatprep.mubr.msk.f32.mxu1 %vm14605_vm0, %v14606_v4 }
0x19e4   : > { %13199 = vmatmul.mubr.msk.f32.vlgmr.msra.gmra.mrb[174].mxu1 %vm293_vm2, %v7100_v10 }
0x19e5   : > { %13979 = vmatpush3.bf16.msra.mxu1 %v16085_v59  ;;  %13201 = vmatprep.mubr.msk.f32.mxu1 %vm14605_vm0, %v14606_v4 }
0x19e6   : > { %13980 = vmatprep.subr.bf16.mxu1 %v14604_v2 }
0x19e8   : > { %13202 = vmatmul.mubr.msk.f32.gmra.mrb[176].mxu1 %vm293_vm2, %v7101_v54 }
0x19e9   : > { %13982 = vmatpush3.bf16.msra.mxu1 %v16089_v32  ;;  %13204 = vmatprep.mubr.msk.f32.mxu1 %vm14605_vm0, %v14606_v4 }
0x19ec   : > { %13205 = vmatmul.mubr.msk.f32.gmra.mrb[178].mxu1 %vm293_vm2, %v7102_v12  ;;  %v6731_v12 = vld [vmem:[%s17044_s2 + $0x4e8] sm:$0xff] }
0x19ed   : > { %13228 = vmatprep.mubr.msk.f32.mxu1 %vm14605_vm0, %v14606_v4 }
0x19f0   : > { %13229 = vmatmul.mubr.msk.f32.vlgmr.msra.gmra.mrb[180].mxu1 %vm293_vm2, %v7286_v15  ;;  %v6732_v15 = vld [vmem:[%s17044_s2 + $0x4f0] sm:$0xff] }
0x19f1   : > { %13231 = vmatprep.mubr.msk.f32.mxu1 %vm14605_vm0, %v14606_v4 }
0x19f4   : > { %13232 = vmatmul.mubr.msk.f32.gmra.mrb[182].mxu1 %vm293_vm2, %v7287_v17 }
0x19f5   : > { %13234 = vmatprep.mubr.msk.f32.mxu1 %vm14605_vm0, %v14606_v4 }
0x19f8   : > { %13235 = vmatmul.mubr.msk.f32.gmra.mrb[184].mxu1 %vm293_vm2, %v7288_v41 }
0x1a4b   : > { %v5512_v18 = vpop.f32.mrb[120].mxu1 }
0x1a4c   : > { %v12930_v31 = vpop.f32.mrb[121].mxu1 }
0x1a4f   : > { %v5517_v20 = vpop.f32.mrb[122].mxu1 }
0x1a50   : > { %v12933_v21 = vpop.f32.mrb[123].mxu1 }
0x1a53   : > { %v5522_v14 = vpop.f32.mrb[124].mxu1 }
0x1a54   : > { %v12936_v48 = vpop.f32.mrb[125].mxu1 }
0x1a57   : > { %v5606_v29 = vpop.f32.mrb[126].mxu1 }
0x1a58   : > { %v12947_v33 = vpop.f32.mrb[127].mxu1  ;;  %12959 = vmatmul.mubr.msk.f32.vlgmr.msra.gmra.mrb[98].mxu0 %vm185_vm1, %v5606_v29 }
0x1a59   : > { %12961 = vmatprep.mubr.msk.f32.mxu0 %vm14605_vm0, %v14606_v4  ;;  %13904 = vmatpush3.bf16.msra.mxu0 %v13903_v3 }
0x1a5a   : > { %13911 = vmatprep.subr.bf16.mxu0 %v14604_v2 }
0x1a5b   : > { %v5611_v19 = vpop.f32.mrb[128].mxu1 }
0x1a5c   : > { %v12950_v39 = vpop.f32.mrb[129].mxu1  ;;  %12962 = vmatmul.mubr.msk.f32.gmra.mrb[100].mxu0 %vm185_vm1, %v5611_v19 }
0x1a5d   : > { %12964 = vmatprep.mubr.msk.f32.mxu0 %vm14605_vm0, %v14606_v4 }
0x1a5f   : > { %v5616_v37 = vpop.f32.mrb[130].mxu1 }
0x1a60   : > { %v12953_v5 = vpop.f32.mrb[131].mxu1  ;;  %12965 = vmatmul.mubr.msk.f32.gmra.mrb[102].mxu0 %vm185_vm1, %v5616_v37  ;;  %v7104_v37 = vld [vmem:[%s17044_s2 + $0x510] sm:$0xff] }
0x1a61   : > { %12971 = vmatprep.mubr.msk.f32.mxu0 %vm14605_vm0, %v14606_v4 }
0x1a63   : > { %v5878_v36 = vpop.f32.mrb[132].mxu1 }
0x1a64   : > { %12972 = vmatmul.mubr.msk.f32.vlgmr.msra.gmra.mrb[98].mxu0 %vm185_vm1, %v5512_v18  ;;  %v12990_v59 = vpop.f32.mrb[133].mxu1  ;;  %v13957_v18 = vpack.c.bf16 %v6732_v15, %v6731_v12  ;;  %v8487_v12 = vld [vmem:[%s17044_s2 + $0x2d0] sm:$0xff]  ;;  %v8654_v15 = vld [vmem:[%s17044_s2 + $0x2d8] sm:$0xff] }
0x1a65   : > { %12974 = vmatprep.mubr.msk.f32.mxu0 %vm14605_vm0, %v14606_v4  ;;  %13913 = vmatpush3.bf16.msra.mxu0 %v13912_v0 }
0x1a66   : > { %13920 = vmatprep.subr.bf16.mxu0 %v14604_v2 }
0x1a67   : > { %v5883_v24 = vpop.f32.mrb[134].mxu1 }
0x1a68   : > { %12975 = vmatmul.mubr.msk.f32.gmra.mrb[100].mxu0 %vm185_vm1, %v5517_v20  ;;  %v12993_v8 = vpop.f32.mrb[135].mxu1 }
0x1a69   : > { %12977 = vmatprep.mubr.msk.f32.mxu0 %vm14605_vm0, %v14606_v4 }
0x1a6b   : > { %v5888_v43 = vpop.f32.mrb[136].mxu1 }
0x1a6c   : > { %12978 = vmatmul.mubr.msk.f32.gmra.mrb[102].mxu0 %vm185_vm1, %v5522_v14  ;;  %v12996_v32 = vpop.f32.mrb[137].mxu1  ;;  %v6918_v14 = vld [vmem:[%s17044_s2 + $0x500] sm:$0xff] }
0x1a6d   : > { %13001 = vmatprep.mubr.msk.f32.mxu0 %vm14605_vm0, %v14606_v4  ;;  %v13966_v29 = vpack.c.bf16 %v6918_v14, %v6917_v23  ;;  %v7483_v14 = vld [vmem:[%s17044_s2 + $0x528] sm:$0xff] }
0x1a6f   : > { %v6064_v16 = vpop.f32.mrb[138].mxu1 }
0x1a70   : > { %13002 = vmatmul.mubr.msk.f32.vlgmr.msra.gmra.mrb[98].mxu0 %vm185_vm1, %v5878_v36  ;;  %v13020_v45 = vpop.f32.mrb[139].mxu1  ;;  %v13975_v36 = vpack.c.bf16 %v7104_v37, %v7103_v35  ;;  %v7816_v37 = vld [vmem:[%s17044_s2 + $0x548] sm:$0xff] }
0x1a71   : > { %13004 = vmatprep.mubr.msk.f32.mxu0 %vm14605_vm0, %v14606_v4  ;;  %13922 = vmatpush3.bf16.msra.mxu0 %v13921_v11 }
0x1a72   : > { %13929 = vmatprep.subr.bf16.mxu0 %v14604_v2 }
0x1a73   : > { %v6069_v13 = vpop.f32.mrb[140].mxu1 }
0x1a74   : > { %13005 = vmatmul.mubr.msk.f32.gmra.mrb[100].mxu0 %vm185_vm1, %v5883_v24  ;;  %v13023_v22 = vpop.f32.mrb[141].mxu1 }
0x1a75   : > { %13007 = vmatprep.mubr.msk.f32.mxu0 %vm14605_vm0, %v14606_v4 }
0x1a77   : > { %v6074_v28 = vpop.f32.mrb[142].mxu1 }
0x1a78   : > { %13008 = vmatmul.mubr.msk.f32.gmra.mrb[102].mxu0 %vm185_vm1, %v5888_v43  ;;  %v13026_v50 = vpop.f32.mrb[143].mxu1  ;;  %v7290_v43 = vld [vmem:[%s17044_s2 + $0x520] sm:$0xff] }
0x1a79   : > { %13031 = vmatprep.mubr.msk.f32.mxu0 %vm14605_vm0, %v14606_v4  ;;  %v7481_v50 = vld [vmem:[%s17044_s2 + $0x268] sm:$0xff] }
0x1a7a   : > { %13256 = vmatprep.mubr.msk.f32.mxu1 %vm7485_vm13, %v7481_v50  ;;  %v8319_v50 = vld [vmem:[%s17044_s2 + $0x2c0] sm:$0xff] }
0x1a7b   : > { %v6250_v34 = vpop.f32.mrb[144].mxu1 }
0x1a7c   : > { %13032 = vmatmul.mubr.msk.f32.vlgmr.msra.gmra.mrb[98].mxu0 %vm185_vm1, %v6064_v16  ;;  %v13050_v9 = vpop.f32.mrb[145].mxu1  ;;  %v13984_v16 = vpack.c.bf16 %v7290_v43, %v7289_v63  ;;  %v7985_v63 = vld [vmem:[%s17044_s2 + $0x560] sm:$0xff] }
0x1a7d   : > { %13034 = vmatprep.mubr.msk.f32.mxu0 %vm14605_vm0, %v14606_v4  ;;  %13931 = vmatpush3.bf16.msra.mxu0 %v13930_v55  ;;  %v7814_v55 = vld [vmem:[%s17044_s2 + $0x288] sm:$0xff] }
0x1a7e   : > { %13938 = vmatprep.subr.bf16.mxu0 %v14604_v2 }
0x1a7f   : > { %v6255_v38 = vpop.f32.mrb[146].mxu1 }
0x1a80   : > { %13035 = vmatmul.mubr.msk.f32.gmra.mrb[100].mxu0 %vm185_vm1, %v6069_v13  ;;  %v13053_v46 = vpop.f32.mrb[147].mxu1 }
0x1a81   : > { %13037 = vmatprep.mubr.msk.f32.mxu0 %vm14605_vm0, %v14606_v4 }
0x1a83   : > { %v6260_v44 = vpop.f32.mrb[148].mxu1 }
0x1a84   : > { %13038 = vmatmul.mubr.msk.f32.gmra.mrb[102].mxu0 %vm185_vm1, %v6074_v28  ;;  %v13056_v62 = vpop.f32.mrb[149].mxu1 }
0x1a85   : > { %13061 = vmatprep.mubr.msk.f32.mxu0 %vm14605_vm0, %v14606_v4 }
0x1a87   : > { %v6436_v61 = vpop.f32.mrb[150].mxu1 }
0x1a88   : > { %13062 = vmatmul.mubr.msk.f32.vlgmr.msra.gmra.mrb[98].mxu0 %vm185_vm1, %v6250_v34  ;;  %v13080_v1 = vpop.f32.mrb[151].mxu1 }
0x1a89   : > { %13064 = vmatprep.mubr.msk.f32.mxu0 %vm14605_vm0, %v14606_v4  ;;  %13940 = vmatpush3.bf16.msra.mxu0 %v13939_v49 }
0x1a8a   : > { %13947 = vmatprep.subr.bf16.mxu0 %v14604_v2 }
0x1a8b   : > { %v6441_v42 = vpop.f32.mrb[152].mxu1 }
0x1a8c   : > { %13065 = vmatmul.mubr.msk.f32.gmra.mrb[100].mxu0 %vm185_vm1, %v6255_v38  ;;  %v13083_v6 = vpop.f32.mrb[153].mxu1 }
0x1a8d   : > { %13067 = vmatprep.mubr.msk.f32.mxu0 %vm14605_vm0, %v14606_v4 }
0x1a8f   : > { %v6446_v56 = vpop.f32.mrb[154].mxu1 }
0x1a90   : > { %13068 = vmatmul.mubr.msk.f32.gmra.mrb[102].mxu0 %vm185_vm1, %v6260_v44  ;;  %v13086_v57 = vpop.f32.mrb[155].mxu1 }
0x1a91   : > { %13091 = vmatprep.mubr.msk.f32.mxu0 %vm14605_vm0, %v14606_v4  ;;  %v7982_v57 = vld [vmem:[%s17044_s2 + $0x298] sm:$0xff] }
0x1a93   : > { %v6622_v60 = vpop.f32.mrb[156].mxu1 }
0x1a94   : > { %13092 = vmatmul.mubr.msk.f32.vlgmr.msra.gmra.mrb[98].mxu0 %vm185_vm1, %v6436_v61  ;;  %v13110_v27 = vpop.f32.mrb[157].mxu1 }
0x1a95   : > { %13094 = vmatprep.mubr.msk.f32.mxu0 %vm14605_vm0, %v14606_v4  ;;  %13949 = vmatpush3.bf16.msra.mxu0 %v13948_v26  ;;  %v7568_v26 = vld [vmem:[%s17044_s2 + $0x280] sm:$0xff]  ;;  %v8150_v27 = vld [vmem:[%s17044_s2 + $0x2a8] sm:$0xff] }
0x1a96   : > { %13956 = vmatprep.subr.bf16.mxu0 %v14604_v2 }
0x1a97   : > { %v6627_v10 = vpop.f32.mrb[158].mxu1 }
0x1a98   : > { %13095 = vmatmul.mubr.msk.f32.gmra.mrb[100].mxu0 %vm185_vm1, %v6441_v42  ;;  %v13113_v54 = vpop.f32.mrb[159].mxu1 }
0x1a99   : > { %13097 = vmatprep.mubr.msk.f32.mxu0 %vm14605_vm0, %v14606_v4  ;;  %v8486_v54 = vld [vmem:[%s17044_s2 + $0x2c8] sm:$0xff] }
0x1a9b   : > { %v6632_v17 = vpop.f32.mrb[160].mxu1 }
0x1a9c   : > { %13098 = vmatmul.mubr.msk.f32.gmra.mrb[102].mxu0 %vm185_vm1, %v6446_v56  ;;  %v13116_v41 = vpop.f32.mrb[161].mxu1  ;;  %v7567_v56 = vld [vmem:[%s17044_s2 + $0x278] sm:$0xff] }
0x1a9d   : > { %13121 = vmatprep.mubr.msk.f32.mxu0 %vm14605_vm0, %v14606_v4  ;;  %v8822_v41 = vld [vmem:[%s17044_s2 + $0x2e8] sm:$0xff] }
0x1a9f   : > { %v6808_v31 = vpop.f32.mrb[162].mxu1 }
0x1aa0   : > { %13122 = vmatmul.mubr.msk.f32.vlgmr.msra.gmra.mrb[98].mxu0 %vm185_vm1, %v6622_v60  ;;  %v13140_v20 = vpop.f32.mrb[163].mxu1  ;;  %v7983_v60 = vld [vmem:[%s17044_s2 + $0x2a0] sm:$0xff] }
0x1aa1   : > { %13124 = vmatprep.mubr.msk.f32.mxu0 %vm14605_vm0, %v14606_v4  ;;  %13958 = vmatpush3.bf16.msra.mxu0 %v13957_v18  ;;  %v8823_v18 = vld [vmem:[%s17044_s2 + $0x2f0] sm:$0xff]  ;;  %v8991_v20 = vld [vmem:[%s17044_s2 + $0x300] sm:$0xff] }
0x1aa2   : > { %13965 = vmatprep.subr.bf16.mxu0 %v14604_v2 }
0x1aa3   : > { %v6813_v21 = vpop.f32.mrb[164].mxu1 }
0x1aa4   : > { %13125 = vmatmul.mubr.msk.f32.gmra.mrb[100].mxu0 %vm185_vm1, %v6627_v10  ;;  %v13143_v40 = vpop.f32.mrb[165].mxu1  ;;  %v8151_v10 = vld [vmem:[%s17044_s2 + $0x2b0] sm:$0xff] }
0x1aa5   : > { %13127 = vmatprep.mubr.msk.f32.mxu0 %vm14605_vm0, %v14606_v4  ;;  %v7570_v40 = vld [vmem:[%s17044_s2 + $0x540] sm:$0xff] }
0x1aa7   : > { %v6818_v48 = vpop.f32.mrb[166].mxu1 }
0x1aa8   : > { %13128 = vmatmul.mubr.msk.f32.gmra.mrb[102].mxu0 %vm185_vm1, %v6632_v17  ;;  %v13146_v3 = vpop.f32.mrb[167].mxu1  ;;  %v8655_v17 = vld [vmem:[%s17044_s2 + $0x2e0] sm:$0xff] }
0x1aa9   : > { %13151 = vmatprep.mubr.msk.f32.mxu0 %vm14605_vm0, %v14606_v4 }
0x1aab   : > { %v6994_v33 = vpop.f32.mrb[168].mxu1 }
0x1aac   : > { %13152 = vmatmul.mubr.msk.f32.vlgmr.msra.gmra.mrb[98].mxu0 %vm185_vm1, %v6808_v31  ;;  %v13170_v19 = vpop.f32.mrb[169].mxu1  ;;  %v8990_v31 = vld [vmem:[%s17044_s2 + $0x2f8] sm:$0xff] }
0x1aad   : > { %13154 = vmatprep.mubr.msk.f32.mxu0 %vm14605_vm0, %v14606_v4  ;;  %13967 = vmatpush3.bf16.msra.mxu0 %v13966_v29  ;;  %v9158_v29 = vld [vmem:[%s17044_s2 + $0x308] sm:$0xff] }
0x1aae   : > { %13974 = vmatprep.subr.bf16.mxu0 %v14604_v2 }
0x1aaf   : > { %v6999_v39 = vpop.f32.mrb[170].mxu1 }
0x1ab0   : > { %13155 = vmatmul.mubr.msk.f32.gmra.mrb[100].mxu0 %vm185_vm1, %v6813_v21  ;;  %v13173_v30 = vpop.f32.mrb[171].mxu1  ;;  %v7569_v21 = vld [vmem:[%s17044_s2 + $0x538] sm:$0xff] }
0x1ab1   : > { %13157 = vmatprep.mubr.msk.f32.mxu0 %vm14605_vm0, %v14606_v4  ;;  %v13994_v23 = vpack.c.bf16 %v7570_v40, %v7569_v21  ;;  %v9160_v40 = vld [vmem:[%s17044_s2 + $0x5c8] sm:$0xff] }
0x1ab3   : > { %v7004_v5 = vpop.f32.mrb[172].mxu1 }
0x1ab4   : > { %13158 = vmatmul.mubr.msk.f32.gmra.mrb[102].mxu0 %vm185_vm1, %v6818_v48  ;;  %v13176_v0 = vpop.f32.mrb[173].mxu1  ;;  %v7484_v48 = vld [vmem:[%s17044_s2 + $0x530] sm:$0xff] }
0x1ab5   : > { %13181 = vmatprep.mubr.msk.f32.mxu0 %vm14605_vm0, %v14606_v4  ;;  %v13998_v3 = vpack.c.bf16 %v7484_v48, %v7483_v14  ;;  %v9327_v48 = vld [vmem:[%s17044_s2 + $0x5e0] sm:$0xf] }
0x1ab7   : > { %v7180_v59 = vpop.f32.mrb[174].mxu1 }
0x1ab8   : > { %13182 = vmatmul.mubr.msk.f32.vlgmr.msra.gmra.mrb[98].mxu0 %vm185_vm1, %v6994_v33  ;;  %v13200_v24 = vpop.f32.mrb[175].mxu1  ;;  %v9159_v33 = vld [vmem:[%s17044_s2 + $0x310] sm:$0xff] }
0x1ab9   : > { %13184 = vmatprep.mubr.msk.f32.mxu0 %vm14605_vm0, %v14606_v4  ;;  %13976 = vmatpush3.bf16.msra.mxu0 %v13975_v36 }
0x1aba   : > { %13983 = vmatprep.subr.bf16.mxu0 %v14604_v2 }
0x1abb   : > { %v7185_v8 = vpop.f32.mrb[176].mxu1 }
0x1abc   : > { %13185 = vmatmul.mubr.msk.f32.gmra.mrb[100].mxu0 %vm185_vm1, %v6999_v39  ;;  %v13203_v7 = vpop.f32.mrb[177].mxu1 }
0x1abd   : > { %13187 = vmatprep.mubr.msk.f32.mxu0 %vm14605_vm0, %v14606_v4  ;;  %v7984_v7 = vld [vmem:[%s17044_s2 + $0x558] sm:$0xff] }
0x1abf   : > { %v7190_v32 = vpop.f32.mrb[178].mxu1 }
0x1ac0   : > { %13188 = vmatmul.mubr.msk.f32.gmra.mrb[102].mxu0 %vm185_vm1, %v7004_v5  ;;  %v13206_v11 = vpop.f32.mrb[179].mxu1  ;;  %v7817_v5 = vld [vmem:[%s17044_s2 + $0x550] sm:$0xff] }
0x1ac1   : > { %13211 = vmatprep.mubr.msk.f32.mxu0 %vm14605_vm0, %v14606_v4  ;;  %v14014_v11 = vpack.c.bf16 %v7985_v63, %v7984_v7  ;;  %v9554_v7 = vld [vmem:[%s17044_s2 + $0x630] sm:$0xff]  ;;  %v9555_v63 = vld [vmem:[%s17044_s2 + $0x638] sm:$0xff] }
0x1ac3   : > { %v7366_v45 = vpop.f32.mrb[180].mxu1 }
0x1ac4   : > { %13212 = vmatmul.mubr.msk.f32.vlgmr.msra.gmra.mrb[98].mxu0 %vm185_vm1, %v7180_v59  ;;  %v13230_v13 = vpop.f32.mrb[181].mxu1  ;;  %v14006_v59 = vpack.c.bf16 %v7817_v5, %v7816_v37  ;;  %v9758_v5 = vld [vmem:[%s17044_s2 + $0x640] sm:$0xff] }
0x1ac5   : > { %13214 = vmatprep.mubr.msk.f32.mxu0 %vm14605_vm0, %v14606_v4  ;;  %13985 = vmatpush3.bf16.msra.mxu0 %v13984_v16  ;;  %v8152_v16 = vld [vmem:[%s17044_s2 + $0x568] sm:$0xff] }
0x1ac7   : > { %v7371_v22 = vpop.f32.mrb[182].mxu1 }
0x1ac8   : > { %13215 = vmatmul.mubr.msk.f32.gmra.mrb[100].mxu0 %vm185_vm1, %v7185_v8  ;;  %v13233_v51 = vpop.f32.mrb[183].mxu1 }
0x1ac9   : > { %13217 = vmatprep.mubr.msk.f32.mxu0 %vm14605_vm0, %v14606_v4  ;;  %v8320_v51 = vld [vmem:[%s17044_s2 + $0x578] sm:$0xff] }
0x1acb   : > { %v7376_v25 = vpop.f32.mrb[184].mxu1 }
0x1acc   : > { %13218 = vmatmul.mubr.msk.f32.gmra.mrb[102].mxu0 %vm185_vm1, %v7190_v32  ;;  %v13236_v28 = vpop.f32.mrb[185].mxu1 }
0x1acd   : > { %13241 = vmatprep.mubr.msk.f32.mxu0 %vm14605_vm0, %v14606_v4 }
0x1ad0   : > { %13242 = vmatmul.mubr.msk.f32.vlgmr.msra.gmra.mrb[98].mxu0 %vm185_vm1, %v7366_v45  ;;  %v8153_v45 = vld [vmem:[%s17044_s2 + $0x570] sm:$0xff] }
0x1ad1   : > { %13244 = vmatprep.mubr.msk.f32.mxu0 %vm14605_vm0, %v14606_v4  ;;  %v14022_v13 = vpack.c.bf16 %v8153_v45, %v8152_v16  ;;  %v9551_v16 = vld [vmem:[%s17044_s2 + $0x618] sm:$0xff] }
0x1ad2   : > { %v9761_v45 = vld [vmem:[%s17044_s2 + $0x658] sm:$0xff] }
0x1ad4   : > { %13245 = vmatmul.mubr.msk.f32.gmra.mrb[100].mxu0 %vm185_vm1, %v7371_v22  ;;  %v8318_v22 = vld [vmem:[%s17044_s2 + $0x2b8] sm:$0xff] }
0x1ad5   : > { %13247 = vmatprep.mubr.msk.f32.mxu0 %vm14605_vm0, %v14606_v4 }
0x1ad8   : > { %13248 = vmatmul.mubr.msk.f32.gmra.mrb[102].mxu0 %vm185_vm1, %v7376_v25  ;;  %v8321_v25 = vld [vmem:[%s17044_s2 + $0x580] sm:$0xff] }
0x1ad9   : > { %13288 = vmatprep.mubr.msk.f32.mxu0 %vm7485_vm13, %v7814_v55  ;;  %v14030_v28 = vpack.c.bf16 %v8321_v25, %v8320_v51  ;;  %v8488_v55 = vld [vmem:[%s17044_s2 + $0x588] sm:$0xff]  ;;  %v9762_v51 = vld [vmem:[%s17044_s2 + $0x660] sm:$0xff]  ;;  %v10225_v25 = vld [vmem:[%s17044_s2 + $0x6f8] sm:$0xff] }
0x1ba3   : > { %v7455_v34 = vpop.f32.mrb[98].mxu0 }
0x1ba4   : > { %v13243_v9 = vpop.f32.mrb[99].mxu0  ;;  %v7475_v38 = vmul.f32 0.1, %v7455_v34  ;;  %vm7472_vm15 = vcmp.ge.f32.partialorder %v7455_v34, 0.0 }
0x1ba6   : > { %v7478_v44 = vsel %vm7472_vm15, %v7455_v34, %v7475_v38  ;;  %v8489_v34 = vld [vmem:[%s17044_s2 + $0x590] sm:$0xff] }
0x1ba7   : > { %v7460_v46 = vpop.f32.mrb[100].mxu0  ;;  %v14038_v38 = vpack.c.bf16 %v8489_v34, %v8488_v55  ;;  %v9992_v55 = vld [vmem:[%s17044_s2 + $0x6a0] sm:$0xff]  ;;  %v10461_v34 = vld [vmem:[%s17044_s2 + $0x748] sm:$0xff] }
0x1ba8   : > { %vm7473_vm3 = vcmp.ge.f32.partialorder %v7460_v46, 0.0  ;;  %v7476_v58 = vmul.f32 0.1, %v7460_v46  ;;  %v13246_v53 = vpop.f32.mrb[101].mxu0 }
0x1baa   : > { %v7479_v62 = vsel %vm7473_vm3, %v7460_v46, %v7476_v58 }
0x1bab   : > { %v16509_v49 = vpack.c.bf16 %v7479_v62, %v7478_v44  ;;  %v7465_v61 = vpop.f32.mrb[102].mxu0 }
0x1bac   : > { %vm7474_vm4 = vcmp.ge.f32.partialorder %v7465_v61, 0.0  ;;  %v7477_v1 = vmul.f32 0.1, %v7465_v61  ;;  %v13249_v42 = vpop.f32.mrb[103].mxu0 }
0x1bad   : > { %13987 = vmatprep.subr.bf16.mxu1 %v16509_v49  ;;  %14003 = vmatprep.subr.bf16.mxu0 %v16509_v49 }
0x1bae   : > { %v16513_v6 = vsel %vm7474_vm4, %v7465_v61, %v7477_v1  ;;  %13989 = vmatpush3.bf16.msra.mxu1 %v16509_v49  ;;  %14005 = vmatpush3.bf16.msra.mxu0 %v16509_v49 }
0x1baf   : > { %13254 = vmatprep.subr.mxu1 %v16513_v6  ;;  %13286 = vmatprep.subr.mxu0 %v16513_v6 }
0x1bb2   : > { %13255 = vmatpush3.msra.mxu1 %v16513_v6  ;;  %13287 = vmatpush3.msra.mxu0 %v16513_v6 }
0x1bb3   : > { %13991 = vmatprep.subr.bf16.mxu1 %v16509_v49  ;;  %14011 = vmatprep.subr.bf16.mxu0 %v16509_v49 }
0x1bb4   : > { %13257 = vmatmul.mubr.msk.f32.vlgmr.msra.gmra.mrb[186].mxu1 %vm7485_vm13, %v7482_v47  ;;  %13289 = vmatmul.mubr.msk.f32.vlgmr.msra.gmra.mrb[104].mxu0 %vm7485_vm13, %v7815_v52  ;;  %v3158_v47 = vld [vmem:[%s14661_s22 + $0x8] sm:$0xff] }
0x1bb5   : > { %13993 = vmatpush3.bf16.msra.mxu1 %v16509_v49  ;;  %14013 = vmatpush3.bf16.msra.mxu0 %v16509_v49 }
0x1bb6   : > { %13263 = vmatprep.subr.mxu1 %v16513_v6  ;;  %13302 = vmatprep.subr.mxu0 %v16513_v6 }
0x1bb7   : > { %13265 = vmatprep.mubr.msk.f32.mxu1 %vm7485_vm13, %v7567_v56  ;;  %13304 = vmatprep.mubr.msk.f32.mxu0 %vm7485_vm13, %v7982_v57  ;;  %v3159_v56 = vld [vmem:[%s14661_s22 + $0x10] sm:$0xff]  ;;  %v3160_v57 = vld [vmem:[%s14661_s22 + $0x18] sm:$0xff] }
0x1bb9   : > { %13264 = vmatpush3.msra.mxu1 %v16513_v6  ;;  %13303 = vmatpush3.msra.mxu0 %v16513_v6 }
0x1bba   : > { %13266 = vmatmul.mubr.msk.f32.vlgmr.msra.gmra.mrb[188].mxu1 %vm7485_vm13, %v7568_v26  ;;  %14019 = vmatprep.subr.bf16.mxu0 %v16509_v49  ;;  %v14078_v26 = vpack.c.bf16 %v3160_v57, %v3159_v56 }
0x1bbb   : > { %13305 = vmatmul.mubr.msk.f32.vlgmr.msra.gmra.mrb[106].mxu0 %vm7485_vm13, %v7983_v60  ;;  %13995 = vmatprep.subr.bf16.mxu1 %v13994_v23  ;;  %v3161_v60 = vld [vmem:[%s14661_s22 + $0x20] sm:$0xff] }
0x1bbc   : > { %14021 = vmatpush3.bf16.msra.mxu0 %v16509_v49  ;;  %13320 = vmatprep.mubr.msk.f32.mxu0 %vm7485_vm13, %v8150_v27  ;;  %v8656_v27 = vld [vmem:[%s17044_s2 + $0x598] sm:$0xff] }
0x1bbd   : > { %13318 = vmatprep.subr.mxu0 %v16513_v6  ;;  %13997 = vmatpush3.bf16.msra.mxu1 %v13994_v23  ;;  %v9161_v23 = vld [vmem:[%s17044_s2 + $0x5d0] sm:$0xff] }
0x1bbe   : > { %13999 = vmatprep.subr.bf16.mxu1 %v13998_v3  ;;  %v14070_v14 = vpack.c.bf16 %v9161_v23, %v9160_v40 }
0x1bc0   : > { %13319 = vmatpush3.msra.mxu0 %v16513_v6 }
0x1bc1   : > { %14035 = vmatprep.subr.bf16.mxu0 %v16509_v49  ;;  %13321 = vmatmul.mubr.msk.f32.vlgmr.msra.gmra.mrb[108].mxu0 %vm7485_vm13, %v8151_v10  ;;  %v8657_v10 = vld [vmem:[%s17044_s2 + $0x5a0] sm:$0xff] }
0x1bc2   : > { %14037 = vmatpush3.bf16.msra.mxu0 %v16509_v49  ;;  %13352 = vmatprep.mubr.msk.f32.mxu0 %vm7485_vm13, %v8486_v54 }
0x1bc3   : > { %13350 = vmatprep.subr.mxu0 %v16513_v6 }
0x1bc6   : > { %13351 = vmatpush3.msra.mxu0 %v16513_v6 }
0x1bc7   : > { %14043 = vmatprep.subr.bf16.mxu0 %v16509_v49  ;;  %13353 = vmatmul.mubr.msk.f32.vlgmr.msra.gmra.mrb[110].mxu0 %vm7485_vm13, %v8487_v12 }
0x1bc8   : > { %14045 = vmatpush3.bf16.msra.mxu0 %v16509_v49  ;;  %13368 = vmatprep.mubr.msk.f32.mxu0 %vm7485_vm13, %v8654_v15  ;;  %v14046_v15 = vpack.c.bf16 %v8657_v10, %v8656_v27  ;;  %v9990_v27 = vld [vmem:[%s17044_s2 + $0x690] sm:$0xff]  ;;  %v9991_v10 = vld [vmem:[%s17044_s2 + $0x698] sm:$0xff] }
0x1bc9   : > { %13366 = vmatprep.subr.mxu0 %v16513_v6 }
0x1bcc   : > { %13367 = vmatpush3.msra.mxu0 %v16513_v6 }
0x1bcd   : > { %14051 = vmatprep.subr.bf16.mxu0 %v16509_v49  ;;  %13369 = vmatmul.mubr.msk.f32.vlgmr.msra.gmra.mrb[112].mxu0 %vm7485_vm13, %v8655_v17  ;;  %v8824_v17 = vld [vmem:[%s17044_s2 + $0x5a8] sm:$0xff] }
0x1bce   : > { %14053 = vmatpush3.bf16.msra.mxu0 %v16509_v49  ;;  %13384 = vmatprep.mubr.msk.f32.mxu0 %vm7485_vm13, %v8822_v41  ;;  %v8825_v41 = vld [vmem:[%s17044_s2 + $0x5b0] sm:$0xff] }
0x1bcf   : > { %13382 = vmatprep.subr.mxu0 %v16513_v6 }
0x1bd2   : > { %13383 = vmatpush3.msra.mxu0 %v16513_v6 }
0x1bd3   : > { %14059 = vmatprep.subr.bf16.mxu0 %v16509_v49  ;;  %13385 = vmatmul.mubr.msk.f32.vlgmr.msra.gmra.mrb[114].mxu0 %vm7485_vm13, %v8823_v18  ;;  %v14054_v18 = vpack.c.bf16 %v8825_v41, %v8824_v17 }
0x1bd4   : > { %14061 = vmatpush3.bf16.msra.mxu0 %v16509_v49  ;;  %13400 = vmatprep.mubr.msk.f32.mxu0 %vm7485_vm13, %v8990_v31  ;;  %v8992_v31 = vld [vmem:[%s17044_s2 + $0x5b8] sm:$0xff] }
0x1bd5   : > { %13398 = vmatprep.subr.mxu0 %v16513_v6 }
0x1bd8   : > { %13399 = vmatpush3.msra.mxu0 %v16513_v6 }
0x1bd9   : > { %14067 = vmatprep.subr.bf16.mxu0 %v16509_v49  ;;  %13401 = vmatmul.mubr.msk.f32.vlgmr.msra.gmra.mrb[116].mxu0 %vm7485_vm13, %v8991_v20  ;;  %v8993_v20 = vld [vmem:[%s17044_s2 + $0x5c0] sm:$0xff] }
0x1bda   : > { %14069 = vmatpush3.bf16.msra.mxu0 %v16509_v49  ;;  %13416 = vmatprep.mubr.msk.f32.mxu0 %vm7485_vm13, %v9158_v29  ;;  %v14062_v21 = vpack.c.bf16 %v8993_v20, %v8992_v31 }
0x1bdb   : > { %13414 = vmatprep.subr.mxu0 %v16513_v6 }
0x1bde   : > { %13415 = vmatpush3.msra.mxu0 %v16513_v6 }
0x1bdf   : > { %14083 = vmatprep.subr.bf16.mxu0 %v14604_v2  ;;  %13417 = vmatmul.mubr.msk.f32.vlgmr.msra.gmra.mrb[118].mxu0 %vm7485_vm13, %v9159_v33 }
0x1be0   : > { %13456 = vmatprep.mubr.msk.f32.mxu0 %vm14605_vm0, %v14606_v4 }
0x1c87   : > { %v13258_v19 = vpop.f32.mrb[186].mxu1  ;;  %v13290_v39 = vpop.f32.mrb[104].mxu0 }
0x1c88   : > { %v7558_v30 = vpop.f32.mrb[187].mxu1  ;;  %v7890_v35 = vpop.f32.mrb[105].mxu0 }
0x1c8d   : > { %v13267_v0 = vpop.f32.mrb[188].mxu1 }
0x1c8e   : > { %v7643_v36 = vpop.f32.mrb[189].mxu1  ;;  %v13306_v24 = vpop.f32.mrb[106].mxu0 }
0x1c8f   : > { %13272 = vmatprep.mubr.msk.f32.mxu1 %vm185_vm1, %v7643_v36  ;;  %v8058_v8 = vpop.f32.mrb[107].mxu0 }
0x1c90   : > { %13273 = vmatmul.mubr.msk.f32.vlgmr.msra.gmra.mrb[190].mxu1 %vm185_vm1, %v13267_v0  ;;  %v9759_v0 = vld [vmem:[%s17044_s2 + $0x648] sm:$0xff] }
0x1c91   : > { %13279 = vmatprep.mubr.msk.f32.mxu1 %vm185_vm1, %v7558_v30  ;;  %14001 = vmatpush3.bf16.msra.mxu1 %v13998_v3  ;;  %v9474_v3 = vld [vmem:[%s17044_s2 + $0x5e8] sm:$0xf]  ;;  %v9552_v30 = vld [vmem:[%s17044_s2 + $0x620] sm:$0xff]  ;;  %v14089_v36 = vpack.c.bf16 %v9759_v0, %v9758_v5 }
0x1c92   : > { %14007 = vmatprep.subr.bf16.mxu1 %v14006_v59 }
0x1c94   : > { %v13322_v43 = vpop.f32.mrb[108].mxu0 }
0x1c95   : > { %v8226_v32 = vpop.f32.mrb[109].mxu0 }
0x1c98   : > { %13280 = vmatmul.mubr.msk.f32.vlgmr.msra.gmra.mrb[190].mxu1 %vm185_vm1, %v13258_v19 }
0x1c99   : > { %14009 = vmatpush3.bf16.msra.mxu1 %v14006_v59  ;;  %13295 = vmatprep.mubr.msk.f32.mxu1 %vm185_vm1, %v7890_v35 }
0x1c9a   : > { %14015 = vmatprep.subr.bf16.mxu1 %v14014_v11  ;;  %v13354_v9 = vpop.f32.mrb[110].mxu0 }
0x1c9b   : > { %v8562_v46 = vpop.f32.mrb[111].mxu0 }
0x1ca0   : > { %13296 = vmatmul.mubr.msk.f32.vlgmr.msra.gmra.mrb[190].mxu1 %vm185_vm1, %v13290_v39  ;;  %v13370_v58 = vpop.f32.mrb[112].mxu0  ;;  %v9326_v39 = vld [vmem:[%s17044_s2 + $0x5d8] sm:$0xf] }
0x1ca1   : > { %14017 = vmatpush3.bf16.msra.mxu1 %v14014_v11  ;;  %13311 = vmatprep.mubr.msk.f32.mxu1 %vm185_vm1, %v8058_v8  ;;  %v8730_v53 = vpop.f32.mrb[113].mxu0  ;;  %v9550_v11 = vld [vmem:[%s17044_s2 + $0x610] sm:$0xff] }
0x1ca2   : > { %14023 = vmatprep.subr.bf16.mxu1 %v14022_v13 }
0x1ca6   : > { %v13386_v44 = vpop.f32.mrb[114].mxu0 }
0x1ca7   : > { %v8898_v62 = vpop.f32.mrb[115].mxu0 }
0x1ca8   : > { %13312 = vmatmul.mubr.msk.f32.vlgmr.msra.gmra.mrb[190].mxu1 %vm185_vm1, %v13306_v24  ;;  %v9553_v24 = vld [vmem:[%s17044_s2 + $0x628] sm:$0xff] }
0x1ca9   : > { %14025 = vmatpush3.bf16.msra.mxu1 %v14022_v13  ;;  %13327 = vmatprep.mubr.msk.f32.mxu1 %vm185_vm1, %v8226_v32  ;;  %v9549_v32 = vld [vmem:[%s17044_s2 + $0x608] sm:$0xff]  ;;  %v14613_v13 = vmov 0  }
0x1caa   : > { %14027 = vmatprep.subr.bf16.mxu1 %v16509_v49  ;;  %14375 = vset.pattern.permute.xlu1 %v14613_v13 }
0x1cab   : > { %14374 = vset.pattern.permute.xlu0 %v14613_v13  ;;  %9771 = vperm.xlu1 %14375, %v9761_v45   ;;  %v10223_v45 = vld [vmem:[%s17044_s2 + $0x6e8] sm:$0xff] }
0x1caf   : > { %9776 = vperm.xlu1 %14375, %v9762_v51  }
0x1cb0   : > { %13328 = vmatmul.mubr.msk.f32.vlgmr.msra.gmra.mrb[190].mxu1 %vm185_vm1, %v13322_v43  ;;  %v9548_v43 = vld [vmem:[%s17044_s2 + $0x600] sm:$0xff] }
0x1cb1   : > { %14029 = vmatpush3.bf16.msra.mxu1 %v16509_v49  ;;  %13336 = vmatprep.mubr.msk.f32.mxu1 %vm7485_vm13, %v8318_v22  ;;  %v13402_v49 = vpop.f32.mrb[116].mxu0  ;;  %v9760_v22 = vld [vmem:[%s17044_s2 + $0x650] sm:$0xff] }
0x1cb2   : > { %13334 = vmatprep.subr.mxu1 %v16513_v6  ;;  %v9066_v61 = vpop.f32.mrb[117].mxu0  ;;  %9766 = vperm.xlu0 %14374, %v9760_v22  }
0x1cb3   : > { %v13418_v1 = vpop.f32.mrb[118].mxu0 }
0x1cb4   : > { %v9234_v42 = vpop.f32.mrb[119].mxu0 }
0x1cb5   : > { %13335 = vmatpush3.msra.mxu1 %v16513_v6  ;;  %v3157_v6 = vld [vmem:[%s14661_s22] sm:$0xff] }
0x1cb6   : > { %13337 = vmatmul.mubr.msk.f32.vlgmr.msra.gmra.mrb[192].mxu1 %vm7485_vm13, %v8319_v50  ;;  %14031 = vmatprep.subr.bf16.mxu1 %v14030_v28  ;;  %v14075_v52 = vpack.c.bf16 %v3158_v47, %v3157_v6  ;;  %v10227_v50 = vld [vmem:[%s17044_s2 + $0x708] sm:$0xff]  ;;  %v10694_v6 = vld [vmem:[%s17044_s2 + $0x7a0] sm:$0xff] }
0x1cb7   : > { %14033 = vmatpush3.bf16.msra.mxu1 %v14030_v28  ;;  %v9763_v28 = vld [vmem:[%s17044_s2 + $0x668] sm:$0xff]  ;;  %10235 = vperm.xlu0 %14374, %v10225_v25  }
0x1cb8   : > { %14039 = vmatprep.subr.bf16.mxu1 %v14038_v38  ;;  %14085 = vmatpush3.bf16.msra.mxu0 %v14075_v52  ;;  %v10901_v47 = vld [vmem:[%s17044_s2 + $0x7c8] sm:$0xff] }
0x1cb9   : > { %14086 = vmatprep.subr.bf16.mxu0 %v14604_v2  ;;  %9781 = vperm.xlu1 %14375, %v9763_v28  }
0x1cbb   : > { %10245 = vperm.xlu0 %14374, %v10227_v50  }
0x1cbc   : > { %14088 = vmatpush3.bf16.msra.mxu0 %v14078_v26 }
0x1cbd   : > { %13454 = vmatprep.subr.mxu0 %v14606_v4  ;;  %9998 = vperm.xlu1 %14375, %v9992_v55  }
0x1cbf   : > { %10471 = vperm.xlu0 %14374, %v10461_v34  }
0x1cc0   : > { %13455 = vmatpush3.msra.mxu0 %v3161_v60 }
0x1cc1   : > { %13457 = vmatmul.mubr.msk.f32.vlgmr.msra.gmra.mrb[120].mxu0 %vm657_vm14, %v9474_v3 }
0x1cc2   : > { %13461 = vmatprep.mubr.msk.f32.mxu0 %vm9556_vm5, %v9552_v30 }
0x1d31   : > { %v9767_v41 = vpop.permute.xlu0 %9766 }
0x1d89   : > { %v13338_v54 = vpop.f32.mrb[192].mxu1 }
0x1d8a   : > { %v8394_v12 = vpop.f32.mrb[193].mxu1 }
0x1d8b   : > { %13343 = vmatprep.mubr.msk.f32.mxu1 %vm185_vm1, %v8394_v12  ;;  %v9772_v12 = vpop.permute.xlu1 %9771 }
0x1d8c   : > { %13344 = vmatmul.mubr.msk.f32.vlgmr.msra.gmra.mrb[190].mxu1 %vm185_vm1, %v13338_v54  ;;  %v14101_v54 = vpack.c.bf16 %v9991_v10, %v9990_v27 }
0x1d8d   : > { %14041 = vmatpush3.bf16.msra.mxu1 %v14038_v38  ;;  %13359 = vmatprep.mubr.msk.f32.mxu1 %vm185_vm1, %v8562_v46  ;;  %v10463_v38 = vld [vmem:[%s17044_s2 + $0x758] sm:$0xff]  ;;  %v9994_v46 = vld [vmem:[%s17044_s2 + $0x6b0] sm:$0xff] }
0x1d8e   : > { %14047 = vmatprep.subr.bf16.mxu1 %v14046_v15  ;;  %10481 = vperm.xlu0 %14374, %v10463_v38  }
0x1d94   : > { %13360 = vmatmul.mubr.msk.f32.vlgmr.msra.gmra.mrb[190].mxu1 %vm185_vm1, %v13354_v9  ;;  %v16759_v35 = vpop.f32.mrb[120].mxu0  ;;  %v9993_v9 = vld [vmem:[%s17044_s2 + $0x6a8] sm:$0xff] }
0x1d95   : > { %14049 = vmatpush3.bf16.msra.mxu1 %v14046_v15  ;;  %13375 = vmatprep.mubr.msk.f32.mxu1 %vm185_vm1, %v8730_v53  ;;  %v13458_v37 = vpop.f32.mrb[121].mxu0  ;;  %v9995_v53 = vld [vmem:[%s17044_s2 + $0x6b8] sm:$0xff]  ;;  %v9777_v15 = vpop.permute.xlu1 %9776 }
0x1d96   : > { %14055 = vmatprep.subr.bf16.mxu1 %v14054_v18  ;;  %10003 = vperm.xlu1 %14375, %v9993_v9  }
0x1d99   : > { %v9782_v40 = vpop.permute.xlu1 %9781 }
0x1d9a   : > { %10008 = vperm.xlu1 %14375, %v9994_v46  }
0x1d9c   : > { %13376 = vmatmul.mubr.msk.f32.vlgmr.msra.gmra.mrb[190].mxu1 %vm185_vm1, %v13370_v58  ;;  %v10693_v58 = vld [vmem:[%s17044_s2 + $0x798] sm:$0xff] }
0x1d9d   : > { %14057 = vmatpush3.bf16.msra.mxu1 %v14054_v18  ;;  %13391 = vmatprep.mubr.msk.f32.mxu1 %vm185_vm1, %v8898_v62  ;;  %v10224_v62 = vld [vmem:[%s17044_s2 + $0x6f0] sm:$0xff]  ;;  %v9999_v22 = vpop.permute.xlu1 %9998 }
0x1d9e   : > { %14063 = vmatprep.subr.bf16.mxu1 %v14062_v21  ;;  %10703 = vperm.xlu0 %14374, %v10693_v58  }
0x1d9f   : > { %10013 = vperm.xlu1 %14375, %v9995_v53  }
0x1da3   : > { %10230 = vperm.xlu1 %14375, %v10224_v62  }
0x1da4   : > { %13392 = vmatmul.mubr.msk.f32.vlgmr.msra.gmra.mrb[190].mxu1 %vm185_vm1, %v13386_v44  ;;  %v10695_v44 = vld [vmem:[%s17044_s2 + $0x7a8] sm:$0xff] }
0x1da5   : > { %14065 = vmatpush3.bf16.msra.mxu1 %v14062_v21  ;;  %13407 = vmatprep.mubr.msk.f32.mxu1 %vm185_vm1, %v9066_v61  ;;  %v10460_v61 = vld [vmem:[%s17044_s2 + $0x740] sm:$0xff] }
0x1da6   : > { %14071 = vmatprep.subr.bf16.mxu1 %v14070_v14  ;;  %10713 = vperm.xlu0 %14374, %v10695_v44  }
0x1dac   : > { %13408 = vmatmul.mubr.msk.f32.vlgmr.msra.gmra.mrb[190].mxu1 %vm185_vm1, %v13402_v49  ;;  %v10226_v49 = vld [vmem:[%s17044_s2 + $0x700] sm:$0xff] }
0x1dad   : > { %14073 = vmatpush3.bf16.msra.mxu1 %v14070_v14  ;;  %13423 = vmatprep.mubr.msk.f32.mxu1 %vm185_vm1, %v9234_v42  ;;  %v10692_v42 = vld [vmem:[%s17044_s2 + $0x790] sm:$0xff] }
0x1dae   : > { %14074 = vmatprep.subr.bf16.mxu1 %v14604_v2  ;;  %10240 = vperm.xlu1 %14375, %v10226_v49  }
0x1db2   : > { %10466 = vperm.xlu1 %14375, %v10460_v61  }
0x1db4   : > { %13424 = vmatmul.mubr.msk.f32.vlgmr.msra.gmra.mrb[190].mxu1 %vm185_vm1, %v13418_v1  ;;  %v10462_v1 = vld [vmem:[%s17044_s2 + $0x750] sm:$0xff] }
0x1db5   : > { %14076 = vmatpush3.bf16.msra.mxu1 %v14075_v52  ;;  %13436 = vmatprep.mubr.msk.f32.mxu1 %vm14605_vm0, %v14606_v4 }
0x1db6   : > { %14077 = vmatprep.subr.bf16.mxu1 %v14604_v2  ;;  %10476 = vperm.xlu1 %14375, %v10462_v1  }
0x1db9   : > { %14079 = vmatpush3.bf16.msra.mxu1 %v14078_v26 }
0x1dba   : > { %13434 = vmatprep.subr.mxu1 %v14606_v4  ;;  %10698 = vperm.xlu1 %14375, %v10692_v42  }
0x1dbd   : > { %13435 = vmatpush3.msra.mxu1 %v3161_v60  ;;  %v9889_v60 = vld [vmem:[%s17044_s2 + $0x670] sm:$0xff] }
0x1dbe   : > { %13437 = vmatmul.mubr.msk.f32.vlgmr.msra.gmra.mrb[194].mxu1 %vm657_vm14, %v9327_v48  ;;  %14080 = vmatprep.subr.bf16.mxu1 %v14604_v2  ;;  %vm9569_vm14 = vcmask 1043456  }
0x1dbf   : > { %13443 = vmatprep.mubr.msk.f32.mxu1 %vm14605_vm0, %v14606_v4  ;;  %10708 = vperm.xlu1 %14375, %v10694_v6  }
0x1dc3   : > { %10904 = vperm.xlu1 %14375, %v10901_v47  }
0x1e15   : > { %v10004_v51 = vpop.permute.xlu1 %10003 }
0x1e19   : > { %v10009_v25 = vpop.permute.xlu1 %10008 }
0x1e1e   : > { %v10014_v38 = vpop.permute.xlu1 %10013 }
0x1e87   : > { %v13425_v29 = vpop.f32.mrb[190].mxu1 }
0x1e88   : > { %v9315_v33 = vpop.f32.mrb[191].mxu1 }
0x1e89   : > { %v14081_v19 = vpack.c.bf16 %v13425_v29, %v9315_v33 }
0x1e8b   : > { %14082 = vmatpush3.bf16.msra.mxu1 %v14081_v19 }
0x1e8c   : > { %14090 = vmatprep.subr.bf16.mxu1 %v14089_v36 }
0x1e8e   : > { %13444 = vmatmul.mubr.msk.f32.vlgmr.msra.gmra.mrb[194].mxu1 %vm185_vm1, %v9326_v39 }
0x1e8f   : > { %14092 = vmatpush3.bf16.msra.mxu1 %v14089_v36 }
0x1f61   : > { %v9470_v59 = vpop.f32.mrb[194].mxu1 }
0x1f62   : > { %v13445_v8 = vpop.f32.mrb[195].mxu1  ;;  %13459 = vmatprep.subr.msk.mxu0 %vm9569_vm14, %v9470_v59 }
0x1f63   : > { %13460 = vmatpush3.msk.msra.mxu0 %vm9569_vm14, %v9470_v59  ;;  %v9890_v59 = vld [vmem:[%s17044_s2 + $0x678] sm:$0xff]  ;;  %v9892_v8 = vld [vmem:[%s17044_s2 + $0x688] sm:$0xff] }
0x1f64   : > { %13462 = vmatmul.mubr.msk.f32.vlgmr.msra.gmra.mrb[122].mxu0 %vm9556_vm5, %v9553_v24  ;;  %13467 = vmatprep.subr.msk.mxu0 %vm9569_vm14, %v16759_v35  ;;  %v9891_v24 = vld [vmem:[%s17044_s2 + $0x680] sm:$0xff] }
0x1f65   : > { %13464 = vmatprep.mubr.msk.f32.mxu0 %vm9556_vm5, %v9554_v7  ;;  %13468 = vmatpush3.msk.msra.mxu0 %vm9569_vm14, %v16759_v35 }
0x1f66   : > { %14102 = vmatprep.subr.bf16.mxu0 %v14101_v54 }
0x1f68   : > { %13465 = vmatmul.mubr.msk.f32.gmra.mrb[124].mxu0 %vm9556_vm5, %v9555_v63 }
0x1f69   : > { %13469 = vmatprep.mubr.msk.f32.mxu0 %vm9556_vm5, %v9548_v43 }
0x1f6c   : > { %13470 = vmatmul.mubr.msk.f32.vlgmr.msra.gmra.mrb[122].mxu0 %vm9556_vm5, %v9549_v32 }
0x1f6d   : > { %13472 = vmatprep.mubr.msk.f32.mxu0 %vm9556_vm5, %v9550_v11  ;;  %14104 = vmatpush3.bf16.msra.mxu0 %v14101_v54  ;;  %v10121_v11 = vld [vmem:[%s17044_s2 + $0x6c0] sm:$0xff] }
0x1f70   : > { %13473 = vmatmul.mubr.msk.f32.gmra.mrb[124].mxu0 %vm9556_vm5, %v9551_v16  ;;  %v10222_v16 = vld [vmem:[%s17044_s2 + $0x6e0] sm:$0xff] }
0x1f71   : > { %v14113_v13 = vpack.c.bf16 %v10223_v45, %v10222_v16 }
0x1f73   : > { %14114 = vmatprep.subr.bf16.mxu0 %v14113_v13 }
0x203f   : > { %v13471_v52 = vpop.f32.mrb[122].mxu0 }
0x2040   : > { %v9739_v56 = vpop.f32.mrb[123].mxu0 }
0x2041   : > { %13479 = vmatprep.mubr.msk.f32.mxu1 %vm185_vm1, %v9739_v56 }
0x2042   : > { %13480 = vmatmul.mubr.msk.f32.vlgmr.msra.gmra.mrb[196].mxu1 %vm185_vm1, %v13471_v52 }
0x2043   : > { %v13474_v57 = vpop.f32.mrb[124].mxu0 }
0x2044   : > { %v9749_v26 = vpop.f32.mrb[125].mxu0 }
0x2045   : > { %13482 = vmatprep.mubr.msk.f32.mxu1 %vm185_vm1, %v9749_v26  ;;  %v10123_v26 = vld [vmem:[%s17044_s2 + $0x6d0] sm:$0xff] }
0x2046   : > { %13483 = vmatmul.mubr.msk.f32.gmra.mrb[198].mxu1 %vm185_vm1, %v13474_v57  ;;  %v10122_v57 = vld [vmem:[%s17044_s2 + $0x6c8] sm:$0xff] }
0x2047   : > { %13493 = vmatprep.mubr.msk.f32.mxu1 %vm293_vm2, %v9889_v60  ;;  %v10124_v60 = vld [vmem:[%s17044_s2 + $0x6d8] sm:$0xff] }
0x2115   : > { %v13481_v17 = vpop.f32.mrb[196].mxu1 }
0x2116   : > { %v9868_v18 = vadd.f32 %v13481_v17, %v9772_v12  ;;  %v9862_v31 = vpop.f32.mrb[197].mxu1  ;;  %v10458_v17 = vld [vmem:[%s17044_s2 + $0x730] sm:$0xff] }
0x2117   : > { %v9863_v20 = vadd.f32 %v9862_v31, %v9767_v41  ;;  %v10459_v41 = vld [vmem:[%s17044_s2 + $0x738] sm:$0xff]  ;;  %v10236_v31 = vpop.permute.xlu0 %10235 }
0x2118   : > { %v9882_v21 = vmul.f32 0.999995, %v9868_v18  ;;  %v14125_v18 = vpack.c.bf16 %v10459_v41, %v10458_v17  ;;  %v10590_v41 = vld [vmem:[%s17044_s2 + $0x768] sm:$0xff] }
0x2119   : > { %v9881_v23 = vmul.f32 0.999995, %v9863_v20  ;;  %v13484_v14 = vpop.f32.mrb[198].mxu1  ;;  %v10231_v20 = vpop.permute.xlu1 %10230 }
0x211a   : > { %14556 = vtanh.f32 %v9882_v21  ;;  %v9878_v48 = vadd.f32 %v13484_v14, %v9782_v40  ;;  %v9872_v3 = vpop.f32.mrb[199].mxu1 }
0x211b   : > { %14558 = vtanh.f32 %v9881_v23  ;;  %v9873_v29 = vadd.f32 %v9872_v3, %v9777_v15  ;;  %v10357_v15 = vld [vmem:[%s17044_s2 + $0x710] sm:$0xff]  ;;  %v10246_v3 = vpop.permute.xlu0 %10245 }
0x211c   : > { %v9884_v33 = vmul.f32 0.999995, %v9878_v48 }
0x211d   : > { %v9883_v19 = vmul.f32 0.999995, %v9873_v29 }
0x211e   : > { %14560 = vtanh.f32 %v9884_v33 }
0x211f   : > { %14562 = vtanh.f32 %v9883_v19  ;;  %v10241_v19 = vpop.permute.xlu1 %10240 }
0x2124   : > { %v16878_v39 = vpop.eup %14556 }
0x2125   : > { %v16880_v30 = vpop.eup %14558 }
0x2126   : > { %v14093_v37 = vpack.c.bf16 %v16878_v39, %v16880_v30 }
0x2128   : > { %v16884_v5 = vpop.eup %14560  ;;  %14094 = vmatprep.subr.bf16.mxu1 %v14093_v37 }
0x2129   : > { %v16886_v0 = vpop.eup %14562  ;;  %14096 = vmatpush3.bf16.msra.mxu1 %v14093_v37 }
0x212a   : > { %v14097_v36 = vpack.c.bf16 %v16884_v5, %v16886_v0 }
0x212c   : > { %14098 = vmatprep.subr.bf16.mxu1 %v14097_v36 }
0x212d   : > { %14100 = vmatpush3.bf16.msra.mxu1 %v14097_v36 }
0x2130   : > { %13494 = vmatmul.mubr.msk.f32.vlgmr.msra.gmra.mrb[200].mxu1 %vm293_vm2, %v9890_v59 }
0x2131   : > { %13496 = vmatprep.mubr.msk.f32.mxu1 %vm293_vm2, %v9891_v24 }
0x2134   : > { %13497 = vmatmul.mubr.msk.f32.gmra.mrb[202].mxu1 %vm293_vm2, %v9892_v8 }
0x2135   : > { %13517 = vmatprep.mubr.msk.f32.mxu1 %vm293_vm2, %v10121_v11 }
0x2203   : > { %v13495_v7 = vpop.f32.mrb[200].mxu1 }
0x2204   : > { %v9971_v63 = vpop.f32.mrb[201].mxu1 }
0x2205   : > { %13503 = vmatprep.mubr.msk.f32.mxu0 %vm185_vm1, %v9971_v63 }
0x2206   : > { %13504 = vmatmul.mubr.msk.f32.vlgmr.msra.gmra.mrb[126].mxu0 %vm185_vm1, %v13495_v7 }
0x2207   : > { %v13498_v43 = vpop.f32.mrb[202].mxu1  ;;  %14116 = vmatpush3.bf16.msra.mxu0 %v14113_v13 }
0x2208   : > { %v9981_v32 = vpop.f32.mrb[203].mxu1  ;;  %14126 = vmatprep.subr.bf16.mxu0 %v14125_v18 }
0x2209   : > { %13506 = vmatprep.mubr.msk.f32.mxu0 %vm185_vm1, %v9981_v32 }
0x220a   : > { %13507 = vmatmul.mubr.msk.f32.gmra.mrb[128].mxu0 %vm185_vm1, %v13498_v43 }
0x22d9   : > { %v13505_v28 = vpop.f32.mrb[126].mxu0 }
0x22da   : > { %v10100_v50 = vadd.f32 %v13505_v28, %v10004_v51  ;;  %v10094_v55 = vpop.f32.mrb[127].mxu0  ;;  %v10359_v51 = vld [vmem:[%s17044_s2 + $0x720] sm:$0xff] }
0x22db   : > { %v10095_v34 = vadd.f32 %v10094_v55, %v9999_v22  ;;  %v10589_v55 = vld [vmem:[%s17044_s2 + $0x760] sm:$0xff] }
0x22dc   : > { %v10114_v9 = vmul.f32 0.999995, %v10100_v50 }
0x22dd   : > { %v10113_v46 = vmul.f32 0.999995, %v10095_v34  ;;  %v13508_v58 = vpop.f32.mrb[128].mxu0  ;;  %v10690_v34 = vld [vmem:[%s17044_s2 + $0x780] sm:$0xff] }
0x22de   : > { %14564 = vtanh.f32 %v10114_v9  ;;  %v10110_v53 = vadd.f32 %v13508_v58, %v10014_v38  ;;  %v10104_v44 = vpop.f32.mrb[129].mxu0  ;;  %v10691_v9 = vld [vmem:[%s17044_s2 + $0x788] sm:$0xff]  ;;  %v10467_v58 = vpop.permute.xlu1 %10466 }
0x22df   : > { %14566 = vtanh.f32 %v10113_v46  ;;  %v10105_v62 = vadd.f32 %v10104_v44, %v10009_v25  ;;  %v14137_v38 = vpack.c.bf16 %v10691_v9, %v10690_v34  ;;  %v10472_v46 = vpop.permute.xlu0 %10471  ;;  %v10899_v34 = vld [vmem:[%s17044_s2 + $0x7b8] sm:$0xff] }
0x22e0   : > { %v10116_v49 = vmul.f32 0.999995, %v10110_v53 }
0x22e1   : > { %v10115_v61 = vmul.f32 0.999995, %v10105_v62 }
0x22e2   : > { %14568 = vtanh.f32 %v10116_v49 }
0x22e3   : > { %14570 = vtanh.f32 %v10115_v61 }
0x22e8   : > { %v14565_v1 = vpop.eup %14564 }
0x22e9   : > { %v14567_v42 = vpop.eup %14566 }
0x22ea   : > { %v14105_v6 = vpack.c.bf16 %v14565_v1, %v14567_v42  ;;  %v10482_v1 = vpop.permute.xlu0 %10481 }
0x22ec   : > { %v14569_v47 = vpop.eup %14568  ;;  %14106 = vmatprep.subr.bf16.mxu1 %v14105_v6 }
0x22ed   : > { %v14571_v52 = vpop.eup %14570  ;;  %14108 = vmatpush3.bf16.msra.mxu1 %v14105_v6 }
0x22ee   : > { %v14109_v56 = vpack.c.bf16 %v14569_v47, %v14571_v52  ;;  %v10477_v47 = vpop.permute.xlu1 %10476 }
0x22f0   : > { %14110 = vmatprep.subr.bf16.mxu1 %v14109_v56 }
0x22f1   : > { %14112 = vmatpush3.bf16.msra.mxu1 %v14109_v56 }
0x22f4   : > { %13518 = vmatmul.mubr.msk.f32.vlgmr.msra.gmra.mrb[204].mxu1 %vm293_vm2, %v10122_v57 }
0x22f5   : > { %13520 = vmatprep.mubr.msk.f32.mxu1 %vm293_vm2, %v10123_v26 }
0x22f8   : > { %13521 = vmatmul.mubr.msk.f32.gmra.mrb[206].mxu1 %vm293_vm2, %v10124_v60 }
0x22f9   : > { %13541 = vmatprep.mubr.msk.f32.mxu1 %vm293_vm2, %v10357_v15 }
0x23c7   : > { %v13519_v27 = vpop.f32.mrb[204].mxu1 }
0x23c8   : > { %v10203_v10 = vpop.f32.mrb[205].mxu1 }
0x23c9   : > { %13527 = vmatprep.mubr.msk.f32.mxu0 %vm185_vm1, %v10203_v10 }
0x23ca   : > { %13528 = vmatmul.mubr.msk.f32.vlgmr.msra.gmra.mrb[130].mxu0 %vm185_vm1, %v13519_v27 }
0x23cb   : > { %v13522_v54 = vpop.f32.mrb[206].mxu1  ;;  %14128 = vmatpush3.bf16.msra.mxu0 %v14125_v18  ;;  %v10591_v18 = vld [vmem:[%s17044_s2 + $0x770] sm:$0xff] }
0x23cc   : > { %v10213_v12 = vpop.f32.mrb[207].mxu1  ;;  %14138 = vmatprep.subr.bf16.mxu0 %v14137_v38 }
0x23cd   : > { %13530 = vmatprep.mubr.msk.f32.mxu0 %vm185_vm1, %v10213_v12 }
0x23ce   : > { %13531 = vmatmul.mubr.msk.f32.gmra.mrb[132].mxu0 %vm185_vm1, %v13522_v54 }
0x249d   : > { %v13529_v21 = vpop.f32.mrb[130].mxu0 }
0x249e   : > { %v10332_v40 = vadd.f32 %v13529_v21, %v10236_v31  ;;  %v10326_v23 = vpop.f32.mrb[131].mxu0  ;;  %v10592_v31 = vld [vmem:[%s17044_s2 + $0x778] sm:$0xff] }
0x249f   : > { %v10327_v14 = vadd.f32 %v10326_v23, %v10231_v20 }
0x24a0   : > { %v10346_v48 = vmul.f32 0.999995, %v10332_v40 }
0x24a1   : > { %v10345_v29 = vmul.f32 0.999995, %v10327_v14  ;;  %v13532_v33 = vpop.f32.mrb[132].mxu0  ;;  %v10704_v14 = vpop.permute.xlu0 %10703 }
0x24a2   : > { %14572 = vtanh.f32 %v10346_v48  ;;  %v10342_v37 = vadd.f32 %v13532_v33, %v10246_v3  ;;  %v10336_v36 = vpop.f32.mrb[133].mxu0  ;;  %v10699_v48 = vpop.permute.xlu1 %10698 }
0x24a3   : > { %14574 = vtanh.f32 %v10345_v29  ;;  %v10337_v59 = vadd.f32 %v10336_v36, %v10241_v19 }
0x24a4   : > { %v10348_v24 = vmul.f32 0.999995, %v10342_v37 }
0x24a5   : > { %v10347_v8 = vmul.f32 0.999995, %v10337_v59  ;;  %v10714_v36 = vpop.permute.xlu0 %10713 }
0x24a6   : > { %14576 = vtanh.f32 %v10348_v24 }
0x24a7   : > { %14578 = vtanh.f32 %v10347_v8  ;;  %v10709_v8 = vpop.permute.xlu1 %10708 }
0x24ac   : > { %v14573_v7 = vpop.eup %14572 }
0x24ad   : > { %v14575_v63 = vpop.eup %14574  ;;  %v16943_v43 = vadd.f32 %v14573_v7, %v16878_v39 }
0x24ae   : > { %v16946_v32 = vadd.f32 %v14575_v63, %v16880_v30  ;;  %v10358_v30 = vld [vmem:[%s17044_s2 + $0x718] sm:$0xff] }
0x24b0   : > { %v14577_v11 = vpop.eup %14576  ;;  %v14117_v16 = vpack.c.bf16 %v16943_v43, %v16946_v32 }
0x24b1   : > { %v14579_v45 = vpop.eup %14578  ;;  %v16951_v13 = vadd.f32 %v14577_v11, %v16884_v5  ;;  %v10360_v5 = vld [vmem:[%s17044_s2 + $0x728] sm:$0xff] }
0x24b2   : > { %14118 = vmatprep.subr.bf16.mxu1 %v14117_v16  ;;  %v16954_v22 = vadd.f32 %v14579_v45, %v16886_v0 }
0x24b3   : > { %14120 = vmatpush3.bf16.msra.mxu1 %v14117_v16 }
0x24b4   : > { %v14121_v39 = vpack.c.bf16 %v16951_v13, %v16954_v22 }
0x24b6   : > { %14122 = vmatprep.subr.bf16.mxu1 %v14121_v39 }
0x24b7   : > { %14124 = vmatpush3.bf16.msra.mxu1 %v14121_v39 }
0x24ba   : > { %13542 = vmatmul.mubr.msk.f32.vlgmr.msra.gmra.mrb[208].mxu1 %vm293_vm2, %v10358_v30 }
0x24bb   : > { %13544 = vmatprep.mubr.msk.f32.mxu1 %vm293_vm2, %v10359_v51 }
0x24be   : > { %13545 = vmatmul.mubr.msk.f32.gmra.mrb[210].mxu1 %vm293_vm2, %v10360_v5 }
0x24bf   : > { %13565 = vmatprep.mubr.msk.f32.mxu1 %vm293_vm2, %v10589_v55 }
0x258d   : > { %v13543_v0 = vpop.f32.mrb[208].mxu1 }
0x258e   : > { %v10439_v25 = vpop.f32.mrb[209].mxu1 }
0x258f   : > { %13551 = vmatprep.mubr.msk.f32.mxu0 %vm185_vm1, %v10439_v25 }
0x2590   : > { %13552 = vmatmul.mubr.msk.f32.vlgmr.msra.gmra.mrb[134].mxu0 %vm185_vm1, %v13543_v0 }
0x2591   : > { %v13546_v28 = vpop.f32.mrb[210].mxu1  ;;  %14140 = vmatpush3.bf16.msra.mxu0 %v14137_v38 }
0x2592   : > { %v10449_v50 = vpop.f32.mrb[211].mxu1 }
0x2593   : > { %13554 = vmatprep.mubr.msk.f32.mxu0 %vm185_vm1, %v10449_v50 }
0x2594   : > { %13555 = vmatmul.mubr.msk.f32.gmra.mrb[136].mxu0 %vm185_vm1, %v13546_v28 }
0x2663   : > { %v13553_v53 = vpop.f32.mrb[134].mxu0 }
0x2664   : > { %v10568_v44 = vadd.f32 %v13553_v53, %v10472_v46  ;;  %v10562_v62 = vpop.f32.mrb[135].mxu0  ;;  %v10981_v46 = vld [vmem:[%s17044_s2 + $0x5f0] sm:$0xff] }
0x2665   : > { %v10563_v49 = vadd.f32 %v10562_v62, %v10467_v58  ;;  %v10905_v58 = vpop.permute.xlu1 %10904 }
0x2666   : > { %v10582_v61 = vmul.f32 0.999995, %v10568_v44 }
0x2667   : > { %v10581_v42 = vmul.f32 0.999995, %v10563_v49  ;;  %v13556_v6 = vpop.f32.mrb[136].mxu0 }
0x2668   : > { %14580 = vtanh.f32 %v10582_v61  ;;  %v10578_v52 = vadd.f32 %v13556_v6, %v10482_v1  ;;  %v10572_v56 = vpop.f32.mrb[137].mxu0 }
0x2669   : > { %14582 = vtanh.f32 %v10581_v42  ;;  %v10573_v57 = vadd.f32 %v10572_v56, %v10477_v47 }
0x266a   : > { %v10584_v26 = vmul.f32 0.999995, %v10578_v52 }
0x266b   : > { %v10583_v60 = vmul.f32 0.999995, %v10573_v57 }
0x266c   : > { %14584 = vtanh.f32 %v10584_v26 }
0x266d   : > { %14586 = vtanh.f32 %v10583_v60 }
0x2672   : > { %v14581_v27 = vpop.eup %14580 }
0x2673   : > { %v14583_v10 = vpop.eup %14582 }
0x2674   : > { %v14129_v54 = vpack.c.bf16 %v14581_v27, %v14583_v10 }
0x2676   : > { %v14585_v12 = vpop.eup %14584  ;;  %14130 = vmatprep.subr.bf16.mxu1 %v14129_v54 }
0x2677   : > { %v14587_v15 = vpop.eup %14586  ;;  %14132 = vmatpush3.bf16.msra.mxu1 %v14129_v54 }
0x2678   : > { %v14133_v17 = vpack.c.bf16 %v14585_v12, %v14587_v15 }
0x267a   : > { %14134 = vmatprep.subr.bf16.mxu1 %v14133_v17 }
0x267b   : > { %14136 = vmatpush3.bf16.msra.mxu1 %v14133_v17 }
0x267c   : > { %14141 = vmatprep.subr.bf16.mxu1 %v14604_v2 }
0x267e   : > { %13566 = vmatmul.mubr.msk.f32.vlgmr.msra.gmra.mrb[212].mxu1 %vm293_vm2, %v10590_v41 }
0x267f   : > { %13568 = vmatprep.mubr.msk.f32.mxu1 %vm293_vm2, %v10591_v18 }
0x2682   : > { %13569 = vmatmul.mubr.msk.f32.gmra.mrb[214].mxu1 %vm293_vm2, %v10592_v31 }
0x2683   : > { %13589 = vmatprep.mubr.msk.f32.mxu1 %vm14605_vm0, %v14606_v4 }
0x2751   : > { %v13567_v20 = vpop.f32.mrb[212].mxu1 }
0x2752   : > { %v10671_v21 = vpop.f32.mrb[213].mxu1 }
0x2753   : > { %13575 = vmatprep.mubr.msk.f32.mxu0 %vm185_vm1, %v10671_v21 }
0x2754   : > { %13576 = vmatmul.mubr.msk.f32.vlgmr.msra.gmra.mrb[138].mxu0 %vm185_vm1, %v13567_v20 }
0x2755   : > { %v13570_v40 = vpop.f32.mrb[214].mxu1 }
0x2756   : > { %v10681_v23 = vpop.f32.mrb[215].mxu1 }
0x2757   : > { %13578 = vmatprep.mubr.msk.f32.mxu0 %vm185_vm1, %v10681_v23 }
0x2758   : > { %13579 = vmatmul.mubr.msk.f32.gmra.mrb[140].mxu0 %vm185_vm1, %v13570_v40 }
0x2759   : > { %13601 = vmatprep.mubr.msk.f32.mxu0 %vm9556_vm5, %v10981_v46 }
0x2827   : > { %v13577_v3 = vpop.f32.mrb[138].mxu0 }
0x2828   : > { %v10800_v29 = vadd.f32 %v13577_v3, %v10704_v14  ;;  %v10794_v33 = vpop.f32.mrb[139].mxu0 }
0x2829   : > { %v10795_v19 = vadd.f32 %v10794_v33, %v10699_v48 }
0x282a   : > { %v10814_v37 = vmul.f32 0.999995, %v10800_v29 }
0x282b   : > { %v10813_v59 = vmul.f32 0.999995, %v10795_v19  ;;  %v13580_v24 = vpop.f32.mrb[140].mxu0 }
0x282c   : > { %14588 = vtanh.f32 %v10814_v37  ;;  %v10810_v7 = vadd.f32 %v13580_v24, %v10714_v36  ;;  %v10804_v63 = vpop.f32.mrb[141].mxu0 }
0x282d   : > { %14590 = vtanh.f32 %v10813_v59  ;;  %v10805_v11 = vadd.f32 %v10804_v63, %v10709_v8 }
0x282e   : > { %v10816_v16 = vmul.f32 0.999995, %v10810_v7 }
0x282f   : > { %v10815_v45 = vmul.f32 0.999995, %v10805_v11 }
0x2830   : > { %14592 = vtanh.f32 %v10816_v16 }
0x2831   : > { %14594 = vtanh.f32 %v10815_v45 }
0x2836   : > { %v14589_v39 = vpop.eup %14588 }
0x2837   : > { %v14591_v30 = vpop.eup %14590  ;;  %v10822_v51 = vadd.f32 %v14589_v39, %v16943_v43  ;;  %v10900_v43 = vld [vmem:[%s17044_s2 + $0x7c0] sm:$0xff] }
0x2838   : > { %v10821_v5 = vadd.f32 %v14591_v30, %v16946_v32  ;;  %v10825_v32 = vld [vmem:[%s17044_s2 + $0x7b0] sm:$0xff] }
0x283a   : > { %v14593_v0 = vpop.eup %14592  ;;  %v14142_v25 = vpack.c.bf16 %v10822_v51, %v10821_v5 }
0x283b   : > { %v14595_v28 = vpop.eup %14594  ;;  %v10824_v50 = vadd.f32 %v14593_v0, %v16951_v13  ;;  %v14148_v13 = vpack.c.bf16 %v10900_v43, %v10899_v34 }
0x283c   : > { %14143 = vmatpush3.bf16.msra.mxu1 %v14142_v25  ;;  %v10823_v55 = vadd.f32 %v14595_v28, %v16954_v22 }
0x283d   : > { %14144 = vmatprep.subr.bf16.mxu1 %v14604_v2 }
0x283e   : > { %v14145_v9 = vpack.c.bf16 %v10824_v50, %v10823_v55 }
0x2840   : > { %14146 = vmatpush3.bf16.msra.mxu1 %v14145_v9 }
0x2841   : > { %14147 = vmatprep.subr.bf16.mxu1 %v14604_v2 }
0x2843   : > { %13590 = vmatmul.mubr.msk.f32.vlgmr.msra.gmra.mrb[216].mxu1 %vm293_vm2, %v10825_v32 }
0x2844   : > { %14149 = vmatpush3.bf16.msra.mxu1 %v14148_v13  ;;  %13596 = vmatprep.mubr.msk.f32.mxu1 %vm14605_vm0, %v14606_v4  ;;  %v10982_v4 = vld [vmem:[%s17044_s2 + $0x5f8] sm:$0x3]  ;;  %vm11068_vm0 = vcmask 123904  }
0x2916   : > { %v10895_v22 = vpop.f32.mrb[216].mxu1 }
0x2917   : > { %v13591_v38 = vpop.f32.mrb[217].mxu1  ;;  %13597 = vmatmul.mubr.msk.f32.vlgmr.msra.gmra.mrb[218].mxu1 %vm185_vm1, %v10895_v22 }
0x29ea   : > { %v10976_v2 = vpop.f32.mrb[218].mxu1 }
0x29eb   : > { %v10977_v53 = vadd.f32 %v10976_v2, %v10905_v58  ;;  %v13598_v44 = vpop.f32.mrb[219].mxu1 }
0x29ed   : > { %v10980_v62 = vadd.f32 %v10977_v53, %v16759_v35 }
0x29ef   : > { %13599 = vmatprep.subr.msk.mxu0 %vm9569_vm14, %v10980_v62 }
0x29f0   : > { %13600 = vmatpush3.msk.msra.mxu0 %vm9569_vm14, %v10980_v62 }
0x29f1   : > { %13602 = vmatmul.mubr.msk.f32.vlgmr.msra.gmra.mrb[142].mxu0 %vm9556_vm5, %v10982_v4 }
0x2ac4   : > { %v13603_v49 = vpop.f32.mrb[142].mxu0 }
0x2ac5   : > { %11069 = vst.msk [vmem:[%s172_s8 + $0x8] sm:$0x3] %vm11068_vm0, %v13603_v49  ;;  %v11058_v35 = vpop.f32.mrb[143].mxu0 }
0x2ac6   : > { %11067 = vst.msk [vmem:[%s172_s8] sm:$0xff] %vm185_vm1, %v11058_v35 }
0x2ac7 PF: > { %s13_s12 = sadd.s32 1, %s14602_s12  }
0x2ac8   : > { %p10_p5 = scmp.ge.s32.totalorder %s13_s12, 4  }
0x2aca   :  { %12 = sbr.rel (!%p10_p5) target bundleno = 1 (0x1), region = 62 }

</bundles_post_ra>
